<compile_context>
chip_gen: v5e
topology: v5e:2x2
jax: 0.10.0
libtpu: 0.0.40
codegen_flags: <defaults>
</compile_context>

<pallas_src>
import math

import numpy as np

import jax
import jax.numpy as jnp
from jax.experimental import pallas as pl
from jax.experimental.pallas import tpu as pltpu


# ----------------------------------------------------------------------------
# Pallas kernels
# ----------------------------------------------------------------------------
def _conv_pool_relu_kernel(x_ref, m_ref, s_ref, bias_ref, pooled_ref, idx_ref):
    """Fused: valid 5x5 conv -> 2x2 max-pool (+argmax) -> +bias -> ReLU.

    x_ref:     (H, C*W)        one sample, packed rows = image rows.
    m_ref:     (K, C*W, 2*OC*OWp)  banded weight matrices (one per kernel row).
    s_ref:     (2K, OHp, H)    0/1 row-selection matrices (pool row parity dy).
    bias_ref:  (1, OC*OWp)
    pooled_ref:(OHp, OC*OWp)   relu(maxpool(conv)) in packed layout.
    idx_ref:   (OHp, OC*OWp)   window-local argmax (0..3, row-major in window).
    """
    K = m_ref.shape[0]
    half = bias_ref.shape[1]
    OHp = pooled_ref.shape[0]

    x = x_ref[...]
    acc0 = jnp.zeros((OHp, 2 * half), jnp.float32)   # pool rows dy = 0
    acc1 = jnp.zeros((OHp, 2 * half), jnp.float32)   # pool rows dy = 1
    for i in range(K):
        t = jnp.dot(x, m_ref[i], preferred_element_type=jnp.float32)
        acc0 = acc0 + jnp.dot(s_ref[i], t, preferred_element_type=jnp.float32)
        acc1 = acc1 + jnp.dot(s_ref[K + i], t, preferred_element_type=jnp.float32)

    # Window elements (dy, dx) in PyTorch row-major window order.
    w00 = acc0[:, :half]
    w01 = acc0[:, half:]
    w10 = acc1[:, :half]
    w11 = acc1[:, half:]
    m = jnp.maximum(jnp.maximum(w00, w01), jnp.maximum(w10, w11))
    idx = jnp.where(w00 == m, 0,
                    jnp.where(w01 == m, 1,
                              jnp.where(w10 == m, 2, 3)))
    # bias is constant over the 2x2 window -> add after the max (same result).
    pooled_ref[...] = jnp.maximum(m + bias_ref[...], 0.0)
    idx_ref[...] = idx.astype(jnp.int32)


def _unpool_deconv_relu_kernel(z_ref, idx_ref, sc_ref, p_ref, d_ref, bias_ref,
                               out_ref):
    """Fused: 2x2 max-unpool -> ConvTranspose2d (as padded conv) -> ReLU.

    z_ref:   (Hp, C*Wp)      values to scatter (one sample, packed).
    idx_ref: (Hp, C*Wp)      window-local argmax recorded by the encoder.
    sc_ref:  (2, C*Wp, C*Wpad)   column scatter (unpool + W padding), per dx.
    p_ref:   (2K, OH, Hp)    row gather (unpool + H padding + conv row tap).
    d_ref:   (K, C*Wpad, OC*OW)  banded deconv weight matrices.
    bias_ref:(1, OC*OW)
    out_ref: (OH, OC*OW)
    """
    K = d_ref.shape[0]
    Hp, _ = z_ref.shape
    CWpad = sc_ref.shape[2]
    OH, ncol = out_ref.shape

    vals = z_ref[...]
    idx = idx_ref[...]

    # Rows of the padded, unpooled image grouped by row parity dy.
    a_rows = []
    for dy in range(2):
        acc = jnp.zeros((Hp, CWpad), jnp.float32)
        for dx in range(2):
            masked = jnp.where(idx == (dy * 2 + dx), vals, 0.0)
            acc = acc + jnp.dot(masked, sc_ref[dx],
                                preferred_element_type=jnp.float32)
        a_rows.append(acc)

    y = jnp.zeros((OH, ncol), jnp.float32)
    for i in range(K):
        b_i = (jnp.dot(p_ref[i], a_rows[0], preferred_element_type=jnp.float32)
               + jnp.dot(p_ref[K + i], a_rows[1],
                         preferred_element_type=jnp.float32))
        y = y + jnp.dot(b_i, d_ref[i], preferred_element_type=jnp.float32)

    out_ref[...] = jnp.maximum(y + bias_ref[...], 0.0)


def _fc_stack_kernel(x_ref, w1_ref, b1_ref, w2_ref, b2_ref, w3_ref, b3_ref,
                     w4_ref, b4_ref, nll_ref, lsm_ref, dec_ref):
    """Fused fc1->relu->fc2->relu (x_NLL) -> log_softmax, fc3->relu->fc4->relu."""
    x = x_ref[...]
    h1 = jnp.maximum(
        jnp.dot(x, w1_ref[...], preferred_element_type=jnp.float32) + b1_ref[...],
        0.0)
    # TODO(synk): F.dropout(training=True) omitted -> identity (eval semantics).
    x_nll = jnp.maximum(
        jnp.dot(h1, w2_ref[...], preferred_element_type=jnp.float32) + b2_ref[...],
        0.0)

    mx = jnp.max(x_nll, axis=1, keepdims=True)
    sh = x_nll - mx
    lse = jnp.log(jnp.sum(jnp.exp(sh), axis=1, keepdims=True))

    h3 = jnp.maximum(
        jnp.dot(x_nll, w3_ref[...], preferred_element_type=jnp.float32)
        + b3_ref[...], 0.0)
    dec = jnp.maximum(
        jnp.dot(h3, w4_ref[...], preferred_element_type=jnp.float32)
        + b4_ref[...], 0.0)

    nll_ref[...] = x_nll
    lsm_ref[...] = sh - lse
    dec_ref[...] = dec


# ----------------------------------------------------------------------------
# pallas_call wrappers
# ----------------------------------------------------------------------------
_PARALLEL = pltpu.CompilerParams(dimension_semantics=("parallel",))


def conv_pool_relu(xp, m, s, bias_row):
    """xp: (N, H, C*W) packed. Returns pooled (N, OHp, OC*OWp), idx (same, i32)."""
    n, h, cw = xp.shape
    k = m.shape[0]
    ncol = m.shape[2]
    half = ncol // 2
    ohp = s.shape[1]
    return pl.pallas_call(
        _conv_pool_relu_kernel,
        out_shape=(
            jax.ShapeDtypeStruct((n, ohp, half), jnp.float32),
            jax.ShapeDtypeStruct((n, ohp, half), jnp.int32),
        ),
        grid=(n,),
        in_specs=[
            pl.BlockSpec((None, h, cw), lambda i: (i, 0, 0)),
            pl.BlockSpec((k, cw, ncol), lambda i: (0, 0, 0)),
            pl.BlockSpec((2 * k, ohp, h), lambda i: (0, 0, 0)),
            pl.BlockSpec((1, half), lambda i: (0, 0)),
        ],
        out_specs=(
            pl.BlockSpec((None, ohp, half), lambda i: (i, 0, 0)),
            pl.BlockSpec((None, ohp, half), lambda i: (i, 0, 0)),
        ),
        compiler_params=_PARALLEL,
    )(xp.astype(jnp.float32), m, s, bias_row)


def unpool_deconv_relu(z, idx, sc, p, d, bias_row):
    """z, idx: (N, Hp, C*Wp) packed. Returns (N, OH, OC*OW) packed."""
    n, hp, cwp = z.shape
    k = d.shape[0]
    cwpad = sc.shape[2]
    oh = p.shape[1]
    ncol = d.shape[2]
    return pl.pallas_call(
        _unpool_deconv_relu_kernel,
        out_shape=jax.ShapeDtypeStruct((n, oh, ncol), jnp.float32),
        grid=(n,),
        in_specs=[
            pl.BlockSpec((None, hp, cwp), lambda i: (i, 0, 0)),
            pl.BlockSpec((None, hp, cwp), lambda i: (i, 0, 0)),
            pl.BlockSpec((2, cwp, cwpad), lambda i: (0, 0, 0)),
            pl.BlockSpec((2 * k, oh, hp), lambda i: (0, 0, 0)),
            pl.BlockSpec((k, cwpad, ncol), lambda i: (0, 0, 0)),
            pl.BlockSpec((1, ncol), lambda i: (0, 0)),
        ],
        out_specs=pl.BlockSpec((None, oh, ncol), lambda i: (i, 0, 0)),
        compiler_params=_PARALLEL,
    )(z.astype(jnp.float32), idx, sc, p, d, bias_row)


def fc_stack(xf, w1, b1, w2, b2, w3, b3, w4, b4):
    nb = xf.shape[0]
    n_nll = w2.shape[1]
    n_dec = w4.shape[1]

    def full(shape):
        return pl.BlockSpec(shape, lambda i: (0, 0))

    return pl.pallas_call(
        _fc_stack_kernel,
        out_shape=(
            jax.ShapeDtypeStruct((nb, n_nll), jnp.float32),
            jax.ShapeDtypeStruct((nb, n_nll), jnp.float32),
            jax.ShapeDtypeStruct((nb, n_dec), jnp.float32),
        ),
        grid=(1,),
        in_specs=[full(xf.shape), full(w1.shape), full(b1.shape),
                  full(w2.shape), full(b2.shape), full(w3.shape),
                  full(b3.shape), full(w4.shape), full(b4.shape)],
        out_specs=(full((nb, n_nll)), full((nb, n_nll)), full((nb, n_dec))),
    )(xf.astype(jnp.float32), w1, b1, w2, b2, w3, b3, w4, b4)


# ----------------------------------------------------------------------------
# One-time parameter preparation (banded weight matrices, selection constants,
# pre-transposed fc weights). Runs once, outside the jitted forward.
# ----------------------------------------------------------------------------
def _build_conv_pool_taps(w, w_in, owp):
    """w: (OC, C, K, K). Returns (K, C*W_in, 2*OC*OWp) banded matrices such that
    (X @ M[i])[h, dx*OC*OWp + oc*OWp + wp] = sum_{c,j} X[h, c*W_in + 2wp+dx+j] * w[oc,c,i,j]."""
    oc_n, c_n, k, _ = w.shape
    half = oc_n * owp
    i_ix, oc, c, j, dx, wp = np.meshgrid(
        np.arange(k), np.arange(oc_n), np.arange(c_n), np.arange(k),
        np.arange(2), np.arange(owp), indexing="ij")
    rows = c * w_in + 2 * wp + dx + j
    cols = dx * half + oc * owp + wp
    vals = w[oc, c, i_ix, j].astype(jnp.float32)
    m = jnp.zeros((k, c_n * w_in, 2 * half), jnp.float32)
    return m.at[i_ix.ravel(), rows.ravel(), cols.ravel()].set(vals.ravel())


def _build_conv_taps(w_eff, w_in, ow):
    """w_eff: (OC, C, K, K) effective conv weight. Returns (K, C*W_in, OC*OW)."""
    oc_n, c_n, k, _ = w_eff.shape
    i_ix, oc, c, j, owx = np.meshgrid(
        np.arange(k), np.arange(oc_n), np.arange(c_n), np.arange(k),
        np.arange(ow), indexing="ij")
    rows = c * w_in + owx + j
    cols = oc * ow + owx
    vals = w_eff[oc, c, i_ix, j].astype(jnp.float32)
    d = jnp.zeros((k, c_n * w_in, oc_n * ow), jnp.float32)
    return d.at[i_ix.ravel(), rows.ravel(), cols.ravel()].set(vals.ravel())


def _build_pool_row_select(h, ohp, k):
    """(2K, OHp, H): S[dy*K+i, hp, 2*hp+dy+i] = 1."""
    s = np.zeros((2 * k, ohp, h), np.float32)
    for dy in range(2):
        for i in range(k):
            for hp in range(ohp):
                s[dy * k + i, hp, 2 * hp + dy + i] = 1.0
    return jnp.asarray(s)


def _build_unpool_row_select(oh, hp_n, k, pad):
    """(2K, OH, Hp): P[dy*K+i, oh, hp] = 1 iff oh + i == pad + 2*hp + dy."""
    p = np.zeros((2 * k, oh, hp_n), np.float32)
    for dy in range(2):
        for i in range(k):
            for hp in range(hp_n):
                row = pad + 2 * hp + dy - i
                if 0 <= row < oh:
                    p[dy * k + i, row, hp] = 1.0
    return jnp.asarray(p)


def _build_unpool_col_scatter(c_n, wp_n, pad):
    """(2, C*Wp, C*Wpad): Sc[dx, c*Wp+wp, c*Wpad + pad + 2*wp + dx] = 1."""
    wpad = 2 * wp_n + 2 * pad
    sc = np.zeros((2, c_n * wp_n, c_n * wpad), np.float32)
    for dx in range(2):
        for c in range(c_n):
            for wp in range(wp_n):
                sc[dx, c * wp_n + wp, c * wpad + pad + 2 * wp + dx] = 1.0
    return jnp.asarray(sc)


def prepare_params(p):
    """Precompute kernel-ready operands once (no per-forward weight relayouts)."""
    f32 = jnp.float32
    prep = {
        "conv1": dict(
            M=_build_conv_pool_taps(p["conv1_w"], w_in=28, owp=12),
            S=_build_pool_row_select(h=28, ohp=12, k=5),
            bias=jnp.repeat(p["conv1_b"].astype(f32), 12)[None, :],
        ),
        "conv2": dict(
            M=_build_conv_pool_taps(p["conv2_w"], w_in=12, owp=4),
            S=_build_pool_row_select(h=12, ohp=4, k=5),
            bias=jnp.repeat(p["conv2_b"].astype(f32), 4)[None, :],
        ),
        "fc": dict(
            w1=p["fc1_w"].T.astype(f32), b1=p["fc1_b"].astype(f32)[None, :],
            w2=p["fc2_w"].T.astype(f32), b2=p["fc2_b"].astype(f32)[None, :],
            w3=p["fc3_w"].T.astype(f32), b3=p["fc3_b"].astype(f32)[None, :],
            w4=p["fc4_w"].T.astype(f32), b4=p["fc4_b"].astype(f32)[None, :],
        ),
    }
    # ConvTranspose2d == valid conv of the (K-1)-padded input with the flipped,
    # channel-swapped kernel.
    w_eff1 = jnp.flip(p["deconv1_w"], axis=(2, 3)).transpose(1, 0, 2, 3)  # (10,20,5,5)
    prep["deconv1"] = dict(
        Sc=_build_unpool_col_scatter(c_n=20, wp_n=4, pad=4),
        P=_build_unpool_row_select(oh=12, hp_n=4, k=5, pad=4),
        D=_build_conv_taps(w_eff1, w_in=16, ow=12),
        bias=jnp.repeat(p["deconv1_b"].astype(f32), 12)[None, :],
    )
    w_eff2 = jnp.flip(p["deconv2_w"], axis=(2, 3)).transpose(1, 0, 2, 3)  # (1,10,5,5)
    prep["deconv2"] = dict(
        Sc=_build_unpool_col_scatter(c_n=10, wp_n=12, pad=4),
        P=_build_unpool_row_select(oh=28, hp_n=12, k=5, pad=4),
        D=_build_conv_taps(w_eff2, w_in=32, ow=28),
        bias=jnp.repeat(p["deconv2_b"].astype(f32), 28)[None, :],
    )
    return prep


# ----------------------------------------------------------------------------
# Layout helpers (tiny, only on returned tensors / decoder hand-off)
# ----------------------------------------------------------------------------
def _unpack_nchw(packed, c, h, w):
    """(N, H, C*W) packed -> (N, C, H, W)."""
    n = packed.shape[0]
    return packed.reshape(n, h, c, w).transpose(0, 2, 1, 3)


def _pack_rows(x_nchw):
    """(N, C, H, W) -> (N, H, C*W) packed."""
    n, c, h, w = x_nchw.shape
    return x_nchw.transpose(0, 2, 1, 3).reshape(n, h, c * w)


# ----------------------------------------------------------------------------
# Parameters (deterministic init, shapes as in the PyTorch module)
# ----------------------------------------------------------------------------
def init_params(key):
    ks = jax.random.split(key, 16)

    def u(k, shape, fan_in):
        bound = 1.0 / math.sqrt(fan_in)
        return jax.random.uniform(k, shape, jnp.float32, -bound, bound)

    return {
        "conv1_w": u(ks[0], (10, 1, 5, 5), 1 * 25),
        "conv1_b": u(ks[1], (10,), 1 * 25),
        "conv2_w": u(ks[2], (20, 10, 5, 5), 10 * 25),
        "conv2_b": u(ks[3], (20,), 10 * 25),
        "fc1_w": u(ks[4], (50, 320), 320),
        "fc1_b": u(ks[5], (50,), 320),
        "fc2_w": u(ks[6], (10, 50), 50),
        "fc2_b": u(ks[7], (10,), 50),
        "fc3_w": u(ks[8], (50, 10), 10),
        "fc3_b": u(ks[9], (50,), 10),
        "fc4_w": u(ks[10], (320, 50), 50),
        "fc4_b": u(ks[11], (320,), 50),
        "deconv1_w": u(ks[12], (20, 10, 5, 5), 20 * 25),   # (in, out, K, K)
        "deconv1_b": u(ks[13], (10,), 20 * 25),
        "deconv2_w": u(ks[14], (10, 1, 5, 5), 10 * 25),
        "deconv2_b": u(ks[15], (1,), 10 * 25),
    }


# ----------------------------------------------------------------------------
# Forward pass (mirrors Net.forward) — 5 fused Pallas kernels
# ----------------------------------------------------------------------------
def forward(prep, x):
    n = x.shape[0]
    xp = x.reshape(n, 28, 28).astype(jnp.float32)          # C=1 packed layout

    # conv1 -> maxpool(2, indices) -> relu  (one kernel)
    c1 = prep["conv1"]
    pooled1, idx1 = conv_pool_relu(xp, c1["M"], c1["S"], c1["bias"])   # (N,12,120)
    x_CONVI = _unpack_nchw(pooled1, 10, 12, 12)                         # (N,10,12,12)

    # conv2 -> Dropout2d (identity, eval) -> maxpool(2, indices) -> relu
    c2 = prep["conv2"]
    pooled2, idx2 = conv_pool_relu(pooled1, c2["M"], c2["S"], c2["bias"])  # (N,4,80)
    x_CONVII = _unpack_nchw(pooled2, 20, 4, 4)                              # (N,20,4,4)

    # fc1..fc4 (+ fused log_softmax of x_NLL) in one kernel
    f = prep["fc"]
    xf = x_CONVII.reshape(n, 320)
    x_NLL, log_sm, x_DECONVII = fc_stack(xf, f["w1"], f["b1"], f["w2"], f["b2"],
                                         f["w3"], f["b3"], f["w4"], f["b4"])

    # decoder: unpool(idx2) + deconv1 + relu fused; unpool(idx1) + deconv2 + relu fused
    d1 = prep["deconv1"]
    z2 = _pack_rows(x_DECONVII.reshape(n, 20, 4, 4))                    # (N,4,80)
    dec1_packed = unpool_deconv_relu(z2, idx2, d1["Sc"], d1["P"], d1["D"],
                                     d1["bias"])                        # (N,12,120)
    x_DECONVI = _unpack_nchw(dec1_packed, 10, 12, 12)                   # (N,10,12,12)

    d2 = prep["deconv2"]
    out_packed = unpool_deconv_relu(dec1_packed, idx1, d2["Sc"], d2["P"],
                                    d2["D"], d2["bias"])                # (N,28,28)
    output = out_packed.reshape(n, 1, 28, 28)

    return x_CONVI, x_CONVII, x_DECONVII, x_DECONVI, output, log_sm


# ----------------------------------------------------------------------------
if __name__ == "__main__":
    key = jax.random.PRNGKey(0)
    pkey, xkey = jax.random.split(key)
    params = init_params(pkey)
    prep = prepare_params(params)

    # MNIST-shaped input (28x28 forced by fc1 in_features = 20*4*4 = 320)
    x = jax.random.normal(xkey, (2, 1, 28, 28), dtype=jnp.float32)

    fwd = jax.jit(forward)
    outs = fwd(prep, x)
    jax.block_until_ready(outs)

    x_CONVI, x_CONVII, x_DECONVII, x_DECONVI, output, log_sm = outs
    assert x_CONVI.shape == (2, 10, 12, 12)
    assert x_CONVII.shape == (2, 20, 4, 4)
    assert x_DECONVII.shape == (2, 320)
    assert x_DECONVI.shape == (2, 10, 12, 12)
    assert output.shape == (2, 1, 28, 28)
    assert log_sm.shape == (2, 10)
    print("KERNEL_OK")
</pallas_src>

<mosaic_0001>
module attributes {stable_mosaic.version = 11 : i64} {
  func.func @_conv_pool_relu_kernel(%arg0: i32, %arg1: memref<1x28x28xf32, #tpu.memory_space<vmem>>, %arg2: memref<5x28x240xf32, #tpu.memory_space<vmem>>, %arg3: memref<10x12x28xf32, #tpu.memory_space<vmem>>, %arg4: memref<1x120xf32, #tpu.memory_space<vmem>>, %arg5: memref<1x12x120xf32, #tpu.memory_space<vmem>>, %arg6: memref<1x12x120xi32, #tpu.memory_space<vmem>>) attributes {dimension_semantics = [#tpu.dimension_semantics<parallel>], iteration_bounds = array<i64: 2>, scalar_prefetch = 0 : i64, scratch_operands = 0 : i64, tpu.core_type = #tpu.core_type<tc>, window_params = [{transform_indices = @transform_0, window_bounds = array<i64: 1, 28, 28>}, {pipeline_mode = #tpu.pipeline_mode<synchronous>, transform_indices = @transform_1, window_bounds = array<i64: 5, 28, 240>}, {pipeline_mode = #tpu.pipeline_mode<synchronous>, transform_indices = @transform_2, window_bounds = array<i64: 10, 12, 28>}, {pipeline_mode = #tpu.pipeline_mode<synchronous>, transform_indices = @transform_3, window_bounds = array<i64: 1, 120>}, {transform_indices = @transform_4, window_bounds = array<i64: 1, 12, 120>}, {transform_indices = @transform_5, window_bounds = array<i64: 1, 12, 120>}]} {
    %c0 = arith.constant 0 : index
    %c0_0 = arith.constant 0 : index
    %c0_1 = arith.constant 0 : index
    %0 = vector.load %arg1[%c0, %c0_0, %c0_1] : memref<1x28x28xf32, #tpu.memory_space<vmem>>, vector<1x28x28xf32>
    %1 = vector.shape_cast %0 : vector<1x28x28xf32> to vector<28x28xf32>
    %cst = arith.constant 0.000000e+00 : f32
    %2 = vector.broadcast %cst : f32 to vector<12x240xf32>
    %cst_2 = arith.constant 0.000000e+00 : f32
    %3 = vector.broadcast %cst_2 : f32 to vector<12x240xf32>
    %c0_3 = arith.constant 0 : index
    %c0_4 = arith.constant 0 : index
    %c0_5 = arith.constant 0 : index
    %4 = vector.load %arg2[%c0_3, %c0_4, %c0_5] : memref<5x28x240xf32, #tpu.memory_space<vmem>>, vector<1x28x240xf32>
    %5 = vector.shape_cast %4 : vector<1x28x240xf32> to vector<28x240xf32>
    %cst_6 = arith.constant dense<0.000000e+00> : vector<28x240xf32>
    %6 = tpu.matmul %1, %5, %cst_6 {dimension_numbers = #tpu.dot_dimension_numbers<[1], [0], [0], [1], [0, 0, 1, 1], [], []>} : vector<28x28xf32>, vector<28x240xf32>, vector<28x240xf32> -> vector<28x240xf32>
    %c0_7 = arith.constant 0 : index
    %c0_8 = arith.constant 0 : index
    %c0_9 = arith.constant 0 : index
    %7 = vector.load %arg3[%c0_7, %c0_8, %c0_9] : memref<10x12x28xf32, #tpu.memory_space<vmem>>, vector<1x12x28xf32>
    %8 = vector.shape_cast %7 : vector<1x12x28xf32> to vector<12x28xf32>
    %cst_10 = arith.constant dense<0.000000e+00> : vector<12x240xf32>
    %9 = tpu.matmul %8, %6, %cst_10 {dimension_numbers = #tpu.dot_dimension_numbers<[1], [0], [0], [1], [0, 0, 1, 1], [], []>} : vector<12x28xf32>, vector<28x240xf32>, vector<12x240xf32> -> vector<12x240xf32>
    %10 = arith.addf %2, %9 : vector<12x240xf32>
    %c5 = arith.constant 5 : index
    %c0_11 = arith.constant 0 : index
    %c0_12 = arith.constant 0 : index
    %11 = vector.load %arg3[%c5, %c0_11, %c0_12] : memref<10x12x28xf32, #tpu.memory_space<vmem>>, vector<1x12x28xf32>
    %12 = vector.shape_cast %11 : vector<1x12x28xf32> to vector<12x28xf32>
    %cst_13 = arith.constant dense<0.000000e+00> : vector<12x240xf32>
    %13 = tpu.matmul %12, %6, %cst_13 {dimension_numbers = #tpu.dot_dimension_numbers<[1], [0], [0], [1], [0, 0, 1, 1], [], []>} : vector<12x28xf32>, vector<28x240xf32>, vector<12x240xf32> -> vector<12x240xf32>
    %14 = arith.addf %3, %13 : vector<12x240xf32>
    %c1 = arith.constant 1 : index
    %c0_14 = arith.constant 0 : index
    %c0_15 = arith.constant 0 : index
    %15 = vector.load %arg2[%c1, %c0_14, %c0_15] : memref<5x28x240xf32, #tpu.memory_space<vmem>>, vector<1x28x240xf32>
    %16 = vector.shape_cast %15 : vector<1x28x240xf32> to vector<28x240xf32>
    %cst_16 = arith.constant dense<0.000000e+00> : vector<28x240xf32>
    %17 = tpu.matmul %1, %16, %cst_16 {dimension_numbers = #tpu.dot_dimension_numbers<[1], [0], [0], [1], [0, 0, 1, 1], [], []>} : vector<28x28xf32>, vector<28x240xf32>, vector<28x240xf32> -> vector<28x240xf32>
    %c1_17 = arith.constant 1 : index
    %c0_18 = arith.constant 0 : index
    %c0_19 = arith.constant 0 : index
    %18 = vector.load %arg3[%c1_17, %c0_18, %c0_19] : memref<10x12x28xf32, #tpu.memory_space<vmem>>, vector<1x12x28xf32>
    %19 = vector.shape_cast %18 : vector<1x12x28xf32> to vector<12x28xf32>
    %cst_20 = arith.constant dense<0.000000e+00> : vector<12x240xf32>
    %20 = tpu.matmul %19, %17, %cst_20 {dimension_numbers = #tpu.dot_dimension_numbers<[1], [0], [0], [1], [0, 0, 1, 1], [], []>} : vector<12x28xf32>, vector<28x240xf32>, vector<12x240xf32> -> vector<12x240xf32>
    %21 = arith.addf %10, %20 : vector<12x240xf32>
    %c6 = arith.constant 6 : index
    %c0_21 = arith.constant 0 : index
    %c0_22 = arith.constant 0 : index
    %22 = vector.load %arg3[%c6, %c0_21, %c0_22] : memref<10x12x28xf32, #tpu.memory_space<vmem>>, vector<1x12x28xf32>
    %23 = vector.shape_cast %22 : vector<1x12x28xf32> to vector<12x28xf32>
    %cst_23 = arith.constant dense<0.000000e+00> : vector<12x240xf32>
    %24 = tpu.matmul %23, %17, %cst_23 {dimension_numbers = #tpu.dot_dimension_numbers<[1], [0], [0], [1], [0, 0, 1, 1], [], []>} : vector<12x28xf32>, vector<28x240xf32>, vector<12x240xf32> -> vector<12x240xf32>
    %25 = arith.addf %14, %24 : vector<12x240xf32>
    %c2 = arith.constant 2 : index
    %c0_24 = arith.constant 0 : index
    %c0_25 = arith.constant 0 : index
    %26 = vector.load %arg2[%c2, %c0_24, %c0_25] : memref<5x28x240xf32, #tpu.memory_space<vmem>>, vector<1x28x240xf32>
    %27 = vector.shape_cast %26 : vector<1x28x240xf32> to vector<28x240xf32>
    %cst_26 = arith.constant dense<0.000000e+00> : vector<28x240xf32>
    %28 = tpu.matmul %1, %27, %cst_26 {dimension_numbers = #tpu.dot_dimension_numbers<[1], [0], [0], [1], [0, 0, 1, 1], [], []>} : vector<28x28xf32>, vector<28x240xf32>, vector<28x240xf32> -> vector<28x240xf32>
    %c2_27 = arith.constant 2 : index
    %c0_28 = arith.constant 0 : index
    %c0_29 = arith.constant 0 : index
    %29 = vector.load %arg3[%c2_27, %c0_28, %c0_29] : memref<10x12x28xf32, #tpu.memory_space<vmem>>, vector<1x12x28xf32>
    %30 = vector.shape_cast %29 : vector<1x12x28xf32> to vector<12x28xf32>
    %cst_30 = arith.constant dense<0.000000e+00> : vector<12x240xf32>
    %31 = tpu.matmul %30, %28, %cst_30 {dimension_numbers = #tpu.dot_dimension_numbers<[1], [0], [0], [1], [0, 0, 1, 1], [], []>} : vector<12x28xf32>, vector<28x240xf32>, vector<12x240xf32> -> vector<12x240xf32>
    %32 = arith.addf %21, %31 : vector<12x240xf32>
    %c7 = arith.constant 7 : index
    %c0_31 = arith.constant 0 : index
    %c0_32 = arith.constant 0 : index
    %33 = vector.load %arg3[%c7, %c0_31, %c0_32] : memref<10x12x28xf32, #tpu.memory_space<vmem>>, vector<1x12x28xf32>
    %34 = vector.shape_cast %33 : vector<1x12x28xf32> to vector<12x28xf32>
    %cst_33 = arith.constant dense<0.000000e+00> : vector<12x240xf32>
    %35 = tpu.matmul %34, %28, %cst_33 {dimension_numbers = #tpu.dot_dimension_numbers<[1], [0], [0], [1], [0, 0, 1, 1], [], []>} : vector<12x28xf32>, vector<28x240xf32>, vector<12x240xf32> -> vector<12x240xf32>
    %36 = arith.addf %25, %35 : vector<12x240xf32>
    %c3 = arith.constant 3 : index
    %c0_34 = arith.constant 0 : index
    %c0_35 = arith.constant 0 : index
    %37 = vector.load %arg2[%c3, %c0_34, %c0_35] : memref<5x28x240xf32, #tpu.memory_space<vmem>>, vector<1x28x240xf32>
    %38 = vector.shape_cast %37 : vector<1x28x240xf32> to vector<28x240xf32>
    %cst_36 = arith.constant dense<0.000000e+00> : vector<28x240xf32>
    %39 = tpu.matmul %1, %38, %cst_36 {dimension_numbers = #tpu.dot_dimension_numbers<[1], [0], [0], [1], [0, 0, 1, 1], [], []>} : vector<28x28xf32>, vector<28x240xf32>, vector<28x240xf32> -> vector<28x240xf32>
    %c3_37 = arith.constant 3 : index
    %c0_38 = arith.constant 0 : index
    %c0_39 = arith.constant 0 : index
    %40 = vector.load %arg3[%c3_37, %c0_38, %c0_39] : memref<10x12x28xf32, #tpu.memory_space<vmem>>, vector<1x12x28xf32>
    %41 = vector.shape_cast %40 : vector<1x12x28xf32> to vector<12x28xf32>
    %cst_40 = arith.constant dense<0.000000e+00> : vector<12x240xf32>
    %42 = tpu.matmul %41, %39, %cst_40 {dimension_numbers = #tpu.dot_dimension_numbers<[1], [0], [0], [1], [0, 0, 1, 1], [], []>} : vector<12x28xf32>, vector<28x240xf32>, vector<12x240xf32> -> vector<12x240xf32>
    %43 = arith.addf %32, %42 : vector<12x240xf32>
    %c8 = arith.constant 8 : index
    %c0_41 = arith.constant 0 : index
    %c0_42 = arith.constant 0 : index
    %44 = vector.load %arg3[%c8, %c0_41, %c0_42] : memref<10x12x28xf32, #tpu.memory_space<vmem>>, vector<1x12x28xf32>
    %45 = vector.shape_cast %44 : vector<1x12x28xf32> to vector<12x28xf32>
    %cst_43 = arith.constant dense<0.000000e+00> : vector<12x240xf32>
    %46 = tpu.matmul %45, %39, %cst_43 {dimension_numbers = #tpu.dot_dimension_numbers<[1], [0], [0], [1], [0, 0, 1, 1], [], []>} : vector<12x28xf32>, vector<28x240xf32>, vector<12x240xf32> -> vector<12x240xf32>
    %47 = arith.addf %36, %46 : vector<12x240xf32>
    %c4 = arith.constant 4 : index
    %c0_44 = arith.constant 0 : index
    %c0_45 = arith.constant 0 : index
    %48 = vector.load %arg2[%c4, %c0_44, %c0_45] : memref<5x28x240xf32, #tpu.memory_space<vmem>>, vector<1x28x240xf32>
    %49 = vector.shape_cast %48 : vector<1x28x240xf32> to vector<28x240xf32>
    %cst_46 = arith.constant dense<0.000000e+00> : vector<28x240xf32>
    %50 = tpu.matmul %1, %49, %cst_46 {dimension_numbers = #tpu.dot_dimension_numbers<[1], [0], [0], [1], [0, 0, 1, 1], [], []>} : vector<28x28xf32>, vector<28x240xf32>, vector<28x240xf32> -> vector<28x240xf32>
    %c4_47 = arith.constant 4 : index
    %c0_48 = arith.constant 0 : index
    %c0_49 = arith.constant 0 : index
    %51 = vector.load %arg3[%c4_47, %c0_48, %c0_49] : memref<10x12x28xf32, #tpu.memory_space<vmem>>, vector<1x12x28xf32>
    %52 = vector.shape_cast %51 : vector<1x12x28xf32> to vector<12x28xf32>
    %cst_50 = arith.constant dense<0.000000e+00> : vector<12x240xf32>
    %53 = tpu.matmul %52, %50, %cst_50 {dimension_numbers = #tpu.dot_dimension_numbers<[1], [0], [0], [1], [0, 0, 1, 1], [], []>} : vector<12x28xf32>, vector<28x240xf32>, vector<12x240xf32> -> vector<12x240xf32>
    %54 = arith.addf %43, %53 : vector<12x240xf32>
    %c9 = arith.constant 9 : index
    %c0_51 = arith.constant 0 : index
    %c0_52 = arith.constant 0 : index
    %55 = vector.load %arg3[%c9, %c0_51, %c0_52] : memref<10x12x28xf32, #tpu.memory_space<vmem>>, vector<1x12x28xf32>
    %56 = vector.shape_cast %55 : vector<1x12x28xf32> to vector<12x28xf32>
    %cst_53 = arith.constant dense<0.000000e+00> : vector<12x240xf32>
    %57 = tpu.matmul %56, %50, %cst_53 {dimension_numbers = #tpu.dot_dimension_numbers<[1], [0], [0], [1], [0, 0, 1, 1], [], []>} : vector<12x28xf32>, vector<28x240xf32>, vector<12x240xf32> -> vector<12x240xf32>
    %58 = arith.addf %47, %57 : vector<12x240xf32>
    %59 = vector.extract_strided_slice %54 {offsets = [0, 0], sizes = [12, 120], strides = [1, 1]} : vector<12x240xf32> to vector<12x120xf32>
    %60 = vector.extract_strided_slice %54 {offsets = [0, 120], sizes = [12, 120], strides = [1, 1]} : vector<12x240xf32> to vector<12x120xf32>
    %61 = vector.extract_strided_slice %58 {offsets = [0, 0], sizes = [12, 120], strides = [1, 1]} : vector<12x240xf32> to vector<12x120xf32>
    %62 = vector.extract_strided_slice %58 {offsets = [0, 120], sizes = [12, 120], strides = [1, 1]} : vector<12x240xf32> to vector<12x120xf32>
    %63 = arith.maximumf %59, %60 : vector<12x120xf32>
    %64 = arith.maximumf %61, %62 : vector<12x120xf32>
    %65 = arith.maximumf %63, %64 : vector<12x120xf32>
    %66 = arith.cmpf oeq, %59, %65 : vector<12x120xf32>
    %67 = arith.cmpf oeq, %60, %65 : vector<12x120xf32>
    %68 = arith.cmpf oeq, %61, %65 : vector<12x120xf32>
    %c2_i32 = arith.constant 2 : i32
    %c3_i32 = arith.constant 3 : i32
    %69 = vector.broadcast %c2_i32 : i32 to vector<12x120xi32>
    %70 = vector.broadcast %c3_i32 : i32 to vector<12x120xi32>
    %71 = arith.select %68, %69, %70 : vector<12x120xi1>, vector<12x120xi32>
    %c1_i32 = arith.constant 1 : i32
    %72 = vector.broadcast %c1_i32 : i32 to vector<12x120xi32>
    %73 = arith.select %67, %72, %71 : vector<12x120xi1>, vector<12x120xi32>
    %c0_i32 = arith.constant 0 : i32
    %74 = vector.broadcast %c0_i32 : i32 to vector<12x120xi32>
    %75 = arith.select %66, %74, %73 : vector<12x120xi1>, vector<12x120xi32>
    %c0_54 = arith.constant 0 : index
    %c0_55 = arith.constant 0 : index
    %76 = vector.load %arg4[%c0_54, %c0_55] : memref<1x120xf32, #tpu.memory_space<vmem>>, vector<1x120xf32>
    %77 = vector.broadcast %76 : vector<1x120xf32> to vector<12x120xf32>
    %78 = arith.addf %65, %77 : vector<12x120xf32>
    %cst_56 = arith.constant 0.000000e+00 : f32
    %79 = vector.broadcast %cst_56 : f32 to vector<12x120xf32>
    %80 = arith.maximumf %78, %79 : vector<12x120xf32>
    %c0_57 = arith.constant 0 : index
    %c0_58 = arith.constant 0 : index
    %c0_59 = arith.constant 0 : index
    %81 = vector.load %arg5[%c0_57, %c0_58, %c0_59] : memref<1x12x120xf32, #tpu.memory_space<vmem>>, vector<1x12x120xf32>
    %82 = vector.shape_cast %81 : vector<1x12x120xf32> to vector<12x120xf32>
    %83 = vector.shape_cast %80 : vector<12x120xf32> to vector<1x12x120xf32>
    tpu.vector_store %arg5[%c0_57, %c0_58, %c0_59], %83 {strides = array<i32>} : memref<1x12x120xf32, #tpu.memory_space<vmem>>, vector<1x12x120xf32>,
    %c0_60 = arith.constant 0 : index
    %c0_61 = arith.constant 0 : index
    %c0_62 = arith.constant 0 : index
    %84 = vector.load %arg6[%c0_60, %c0_61, %c0_62] : memref<1x12x120xi32, #tpu.memory_space<vmem>>, vector<1x12x120xi32>
    %85 = vector.shape_cast %84 : vector<1x12x120xi32> to vector<12x120xi32>
    %86 = vector.shape_cast %75 : vector<12x120xi32> to vector<1x12x120xi32>
    tpu.vector_store %arg6[%c0_60, %c0_61, %c0_62], %86 {strides = array<i32>} : memref<1x12x120xi32, #tpu.memory_space<vmem>>, vector<1x12x120xi32>,
    return
  }
  func.func @transform_0(%arg0: i32) -> (i32, i32, i32) {
    %c0_i32 = arith.constant 0 : i32
    %c0_i32_0 = arith.constant 0 : i32
    %c0_i32_1 = arith.constant 0 : i32
    return %arg0, %c0_i32, %c0_i32_0 : i32, i32, i32
  }
  func.func @transform_1(%arg0: i32) -> (i32, i32, i32) {
    %c0_i32 = arith.constant 0 : i32
    %c0_i32_0 = arith.constant 0 : i32
    %c0_i32_1 = arith.constant 0 : i32
    %c0_i32_2 = arith.constant 0 : i32
    return %c0_i32, %c0_i32_0, %c0_i32_1 : i32, i32, i32
  }
  func.func @transform_2(%arg0: i32) -> (i32, i32, i32) {
    %c0_i32 = arith.constant 0 : i32
    %c0_i32_0 = arith.constant 0 : i32
    %c0_i32_1 = arith.constant 0 : i32
    %c0_i32_2 = arith.constant 0 : i32
    return %c0_i32, %c0_i32_0, %c0_i32_1 : i32, i32, i32
  }
  func.func @transform_3(%arg0: i32) -> (i32, i32) {
    %c0_i32 = arith.constant 0 : i32
    %c0_i32_0 = arith.constant 0 : i32
    %c0_i32_1 = arith.constant 0 : i32
    return %c0_i32, %c0_i32_0 : i32, i32
  }
  func.func @transform_4(%arg0: i32) -> (i32, i32, i32) {
    %c0_i32 = arith.constant 0 : i32
    %c0_i32_0 = arith.constant 0 : i32
    %c0_i32_1 = arith.constant 0 : i32
    return %arg0, %c0_i32, %c0_i32_0 : i32, i32, i32
  }
  func.func @transform_5(%arg0: i32) -> (i32, i32, i32) {
    %c0_i32 = arith.constant 0 : i32
    %c0_i32_0 = arith.constant 0 : i32
    %c0_i32_1 = arith.constant 0 : i32
    return %arg0, %c0_i32, %c0_i32_0 : i32, i32, i32
  }
}

module attributes {stable_mosaic.version = 11 : i64} {
  func.func @_conv_pool_relu_kernel(%arg0: i32, %arg1: memref<1x12x120xf32, #tpu.memory_space<vmem>>, %arg2: memref<5x120x160xf32, #tpu.memory_space<vmem>>, %arg3: memref<10x4x12xf32, #tpu.memory_space<vmem>>, %arg4: memref<1x80xf32, #tpu.memory_space<vmem>>, %arg5: memref<1x4x80xf32, #tpu.memory_space<vmem>>, %arg6: memref<1x4x80xi32, #tpu.memory_space<vmem>>) attributes {dimension_semantics = [#tpu.dimension_semantics<parallel>], iteration_bounds = array<i64: 2>, scalar_prefetch = 0 : i64, scratch_operands = 0 : i64, tpu.core_type = #tpu.core_type<tc>, window_params = [{transform_indices = @transform_0, window_bounds = array<i64: 1, 12, 120>}, {pipeline_mode = #tpu.pipeline_mode<synchronous>, transform_indices = @transform_1, window_bounds = array<i64: 5, 120, 160>}, {pipeline_mode = #tpu.pipeline_mode<synchronous>, transform_indices = @transform_2, window_bounds = array<i64: 10, 4, 12>}, {pipeline_mode = #tpu.pipeline_mode<synchronous>, transform_indices = @transform_3, window_bounds = array<i64: 1, 80>}, {transform_indices = @transform_4, window_bounds = array<i64: 1, 4, 80>}, {transform_indices = @transform_5, window_bounds = array<i64: 1, 4, 80>}]} {
    %c0 = arith.constant 0 : index
    %c0_0 = arith.constant 0 : index
    %c0_1 = arith.constant 0 : index
    %0 = vector.load %arg1[%c0, %c0_0, %c0_1] : memref<1x12x120xf32, #tpu.memory_space<vmem>>, vector<1x12x120xf32>
    %1 = vector.shape_cast %0 : vector<1x12x120xf32> to vector<12x120xf32>
    %cst = arith.constant 0.000000e+00 : f32
    %2 = vector.broadcast %cst : f32 to vector<4x160xf32>
    %cst_2 = arith.constant 0.000000e+00 : f32
    %3 = vector.broadcast %cst_2 : f32 to vector<4x160xf32>
    %c0_3 = arith.constant 0 : index
    %c0_4 = arith.constant 0 : index
    %c0_5 = arith.constant 0 : index
    %4 = vector.load %arg2[%c0_3, %c0_4, %c0_5] : memref<5x120x160xf32, #tpu.memory_space<vmem>>, vector<1x120x160xf32>
    %5 = vector.shape_cast %4 : vector<1x120x160xf32> to vector<120x160xf32>
    %cst_6 = arith.constant dense<0.000000e+00> : vector<12x160xf32>
    %6 = tpu.matmul %1, %5, %cst_6 {dimension_numbers = #tpu.dot_dimension_numbers<[1], [0], [0], [1], [0, 0, 1, 1], [], []>} : vector<12x120xf32>, vector<120x160xf32>, vector<12x160xf32> -> vector<12x160xf32>
    %c0_7 = arith.constant 0 : index
    %c0_8 = arith.constant 0 : index
    %c0_9 = arith.constant 0 : index
    %7 = vector.load %arg3[%c0_7, %c0_8, %c0_9] : memref<10x4x12xf32, #tpu.memory_space<vmem>>, vector<1x4x12xf32>
    %8 = vector.shape_cast %7 : vector<1x4x12xf32> to vector<4x12xf32>
    %cst_10 = arith.constant dense<0.000000e+00> : vector<4x160xf32>
    %9 = tpu.matmul %8, %6, %cst_10 {dimension_numbers = #tpu.dot_dimension_numbers<[1], [0], [0], [1], [0, 0, 1, 1], [], []>} : vector<4x12xf32>, vector<12x160xf32>, vector<4x160xf32> -> vector<4x160xf32>
    %10 = arith.addf %2, %9 : vector<4x160xf32>
    %c5 = arith.constant 5 : index
    %c0_11 = arith.constant 0 : index
    %c0_12 = arith.constant 0 : index
    %11 = vector.load %arg3[%c5, %c0_11, %c0_12] : memref<10x4x12xf32, #tpu.memory_space<vmem>>, vector<1x4x12xf32>
    %12 = vector.shape_cast %11 : vector<1x4x12xf32> to vector<4x12xf32>
    %cst_13 = arith.constant dense<0.000000e+00> : vector<4x160xf32>
    %13 = tpu.matmul %12, %6, %cst_13 {dimension_numbers = #tpu.dot_dimension_numbers<[1], [0], [0], [1], [0, 0, 1, 1], [], []>} : vector<4x12xf32>, vector<12x160xf32>, vector<4x160xf32> -> vector<4x160xf32>
    %14 = arith.addf %3, %13 : vector<4x160xf32>
    %c1 = arith.constant 1 : index
    %c0_14 = arith.constant 0 : index
    %c0_15 = arith.constant 0 : index
    %15 = vector.load %arg2[%c1, %c0_14, %c0_15] : memref<5x120x160xf32, #tpu.memory_space<vmem>>, vector<1x120x160xf32>
    %16 = vector.shape_cast %15 : vector<1x120x160xf32> to vector<120x160xf32>
    %cst_16 = arith.constant dense<0.000000e+00> : vector<12x160xf32>
    %17 = tpu.matmul %1, %16, %cst_16 {dimension_numbers = #tpu.dot_dimension_numbers<[1], [0], [0], [1], [0, 0, 1, 1], [], []>} : vector<12x120xf32>, vector<120x160xf32>, vector<12x160xf32> -> vector<12x160xf32>
    %c1_17 = arith.constant 1 : index
    %c0_18 = arith.constant 0 : index
    %c0_19 = arith.constant 0 : index
    %18 = vector.load %arg3[%c1_17, %c0_18, %c0_19] : memref<10x4x12xf32, #tpu.memory_space<vmem>>, vector<1x4x12xf32>
    %19 = vector.shape_cast %18 : vector<1x4x12xf32> to vector<4x12xf32>
    %cst_20 = arith.constant dense<0.000000e+00> : vector<4x160xf32>
    %20 = tpu.matmul %19, %17, %cst_20 {dimension_numbers = #tpu.dot_dimension_numbers<[1], [0], [0], [1], [0, 0, 1, 1], [], []>} : vector<4x12xf32>, vector<12x160xf32>, vector<4x160xf32> -> vector<4x160xf32>
    %21 = arith.addf %10, %20 : vector<4x160xf32>
    %c6 = arith.constant 6 : index
    %c0_21 = arith.constant 0 : index
    %c0_22 = arith.constant 0 : index
    %22 = vector.load %arg3[%c6, %c0_21, %c0_22] : memref<10x4x12xf32, #tpu.memory_space<vmem>>, vector<1x4x12xf32>
    %23 = vector.shape_cast %22 : vector<1x4x12xf32> to vector<4x12xf32>
    %cst_23 = arith.constant dense<0.000000e+00> : vector<4x160xf32>
    %24 = tpu.matmul %23, %17, %cst_23 {dimension_numbers = #tpu.dot_dimension_numbers<[1], [0], [0], [1], [0, 0, 1, 1], [], []>} : vector<4x12xf32>, vector<12x160xf32>, vector<4x160xf32> -> vector<4x160xf32>
    %25 = arith.addf %14, %24 : vector<4x160xf32>
    %c2 = arith.constant 2 : index
    %c0_24 = arith.constant 0 : index
    %c0_25 = arith.constant 0 : index
    %26 = vector.load %arg2[%c2, %c0_24, %c0_25] : memref<5x120x160xf32, #tpu.memory_space<vmem>>, vector<1x120x160xf32>
    %27 = vector.shape_cast %26 : vector<1x120x160xf32> to vector<120x160xf32>
    %cst_26 = arith.constant dense<0.000000e+00> : vector<12x160xf32>
    %28 = tpu.matmul %1, %27, %cst_26 {dimension_numbers = #tpu.dot_dimension_numbers<[1], [0], [0], [1], [0, 0, 1, 1], [], []>} : vector<12x120xf32>, vector<120x160xf32>, vector<12x160xf32> -> vector<12x160xf32>
    %c2_27 = arith.constant 2 : index
    %c0_28 = arith.constant 0 : index
    %c0_29 = arith.constant 0 : index
    %29 = vector.load %arg3[%c2_27, %c0_28, %c0_29] : memref<10x4x12xf32, #tpu.memory_space<vmem>>, vector<1x4x12xf32>
    %30 = vector.shape_cast %29 : vector<1x4x12xf32> to vector<4x12xf32>
    %cst_30 = arith.constant dense<0.000000e+00> : vector<4x160xf32>
    %31 = tpu.matmul %30, %28, %cst_30 {dimension_numbers = #tpu.dot_dimension_numbers<[1], [0], [0], [1], [0, 0, 1, 1], [], []>} : vector<4x12xf32>, vector<12x160xf32>, vector<4x160xf32> -> vector<4x160xf32>
    %32 = arith.addf %21, %31 : vector<4x160xf32>
    %c7 = arith.constant 7 : index
    %c0_31 = arith.constant 0 : index
    %c0_32 = arith.constant 0 : index
    %33 = vector.load %arg3[%c7, %c0_31, %c0_32] : memref<10x4x12xf32, #tpu.memory_space<vmem>>, vector<1x4x12xf32>
    %34 = vector.shape_cast %33 : vector<1x4x12xf32> to vector<4x12xf32>
    %cst_33 = arith.constant dense<0.000000e+00> : vector<4x160xf32>
    %35 = tpu.matmul %34, %28, %cst_33 {dimension_numbers = #tpu.dot_dimension_numbers<[1], [0], [0], [1], [0, 0, 1, 1], [], []>} : vector<4x12xf32>, vector<12x160xf32>, vector<4x160xf32> -> vector<4x160xf32>
    %36 = arith.addf %25, %35 : vector<4x160xf32>
    %c3 = arith.constant 3 : index
    %c0_34 = arith.constant 0 : index
    %c0_35 = arith.constant 0 : index
    %37 = vector.load %arg2[%c3, %c0_34, %c0_35] : memref<5x120x160xf32, #tpu.memory_space<vmem>>, vector<1x120x160xf32>
    %38 = vector.shape_cast %37 : vector<1x120x160xf32> to vector<120x160xf32>
    %cst_36 = arith.constant dense<0.000000e+00> : vector<12x160xf32>
    %39 = tpu.matmul %1, %38, %cst_36 {dimension_numbers = #tpu.dot_dimension_numbers<[1], [0], [0], [1], [0, 0, 1, 1], [], []>} : vector<12x120xf32>, vector<120x160xf32>, vector<12x160xf32> -> vector<12x160xf32>
    %c3_37 = arith.constant 3 : index
    %c0_38 = arith.constant 0 : index
    %c0_39 = arith.constant 0 : index
    %40 = vector.load %arg3[%c3_37, %c0_38, %c0_39] : memref<10x4x12xf32, #tpu.memory_space<vmem>>, vector<1x4x12xf32>
    %41 = vector.shape_cast %40 : vector<1x4x12xf32> to vector<4x12xf32>
    %cst_40 = arith.constant dense<0.000000e+00> : vector<4x160xf32>
    %42 = tpu.matmul %41, %39, %cst_40 {dimension_numbers = #tpu.dot_dimension_numbers<[1], [0], [0], [1], [0, 0, 1, 1], [], []>} : vector<4x12xf32>, vector<12x160xf32>, vector<4x160xf32> -> vector<4x160xf32>
    %43 = arith.addf %32, %42 : vector<4x160xf32>
    %c8 = arith.constant 8 : index
    %c0_41 = arith.constant 0 : index
    %c0_42 = arith.constant 0 : index
    %44 = vector.load %arg3[%c8, %c0_41, %c0_42] : memref<10x4x12xf32, #tpu.memory_space<vmem>>, vector<1x4x12xf32>
    %45 = vector.shape_cast %44 : vector<1x4x12xf32> to vector<4x12xf32>
    %cst_43 = arith.constant dense<0.000000e+00> : vector<4x160xf32>
    %46 = tpu.matmul %45, %39, %cst_43 {dimension_numbers = #tpu.dot_dimension_numbers<[1], [0], [0], [1], [0, 0, 1, 1], [], []>} : vector<4x12xf32>, vector<12x160xf32>, vector<4x160xf32> -> vector<4x160xf32>
    %47 = arith.addf %36, %46 : vector<4x160xf32>
    %c4 = arith.constant 4 : index
    %c0_44 = arith.constant 0 : index
    %c0_45 = arith.constant 0 : index
    %48 = vector.load %arg2[%c4, %c0_44, %c0_45] : memref<5x120x160xf32, #tpu.memory_space<vmem>>, vector<1x120x160xf32>
    %49 = vector.shape_cast %48 : vector<1x120x160xf32> to vector<120x160xf32>
    %cst_46 = arith.constant dense<0.000000e+00> : vector<12x160xf32>
    %50 = tpu.matmul %1, %49, %cst_46 {dimension_numbers = #tpu.dot_dimension_numbers<[1], [0], [0], [1], [0, 0, 1, 1], [], []>} : vector<12x120xf32>, vector<120x160xf32>, vector<12x160xf32> -> vector<12x160xf32>
    %c4_47 = arith.constant 4 : index
    %c0_48 = arith.constant 0 : index
    %c0_49 = arith.constant 0 : index
    %51 = vector.load %arg3[%c4_47, %c0_48, %c0_49] : memref<10x4x12xf32, #tpu.memory_space<vmem>>, vector<1x4x12xf32>
    %52 = vector.shape_cast %51 : vector<1x4x12xf32> to vector<4x12xf32>
    %cst_50 = arith.constant dense<0.000000e+00> : vector<4x160xf32>
    %53 = tpu.matmul %52, %50, %cst_50 {dimension_numbers = #tpu.dot_dimension_numbers<[1], [0], [0], [1], [0, 0, 1, 1], [], []>} : vector<4x12xf32>, vector<12x160xf32>, vector<4x160xf32> -> vector<4x160xf32>
    %54 = arith.addf %43, %53 : vector<4x160xf32>
    %c9 = arith.constant 9 : index
    %c0_51 = arith.constant 0 : index
    %c0_52 = arith.constant 0 : index
    %55 = vector.load %arg3[%c9, %c0_51, %c0_52] : memref<10x4x12xf32, #tpu.memory_space<vmem>>, vector<1x4x12xf32>
    %56 = vector.shape_cast %55 : vector<1x4x12xf32> to vector<4x12xf32>
    %cst_53 = arith.constant dense<0.000000e+00> : vector<4x160xf32>
    %57 = tpu.matmul %56, %50, %cst_53 {dimension_numbers = #tpu.dot_dimension_numbers<[1], [0], [0], [1], [0, 0, 1, 1], [], []>} : vector<4x12xf32>, vector<12x160xf32>, vector<4x160xf32> -> vector<4x160xf32>
    %58 = arith.addf %47, %57 : vector<4x160xf32>
    %59 = vector.extract_strided_slice %54 {offsets = [0, 0], sizes = [4, 80], strides = [1, 1]} : vector<4x160xf32> to vector<4x80xf32>
    %60 = vector.extract_strided_slice %54 {offsets = [0, 80], sizes = [4, 80], strides = [1, 1]} : vector<4x160xf32> to vector<4x80xf32>
    %61 = vector.extract_strided_slice %58 {offsets = [0, 0], sizes = [4, 80], strides = [1, 1]} : vector<4x160xf32> to vector<4x80xf32>
    %62 = vector.extract_strided_slice %58 {offsets = [0, 80], sizes = [4, 80], strides = [1, 1]} : vector<4x160xf32> to vector<4x80xf32>
    %63 = arith.maximumf %59, %60 : vector<4x80xf32>
    %64 = arith.maximumf %61, %62 : vector<4x80xf32>
    %65 = arith.maximumf %63, %64 : vector<4x80xf32>
    %66 = arith.cmpf oeq, %59, %65 : vector<4x80xf32>
    %67 = arith.cmpf oeq, %60, %65 : vector<4x80xf32>
    %68 = arith.cmpf oeq, %61, %65 : vector<4x80xf32>
    %c2_i32 = arith.constant 2 : i32
    %c3_i32 = arith.constant 3 : i32
    %69 = vector.broadcast %c2_i32 : i32 to vector<4x80xi32>
    %70 = vector.broadcast %c3_i32 : i32 to vector<4x80xi32>
    %71 = arith.select %68, %69, %70 : vector<4x80xi1>, vector<4x80xi32>
    %c1_i32 = arith.constant 1 : i32
    %72 = vector.broadcast %c1_i32 : i32 to vector<4x80xi32>
    %73 = arith.select %67, %72, %71 : vector<4x80xi1>, vector<4x80xi32>
    %c0_i32 = arith.constant 0 : i32
    %74 = vector.broadcast %c0_i32 : i32 to vector<4x80xi32>
    %75 = arith.select %66, %74, %73 : vector<4x80xi1>, vector<4x80xi32>
    %c0_54 = arith.constant 0 : index
    %c0_55 = arith.constant 0 : index
    %76 = vector.load %arg4[%c0_54, %c0_55] : memref<1x80xf32, #tpu.memory_space<vmem>>, vector<1x80xf32>
    %77 = vector.broadcast %76 : vector<1x80xf32> to vector<4x80xf32>
    %78 = arith.addf %65, %77 : vector<4x80xf32>
    %cst_56 = arith.constant 0.000000e+00 : f32
    %79 = vector.broadcast %cst_56 : f32 to vector<4x80xf32>
    %80 = arith.maximumf %78, %79 : vector<4x80xf32>
    %c0_57 = arith.constant 0 : index
    %c0_58 = arith.constant 0 : index
    %c0_59 = arith.constant 0 : index
    %81 = vector.load %arg5[%c0_57, %c0_58, %c0_59] : memref<1x4x80xf32, #tpu.memory_space<vmem>>, vector<1x4x80xf32>
    %82 = vector.shape_cast %81 : vector<1x4x80xf32> to vector<4x80xf32>
    %83 = vector.shape_cast %80 : vector<4x80xf32> to vector<1x4x80xf32>
    tpu.vector_store %arg5[%c0_57, %c0_58, %c0_59], %83 {strides = array<i32>} : memref<1x4x80xf32, #tpu.memory_space<vmem>>, vector<1x4x80xf32>,
    %c0_60 = arith.constant 0 : index
    %c0_61 = arith.constant 0 : index
    %c0_62 = arith.constant 0 : index
    %84 = vector.load %arg6[%c0_60, %c0_61, %c0_62] : memref<1x4x80xi32, #tpu.memory_space<vmem>>, vector<1x4x80xi32>
    %85 = vector.shape_cast %84 : vector<1x4x80xi32> to vector<4x80xi32>
    %86 = vector.shape_cast %75 : vector<4x80xi32> to vector<1x4x80xi32>
    tpu.vector_store %arg6[%c0_60, %c0_61, %c0_62], %86 {strides = array<i32>} : memref<1x4x80xi32, #tpu.memory_space<vmem>>, vector<1x4x80xi32>,
    return
  }
  func.func @transform_0(%arg0: i32) -> (i32, i32, i32) {
    %c0_i32 = arith.constant 0 : i32
    %c0_i32_0 = arith.constant 0 : i32
    %c0_i32_1 = arith.constant 0 : i32
    return %arg0, %c0_i32, %c0_i32_0 : i32, i32, i32
  }
  func.func @transform_1(%arg0: i32) -> (i32, i32, i32) {
    %c0_i32 = arith.constant 0 : i32
    %c0_i32_0 = arith.constant 0 : i32
    %c0_i32_1 = arith.constant 0 : i32
    %c0_i32_2 = arith.constant 0 : i32
    return %c0_i32, %c0_i32_0, %c0_i32_1 : i32, i32, i32
  }
  func.func @transform_2(%arg0: i32) -> (i32, i32, i32) {
    %c0_i32 = arith.constant 0 : i32
    %c0_i32_0 = arith.constant 0 : i32
    %c0_i32_1 = arith.constant 0 : i32
    %c0_i32_2 = arith.constant 0 : i32
    return %c0_i32, %c0_i32_0, %c0_i32_1 : i32, i32, i32
  }
  func.func @transform_3(%arg0: i32) -> (i32, i32) {
    %c0_i32 = arith.constant 0 : i32
    %c0_i32_0 = arith.constant 0 : i32
    %c0_i32_1 = arith.constant 0 : i32
    return %c0_i32, %c0_i32_0 : i32, i32
  }
  func.func @transform_4(%arg0: i32) -> (i32, i32, i32) {
    %c0_i32 = arith.constant 0 : i32
    %c0_i32_0 = arith.constant 0 : i32
    %c0_i32_1 = arith.constant 0 : i32
    return %arg0, %c0_i32, %c0_i32_0 : i32, i32, i32
  }
  func.func @transform_5(%arg0: i32) -> (i32, i32, i32) {
    %c0_i32 = arith.constant 0 : i32
    %c0_i32_0 = arith.constant 0 : i32
    %c0_i32_1 = arith.constant 0 : i32
    return %arg0, %c0_i32, %c0_i32_0 : i32, i32, i32
  }
}

module attributes {stable_mosaic.version = 11 : i64} {
  func.func @_fc_stack_kernel(%arg0: i32, %arg1: memref<2x320xf32, #tpu.memory_space<vmem>>, %arg2: memref<320x50xf32, #tpu.memory_space<vmem>>, %arg3: memref<1x50xf32, #tpu.memory_space<vmem>>, %arg4: memref<50x10xf32, #tpu.memory_space<vmem>>, %arg5: memref<1x10xf32, #tpu.memory_space<vmem>>, %arg6: memref<10x50xf32, #tpu.memory_space<vmem>>, %arg7: memref<1x50xf32, #tpu.memory_space<vmem>>, %arg8: memref<50x320xf32, #tpu.memory_space<vmem>>, %arg9: memref<1x320xf32, #tpu.memory_space<vmem>>, %arg10: memref<2x10xf32, #tpu.memory_space<vmem>>, %arg11: memref<2x10xf32, #tpu.memory_space<vmem>>, %arg12: memref<2x320xf32, #tpu.memory_space<vmem>>) attributes {dimension_semantics = [#tpu.dimension_semantics<arbitrary>], iteration_bounds = array<i64: 1>, scalar_prefetch = 0 : i64, scratch_operands = 0 : i64, tpu.core_type = #tpu.core_type<tc>, window_params = [{pipeline_mode = #tpu.pipeline_mode<synchronous>, transform_indices = @transform_0, window_bounds = array<i64: 2, 320>}, {pipeline_mode = #tpu.pipeline_mode<synchronous>, transform_indices = @transform_1, window_bounds = array<i64: 320, 50>}, {pipeline_mode = #tpu.pipeline_mode<synchronous>, transform_indices = @transform_2, window_bounds = array<i64: 1, 50>}, {pipeline_mode = #tpu.pipeline_mode<synchronous>, transform_indices = @transform_3, window_bounds = array<i64: 50, 10>}, {pipeline_mode = #tpu.pipeline_mode<synchronous>, transform_indices = @transform_4, window_bounds = array<i64: 1, 10>}, {pipeline_mode = #tpu.pipeline_mode<synchronous>, transform_indices = @transform_5, window_bounds = array<i64: 10, 50>}, {pipeline_mode = #tpu.pipeline_mode<synchronous>, transform_indices = @transform_6, window_bounds = array<i64: 1, 50>}, {pipeline_mode = #tpu.pipeline_mode<synchronous>, transform_indices = @transform_7, window_bounds = array<i64: 50, 320>}, {pipeline_mode = #tpu.pipeline_mode<synchronous>, transform_indices = @transform_8, window_bounds = array<i64: 1, 320>}, {pipeline_mode = #tpu.pipeline_mode<synchronous>, transform_indices = @transform_9, window_bounds = array<i64: 2, 10>}, {pipeline_mode = #tpu.pipeline_mode<synchronous>, transform_indices = @transform_10, window_bounds = array<i64: 2, 10>}, {pipeline_mode = #tpu.pipeline_mode<synchronous>, transform_indices = @transform_11, window_bounds = array<i64: 2, 320>}]} {
    %c0 = arith.constant 0 : index
    %c0_0 = arith.constant 0 : index
    %0 = vector.load %arg1[%c0, %c0_0] : memref<2x320xf32, #tpu.memory_space<vmem>>, vector<2x320xf32>
    %c0_1 = arith.constant 0 : index
    %c0_2 = arith.constant 0 : index
    %1 = vector.load %arg2[%c0_1, %c0_2] : memref<320x50xf32, #tpu.memory_space<vmem>>, vector<320x50xf32>
    %cst = arith.constant dense<0.000000e+00> : vector<2x50xf32>
    %2 = tpu.matmul %0, %1, %cst {dimension_numbers = #tpu.dot_dimension_numbers<[1], [0], [0], [1], [0, 0, 1, 1], [], []>} : vector<2x320xf32>, vector<320x50xf32>, vector<2x50xf32> -> vector<2x50xf32>
    %c0_3 = arith.constant 0 : index
    %c0_4 = arith.constant 0 : index
    %3 = vector.load %arg3[%c0_3, %c0_4] : memref<1x50xf32, #tpu.memory_space<vmem>>, vector<1x50xf32>
    %4 = vector.broadcast %3 : vector<1x50xf32> to vector<2x50xf32>
    %5 = arith.addf %2, %4 : vector<2x50xf32>
    %cst_5 = arith.constant 0.000000e+00 : f32
    %6 = vector.broadcast %cst_5 : f32 to vector<2x50xf32>
    %7 = arith.maximumf %5, %6 : vector<2x50xf32>
    %c0_6 = arith.constant 0 : index
    %c0_7 = arith.constant 0 : index
    %8 = vector.load %arg4[%c0_6, %c0_7] : memref<50x10xf32, #tpu.memory_space<vmem>>, vector<50x10xf32>
    %cst_8 = arith.constant dense<0.000000e+00> : vector<2x10xf32>
    %9 = tpu.matmul %7, %8, %cst_8 {dimension_numbers = #tpu.dot_dimension_numbers<[1], [0], [0], [1], [0, 0, 1, 1], [], []>} : vector<2x50xf32>, vector<50x10xf32>, vector<2x10xf32> -> vector<2x10xf32>
    %c0_9 = arith.constant 0 : index
    %c0_10 = arith.constant 0 : index
    %10 = vector.load %arg5[%c0_9, %c0_10] : memref<1x10xf32, #tpu.memory_space<vmem>>, vector<1x10xf32>
    %11 = vector.broadcast %10 : vector<1x10xf32> to vector<2x10xf32>
    %12 = arith.addf %9, %11 : vector<2x10xf32>
    %cst_11 = arith.constant 0.000000e+00 : f32
    %13 = vector.broadcast %cst_11 : f32 to vector<2x10xf32>
    %14 = arith.maximumf %12, %13 : vector<2x10xf32>
    %cst_12 = arith.constant dense<0xFF800000> : vector<2xf32>
    %15 = vector.multi_reduction <maximumf>, %14, %cst_12 [1] : vector<2x10xf32> to vector<2xf32>
    %16 = vector.shape_cast %15 : vector<2xf32> to vector<2x1xf32>
    %17 = vector.broadcast %16 : vector<2x1xf32> to vector<2x10xf32>
    %18 = arith.subf %14, %17 : vector<2x10xf32>
    %19 = math.exp %18 : vector<2x10xf32>
    %cst_13 = arith.constant dense<0.000000e+00> : vector<2xf32>
    %20 = vector.multi_reduction <add>, %19, %cst_13 [1] : vector<2x10xf32> to vector<2xf32>
    %21 = vector.shape_cast %20 : vector<2xf32> to vector<2x1xf32>
    %22 = math.log %21 : vector<2x1xf32>
    %c0_14 = arith.constant 0 : index
    %c0_15 = arith.constant 0 : index
    %23 = vector.load %arg6[%c0_14, %c0_15] : memref<10x50xf32, #tpu.memory_space<vmem>>, vector<10x50xf32>
    %cst_16 = arith.constant dense<0.000000e+00> : vector<2x50xf32>
    %24 = tpu.matmul %14, %23, %cst_16 {dimension_numbers = #tpu.dot_dimension_numbers<[1], [0], [0], [1], [0, 0, 1, 1], [], []>} : vector<2x10xf32>, vector<10x50xf32>, vector<2x50xf32> -> vector<2x50xf32>
    %c0_17 = arith.constant 0 : index
    %c0_18 = arith.constant 0 : index
    %25 = vector.load %arg7[%c0_17, %c0_18] : memref<1x50xf32, #tpu.memory_space<vmem>>, vector<1x50xf32>
    %26 = vector.broadcast %25 : vector<1x50xf32> to vector<2x50xf32>
    %27 = arith.addf %24, %26 : vector<2x50xf32>
    %cst_19 = arith.constant 0.000000e+00 : f32
    %28 = vector.broadcast %cst_19 : f32 to vector<2x50xf32>
    %29 = arith.maximumf %27, %28 : vector<2x50xf32>
    %c0_20 = arith.constant 0 : index
    %c0_21 = arith.constant 0 : index
    %30 = vector.load %arg8[%c0_20, %c0_21] : memref<50x320xf32, #tpu.memory_space<vmem>>, vector<50x320xf32>
    %cst_22 = arith.constant dense<0.000000e+00> : vector<2x320xf32>
    %31 = tpu.matmul %29, %30, %cst_22 {dimension_numbers = #tpu.dot_dimension_numbers<[1], [0], [0], [1], [0, 0, 1, 1], [], []>} : vector<2x50xf32>, vector<50x320xf32>, vector<2x320xf32> -> vector<2x320xf32>
    %c0_23 = arith.constant 0 : index
    %c0_24 = arith.constant 0 : index
    %32 = vector.load %arg9[%c0_23, %c0_24] : memref<1x320xf32, #tpu.memory_space<vmem>>, vector<1x320xf32>
    %33 = vector.broadcast %32 : vector<1x320xf32> to vector<2x320xf32>
    %34 = arith.addf %31, %33 : vector<2x320xf32>
    %cst_25 = arith.constant 0.000000e+00 : f32
    %35 = vector.broadcast %cst_25 : f32 to vector<2x320xf32>
    %36 = arith.maximumf %34, %35 : vector<2x320xf32>
    %c0_26 = arith.constant 0 : index
    %c0_27 = arith.constant 0 : index
    %37 = vector.load %arg10[%c0_26, %c0_27] : memref<2x10xf32, #tpu.memory_space<vmem>>, vector<2x10xf32>
    tpu.vector_store %arg10[%c0_26, %c0_27], %14 {strides = array<i32>} : memref<2x10xf32, #tpu.memory_space<vmem>>, vector<2x10xf32>,
    %38 = vector.broadcast %22 : vector<2x1xf32> to vector<2x10xf32>
    %39 = arith.subf %18, %38 : vector<2x10xf32>
    %c0_28 = arith.constant 0 : index
    %c0_29 = arith.constant 0 : index
    %40 = vector.load %arg11[%c0_28, %c0_29] : memref<2x10xf32, #tpu.memory_space<vmem>>, vector<2x10xf32>
    tpu.vector_store %arg11[%c0_28, %c0_29], %39 {strides = array<i32>} : memref<2x10xf32, #tpu.memory_space<vmem>>, vector<2x10xf32>,
    %c0_30 = arith.constant 0 : index
    %c0_31 = arith.constant 0 : index
    %41 = vector.load %arg12[%c0_30, %c0_31] : memref<2x320xf32, #tpu.memory_space<vmem>>, vector<2x320xf32>
    tpu.vector_store %arg12[%c0_30, %c0_31], %36 {strides = array<i32>} : memref<2x320xf32, #tpu.memory_space<vmem>>, vector<2x320xf32>,
    return
  }
  func.func @transform_0(%arg0: i32) -> (i32, i32) {
    %c0_i32 = arith.constant 0 : i32
    %c0_i32_0 = arith.constant 0 : i32
    %c0_i32_1 = arith.constant 0 : i32
    return %c0_i32, %c0_i32_0 : i32, i32
  }
  func.func @transform_1(%arg0: i32) -> (i32, i32) {
    %c0_i32 = arith.constant 0 : i32
    %c0_i32_0 = arith.constant 0 : i32
    %c0_i32_1 = arith.constant 0 : i32
    return %c0_i32, %c0_i32_0 : i32, i32
  }
  func.func @transform_2(%arg0: i32) -> (i32, i32) {
    %c0_i32 = arith.constant 0 : i32
    %c0_i32_0 = arith.constant 0 : i32
    %c0_i32_1 = arith.constant 0 : i32
    return %c0_i32, %c0_i32_0 : i32, i32
  }
  func.func @transform_3(%arg0: i32) -> (i32, i32) {
    %c0_i32 = arith.constant 0 : i32
    %c0_i32_0 = arith.constant 0 : i32
    %c0_i32_1 = arith.constant 0 : i32
    return %c0_i32, %c0_i32_0 : i32, i32
  }
  func.func @transform_4(%arg0: i32) -> (i32, i32) {
    %c0_i32 = arith.constant 0 : i32
    %c0_i32_0 = arith.constant 0 : i32
    %c0_i32_1 = arith.constant 0 : i32
    return %c0_i32, %c0_i32_0 : i32, i32
  }
  func.func @transform_5(%arg0: i32) -> (i32, i32) {
    %c0_i32 = arith.constant 0 : i32
    %c0_i32_0 = arith.constant 0 : i32
    %c0_i32_1 = arith.constant 0 : i32
    return %c0_i32, %c0_i32_0 : i32, i32
  }
  func.func @transform_6(%arg0: i32) -> (i32, i32) {
    %c0_i32 = arith.constant 0 : i32
    %c0_i32_0 = arith.constant 0 : i32
    %c0_i32_1 = arith.constant 0 : i32
    return %c0_i32, %c0_i32_0 : i32, i32
  }
  func.func @transform_7(%arg0: i32) -> (i32, i32) {
    %c0_i32 = arith.constant 0 : i32
    %c0_i32_0 = arith.constant 0 : i32
    %c0_i32_1 = arith.constant 0 : i32
    return %c0_i32, %c0_i32_0 : i32, i32
  }
  func.func @transform_8(%arg0: i32) -> (i32, i32) {
    %c0_i32 = arith.constant 0 : i32
    %c0_i32_0 = arith.constant 0 : i32
    %c0_i32_1 = arith.constant 0 : i32
    return %c0_i32, %c0_i32_0 : i32, i32
  }
  func.func @transform_9(%arg0: i32) -> (i32, i32) {
    %c0_i32 = arith.constant 0 : i32
    %c0_i32_0 = arith.constant 0 : i32
    %c0_i32_1 = arith.constant 0 : i32
    return %c0_i32, %c0_i32_0 : i32, i32
  }
  func.func @transform_10(%arg0: i32) -> (i32, i32) {
    %c0_i32 = arith.constant 0 : i32
    %c0_i32_0 = arith.constant 0 : i32
    %c0_i32_1 = arith.constant 0 : i32
    return %c0_i32, %c0_i32_0 : i32, i32
  }
  func.func @transform_11(%arg0: i32) -> (i32, i32) {
    %c0_i32 = arith.constant 0 : i32
    %c0_i32_0 = arith.constant 0 : i32
    %c0_i32_1 = arith.constant 0 : i32
    return %c0_i32, %c0_i32_0 : i32, i32
  }
}

module attributes {stable_mosaic.version = 11 : i64} {
  func.func @_unpool_deconv_relu_kernel(%arg0: i32, %arg1: memref<1x4x80xf32, #tpu.memory_space<vmem>>, %arg2: memref<1x4x80xi32, #tpu.memory_space<vmem>>, %arg3: memref<2x80x320xf32, #tpu.memory_space<vmem>>, %arg4: memref<10x12x4xf32, #tpu.memory_space<vmem>>, %arg5: memref<5x320x120xf32, #tpu.memory_space<vmem>>, %arg6: memref<1x120xf32, #tpu.memory_space<vmem>>, %arg7: memref<1x12x120xf32, #tpu.memory_space<vmem>>) attributes {dimension_semantics = [#tpu.dimension_semantics<parallel>], iteration_bounds = array<i64: 2>, scalar_prefetch = 0 : i64, scratch_operands = 0 : i64, tpu.core_type = #tpu.core_type<tc>, window_params = [{transform_indices = @transform_0, window_bounds = array<i64: 1, 4, 80>}, {transform_indices = @transform_1, window_bounds = array<i64: 1, 4, 80>}, {pipeline_mode = #tpu.pipeline_mode<synchronous>, transform_indices = @transform_2, window_bounds = array<i64: 2, 80, 320>}, {pipeline_mode = #tpu.pipeline_mode<synchronous>, transform_indices = @transform_3, window_bounds = array<i64: 10, 12, 4>}, {pipeline_mode = #tpu.pipeline_mode<synchronous>, transform_indices = @transform_4, window_bounds = array<i64: 5, 320, 120>}, {pipeline_mode = #tpu.pipeline_mode<synchronous>, transform_indices = @transform_5, window_bounds = array<i64: 1, 120>}, {transform_indices = @transform_6, window_bounds = array<i64: 1, 12, 120>}]} {
    %c0 = arith.constant 0 : index
    %c0_0 = arith.constant 0 : index
    %c0_1 = arith.constant 0 : index
    %0 = vector.load %arg1[%c0, %c0_0, %c0_1] : memref<1x4x80xf32, #tpu.memory_space<vmem>>, vector<1x4x80xf32>
    %1 = vector.shape_cast %0 : vector<1x4x80xf32> to vector<4x80xf32>
    %c0_2 = arith.constant 0 : index
    %c0_3 = arith.constant 0 : index
    %c0_4 = arith.constant 0 : index
    %2 = vector.load %arg2[%c0_2, %c0_3, %c0_4] : memref<1x4x80xi32, #tpu.memory_space<vmem>>, vector<1x4x80xi32>
    %3 = vector.shape_cast %2 : vector<1x4x80xi32> to vector<4x80xi32>
    %cst = arith.constant 0.000000e+00 : f32
    %4 = vector.broadcast %cst : f32 to vector<4x320xf32>
    %c0_i32 = arith.constant 0 : i32
    %5 = vector.broadcast %c0_i32 : i32 to vector<4x80xi32>
    %6 = arith.cmpi eq, %3, %5 : vector<4x80xi32>
    %cst_5 = arith.constant 0.000000e+00 : f32
    %7 = vector.broadcast %cst_5 : f32 to vector<4x80xf32>
    %8 = arith.select %6, %1, %7 : vector<4x80xi1>, vector<4x80xf32>
    %c0_6 = arith.constant 0 : index
    %c0_7 = arith.constant 0 : index
    %c0_8 = arith.constant 0 : index
    %9 = vector.load %arg3[%c0_6, %c0_7, %c0_8] : memref<2x80x320xf32, #tpu.memory_space<vmem>>, vector<1x80x320xf32>
    %10 = vector.shape_cast %9 : vector<1x80x320xf32> to vector<80x320xf32>
    %cst_9 = arith.constant dense<0.000000e+00> : vector<4x320xf32>
    %11 = tpu.matmul %8, %10, %cst_9 {dimension_numbers = #tpu.dot_dimension_numbers<[1], [0], [0], [1], [0, 0, 1, 1], [], []>} : vector<4x80xf32>, vector<80x320xf32>, vector<4x320xf32> -> vector<4x320xf32>
    %12 = arith.addf %4, %11 : vector<4x320xf32>
    %c1_i32 = arith.constant 1 : i32
    %13 = vector.broadcast %c1_i32 : i32 to vector<4x80xi32>
    %14 = arith.cmpi eq, %3, %13 : vector<4x80xi32>
    %cst_10 = arith.constant 0.000000e+00 : f32
    %15 = vector.broadcast %cst_10 : f32 to vector<4x80xf32>
    %16 = arith.select %14, %1, %15 : vector<4x80xi1>, vector<4x80xf32>
    %c1 = arith.constant 1 : index
    %c0_11 = arith.constant 0 : index
    %c0_12 = arith.constant 0 : index
    %17 = vector.load %arg3[%c1, %c0_11, %c0_12] : memref<2x80x320xf32, #tpu.memory_space<vmem>>, vector<1x80x320xf32>
    %18 = vector.shape_cast %17 : vector<1x80x320xf32> to vector<80x320xf32>
    %cst_13 = arith.constant dense<0.000000e+00> : vector<4x320xf32>
    %19 = tpu.matmul %16, %18, %cst_13 {dimension_numbers = #tpu.dot_dimension_numbers<[1], [0], [0], [1], [0, 0, 1, 1], [], []>} : vector<4x80xf32>, vector<80x320xf32>, vector<4x320xf32> -> vector<4x320xf32>
    %20 = arith.addf %12, %19 : vector<4x320xf32>
    %cst_14 = arith.constant 0.000000e+00 : f32
    %21 = vector.broadcast %cst_14 : f32 to vector<4x320xf32>
    %c2_i32 = arith.constant 2 : i32
    %22 = vector.broadcast %c2_i32 : i32 to vector<4x80xi32>
    %23 = arith.cmpi eq, %3, %22 : vector<4x80xi32>
    %cst_15 = arith.constant 0.000000e+00 : f32
    %24 = vector.broadcast %cst_15 : f32 to vector<4x80xf32>
    %25 = arith.select %23, %1, %24 : vector<4x80xi1>, vector<4x80xf32>
    %c0_16 = arith.constant 0 : index
    %c0_17 = arith.constant 0 : index
    %c0_18 = arith.constant 0 : index
    %26 = vector.load %arg3[%c0_16, %c0_17, %c0_18] : memref<2x80x320xf32, #tpu.memory_space<vmem>>, vector<1x80x320xf32>
    %27 = vector.shape_cast %26 : vector<1x80x320xf32> to vector<80x320xf32>
    %cst_19 = arith.constant dense<0.000000e+00> : vector<4x320xf32>
    %28 = tpu.matmul %25, %27, %cst_19 {dimension_numbers = #tpu.dot_dimension_numbers<[1], [0], [0], [1], [0, 0, 1, 1], [], []>} : vector<4x80xf32>, vector<80x320xf32>, vector<4x320xf32> -> vector<4x320xf32>
    %29 = arith.addf %21, %28 : vector<4x320xf32>
    %c3_i32 = arith.constant 3 : i32
    %30 = vector.broadcast %c3_i32 : i32 to vector<4x80xi32>
    %31 = arith.cmpi eq, %3, %30 : vector<4x80xi32>
    %cst_20 = arith.constant 0.000000e+00 : f32
    %32 = vector.broadcast %cst_20 : f32 to vector<4x80xf32>
    %33 = arith.select %31, %1, %32 : vector<4x80xi1>, vector<4x80xf32>
    %c1_21 = arith.constant 1 : index
    %c0_22 = arith.constant 0 : index
    %c0_23 = arith.constant 0 : index
    %34 = vector.load %arg3[%c1_21, %c0_22, %c0_23] : memref<2x80x320xf32, #tpu.memory_space<vmem>>, vector<1x80x320xf32>
    %35 = vector.shape_cast %34 : vector<1x80x320xf32> to vector<80x320xf32>
    %cst_24 = arith.constant dense<0.000000e+00> : vector<4x320xf32>
    %36 = tpu.matmul %33, %35, %cst_24 {dimension_numbers = #tpu.dot_dimension_numbers<[1], [0], [0], [1], [0, 0, 1, 1], [], []>} : vector<4x80xf32>, vector<80x320xf32>, vector<4x320xf32> -> vector<4x320xf32>
    %37 = arith.addf %29, %36 : vector<4x320xf32>
    %cst_25 = arith.constant 0.000000e+00 : f32
    %38 = vector.broadcast %cst_25 : f32 to vector<12x120xf32>
    %c0_26 = arith.constant 0 : index
    %c0_27 = arith.constant 0 : index
    %c0_28 = arith.constant 0 : index
    %39 = vector.load %arg4[%c0_26, %c0_27, %c0_28] : memref<10x12x4xf32, #tpu.memory_space<vmem>>, vector<1x12x4xf32>
    %40 = vector.shape_cast %39 : vector<1x12x4xf32> to vector<12x4xf32>
    %cst_29 = arith.constant dense<0.000000e+00> : vector<12x320xf32>
    %41 = tpu.matmul %40, %20, %cst_29 {dimension_numbers = #tpu.dot_dimension_numbers<[1], [0], [0], [1], [0, 0, 1, 1], [], []>} : vector<12x4xf32>, vector<4x320xf32>, vector<12x320xf32> -> vector<12x320xf32>
    %c5 = arith.constant 5 : index
    %c0_30 = arith.constant 0 : index
    %c0_31 = arith.constant 0 : index
    %42 = vector.load %arg4[%c5, %c0_30, %c0_31] : memref<10x12x4xf32, #tpu.memory_space<vmem>>, vector<1x12x4xf32>
    %43 = vector.shape_cast %42 : vector<1x12x4xf32> to vector<12x4xf32>
    %cst_32 = arith.constant dense<0.000000e+00> : vector<12x320xf32>
    %44 = tpu.matmul %43, %37, %cst_32 {dimension_numbers = #tpu.dot_dimension_numbers<[1], [0], [0], [1], [0, 0, 1, 1], [], []>} : vector<12x4xf32>, vector<4x320xf32>, vector<12x320xf32> -> vector<12x320xf32>
    %45 = arith.addf %41, %44 : vector<12x320xf32>
    %c0_33 = arith.constant 0 : index
    %c0_34 = arith.constant 0 : index
    %c0_35 = arith.constant 0 : index
    %46 = vector.load %arg5[%c0_33, %c0_34, %c0_35] : memref<5x320x120xf32, #tpu.memory_space<vmem>>, vector<1x320x120xf32>
    %47 = vector.shape_cast %46 : vector<1x320x120xf32> to vector<320x120xf32>
    %cst_36 = arith.constant dense<0.000000e+00> : vector<12x120xf32>
    %48 = tpu.matmul %45, %47, %cst_36 {dimension_numbers = #tpu.dot_dimension_numbers<[1], [0], [0], [1], [0, 0, 1, 1], [], []>} : vector<12x320xf32>, vector<320x120xf32>, vector<12x120xf32> -> vector<12x120xf32>
    %49 = arith.addf %38, %48 : vector<12x120xf32>
    %c1_37 = arith.constant 1 : index
    %c0_38 = arith.constant 0 : index
    %c0_39 = arith.constant 0 : index
    %50 = vector.load %arg4[%c1_37, %c0_38, %c0_39] : memref<10x12x4xf32, #tpu.memory_space<vmem>>, vector<1x12x4xf32>
    %51 = vector.shape_cast %50 : vector<1x12x4xf32> to vector<12x4xf32>
    %cst_40 = arith.constant dense<0.000000e+00> : vector<12x320xf32>
    %52 = tpu.matmul %51, %20, %cst_40 {dimension_numbers = #tpu.dot_dimension_numbers<[1], [0], [0], [1], [0, 0, 1, 1], [], []>} : vector<12x4xf32>, vector<4x320xf32>, vector<12x320xf32> -> vector<12x320xf32>
    %c6 = arith.constant 6 : index
    %c0_41 = arith.constant 0 : index
    %c0_42 = arith.constant 0 : index
    %53 = vector.load %arg4[%c6, %c0_41, %c0_42] : memref<10x12x4xf32, #tpu.memory_space<vmem>>, vector<1x12x4xf32>
    %54 = vector.shape_cast %53 : vector<1x12x4xf32> to vector<12x4xf32>
    %cst_43 = arith.constant dense<0.000000e+00> : vector<12x320xf32>
    %55 = tpu.matmul %54, %37, %cst_43 {dimension_numbers = #tpu.dot_dimension_numbers<[1], [0], [0], [1], [0, 0, 1, 1], [], []>} : vector<12x4xf32>, vector<4x320xf32>, vector<12x320xf32> -> vector<12x320xf32>
    %56 = arith.addf %52, %55 : vector<12x320xf32>
    %c1_44 = arith.constant 1 : index
    %c0_45 = arith.constant 0 : index
    %c0_46 = arith.constant 0 : index
    %57 = vector.load %arg5[%c1_44, %c0_45, %c0_46] : memref<5x320x120xf32, #tpu.memory_space<vmem>>, vector<1x320x120xf32>
    %58 = vector.shape_cast %57 : vector<1x320x120xf32> to vector<320x120xf32>
    %cst_47 = arith.constant dense<0.000000e+00> : vector<12x120xf32>
    %59 = tpu.matmul %56, %58, %cst_47 {dimension_numbers = #tpu.dot_dimension_numbers<[1], [0], [0], [1], [0, 0, 1, 1], [], []>} : vector<12x320xf32>, vector<320x120xf32>, vector<12x120xf32> -> vector<12x120xf32>
    %60 = arith.addf %49, %59 : vector<12x120xf32>
    %c2 = arith.constant 2 : index
    %c0_48 = arith.constant 0 : index
    %c0_49 = arith.constant 0 : index
    %61 = vector.load %arg4[%c2, %c0_48, %c0_49] : memref<10x12x4xf32, #tpu.memory_space<vmem>>, vector<1x12x4xf32>
    %62 = vector.shape_cast %61 : vector<1x12x4xf32> to vector<12x4xf32>
    %cst_50 = arith.constant dense<0.000000e+00> : vector<12x320xf32>
    %63 = tpu.matmul %62, %20, %cst_50 {dimension_numbers = #tpu.dot_dimension_numbers<[1], [0], [0], [1], [0, 0, 1, 1], [], []>} : vector<12x4xf32>, vector<4x320xf32>, vector<12x320xf32> -> vector<12x320xf32>
    %c7 = arith.constant 7 : index
    %c0_51 = arith.constant 0 : index
    %c0_52 = arith.constant 0 : index
    %64 = vector.load %arg4[%c7, %c0_51, %c0_52] : memref<10x12x4xf32, #tpu.memory_space<vmem>>, vector<1x12x4xf32>
    %65 = vector.shape_cast %64 : vector<1x12x4xf32> to vector<12x4xf32>
    %cst_53 = arith.constant dense<0.000000e+00> : vector<12x320xf32>
    %66 = tpu.matmul %65, %37, %cst_53 {dimension_numbers = #tpu.dot_dimension_numbers<[1], [0], [0], [1], [0, 0, 1, 1], [], []>} : vector<12x4xf32>, vector<4x320xf32>, vector<12x320xf32> -> vector<12x320xf32>
    %67 = arith.addf %63, %66 : vector<12x320xf32>
    %c2_54 = arith.constant 2 : index
    %c0_55 = arith.constant 0 : index
    %c0_56 = arith.constant 0 : index
    %68 = vector.load %arg5[%c2_54, %c0_55, %c0_56] : memref<5x320x120xf32, #tpu.memory_space<vmem>>, vector<1x320x120xf32>
    %69 = vector.shape_cast %68 : vector<1x320x120xf32> to vector<320x120xf32>
    %cst_57 = arith.constant dense<0.000000e+00> : vector<12x120xf32>
    %70 = tpu.matmul %67, %69, %cst_57 {dimension_numbers = #tpu.dot_dimension_numbers<[1], [0], [0], [1], [0, 0, 1, 1], [], []>} : vector<12x320xf32>, vector<320x120xf32>, vector<12x120xf32> -> vector<12x120xf32>
    %71 = arith.addf %60, %70 : vector<12x120xf32>
    %c3 = arith.constant 3 : index
    %c0_58 = arith.constant 0 : index
    %c0_59 = arith.constant 0 : index
    %72 = vector.load %arg4[%c3, %c0_58, %c0_59] : memref<10x12x4xf32, #tpu.memory_space<vmem>>, vector<1x12x4xf32>
    %73 = vector.shape_cast %72 : vector<1x12x4xf32> to vector<12x4xf32>
    %cst_60 = arith.constant dense<0.000000e+00> : vector<12x320xf32>
    %74 = tpu.matmul %73, %20, %cst_60 {dimension_numbers = #tpu.dot_dimension_numbers<[1], [0], [0], [1], [0, 0, 1, 1], [], []>} : vector<12x4xf32>, vector<4x320xf32>, vector<12x320xf32> -> vector<12x320xf32>
    %c8 = arith.constant 8 : index
    %c0_61 = arith.constant 0 : index
    %c0_62 = arith.constant 0 : index
    %75 = vector.load %arg4[%c8, %c0_61, %c0_62] : memref<10x12x4xf32, #tpu.memory_space<vmem>>, vector<1x12x4xf32>
    %76 = vector.shape_cast %75 : vector<1x12x4xf32> to vector<12x4xf32>
    %cst_63 = arith.constant dense<0.000000e+00> : vector<12x320xf32>
    %77 = tpu.matmul %76, %37, %cst_63 {dimension_numbers = #tpu.dot_dimension_numbers<[1], [0], [0], [1], [0, 0, 1, 1], [], []>} : vector<12x4xf32>, vector<4x320xf32>, vector<12x320xf32> -> vector<12x320xf32>
    %78 = arith.addf %74, %77 : vector<12x320xf32>
    %c3_64 = arith.constant 3 : index
    %c0_65 = arith.constant 0 : index
    %c0_66 = arith.constant 0 : index
    %79 = vector.load %arg5[%c3_64, %c0_65, %c0_66] : memref<5x320x120xf32, #tpu.memory_space<vmem>>, vector<1x320x120xf32>
    %80 = vector.shape_cast %79 : vector<1x320x120xf32> to vector<320x120xf32>
    %cst_67 = arith.constant dense<0.000000e+00> : vector<12x120xf32>
    %81 = tpu.matmul %78, %80, %cst_67 {dimension_numbers = #tpu.dot_dimension_numbers<[1], [0], [0], [1], [0, 0, 1, 1], [], []>} : vector<12x320xf32>, vector<320x120xf32>, vector<12x120xf32> -> vector<12x120xf32>
    %82 = arith.addf %71, %81 : vector<12x120xf32>
    %c4 = arith.constant 4 : index
    %c0_68 = arith.constant 0 : index
    %c0_69 = arith.constant 0 : index
    %83 = vector.load %arg4[%c4, %c0_68, %c0_69] : memref<10x12x4xf32, #tpu.memory_space<vmem>>, vector<1x12x4xf32>
    %84 = vector.shape_cast %83 : vector<1x12x4xf32> to vector<12x4xf32>
    %cst_70 = arith.constant dense<0.000000e+00> : vector<12x320xf32>
    %85 = tpu.matmul %84, %20, %cst_70 {dimension_numbers = #tpu.dot_dimension_numbers<[1], [0], [0], [1], [0, 0, 1, 1], [], []>} : vector<12x4xf32>, vector<4x320xf32>, vector<12x320xf32> -> vector<12x320xf32>
    %c9 = arith.constant 9 : index
    %c0_71 = arith.constant 0 : index
    %c0_72 = arith.constant 0 : index
    %86 = vector.load %arg4[%c9, %c0_71, %c0_72] : memref<10x12x4xf32, #tpu.memory_space<vmem>>, vector<1x12x4xf32>
    %87 = vector.shape_cast %86 : vector<1x12x4xf32> to vector<12x4xf32>
    %cst_73 = arith.constant dense<0.000000e+00> : vector<12x320xf32>
    %88 = tpu.matmul %87, %37, %cst_73 {dimension_numbers = #tpu.dot_dimension_numbers<[1], [0], [0], [1], [0, 0, 1, 1], [], []>} : vector<12x4xf32>, vector<4x320xf32>, vector<12x320xf32> -> vector<12x320xf32>
    %89 = arith.addf %85, %88 : vector<12x320xf32>
    %c4_74 = arith.constant 4 : index
    %c0_75 = arith.constant 0 : index
    %c0_76 = arith.constant 0 : index
    %90 = vector.load %arg5[%c4_74, %c0_75, %c0_76] : memref<5x320x120xf32, #tpu.memory_space<vmem>>, vector<1x320x120xf32>
    %91 = vector.shape_cast %90 : vector<1x320x120xf32> to vector<320x120xf32>
    %cst_77 = arith.constant dense<0.000000e+00> : vector<12x120xf32>
    %92 = tpu.matmul %89, %91, %cst_77 {dimension_numbers = #tpu.dot_dimension_numbers<[1], [0], [0], [1], [0, 0, 1, 1], [], []>} : vector<12x320xf32>, vector<320x120xf32>, vector<12x120xf32> -> vector<12x120xf32>
    %93 = arith.addf %82, %92 : vector<12x120xf32>
    %c0_78 = arith.constant 0 : index
    %c0_79 = arith.constant 0 : index
    %94 = vector.load %arg6[%c0_78, %c0_79] : memref<1x120xf32, #tpu.memory_space<vmem>>, vector<1x120xf32>
    %95 = vector.broadcast %94 : vector<1x120xf32> to vector<12x120xf32>
    %96 = arith.addf %93, %95 : vector<12x120xf32>
    %cst_80 = arith.constant 0.000000e+00 : f32
    %97 = vector.broadcast %cst_80 : f32 to vector<12x120xf32>
    %98 = arith.maximumf %96, %97 : vector<12x120xf32>
    %c0_81 = arith.constant 0 : index
    %c0_82 = arith.constant 0 : index
    %c0_83 = arith.constant 0 : index
    %99 = vector.load %arg7[%c0_81, %c0_82, %c0_83] : memref<1x12x120xf32, #tpu.memory_space<vmem>>, vector<1x12x120xf32>
    %100 = vector.shape_cast %99 : vector<1x12x120xf32> to vector<12x120xf32>
    %101 = vector.shape_cast %98 : vector<12x120xf32> to vector<1x12x120xf32>
    tpu.vector_store %arg7[%c0_81, %c0_82, %c0_83], %101 {strides = array<i32>} : memref<1x12x120xf32, #tpu.memory_space<vmem>>, vector<1x12x120xf32>,
    return
  }
  func.func @transform_0(%arg0: i32) -> (i32, i32, i32) {
    %c0_i32 = arith.constant 0 : i32
    %c0_i32_0 = arith.constant 0 : i32
    %c0_i32_1 = arith.constant 0 : i32
    return %arg0, %c0_i32, %c0_i32_0 : i32, i32, i32
  }
  func.func @transform_1(%arg0: i32) -> (i32, i32, i32) {
    %c0_i32 = arith.constant 0 : i32
    %c0_i32_0 = arith.constant 0 : i32
    %c0_i32_1 = arith.constant 0 : i32
    return %arg0, %c0_i32, %c0_i32_0 : i32, i32, i32
  }
  func.func @transform_2(%arg0: i32) -> (i32, i32, i32) {
    %c0_i32 = arith.constant 0 : i32
    %c0_i32_0 = arith.constant 0 : i32
    %c0_i32_1 = arith.constant 0 : i32
    %c0_i32_2 = arith.constant 0 : i32
    return %c0_i32, %c0_i32_0, %c0_i32_1 : i32, i32, i32
  }
  func.func @transform_3(%arg0: i32) -> (i32, i32, i32) {
    %c0_i32 = arith.constant 0 : i32
    %c0_i32_0 = arith.constant 0 : i32
    %c0_i32_1 = arith.constant 0 : i32
    %c0_i32_2 = arith.constant 0 : i32
    return %c0_i32, %c0_i32_0, %c0_i32_1 : i32, i32, i32
  }
  func.func @transform_4(%arg0: i32) -> (i32, i32, i32) {
    %c0_i32 = arith.constant 0 : i32
    %c0_i32_0 = arith.constant 0 : i32
    %c0_i32_1 = arith.constant 0 : i32
    %c0_i32_2 = arith.constant 0 : i32
    return %c0_i32, %c0_i32_0, %c0_i32_1 : i32, i32, i32
  }
  func.func @transform_5(%arg0: i32) -> (i32, i32) {
    %c0_i32 = arith.constant 0 : i32
    %c0_i32_0 = arith.constant 0 : i32
    %c0_i32_1 = arith.constant 0 : i32
    return %c0_i32, %c0_i32_0 : i32, i32
  }
  func.func @transform_6(%arg0: i32) -> (i32, i32, i32) {
    %c0_i32 = arith.constant 0 : i32
    %c0_i32_0 = arith.constant 0 : i32
    %c0_i32_1 = arith.constant 0 : i32
    return %arg0, %c0_i32, %c0_i32_0 : i32, i32, i32
  }
}

module attributes {stable_mosaic.version = 11 : i64} {
  func.func @_unpool_deconv_relu_kernel(%arg0: i32, %arg1: memref<1x12x120xf32, #tpu.memory_space<vmem>>, %arg2: memref<1x12x120xi32, #tpu.memory_space<vmem>>, %arg3: memref<2x120x320xf32, #tpu.memory_space<vmem>>, %arg4: memref<10x28x12xf32, #tpu.memory_space<vmem>>, %arg5: memref<5x320x28xf32, #tpu.memory_space<vmem>>, %arg6: memref<1x28xf32, #tpu.memory_space<vmem>>, %arg7: memref<1x28x28xf32, #tpu.memory_space<vmem>>) attributes {dimension_semantics = [#tpu.dimension_semantics<parallel>], iteration_bounds = array<i64: 2>, scalar_prefetch = 0 : i64, scratch_operands = 0 : i64, tpu.core_type = #tpu.core_type<tc>, window_params = [{transform_indices = @transform_0, window_bounds = array<i64: 1, 12, 120>}, {transform_indices = @transform_1, window_bounds = array<i64: 1, 12, 120>}, {pipeline_mode = #tpu.pipeline_mode<synchronous>, transform_indices = @transform_2, window_bounds = array<i64: 2, 120, 320>}, {pipeline_mode = #tpu.pipeline_mode<synchronous>, transform_indices = @transform_3, window_bounds = array<i64: 10, 28, 12>}, {pipeline_mode = #tpu.pipeline_mode<synchronous>, transform_indices = @transform_4, window_bounds = array<i64: 5, 320, 28>}, {pipeline_mode = #tpu.pipeline_mode<synchronous>, transform_indices = @transform_5, window_bounds = array<i64: 1, 28>}, {transform_indices = @transform_6, window_bounds = array<i64: 1, 28, 28>}]} {
    %c0 = arith.constant 0 : index
    %c0_0 = arith.constant 0 : index
    %c0_1 = arith.constant 0 : index
    %0 = vector.load %arg1[%c0, %c0_0, %c0_1] : memref<1x12x120xf32, #tpu.memory_space<vmem>>, vector<1x12x120xf32>
    %1 = vector.shape_cast %0 : vector<1x12x120xf32> to vector<12x120xf32>
    %c0_2 = arith.constant 0 : index
    %c0_3 = arith.constant 0 : index
    %c0_4 = arith.constant 0 : index
    %2 = vector.load %arg2[%c0_2, %c0_3, %c0_4] : memref<1x12x120xi32, #tpu.memory_space<vmem>>, vector<1x12x120xi32>
    %3 = vector.shape_cast %2 : vector<1x12x120xi32> to vector<12x120xi32>
    %cst = arith.constant 0.000000e+00 : f32
    %4 = vector.broadcast %cst : f32 to vector<12x320xf32>
    %c0_i32 = arith.constant 0 : i32
    %5 = vector.broadcast %c0_i32 : i32 to vector<12x120xi32>
    %6 = arith.cmpi eq, %3, %5 : vector<12x120xi32>
    %cst_5 = arith.constant 0.000000e+00 : f32
    %7 = vector.broadcast %cst_5 : f32 to vector<12x120xf32>
    %8 = arith.select %6, %1, %7 : vector<12x120xi1>, vector<12x120xf32>
    %c0_6 = arith.constant 0 : index
    %c0_7 = arith.constant 0 : index
    %c0_8 = arith.constant 0 : index
    %9 = vector.load %arg3[%c0_6, %c0_7, %c0_8] : memref<2x120x320xf32, #tpu.memory_space<vmem>>, vector<1x120x320xf32>
    %10 = vector.shape_cast %9 : vector<1x120x320xf32> to vector<120x320xf32>
    %cst_9 = arith.constant dense<0.000000e+00> : vector<12x320xf32>
    %11 = tpu.matmul %8, %10, %cst_9 {dimension_numbers = #tpu.dot_dimension_numbers<[1], [0], [0], [1], [0, 0, 1, 1], [], []>} : vector<12x120xf32>, vector<120x320xf32>, vector<12x320xf32> -> vector<12x320xf32>
    %12 = arith.addf %4, %11 : vector<12x320xf32>
    %c1_i32 = arith.constant 1 : i32
    %13 = vector.broadcast %c1_i32 : i32 to vector<12x120xi32>
    %14 = arith.cmpi eq, %3, %13 : vector<12x120xi32>
    %cst_10 = arith.constant 0.000000e+00 : f32
    %15 = vector.broadcast %cst_10 : f32 to vector<12x120xf32>
    %16 = arith.select %14, %1, %15 : vector<12x120xi1>, vector<12x120xf32>
    %c1 = arith.constant 1 : index
    %c0_11 = arith.constant 0 : index
    %c0_12 = arith.constant 0 : index
    %17 = vector.load %arg3[%c1, %c0_11, %c0_12] : memref<2x120x320xf32, #tpu.memory_space<vmem>>, vector<1x120x320xf32>
    %18 = vector.shape_cast %17 : vector<1x120x320xf32> to vector<120x320xf32>
    %cst_13 = arith.constant dense<0.000000e+00> : vector<12x320xf32>
    %19 = tpu.matmul %16, %18, %cst_13 {dimension_numbers = #tpu.dot_dimension_numbers<[1], [0], [0], [1], [0, 0, 1, 1], [], []>} : vector<12x120xf32>, vector<120x320xf32>, vector<12x320xf32> -> vector<12x320xf32>
    %20 = arith.addf %12, %19 : vector<12x320xf32>
    %cst_14 = arith.constant 0.000000e+00 : f32
    %21 = vector.broadcast %cst_14 : f32 to vector<12x320xf32>
    %c2_i32 = arith.constant 2 : i32
    %22 = vector.broadcast %c2_i32 : i32 to vector<12x120xi32>
    %23 = arith.cmpi eq, %3, %22 : vector<12x120xi32>
    %cst_15 = arith.constant 0.000000e+00 : f32
    %24 = vector.broadcast %cst_15 : f32 to vector<12x120xf32>
    %25 = arith.select %23, %1, %24 : vector<12x120xi1>, vector<12x120xf32>
    %c0_16 = arith.constant 0 : index
    %c0_17 = arith.constant 0 : index
    %c0_18 = arith.constant 0 : index
    %26 = vector.load %arg3[%c0_16, %c0_17, %c0_18] : memref<2x120x320xf32, #tpu.memory_space<vmem>>, vector<1x120x320xf32>
    %27 = vector.shape_cast %26 : vector<1x120x320xf32> to vector<120x320xf32>
    %cst_19 = arith.constant dense<0.000000e+00> : vector<12x320xf32>
    %28 = tpu.matmul %25, %27, %cst_19 {dimension_numbers = #tpu.dot_dimension_numbers<[1], [0], [0], [1], [0, 0, 1, 1], [], []>} : vector<12x120xf32>, vector<120x320xf32>, vector<12x320xf32> -> vector<12x320xf32>
    %29 = arith.addf %21, %28 : vector<12x320xf32>
    %c3_i32 = arith.constant 3 : i32
    %30 = vector.broadcast %c3_i32 : i32 to vector<12x120xi32>
    %31 = arith.cmpi eq, %3, %30 : vector<12x120xi32>
    %cst_20 = arith.constant 0.000000e+00 : f32
    %32 = vector.broadcast %cst_20 : f32 to vector<12x120xf32>
    %33 = arith.select %31, %1, %32 : vector<12x120xi1>, vector<12x120xf32>
    %c1_21 = arith.constant 1 : index
    %c0_22 = arith.constant 0 : index
    %c0_23 = arith.constant 0 : index
    %34 = vector.load %arg3[%c1_21, %c0_22, %c0_23] : memref<2x120x320xf32, #tpu.memory_space<vmem>>, vector<1x120x320xf32>
    %35 = vector.shape_cast %34 : vector<1x120x320xf32> to vector<120x320xf32>
    %cst_24 = arith.constant dense<0.000000e+00> : vector<12x320xf32>
    %36 = tpu.matmul %33, %35, %cst_24 {dimension_numbers = #tpu.dot_dimension_numbers<[1], [0], [0], [1], [0, 0, 1, 1], [], []>} : vector<12x120xf32>, vector<120x320xf32>, vector<12x320xf32> -> vector<12x320xf32>
    %37 = arith.addf %29, %36 : vector<12x320xf32>
    %cst_25 = arith.constant 0.000000e+00 : f32
    %38 = vector.broadcast %cst_25 : f32 to vector<28x28xf32>
    %c0_26 = arith.constant 0 : index
    %c0_27 = arith.constant 0 : index
    %c0_28 = arith.constant 0 : index
    %39 = vector.load %arg4[%c0_26, %c0_27, %c0_28] : memref<10x28x12xf32, #tpu.memory_space<vmem>>, vector<1x28x12xf32>
    %40 = vector.shape_cast %39 : vector<1x28x12xf32> to vector<28x12xf32>
    %cst_29 = arith.constant dense<0.000000e+00> : vector<28x320xf32>
    %41 = tpu.matmul %40, %20, %cst_29 {dimension_numbers = #tpu.dot_dimension_numbers<[1], [0], [0], [1], [0, 0, 1, 1], [], []>} : vector<28x12xf32>, vector<12x320xf32>, vector<28x320xf32> -> vector<28x320xf32>
    %c5 = arith.constant 5 : index
    %c0_30 = arith.constant 0 : index
    %c0_31 = arith.constant 0 : index
    %42 = vector.load %arg4[%c5, %c0_30, %c0_31] : memref<10x28x12xf32, #tpu.memory_space<vmem>>, vector<1x28x12xf32>
    %43 = vector.shape_cast %42 : vector<1x28x12xf32> to vector<28x12xf32>
    %cst_32 = arith.constant dense<0.000000e+00> : vector<28x320xf32>
    %44 = tpu.matmul %43, %37, %cst_32 {dimension_numbers = #tpu.dot_dimension_numbers<[1], [0], [0], [1], [0, 0, 1, 1], [], []>} : vector<28x12xf32>, vector<12x320xf32>, vector<28x320xf32> -> vector<28x320xf32>
    %45 = arith.addf %41, %44 : vector<28x320xf32>
    %c0_33 = arith.constant 0 : index
    %c0_34 = arith.constant 0 : index
    %c0_35 = arith.constant 0 : index
    %46 = vector.load %arg5[%c0_33, %c0_34, %c0_35] : memref<5x320x28xf32, #tpu.memory_space<vmem>>, vector<1x320x28xf32>
    %47 = vector.shape_cast %46 : vector<1x320x28xf32> to vector<320x28xf32>
    %cst_36 = arith.constant dense<0.000000e+00> : vector<28x28xf32>
    %48 = tpu.matmul %45, %47, %cst_36 {dimension_numbers = #tpu.dot_dimension_numbers<[1], [0], [0], [1], [0, 0, 1, 1], [], []>} : vector<28x320xf32>, vector<320x28xf32>, vector<28x28xf32> -> vector<28x28xf32>
    %49 = arith.addf %38, %48 : vector<28x28xf32>
    %c1_37 = arith.constant 1 : index
    %c0_38 = arith.constant 0 : index
    %c0_39 = arith.constant 0 : index
    %50 = vector.load %arg4[%c1_37, %c0_38, %c0_39] : memref<10x28x12xf32, #tpu.memory_space<vmem>>, vector<1x28x12xf32>
    %51 = vector.shape_cast %50 : vector<1x28x12xf32> to vector<28x12xf32>
    %cst_40 = arith.constant dense<0.000000e+00> : vector<28x320xf32>
    %52 = tpu.matmul %51, %20, %cst_40 {dimension_numbers = #tpu.dot_dimension_numbers<[1], [0], [0], [1], [0, 0, 1, 1], [], []>} : vector<28x12xf32>, vector<12x320xf32>, vector<28x320xf32> -> vector<28x320xf32>
    %c6 = arith.constant 6 : index
    %c0_41 = arith.constant 0 : index
    %c0_42 = arith.constant 0 : index
    %53 = vector.load %arg4[%c6, %c0_41, %c0_42] : memref<10x28x12xf32, #tpu.memory_space<vmem>>, vector<1x28x12xf32>
    %54 = vector.shape_cast %53 : vector<1x28x12xf32> to vector<28x12xf32>
    %cst_43 = arith.constant dense<0.000000e+00> : vector<28x320xf32>
    %55 = tpu.matmul %54, %37, %cst_43 {dimension_numbers = #tpu.dot_dimension_numbers<[1], [0], [0], [1], [0, 0, 1, 1], [], []>} : vector<28x12xf32>, vector<12x320xf32>, vector<28x320xf32> -> vector<28x320xf32>
    %56 = arith.addf %52, %55 : vector<28x320xf32>
    %c1_44 = arith.constant 1 : index
    %c0_45 = arith.constant 0 : index
    %c0_46 = arith.constant 0 : index
    %57 = vector.load %arg5[%c1_44, %c0_45, %c0_46] : memref<5x320x28xf32, #tpu.memory_space<vmem>>, vector<1x320x28xf32>
    %58 = vector.shape_cast %57 : vector<1x320x28xf32> to vector<320x28xf32>
    %cst_47 = arith.constant dense<0.000000e+00> : vector<28x28xf32>
    %59 = tpu.matmul %56, %58, %cst_47 {dimension_numbers = #tpu.dot_dimension_numbers<[1], [0], [0], [1], [0, 0, 1, 1], [], []>} : vector<28x320xf32>, vector<320x28xf32>, vector<28x28xf32> -> vector<28x28xf32>
    %60 = arith.addf %49, %59 : vector<28x28xf32>
    %c2 = arith.constant 2 : index
    %c0_48 = arith.constant 0 : index
    %c0_49 = arith.constant 0 : index
    %61 = vector.load %arg4[%c2, %c0_48, %c0_49] : memref<10x28x12xf32, #tpu.memory_space<vmem>>, vector<1x28x12xf32>
    %62 = vector.shape_cast %61 : vector<1x28x12xf32> to vector<28x12xf32>
    %cst_50 = arith.constant dense<0.000000e+00> : vector<28x320xf32>
    %63 = tpu.matmul %62, %20, %cst_50 {dimension_numbers = #tpu.dot_dimension_numbers<[1], [0], [0], [1], [0, 0, 1, 1], [], []>} : vector<28x12xf32>, vector<12x320xf32>, vector<28x320xf32> -> vector<28x320xf32>
    %c7 = arith.constant 7 : index
    %c0_51 = arith.constant 0 : index
    %c0_52 = arith.constant 0 : index
    %64 = vector.load %arg4[%c7, %c0_51, %c0_52] : memref<10x28x12xf32, #tpu.memory_space<vmem>>, vector<1x28x12xf32>
    %65 = vector.shape_cast %64 : vector<1x28x12xf32> to vector<28x12xf32>
    %cst_53 = arith.constant dense<0.000000e+00> : vector<28x320xf32>
    %66 = tpu.matmul %65, %37, %cst_53 {dimension_numbers = #tpu.dot_dimension_numbers<[1], [0], [0], [1], [0, 0, 1, 1], [], []>} : vector<28x12xf32>, vector<12x320xf32>, vector<28x320xf32> -> vector<28x320xf32>
    %67 = arith.addf %63, %66 : vector<28x320xf32>
    %c2_54 = arith.constant 2 : index
    %c0_55 = arith.constant 0 : index
    %c0_56 = arith.constant 0 : index
    %68 = vector.load %arg5[%c2_54, %c0_55, %c0_56] : memref<5x320x28xf32, #tpu.memory_space<vmem>>, vector<1x320x28xf32>
    %69 = vector.shape_cast %68 : vector<1x320x28xf32> to vector<320x28xf32>
    %cst_57 = arith.constant dense<0.000000e+00> : vector<28x28xf32>
    %70 = tpu.matmul %67, %69, %cst_57 {dimension_numbers = #tpu.dot_dimension_numbers<[1], [0], [0], [1], [0, 0, 1, 1], [], []>} : vector<28x320xf32>, vector<320x28xf32>, vector<28x28xf32> -> vector<28x28xf32>
    %71 = arith.addf %60, %70 : vector<28x28xf32>
    %c3 = arith.constant 3 : index
    %c0_58 = arith.constant 0 : index
    %c0_59 = arith.constant 0 : index
    %72 = vector.load %arg4[%c3, %c0_58, %c0_59] : memref<10x28x12xf32, #tpu.memory_space<vmem>>, vector<1x28x12xf32>
    %73 = vector.shape_cast %72 : vector<1x28x12xf32> to vector<28x12xf32>
    %cst_60 = arith.constant dense<0.000000e+00> : vector<28x320xf32>
    %74 = tpu.matmul %73, %20, %cst_60 {dimension_numbers = #tpu.dot_dimension_numbers<[1], [0], [0], [1], [0, 0, 1, 1], [], []>} : vector<28x12xf32>, vector<12x320xf32>, vector<28x320xf32> -> vector<28x320xf32>
    %c8 = arith.constant 8 : index
    %c0_61 = arith.constant 0 : index
    %c0_62 = arith.constant 0 : index
    %75 = vector.load %arg4[%c8, %c0_61, %c0_62] : memref<10x28x12xf32, #tpu.memory_space<vmem>>, vector<1x28x12xf32>
    %76 = vector.shape_cast %75 : vector<1x28x12xf32> to vector<28x12xf32>
    %cst_63 = arith.constant dense<0.000000e+00> : vector<28x320xf32>
    %77 = tpu.matmul %76, %37, %cst_63 {dimension_numbers = #tpu.dot_dimension_numbers<[1], [0], [0], [1], [0, 0, 1, 1], [], []>} : vector<28x12xf32>, vector<12x320xf32>, vector<28x320xf32> -> vector<28x320xf32>
    %78 = arith.addf %74, %77 : vector<28x320xf32>
    %c3_64 = arith.constant 3 : index
    %c0_65 = arith.constant 0 : index
    %c0_66 = arith.constant 0 : index
    %79 = vector.load %arg5[%c3_64, %c0_65, %c0_66] : memref<5x320x28xf32, #tpu.memory_space<vmem>>, vector<1x320x28xf32>
    %80 = vector.shape_cast %79 : vector<1x320x28xf32> to vector<320x28xf32>
    %cst_67 = arith.constant dense<0.000000e+00> : vector<28x28xf32>
    %81 = tpu.matmul %78, %80, %cst_67 {dimension_numbers = #tpu.dot_dimension_numbers<[1], [0], [0], [1], [0, 0, 1, 1], [], []>} : vector<28x320xf32>, vector<320x28xf32>, vector<28x28xf32> -> vector<28x28xf32>
    %82 = arith.addf %71, %81 : vector<28x28xf32>
    %c4 = arith.constant 4 : index
    %c0_68 = arith.constant 0 : index
    %c0_69 = arith.constant 0 : index
    %83 = vector.load %arg4[%c4, %c0_68, %c0_69] : memref<10x28x12xf32, #tpu.memory_space<vmem>>, vector<1x28x12xf32>
    %84 = vector.shape_cast %83 : vector<1x28x12xf32> to vector<28x12xf32>
    %cst_70 = arith.constant dense<0.000000e+00> : vector<28x320xf32>
    %85 = tpu.matmul %84, %20, %cst_70 {dimension_numbers = #tpu.dot_dimension_numbers<[1], [0], [0], [1], [0, 0, 1, 1], [], []>} : vector<28x12xf32>, vector<12x320xf32>, vector<28x320xf32> -> vector<28x320xf32>
    %c9 = arith.constant 9 : index
    %c0_71 = arith.constant 0 : index
    %c0_72 = arith.constant 0 : index
    %86 = vector.load %arg4[%c9, %c0_71, %c0_72] : memref<10x28x12xf32, #tpu.memory_space<vmem>>, vector<1x28x12xf32>
    %87 = vector.shape_cast %86 : vector<1x28x12xf32> to vector<28x12xf32>
    %cst_73 = arith.constant dense<0.000000e+00> : vector<28x320xf32>
    %88 = tpu.matmul %87, %37, %cst_73 {dimension_numbers = #tpu.dot_dimension_numbers<[1], [0], [0], [1], [0, 0, 1, 1], [], []>} : vector<28x12xf32>, vector<12x320xf32>, vector<28x320xf32> -> vector<28x320xf32>
    %89 = arith.addf %85, %88 : vector<28x320xf32>
    %c4_74 = arith.constant 4 : index
    %c0_75 = arith.constant 0 : index
    %c0_76 = arith.constant 0 : index
    %90 = vector.load %arg5[%c4_74, %c0_75, %c0_76] : memref<5x320x28xf32, #tpu.memory_space<vmem>>, vector<1x320x28xf32>
    %91 = vector.shape_cast %90 : vector<1x320x28xf32> to vector<320x28xf32>
    %cst_77 = arith.constant dense<0.000000e+00> : vector<28x28xf32>
    %92 = tpu.matmul %89, %91, %cst_77 {dimension_numbers = #tpu.dot_dimension_numbers<[1], [0], [0], [1], [0, 0, 1, 1], [], []>} : vector<28x320xf32>, vector<320x28xf32>, vector<28x28xf32> -> vector<28x28xf32>
    %93 = arith.addf %82, %92 : vector<28x28xf32>
    %c0_78 = arith.constant 0 : index
    %c0_79 = arith.constant 0 : index
    %94 = vector.load %arg6[%c0_78, %c0_79] : memref<1x28xf32, #tpu.memory_space<vmem>>, vector<1x28xf32>
    %95 = vector.broadcast %94 : vector<1x28xf32> to vector<28x28xf32>
    %96 = arith.addf %93, %95 : vector<28x28xf32>
    %cst_80 = arith.constant 0.000000e+00 : f32
    %97 = vector.broadcast %cst_80 : f32 to vector<28x28xf32>
    %98 = arith.maximumf %96, %97 : vector<28x28xf32>
    %c0_81 = arith.constant 0 : index
    %c0_82 = arith.constant 0 : index
    %c0_83 = arith.constant 0 : index
    %99 = vector.load %arg7[%c0_81, %c0_82, %c0_83] : memref<1x28x28xf32, #tpu.memory_space<vmem>>, vector<1x28x28xf32>
    %100 = vector.shape_cast %99 : vector<1x28x28xf32> to vector<28x28xf32>
    %101 = vector.shape_cast %98 : vector<28x28xf32> to vector<1x28x28xf32>
    tpu.vector_store %arg7[%c0_81, %c0_82, %c0_83], %101 {strides = array<i32>} : memref<1x28x28xf32, #tpu.memory_space<vmem>>, vector<1x28x28xf32>,
    return
  }
  func.func @transform_0(%arg0: i32) -> (i32, i32, i32) {
    %c0_i32 = arith.constant 0 : i32
    %c0_i32_0 = arith.constant 0 : i32
    %c0_i32_1 = arith.constant 0 : i32
    return %arg0, %c0_i32, %c0_i32_0 : i32, i32, i32
  }
  func.func @transform_1(%arg0: i32) -> (i32, i32, i32) {
    %c0_i32 = arith.constant 0 : i32
    %c0_i32_0 = arith.constant 0 : i32
    %c0_i32_1 = arith.constant 0 : i32
    return %arg0, %c0_i32, %c0_i32_0 : i32, i32, i32
  }
  func.func @transform_2(%arg0: i32) -> (i32, i32, i32) {
    %c0_i32 = arith.constant 0 : i32
    %c0_i32_0 = arith.constant 0 : i32
    %c0_i32_1 = arith.constant 0 : i32
    %c0_i32_2 = arith.constant 0 : i32
    return %c0_i32, %c0_i32_0, %c0_i32_1 : i32, i32, i32
  }
  func.func @transform_3(%arg0: i32) -> (i32, i32, i32) {
    %c0_i32 = arith.constant 0 : i32
    %c0_i32_0 = arith.constant 0 : i32
    %c0_i32_1 = arith.constant 0 : i32
    %c0_i32_2 = arith.constant 0 : i32
    return %c0_i32, %c0_i32_0, %c0_i32_1 : i32, i32, i32
  }
  func.func @transform_4(%arg0: i32) -> (i32, i32, i32) {
    %c0_i32 = arith.constant 0 : i32
    %c0_i32_0 = arith.constant 0 : i32
    %c0_i32_1 = arith.constant 0 : i32
    %c0_i32_2 = arith.constant 0 : i32
    return %c0_i32, %c0_i32_0, %c0_i32_1 : i32, i32, i32
  }
  func.func @transform_5(%arg0: i32) -> (i32, i32) {
    %c0_i32 = arith.constant 0 : i32
    %c0_i32_0 = arith.constant 0 : i32
    %c0_i32_1 = arith.constant 0 : i32
    return %c0_i32, %c0_i32_0 : i32, i32
  }
  func.func @transform_6(%arg0: i32) -> (i32, i32, i32) {
    %c0_i32 = arith.constant 0 : i32
    %c0_i32_0 = arith.constant 0 : i32
    %c0_i32_1 = arith.constant 0 : i32
    return %arg0, %c0_i32, %c0_i32_0 : i32, i32, i32
  }
}

</mosaic_0001>

<bundles_post_ra>
// kernel: forward.7
= control target key start
LH: loop header
LB: loop body
LE: loop exit
PB: predicated region body
PF: predicated region fallthrough
CT: control target
= control target key end

     0   :  { %17 = vsyncpa [#allocation3], 0  ;;  %vm168_vm0 = vcmask 1041408   ;;  %s779_s0 = inlined_call_operand.vmem [shape: f32[2,320], index: 0, kind: input, shape index: {}]   ;;  %s780_s1 = inlined_call_operand.vmem [shape: f32[320,50], index: 1, kind: input, shape index: {}]   ;;  %s781_s2 = inlined_call_operand.vmem [shape: f32[1,50], index: 2, kind: input, shape index: {}]   ;;  %s782_s3 = inlined_call_operand.vmem [shape: f32[50,10], index: 3, kind: input, shape index: {}]   ;;  %s783_s4 = inlined_call_operand.vmem [shape: f32[1,10], index: 4, kind: input, shape index: {}]   ;;  %s784_s5 = inlined_call_operand.vmem [shape: f32[10,50], index: 5, kind: input, shape index: {}]   ;;  %s785_s6 = inlined_call_operand.vmem [shape: f32[1,50], index: 6, kind: input, shape index: {}]   ;;  %s786_s7 = inlined_call_operand.vmem [shape: f32[50,320], index: 7, kind: input, shape index: {}]   ;;  %s787_s8 = inlined_call_operand.vmem [shape: f32[1,320], index: 8, kind: input, shape index: {}]   ;;  %s788_s9 = inlined_call_operand.hbm [shape: f32[2,10], index: 9, kind: output, shape index: {0}]   ;;  %s789_s10 = inlined_call_operand.hbm [shape: f32[2,10], index: 10, kind: output, shape index: {1}]   ;;  %s790_s11 = inlined_call_operand.vmem [shape: f32[2,320], index: 11, kind: output, shape index: {2}]  }
   0x1   :  { %v53_v0 = vld [vmem:[%s780_s1 + $0x78] sm:$0xff]  ;;  %v52_v1 = vld [vmem:[%s780_s1 + $0x70] sm:$0xff]  ;;  %v51_v4 = vld [vmem:[%s780_s1 + $0x68] sm:$0xff] }
   0x2   :  { %v69_v2 = vld [vmem:[%s780_s1 + $0xf8] sm:$0xff]  ;;  %92 = vmatpush.msra.mxu0 %v53_v0  ;;  %v68_v3 = vld [vmem:[%s780_s1 + $0xf0] sm:$0xff]  ;;  %v67_v5 = vld [vmem:[%s780_s1 + $0xe8] sm:$0xff] }
   0x3   :  { %112 = vmatpush.msra.mxu1 %v69_v2  ;;  %v50_v6 = vld [vmem:[%s780_s1 + $0x60] sm:$0xff]  ;;  %v77_v8 = vld [vmem:[%s780_s1 + $0x138] sm:$0xff]  ;;  %v76_v11 = vld [vmem:[%s780_s1 + $0x130] sm:$0xff] }
   0x4   :  { %93 = vmatpush.msra.mxu0 %v52_v1  ;;  %v66_v7 = vld [vmem:[%s780_s1 + $0xe0] sm:$0xff]  ;;  %v49_v9 = vld [vmem:[%s780_s1 + $0x58] sm:$0xff]  ;;  %140 = vmatpush.msra.mxu2 %v77_v8  ;;  %v75_v12 = vld [vmem:[%s780_s1 + $0x128] sm:$0xff] }
   0x5   :  { %113 = vmatpush.msra.mxu1 %v68_v3  ;;  %v65_v10 = vld [vmem:[%s780_s1 + $0xd8] sm:$0xff]  ;;  %v48_v13 = vld [vmem:[%s780_s1 + $0x50] sm:$0xff]  ;;  %v74_v15 = vld [vmem:[%s780_s1 + $0x120] sm:$0xff] }
   0x6   :  { %94 = vmatpush.msra.mxu0 %v51_v4  ;;  %v64_v14 = vld [vmem:[%s780_s1 + $0xd0] sm:$0xff]  ;;  %141 = vmatpush.msra.mxu2 %v76_v11  ;;  %v47_v16 = vld [vmem:[%s780_s1 + $0x48] sm:$0xff]  ;;  %v46_v18 = vld [vmem:[%s780_s1 + $0x40] sm:$0xff] }
   0x7   :  { %114 = vmatpush.msra.mxu1 %v67_v5  ;;  %v63_v17 = vld [vmem:[%s780_s1 + $0xc8] sm:$0xff]  ;;  %v73_v19 = vld [vmem:[%s780_s1 + $0x118] sm:$0xff]  ;;  %v62_v21 = vld [vmem:[%s780_s1 + $0xc0] sm:$0xff] }
   0x8   :  { %95 = vmatpush.msra.mxu0 %v50_v6  ;;  %142 = vmatpush.msra.mxu2 %v75_v12  ;;  %v45_v20 = vld [vmem:[%s780_s1 + $0x38] sm:$0xff]  ;;  %v37_v22 = vld [vmem:[%s779_s0] sm:$0x3f]  ;;  %v72_v24 = vld [vmem:[%s780_s1 + $0x110] sm:$0xff] }
   0x9   :  { %115 = vmatpush.msra.mxu1 %v66_v7  ;;  %v61_v23 = vld [vmem:[%s780_s1 + $0xb8] sm:$0xff]  ;;  %83 = vst [vmem:[#allocation1] ss:$4 sm:$0xff] %v37_v22  ;;  %v159_v25 = vld [vmem:[%s782_s3 + $0x30] sm:$0x3]  ;;  %v71_v26 = vld [vmem:[%s780_s1 + $0x108] sm:$0xff] }
   0xa   :  { %96 = vmatpush.msra.mxu0 %v49_v9  ;;  %143 = vmatpush.msra.mxu2 %v74_v15  ;;  %v158_v27 = vld [vmem:[%s782_s3 + $0x28] sm:$0xff] }
   0xb   :  { %116 = vmatpush.msra.mxu1 %v65_v10  ;;  %397 = vmatpush.msk.msra.mxu3 %vm168_vm0, %v159_v25 }
   0xc   :  { %97 = vmatpush.msra.mxu0 %v48_v13  ;;  %144 = vmatpush.msra.mxu2 %v73_v19 }
   0xd   :  { %117 = vmatpush.msra.mxu1 %v64_v14 }
   0xe   :  { %98 = vmatpush.msra.mxu0 %v47_v16 }
   0xf   :  { %118 = vmatpush.msra.mxu1 %v63_v17 }
  0x10   :  { %99 = vmatpush.msra.mxu0 %v46_v18 }
  0x11   :  { %119 = vmatpush.msra.mxu1 %v62_v21 }
  0x12   :  { %18 = vsyncpa [#allocation5], 0  ;;  %v44_v28 = vld [vmem:[%s780_s1 + $0x30] sm:$0xff]  ;;  %145 = vmatpush.msra.mxu2 %v72_v24  ;;  %182 = vmatpush.msra.mxu3 %v158_v27  ;;  %v70_v30 = vld [vmem:[%s780_s1 + $0x100] sm:$0xff]  ;;  %vm89_vm1 = vcmask 523264   ;;  %vm164_vm2 = vcmask 408576  }
  0x13   :  { %v60_v29 = vld [vmem:[%s780_s1 + $0xb0] sm:$0xff]  ;;  %100 = vmatpush.msra.mxu0 %v45_v20  ;;  %120 = vmatpush.msra.mxu1 %v61_v23  ;;  %v43_v31 = vld [vmem:[%s780_s1 + $0x28] sm:$0xff]  ;;  %v42_v33 = vld [vmem:[%s780_s1 + $0x20] sm:$0xff]  ;;  %vm211_vm3 = vcmask 80896   ;;  %vm193_vm4 = vcmask 74752   ;;  %s367_s18 = sshll.u32 %s788_s9, 4  ;;  %s368_s18 = int_to_ptr.hbm [resolvable:$true] %s367_s18 }
  0x14   :  { %v59_v32 = vld [vmem:[%s780_s1 + $0xa8] sm:$0xff]  ;;  %146 = vmatpush.msra.mxu2 %v71_v26  ;;  %v58_v34 = vld [vmem:[%s780_s1 + $0xa0] sm:$0xff]  ;;  %v86_v35 = vld.sshfl [vmem:[#allocation1 + $0x10] sm:$0xff pattern:$0x73625140]  ;;  %s378_s21 = sshll.u32 %s789_s10, 4  ;;  %s379_s21 = int_to_ptr.hbm [resolvable:$true] %s378_s21 }
  0x15   :  { %101 = vmatpush.msra.mxu0 %v44_v28  ;;  %121 = vmatpush.msra.mxu1 %v60_v29  ;;  %v41_v36 = vld [vmem:[%s780_s1 + $0x18] sm:$0xff]  ;;  %v40_v38 = vld [vmem:[%s780_s1 + $0x10] sm:$0xff]  ;;  %v39_v40 = vld [vmem:[%s780_s1 + $0x8] sm:$0xff]  ;;  %vm355_vm5 = vcmask 1043458   ;;  %vm357_vm7 = vcmask 521220   ;;  %vm352_vm8 = vcmask 1043456  }
  0x16   :  { %147 = vmatpush.msra.mxu2 %v70_v30  ;;  %v57_v37 = vld [vmem:[%s780_s1 + $0x98] sm:$0xff]  ;;  %v56_v39 = vld [vmem:[%s780_s1 + $0x90] sm:$0xff]  ;;  %v55_v41 = vld [vmem:[%s780_s1 + $0x88] sm:$0xff] }
  0x17   :  { %102 = vmatpush.msra.mxu0 %v43_v31  ;;  %122 = vmatpush.msra.mxu1 %v59_v32  ;;  %v38_v42 = vld [vmem:[%s780_s1] sm:$0xff]  ;;  %v85_v45 = vld.sshfl [vmem:[#allocation1 + $0x8] sm:$0xff pattern:$0x73625140]  ;;  %v156_v47 = vld [vmem:[%s782_s3 + $0x18] sm:$0xff] }
  0x18   :  { %396 = vmatmul.msk.f32.vlgmr.msra.gmra.mxu2 %vm89_vm1, %v86_v35  ;;  %v54_v43 = vld [vmem:[%s780_s1 + $0x80] sm:$0xff]  ;;  %v155_v48 = vld [vmem:[%s782_s3 + $0x10] sm:$0xff]  ;;  %v154_v49 = vld [vmem:[%s782_s3 + $0x8] sm:$0xff] }
  0x19   :  { %103 = vmatpush.msra.mxu0 %v42_v33  ;;  %123 = vmatpush.msra.mxu1 %v58_v34  ;;  %v84_v44 = vld.sshfl [vmem:[#allocation1] sm:$0xff pattern:$0x73625140]  ;;  %v206_v51 = vld [vmem:[%s784_s5 + $0x8] sm:$0x3]  ;;  %v254_v3 = vld [vmem:[%s786_s7 + $0x78] sm:$0xff] }
  0x1a   :  { %v157_v46 = vld [vmem:[%s782_s3 + $0x20] sm:$0xff]  ;;  %v257_v2 = vld [vmem:[%s786_s7 + $0x90] sm:$0x3]  ;;  %v258_v5 = vld [vmem:[%s786_s7 + $0x98] sm:$0x3] }
  0x1b   :  { %104 = vmatpush.msra.mxu0 %v41_v36  ;;  %124 = vmatpush.msra.mxu1 %v57_v37  ;;  %v153_v50 = vld [vmem:[%s782_s3] sm:$0xff]  ;;  %v248_v6 = vld [vmem:[%s786_s7 + $0x48] sm:$0xff]  ;;  %v245_v8 = vld [vmem:[%s786_s7 + $0x30] sm:$0xff] }
  0x1c   :  { %183 = vmatpush.msra.mxu3 %v157_v46  ;;  %v409_v52 = vld [vmem:[%s781_s2] ss:$0 sm:$0xff]  ;;  %401 = vmatpush.msk.msrb.mxu2 %vm168_vm0, %v257_v2  ;;  %v252_v9 = vld [vmem:[%s786_s7 + $0x68] sm:$0xff]  ;;  %v242_v10 = vld [vmem:[%s786_s7 + $0x18] sm:$0xff] }
  0x1d   :  { %105 = vmatpush.msra.mxu0 %v40_v38  ;;  %125 = vmatpush.msra.mxu1 %v56_v39  ;;  %v205_v60 = vld [vmem:[%s784_s5] sm:$0xff]  ;;  %v249_v11 = vld [vmem:[%s786_s7 + $0x50] sm:$0xff]  ;;  %v246_v13 = vld [vmem:[%s786_s7 + $0x38] sm:$0xff] }
  0x1e   :  { %184 = vmatpush.msra.mxu3 %v156_v47  ;;  %v410_v61 = vld [vmem:[%s783_s4] ss:$0 sm:$0xff]  ;;  %290 = vmatpush.msrb.mxu2 %v254_v3  ;;  %v256_v16 = vld [vmem:[%s786_s7 + $0x88] sm:$0xff]  ;;  %v253_v18 = vld [vmem:[%s786_s7 + $0x70] sm:$0xff] }
  0x1f   :  { %106 = vmatpush.msra.mxu0 %v39_v40  ;;  %126 = vmatpush.msra.mxu1 %v55_v41  ;;  %v251_v4 = vld [vmem:[%s786_s7 + $0x60] sm:$0xff]  ;;  %v240_v17 = vld [vmem:[%s786_s7 + $0x8] sm:$0xff]  ;;  %v250_v19 = vld [vmem:[%s786_s7 + $0x58] sm:$0xff] }
  0x20   :  { %185 = vmatpush.msra.mxu3 %v155_v48  ;;  %291 = vmatpush.msrb.mxu2 %v251_v4  ;;  %v255_v7 = vld [vmem:[%s786_s7 + $0x80] sm:$0xff]  ;;  %v244_v21 = vld [vmem:[%s786_s7 + $0x28] sm:$0xff]  ;;  %v241_v22 = vld [vmem:[%s786_s7 + $0x10] sm:$0xff] }
  0x21   :  { %107 = vmatpush.msra.mxu0 %v38_v42  ;;  %127 = vmatpush.msra.mxu1 %v54_v43  ;;  %v239_v12 = vld [vmem:[%s786_s7] sm:$0xff]  ;;  %vm356_vm6 = vmor %vm355_vm5, %vm168_vm0 }
  0x22   :  { %108 = vmatmul.f32.vlgmr.msra.gmra.mxu0 %v84_v44  ;;  %128 = vmatmul.f32.vlgmr.msra.gmra.mxu1 %v85_v45  ;;  %v259_v14 = vld [vmem:[%s786_s7 + $0xa0] sm:$0x3]  ;;  %vm358_vm9 = vmor %vm357_vm7, %vm356_vm6 }
  0x23   :  { %186 = vmatpush.msra.mxu3 %v154_v49  ;;  %292 = vmatpush.msrb.mxu2 %v248_v6  ;;  %v243_v15 = vld [vmem:[%s786_s7 + $0x20] sm:$0xff] }
  0x24   :  { %v247_v20 = vld [vmem:[%s786_s7 + $0x40] sm:$0xff]  ;;  %s468_s7 = smov [#allocation2]  }
  0x25   :  { %187 = vmatpush.msra.mxu3 %v153_v50  ;;  %293 = vmatpush.msrb.mxu2 %v245_v8  ;;  %v411_v28 = vld [vmem:[%s785_s6] ss:$0 sm:$0xff]  ;;  %s365_s16 = sshll.u32 %s468_s7, 4  ;;  %s469_s6 = smov [#allocation4]   ;;  %s366_s16 = int_to_ptr.vmem [resolvable:$true] %s365_s16 }
  0x26   :  { %s376_s19 = sshll.u32 %s469_s6, 4  ;;  %v260_v36 = vld [vmem:[%s787_s8] sm:$0x7]  ;;  %s377_s19 = int_to_ptr.vmem [resolvable:$true] %s376_s19 }
  0x27   :  { %399 = vmatpush.msk.msrb.mxu3 %vm168_vm0, %v206_v51  ;;  %294 = vmatpush.msrb.mxu2 %v242_v10  ;;  %v263_v37 = vperm.slane %v260_v36, 1  ;;  %v262_v41 = vperm.slane %v260_v36, 0  ;;  %v264_v42 = vperm.slane %v260_v36, 2 }
  0x29   :  { %233 = vmatpush.msrb.mxu3 %v205_v60  ;;  %295 = vmatpush.msrb.mxu2 %v239_v12 }
  0x2b   :  { %405 = vmatpush.msk.msra.mxu2 %vm168_vm0, %v259_v14 }
  0x2d   :  { %330 = vmatpush.msra.mxu2 %v256_v16 }
  0x2f   :  { %331 = vmatpush.msra.mxu2 %v253_v18 }
  0x31   :  { %332 = vmatpush.msra.mxu2 %v250_v19 }
  0x33   :  { %333 = vmatpush.msra.mxu2 %v247_v20 }
  0x35   :  { %334 = vmatpush.msra.mxu2 %v244_v21 }
  0x37   :  { %335 = vmatpush.msra.mxu2 %v241_v22 }
  0x9b   :  { %v149_v56 = vpop.f32.mrf.mxu2 }
  0x9f   :  { %v109_v53 = vpop.f32.mrf.mxu0  ;;  %v129_v54 = vpop.f32.mrf.mxu1 }
  0xa0   :  { %v110_v55 = vadd.f32 %v409_v52, %v109_v53 }
  0xa2   :  { %v130_v57 = vadd.f32 %v129_v54, %v110_v55 }
  0xa4   :  { %v150_v58 = vadd.f32 %v149_v56, %v130_v57 }
  0xa6   :  { %v152_v59 = vmax.f32 %v150_v58, 0.0 }
  0xa8   :  { %398 = vmatmul.msk.f32.vlgmr.msra.gmra.mxu3 %vm164_vm2, %v152_v59 }
  0xa9   :  { %403 = vmatpush.msk.msra.mxu3 %vm168_vm0, %v258_v5 }
  0xab   :  { %310 = vmatpush.msra.mxu3 %v255_v7 }
  0xad   :  { %311 = vmatpush.msra.mxu3 %v252_v9 }
  0xaf   :  { %312 = vmatpush.msra.mxu3 %v249_v11 }
  0xb1   :  { %313 = vmatpush.msra.mxu3 %v246_v13 }
  0xb3   :  { %314 = vmatpush.msra.mxu3 %v243_v15 }
  0xb5   :  { %315 = vmatpush.msra.mxu3 %v240_v17 }
 0x12b   :  { %v189_v62 = vpop.f32.mrf.mxu3 }
 0x12c   :  { %v190_v63 = vadd.f32 %v410_v61, %v189_v62 }
 0x12e   :  { %v192_v0 = vmax.f32 %v190_v63, 0.0 }
 0x130   :  { %400 = vmatmul.msk.f32.vlgmr.msrb.gmra.mxu3 %vm211_vm3, %v192_v0  ;;  %v194_v1 = vsel %vm193_vm4, %v192_v0, -inf  ;;  %343 = vst.msk [vmem:[#allocation2] sm:$0x3] %vm193_vm4, %v192_v0 }
 0x131   :  { %195 = vmax.xlane.f32.xlu0 %v194_v1  ;;  %370 = dma.vmem_to_hbm [thread:$0]  %s366_s16, 32, %s368_s18, [#allocation3]  }
 0x1a4   :  { %v196_v23 = vpop.xlane.xlu0 %195 }
 0x1a5   :  { %v197_v24 = vsub.f32 %v192_v0, %v196_v23 }
 0x1a7   :  { %v198_v25 = vmul.f32 1.442695, %v197_v24 }
 0x1a9   :  { %412 = vpow2.f32 %v198_v25 }
 0x1af   :  { %v413_v26 = vpop.eup %412 }
 0x1b0   :  { %v200_v27 = vsel %vm193_vm4, %v413_v26, 0.0 }
 0x1b1   :  { %201 = vadd.xlane.f32.xlu0 %v200_v27 }
 0x1b3   :  { %v235_v29 = vpop.f32.mrf.mxu3 }
 0x1b4   :  { %v236_v30 = vadd.f32 %v411_v28, %v235_v29 }
 0x1b6   :  { %v238_v31 = vmax.f32 %v236_v30, 0.0 }
 0x1b8   :  { %402 = vmatmul.msk.f32.vlgmr.msrb.gmra.mxu2 %vm164_vm2, %v238_v31  ;;  %404 = vmatmul.msk.f32.vlgmr.msra.gmra.mxu3 %vm164_vm2, %v238_v31 }
 0x1c0   :  { %406 = vmatmul.msk.f32.vlgmr.msra.gmra.mxu2 %vm164_vm2, %v238_v31 }
 0x224   :  { %v202_v32 = vpop.xlane.xlu0 %201 }
 0x225   :  { %414 = vlog2.f32 %v202_v32 }
 0x22b   :  { %v415_v33 = vpop.eup %414 }
 0x22c   :  { %v204_v34 = vmul.f32 0.6931472, %v415_v33 }
 0x22e   :  { %v344_v35 = vsub.f32 %v197_v24, %v204_v34 }
 0x230   :  { %345 = vst.msk [vmem:[#allocation4] sm:$0x3] %vm193_vm4, %v344_v35 }
 0x231   :  { %381 = dma.vmem_to_hbm [thread:$0]  %s377_s19, 32, %s379_s21, [#allocation5]  }
 0x23b   :  { %v297_v38 = vpop.f32.mrf.mxu2  ;;  %v317_v39 = vpop.f32.mrf.mxu3 }
 0x23c   :  { %v318_v40 = vadd.f32 %v317_v39, %v263_v37  ;;  %v298_v44 = vadd.f32 %v297_v38, %v262_v41 }
 0x23e   :  { %v341_v43 = vmax.f32 %v318_v40, 0.0  ;;  %v340_v49 = vmax.f32 %v298_v44, 0.0 }
 0x240   :  { %v349_v47 = vrot.slane %v341_v43, 6 }
 0x242   :  { %v351_v51 = vsel %vm168_vm0, %v340_v49, %v349_v47 }
 0x243   :  { %v337_v45 = vpop.f32.mrf.mxu2 }
 0x244   :  { %v338_v46 = vadd.f32 %v337_v45, %v264_v42 }
 0x246   :  { %v342_v48 = vmax.f32 %v338_v46, 0.0 }
 0x248   :  { %v350_v50 = vrot.slane %v342_v48, 4 }
 0x24a   :  { %v353_v52 = vsel %vm352_vm8, %v351_v51, %v350_v50 }
 0x24b   :  { %359 = vst.msk [vmem:[%s790_s11] sm:$0x3f] %vm358_vm9, %v353_v52 }
 0x24c   :  { %464 = dma.done.wait [#allocation3], 32  }
 0x24d   :  { %465 = vsyncadd [#allocation3], 4294967264 }
 0x24e   :  { %466 = dma.done.wait [#allocation5], 32  }
 0x24f   :  { %467 = vsyncadd [#allocation5], 4294967264 }
 0x250   :  { %394 = vsyncpa [#allocation3], 1 }
 0x251   :  { %395 = vsyncpa [#allocation5], 1 }

// kernel: forward.5
= control target key start
LH: loop header
LB: loop body
LE: loop exit
PB: predicated region body
PF: predicated region fallthrough
CT: control target
= control target key end

     0   :  { %11 = vsyncpa [#allocation3], 0  ;;  %s1680_s18 = smov 0   ;;  %s2004_s0 = inlined_call_operand.vmem [shape: f32[2,28,28], index: 0, kind: input, shape index: {}]   ;;  %s2005_s1 = inlined_call_operand.hbm [shape: f32[5,28,240], index: 1, kind: input, shape index: {}]   ;;  %s2006_s2 = inlined_call_operand.vmem [shape: f32[10,12,28], index: 2, kind: input, shape index: {}]   ;;  %s2007_s3 = inlined_call_operand.vmem [shape: f32[1,120], index: 3, kind: input, shape index: {}]   ;;  %s2008_s4 = inlined_call_operand.vmem [shape: f32[2,12,120], index: 4, kind: output, shape index: {0}]   ;;  %s2009_s5 = inlined_call_operand.vmem [shape: s32[2,12,120], index: 5, kind: output, shape index: {1}]  }
   0x1 LB: > { %s174_s21 = sshll.u32 %s2005_s1, 4  ;;  %s1431_s22 = sadd.s32 4294967295, %s1642_s18   ;;  %s1642_s18 = sphi %s1680_s18, %s17_s18   ;;  %s175_s21 = int_to_ptr.hbm [resolvable:$true] %s174_s21 }
   0x2   : > { %p1433_p0 = scmp.ge.s32.totalorder %s1642_s18, 1  ;;  %p163_p1 = scmp.lt.s32.totalorder %s1642_s18, 3 }
   0x3   : > { %p1585_p2 = scmp.eq.s32.totalorder %s1431_s22, 0  ;;  %s1644_s23 = smov [#allocation2]  }
   0x4   : > { %p164_p3 = pnand %p1433_p0, %p163_p1  ;;  %s176_s24 = sshll.u32 %s1644_s23, 4  ;;  %s177_s24 = int_to_ptr.vmem [resolvable:$true] %s176_s24 }
   0x5   : > { %s1645_s25 = smov 256   ;;  %s1646_s26 = smov 16  }
   0x6   : > { %p1581_p4 = pneg %p164_p3  ;;  %206 = sbr.rel (%p164_p3) target bundleno = 950 (0x3b6), region = 36 }
   0x8   : > { %p1582_p5 = pnand %p1585_p2, %p1581_p4 }
   0xa   : > { %1584 = dma.hbm_to_vmem [thread:$0]  (!%p1582_p5), %s175_s21, 5120, %s177_s24, [#allocation3], %s1645_s25, %s1645_s25, %s1646_s26  }
   0xb   : > { %1637 = dma.done.wait (%p1585_p2), [#allocation3], 5120  }
   0xc   : > { %1639 = vsyncadd (%p1585_p2), [#allocation3], 4294962176  ;;  %p240_p6 = scmp.lt.s32.totalorder %s1431_s22, 1  ;;  %vm280_vm0 = vcmask 1043456   ;;  %v357_v0 = vld [vmem:[#allocation2 + $0x70] sm:$0xf] }
   0xd   : > { %v358_v1 = vld [vmem:[#allocation2 + $0x78] sm:$0xf]  ;;  %v355_v2 = vld [vmem:[#allocation2 + $0x60] sm:$0xff]  ;;  %1456 = vmatpush.msk.msra.mxu2 %vm280_vm0, %v357_v0  ;;  %v356_v3 = vld [vmem:[#allocation2 + $0x68] sm:$0xff]  ;;  %vm267_vm1 = vcmask 228352   ;;  %s1647_s25 = smov 8  }
   0xe   : > { %s2011_s22 = smov (!%p240_p6, %s1431_s22), 1  ;;  %1461 = vmatpush.msk.msra.mxu3 %vm280_vm0, %v358_v1  ;;  %v353_v4 = vld [vmem:[#allocation2 + $0x50] sm:$0xff]  ;;  %v354_v5 = vld [vmem:[#allocation2 + $0x58] sm:$0xff]  ;;  %v351_v6 = vld [vmem:[#allocation2 + $0x40] sm:$0xff]  ;;  %vm1252_vm2 = vcmask 64512   ;;  %s1648_s29 = smov 120  }
   0xf   : > { %s1574_s27 = sshll.u32 %s2011_s22, 5  ;;  %378 = vmatpush.msra.mxu2 %v355_v2  ;;  %v265_v7 = vld [vmem:[#allocation2 + $0x30] sm:$0xf]  ;;  %v266_v8 = vld [vmem:[#allocation2 + $0x38] sm:$0xf]  ;;  %v352_v9 = vld [vmem:[#allocation2 + $0x48] sm:$0xff] }
  0x10   : > { %s1699_s30 = scalar_lea.vmem %s2004_s0, %s1574_s27  ;;  %407 = vmatpush.msra.mxu3 %v356_v3  ;;  %1444 = vmatpush.msk.msra.mxu0 %vm280_vm0, %v265_v7  ;;  %v263_v10 = vld [vmem:[#allocation2 + $0x20] sm:$0xff]  ;;  %v264_v11 = vld [vmem:[#allocation2 + $0x28] sm:$0xff]  ;;  %v261_v13 = vld [vmem:[#allocation2 + $0x10] sm:$0xff]  ;;  %s1575_s28 = sshll.u32 %s2011_s22, 4  ;;  %vm1325_vm4 = vcmask 982016   ;;  %vm1327_vm6 = vcmask 977920  }
  0x11   : > { %1449 = vmatpush.msk.msra.mxu1 %vm280_vm0, %v266_v8  ;;  %379 = vmatpush.msra.mxu2 %v353_v4  ;;  %v1704_v12 = vld [vmem:[%s1699_s30] sm:$0xff]  ;;  %v262_v14 = vld [vmem:[#allocation2 + $0x18] sm:$0xff]  ;;  %v260_v16 = vld [vmem:[#allocation2 + $0x8] sm:$0xff]  ;;  %s249_s7 = scalar_lea.vmem %s2008_s4, %s1575_s28  ;;  %s254_s10 = scalar_lea.vmem %s2009_s5, %s1575_s28 }
  0x12   : > { %408 = vmatpush.msra.mxu3 %v354_v5  ;;  %300 = vmatpush.msra.mxu0 %v263_v10  ;;  %v259_v15 = vld [vmem:[#allocation2] sm:$0xff]  ;;  %v1715_v17 = vld [vmem:[%s1699_s30 + $0x8] sm:$0xff]  ;;  %v1726_v18 = vld [vmem:[%s1699_s30 + $0x10] sm:$0xff] }
  0x13   : > { %329 = vmatpush.msra.mxu1 %v264_v11  ;;  %380 = vmatpush.msra.mxu2 %v351_v6  ;;  %v1737_v19 = vld [vmem:[%s1699_s30 + $0x18] sm:$0xf]  ;;  %v1466_v36 = vld [vmem:[%s2006_s2 + $0x10] sm:$0xff]  ;;  %v345_v37 = vld [vmem:[%s2006_s2] sm:$0xff] }
  0x14   : > { %409 = vmatpush.msra.mxu3 %v352_v9  ;;  %1457 = vmatmul.msk.f32.vlgmr.msra.gmra.mxu2 %vm267_vm1, %v1704_v12  ;;  %v1467_v38 = vld [vmem:[%s2006_s2 + $0x18] sm:$0xf]  ;;  %v346_v39 = vld [vmem:[%s2006_s2 + $0x8] sm:$0xf]  ;;  %v656_v40 = vld [vmem:[#allocation2 + $0xb0] sm:$0xf] }
  0x15   : > { %1462 = vmatmul.msk.f32.vlgmr.msra.gmra.mxu3 %vm267_vm1, %v1704_v12  ;;  %301 = vmatpush.msra.mxu0 %v261_v13  ;;  %v657_v41 = vld [vmem:[#allocation2 + $0xb8] sm:$0xf]  ;;  %v654_v42 = vld [vmem:[#allocation2 + $0xa0] sm:$0xff]  ;;  %v655_v43 = vld [vmem:[#allocation2 + $0xa8] sm:$0xff] }
  0x16   : > { %330 = vmatpush.msra.mxu1 %v262_v14  ;;  %v1480_v44 = vld [vmem:[%s2006_s2 + $0x60] sm:$0xff]  ;;  %v652_v45 = vld [vmem:[#allocation2 + $0x90] sm:$0xff]  ;;  %v653_v46 = vld [vmem:[#allocation2 + $0x98] sm:$0xff] }
  0x17   : > { %302 = vmatpush.msra.mxu0 %v259_v15  ;;  %v1454_v47 = vld [vmem:[%s2006_s2 + $0x50] sm:$0xff]  ;;  %v650_v48 = vld [vmem:[#allocation2 + $0x80] sm:$0xff]  ;;  %v651_v49 = vld [vmem:[#allocation2 + $0x88] sm:$0xff] }
  0x18   : > { %331 = vmatpush.msra.mxu1 %v260_v16  ;;  %1445 = vmatmul.msk.f32.vlgmr.msra.gmra.mxu0 %vm267_vm1, %v1704_v12  ;;  %v1481_v50 = vld [vmem:[%s2006_s2 + $0x68] sm:$0xf]  ;;  %v1455_v51 = vld [vmem:[%s2006_s2 + $0x58] sm:$0xf]  ;;  %v853_v52 = vld [vmem:[#allocation2 + $0xf0] sm:$0xf] }
  0x19   : > { %1450 = vmatmul.msk.f32.vlgmr.msra.gmra.mxu1 %vm267_vm1, %v1704_v12  ;;  %v854_v53 = vld [vmem:[#allocation2 + $0xf8] sm:$0xf]  ;;  %v851_v54 = vld [vmem:[#allocation2 + $0xe0] sm:$0xff]  ;;  %v852_v55 = vld [vmem:[#allocation2 + $0xe8] sm:$0xff] }
  0x1a   : > { %v849_v56 = vld [vmem:[#allocation2 + $0xd0] sm:$0xff]  ;;  %v850_v57 = vld [vmem:[#allocation2 + $0xd8] sm:$0xff]  ;;  %v847_v58 = vld [vmem:[#allocation2 + $0xc0] sm:$0xff] }
  0x1b   : > { %v848_v59 = vld [vmem:[#allocation2 + $0xc8] sm:$0xff]  ;;  %v1050_v60 = vld [vmem:[#allocation2 + $0x130] sm:$0xf]  ;;  %v1051_v61 = vld [vmem:[#allocation2 + $0x138] sm:$0xf] }
  0x1c   : > { %1458 = vmatmul.msk.f32.gmra.mxu2 %vm267_vm1, %v1715_v17  ;;  %v1048_v62 = vld [vmem:[#allocation2 + $0x120] sm:$0xff]  ;;  %v1049_v63 = vld [vmem:[#allocation2 + $0x128] sm:$0xff]  ;;  %v1046_v0 = vld [vmem:[#allocation2 + $0x110] sm:$0xff] }
  0x1d   : > { %1463 = vmatmul.msk.f32.gmra.mxu3 %vm267_vm1, %v1715_v17  ;;  %v1047_v1 = vld [vmem:[#allocation2 + $0x118] sm:$0xff]  ;;  %v1044_v2 = vld [vmem:[#allocation2 + $0x100] sm:$0xff]  ;;  %v1045_v3 = vld [vmem:[#allocation2 + $0x108] sm:$0xff] }
  0x20   : > { %1446 = vmatmul.msk.f32.gmra.mxu0 %vm267_vm1, %v1715_v17 }
  0x21   : > { %1451 = vmatmul.msk.f32.gmra.mxu1 %vm267_vm1, %v1715_v17 }
  0x24   : > { %1459 = vmatmul.msk.f32.gmra.mxu2 %vm267_vm1, %v1726_v18 }
  0x25   : > { %1464 = vmatmul.msk.f32.gmra.mxu3 %vm267_vm1, %v1726_v18 }
  0x28   : > { %1447 = vmatmul.msk.f32.gmra.mxu0 %vm267_vm1, %v1726_v18 }
  0x29   : > { %1452 = vmatmul.msk.f32.gmra.mxu1 %vm267_vm1, %v1726_v18 }
  0x2c   : > { %1460 = vmatmul.msk.f32.gmra.mxu2 %vm267_vm1, %v1737_v19 }
  0x2d   : > { %1465 = vmatmul.msk.f32.gmra.mxu3 %vm267_vm1, %v1737_v19 }
  0x30   : > { %1448 = vmatmul.msk.f32.gmra.mxu0 %vm267_vm1, %v1737_v19 }
  0x31   : > { %1453 = vmatmul.msk.f32.gmra.mxu1 %vm267_vm1, %v1737_v19 }
  0x95   : > { %v304_v20 = vpop.f32.mrf.mxu0 }
  0x96   : > { %v333_v21 = vpop.f32.mrf.mxu1 }
  0x97   : > { %v382_v22 = vpop.f32.mrf.mxu2 }
  0x98   : > { %v411_v23 = vpop.f32.mrf.mxu3 }
  0x9d   : > { %v307_v24 = vpop.f32.mrf.mxu0 }
  0x9e   : > { %v336_v25 = vpop.f32.mrf.mxu1 }
  0x9f   : > { %v385_v26 = vpop.f32.mrf.mxu2 }
  0xa0   : > { %v414_v27 = vpop.f32.mrf.mxu3 }
  0xa5   : > { %v310_v28 = vpop.f32.mrf.mxu0 }
  0xa6   : > { %v339_v29 = vpop.f32.mrf.mxu1 }
  0xa7   : > { %v388_v30 = vpop.f32.mrf.mxu2 }
  0xa8   : > { %v417_v31 = vpop.f32.mrf.mxu3 }
  0xad   : > { %v313_v32 = vpop.f32.mrf.mxu0 }
  0xae   : > { %v342_v33 = vpop.f32.mrf.mxu1  ;;  %1474 = vmatpush.msk.msrb.mxu2 %vm280_vm0, %v313_v32 }
  0xaf   : > { %1477 = vmatpush.msk.msrb.mxu3 %vm280_vm0, %v342_v33  ;;  %v391_v34 = vpop.f32.mrf.mxu2 }
  0xb0   : > { %v420_v35 = vpop.f32.mrf.mxu3  ;;  %1468 = vmatpush.msk.msrb.mxu0 %vm280_vm0, %v391_v34  ;;  %509 = vmatpush.msrb.mxu2 %v310_v28 }
  0xb1   : > { %1471 = vmatpush.msk.msrb.mxu1 %vm280_vm0, %v420_v35  ;;  %532 = vmatpush.msrb.mxu3 %v339_v29 }
  0xb2   : > { %451 = vmatpush.msrb.mxu0 %v388_v30  ;;  %510 = vmatpush.msrb.mxu2 %v307_v24 }
  0xb3   : > { %474 = vmatpush.msrb.mxu1 %v417_v31  ;;  %533 = vmatpush.msrb.mxu3 %v336_v25 }
  0xb4   : > { %452 = vmatpush.msrb.mxu0 %v385_v26  ;;  %511 = vmatpush.msrb.mxu2 %v304_v20 }
  0xb5   : > { %475 = vmatpush.msrb.mxu1 %v414_v27  ;;  %534 = vmatpush.msrb.mxu3 %v333_v21 }
  0xb6   : > { %453 = vmatpush.msrb.mxu0 %v382_v22  ;;  %1475 = vmatmul.msk.f32.vlgmr.msrb.gmra.mxu2 %vm267_vm1, %v345_v37 }
  0xb7   : > { %476 = vmatpush.msrb.mxu1 %v411_v23  ;;  %1469 = vmatmul.msk.f32.vlgmr.msrb.gmra.mxu0 %vm267_vm1, %v1466_v36 }
  0xb8   : > { %1472 = vmatmul.msk.f32.vlgmr.msrb.gmra.mxu1 %vm267_vm1, %v1466_v36  ;;  %1482 = vmatpush.msk.msra.mxu0 %vm280_vm0, %v391_v34 }
  0xb9   : > { %1485 = vmatpush.msk.msra.mxu1 %vm280_vm0, %v420_v35  ;;  %1478 = vmatmul.msk.f32.vlgmr.msrb.gmra.mxu3 %vm267_vm1, %v345_v37  ;;  %v1505_v35 = vld [vmem:[%s2006_s2 + $0x28] sm:$0xf] }
  0xba   : > { %564 = vmatpush.msra.mxu0 %v388_v30  ;;  %1488 = vmatpush.msk.msra.mxu2 %vm280_vm0, %v313_v32  ;;  %v1504_v32 = vld [vmem:[%s2006_s2 + $0x20] sm:$0xff] }
  0xbb   : > { %587 = vmatpush.msra.mxu1 %v417_v31  ;;  %1491 = vmatpush.msk.msra.mxu3 %vm280_vm0, %v342_v33 }
  0xbc   : > { %565 = vmatpush.msra.mxu0 %v385_v26  ;;  %616 = vmatpush.msra.mxu2 %v310_v28 }
  0xbd   : > { %588 = vmatpush.msra.mxu1 %v414_v27  ;;  %639 = vmatpush.msra.mxu3 %v339_v29 }
  0xbe   : > { %566 = vmatpush.msra.mxu0 %v382_v22  ;;  %617 = vmatpush.msra.mxu2 %v307_v24 }
  0xbf   : > { %589 = vmatpush.msra.mxu1 %v411_v23  ;;  %1470 = vmatmul.msk.f32.gmra.mxu0 %vm267_vm1, %v1467_v38 }
  0xc0   : > { %1473 = vmatmul.msk.f32.gmra.mxu1 %vm267_vm1, %v1467_v38  ;;  %640 = vmatpush.msra.mxu3 %v336_v25  ;;  %v1512_v38 = vld [vmem:[%s2006_s2 + $0x70] sm:$0xff] }
  0xc1   : > { %1476 = vmatmul.msk.f32.gmra.mxu2 %vm267_vm1, %v346_v39  ;;  %1479 = vmatmul.msk.f32.gmra.mxu3 %vm267_vm1, %v346_v39 }
  0xc2   : > { %618 = vmatpush.msra.mxu2 %v304_v20  ;;  %641 = vmatpush.msra.mxu3 %v333_v21 }
  0xc3   : > { %1494 = vmatpush.msk.msrb.mxu0 %vm280_vm0, %v656_v40  ;;  %1499 = vmatpush.msk.msrb.mxu1 %vm280_vm0, %v657_v41  ;;  %v1513_v41 = vld [vmem:[%s2006_s2 + $0x78] sm:$0xf] }
  0xc5   : > { %677 = vmatpush.msrb.mxu0 %v654_v42  ;;  %706 = vmatpush.msrb.mxu1 %v655_v43 }
  0xc7   : > { %1483 = vmatmul.msk.f32.vlgmr.msra.gmra.mxu0 %vm267_vm1, %v1480_v44  ;;  %707 = vmatpush.msrb.mxu1 %v653_v46 }
  0xc8   : > { %1486 = vmatmul.msk.f32.vlgmr.msra.gmra.mxu1 %vm267_vm1, %v1480_v44  ;;  %678 = vmatpush.msrb.mxu0 %v652_v45  ;;  %v1530_v44 = vld [vmem:[%s2006_s2 + $0x30] sm:$0xff] }
  0xc9   : > { %1489 = vmatmul.msk.f32.vlgmr.msra.gmra.mxu2 %vm267_vm1, %v1454_v47  ;;  %1492 = vmatmul.msk.f32.vlgmr.msra.gmra.mxu3 %vm267_vm1, %v1454_v47  ;;  %v1531_v47 = vld [vmem:[%s2006_s2 + $0x38] sm:$0xf] }
  0xca   : > { %679 = vmatpush.msrb.mxu0 %v650_v48  ;;  %708 = vmatpush.msrb.mxu1 %v651_v49 }
  0xcc   : > { %1520 = vmatpush.msk.msra.mxu0 %vm280_vm0, %v853_v52  ;;  %1525 = vmatpush.msk.msra.mxu1 %vm280_vm0, %v854_v53  ;;  %v1539_v53 = vld [vmem:[%s2006_s2 + $0x88] sm:$0xf] }
  0xce   : > { %874 = vmatpush.msra.mxu0 %v851_v54  ;;  %903 = vmatpush.msra.mxu1 %v852_v55 }
  0xcf   : > { %1484 = vmatmul.msk.f32.gmra.mxu0 %vm267_vm1, %v1481_v50 }
  0xd0   : > { %1487 = vmatmul.msk.f32.gmra.mxu1 %vm267_vm1, %v1481_v50  ;;  %875 = vmatpush.msra.mxu0 %v849_v56  ;;  %v1538_v50 = vld [vmem:[%s2006_s2 + $0x80] sm:$0xff] }
  0xd1   : > { %1490 = vmatmul.msk.f32.gmra.mxu2 %vm267_vm1, %v1455_v51  ;;  %1493 = vmatmul.msk.f32.gmra.mxu3 %vm267_vm1, %v1455_v51  ;;  %v1556_v56 = vld [vmem:[%s2006_s2 + $0x40] sm:$0xff] }
  0xd2   : > { %904 = vmatpush.msra.mxu1 %v850_v57  ;;  %876 = vmatpush.msra.mxu0 %v847_v58  ;;  %v1557_v57 = vld [vmem:[%s2006_s2 + $0x48] sm:$0xf]  ;;  %v1564_v58 = vld [vmem:[%s2006_s2 + $0x90] sm:$0xff] }
  0xd4   : > { %905 = vmatpush.msra.mxu1 %v848_v59  ;;  %v1565_v59 = vld [vmem:[%s2006_s2 + $0x98] sm:$0xf] }
  0xd7   : > { %1495 = vmatmul.msk.f32.vlgmr.msrb.gmra.mxu0 %vm267_vm1, %v1704_v12 }
  0xd8   : > { %1500 = vmatmul.msk.f32.vlgmr.msrb.gmra.mxu1 %vm267_vm1, %v1704_v12  ;;  %1546 = vmatpush.msk.msrb.mxu0 %vm280_vm0, %v1050_v60 }
  0xd9   : > { %1551 = vmatpush.msk.msrb.mxu1 %vm280_vm0, %v1051_v61 }
  0xda   : > { %1071 = vmatpush.msrb.mxu0 %v1048_v62 }
  0xdb   : > { %1100 = vmatpush.msrb.mxu1 %v1049_v63 }
  0xdc   : > { %1072 = vmatpush.msrb.mxu0 %v1046_v0 }
  0xdd   : > { %1101 = vmatpush.msrb.mxu1 %v1047_v1 }
  0xde   : > { %1073 = vmatpush.msrb.mxu0 %v1044_v2 }
  0xdf   : > { %1496 = vmatmul.msk.f32.gmra.mxu0 %vm267_vm1, %v1715_v17  ;;  %1102 = vmatpush.msrb.mxu1 %v1045_v3 }
  0xe0   : > { %1501 = vmatmul.msk.f32.gmra.mxu1 %vm267_vm1, %v1715_v17 }
  0xe7   : > { %1497 = vmatmul.msk.f32.gmra.mxu0 %vm267_vm1, %v1726_v18 }
  0xe8   : > { %1502 = vmatmul.msk.f32.gmra.mxu1 %vm267_vm1, %v1726_v18 }
  0xef   : > { %1498 = vmatmul.msk.f32.gmra.mxu0 %vm267_vm1, %v1737_v19 }
  0xf0   : > { %1503 = vmatmul.msk.f32.gmra.mxu1 %vm267_vm1, %v1737_v19 }
  0xf7   : > { %1521 = vmatmul.msk.f32.vlgmr.msra.gmra.mxu0 %vm267_vm1, %v1704_v12 }
  0xf8   : > { %1526 = vmatmul.msk.f32.vlgmr.msra.gmra.mxu1 %vm267_vm1, %v1704_v12 }
  0xff   : > { %1522 = vmatmul.msk.f32.gmra.mxu0 %vm267_vm1, %v1715_v17 }
 0x100   : > { %1527 = vmatmul.msk.f32.gmra.mxu1 %vm267_vm1, %v1715_v17 }
 0x107   : > { %1523 = vmatmul.msk.f32.gmra.mxu0 %vm267_vm1, %v1726_v18 }
 0x108   : > { %1528 = vmatmul.msk.f32.gmra.mxu1 %vm267_vm1, %v1726_v18 }
 0x10f   : > { %1524 = vmatmul.msk.f32.gmra.mxu0 %vm267_vm1, %v1737_v19 }
 0x110   : > { %1529 = vmatmul.msk.f32.gmra.mxu1 %vm267_vm1, %v1737_v19 }
 0x117   : > { %1547 = vmatmul.msk.f32.vlgmr.msrb.gmra.mxu0 %vm267_vm1, %v1704_v12 }
 0x118   : > { %1552 = vmatmul.msk.f32.vlgmr.msrb.gmra.mxu1 %vm267_vm1, %v1704_v12 }
 0x11f   : > { %1548 = vmatmul.msk.f32.gmra.mxu0 %vm267_vm1, %v1715_v17 }
 0x120   : > { %1553 = vmatmul.msk.f32.gmra.mxu1 %vm267_vm1, %v1715_v17 }
 0x127   : > { %1549 = vmatmul.msk.f32.gmra.mxu0 %vm267_vm1, %v1726_v18 }
 0x128   : > { %1554 = vmatmul.msk.f32.gmra.mxu1 %vm267_vm1, %v1726_v18 }
 0x12f   : > { %1550 = vmatmul.msk.f32.gmra.mxu0 %vm267_vm1, %v1737_v19 }
 0x130   : > { %1555 = vmatmul.msk.f32.gmra.mxu1 %vm267_vm1, %v1737_v19 }
 0x134   : > { %v455_v4 = vpop.f32.mrf.mxu0 }
 0x135   : > { %v478_v5 = vpop.f32.mrf.mxu1 }
 0x139   : > { %v513_v8 = vpop.f32.mrf.mxu2 }
 0x13a   : > { %v1849_v10 = vadd.f32 %v513_v8, %v455_v4 }
 0x13c   : > { %v458_v6 = vpop.f32.mrf.mxu0  ;;  %v536_v9 = vpop.f32.mrf.mxu3 }
 0x13d   : > { %v481_v7 = vpop.f32.mrf.mxu1  ;;  %v1851_v11 = vadd.f32 %v536_v9, %v478_v5 }
 0x144   : > { %v568_v12 = vpop.f32.mrf.mxu0  ;;  %v516_v14 = vpop.f32.mrf.mxu2 }
 0x145   : > { %v591_v13 = vpop.f32.mrf.mxu1  ;;  %v539_v15 = vpop.f32.mrf.mxu3  ;;  %v1853_v16 = vadd.f32 %v516_v14, %v458_v6 }
 0x146   : > { %v1855_v17 = vadd.f32 %v539_v15, %v481_v7 }
 0x14c   : > { %v1857_v18 = vpop.f32.mrf.mxu0  ;;  %v620_v20 = vpop.f32.mrf.mxu2 }
 0x14d   : > { %v1859_v19 = vpop.f32.mrf.mxu1  ;;  %v643_v21 = vpop.f32.mrf.mxu3  ;;  %v1861_v22 = vadd.f32 %v620_v20, %v568_v12 }
 0x14e   : > { %v1863_v23 = vadd.f32 %v643_v21, %v591_v13 }
 0x154   : > { %v681_v24 = vpop.f32.mrf.mxu0  ;;  %v623_v60 = vpop.f32.mrf.mxu2 }
 0x155   : > { %v710_v25 = vpop.f32.mrf.mxu1  ;;  %v646_v61 = vpop.f32.mrf.mxu3 }
 0x15c   : > { %v684_v26 = vpop.f32.mrf.mxu0 }
 0x15d   : > { %v713_v27 = vpop.f32.mrf.mxu1 }
 0x164   : > { %v687_v28 = vpop.f32.mrf.mxu0 }
 0x165   : > { %v716_v29 = vpop.f32.mrf.mxu1 }
 0x16c   : > { %v690_v30 = vpop.f32.mrf.mxu0 }
 0x16d   : > { %v719_v31 = vpop.f32.mrf.mxu1  ;;  %1506 = vmatpush.msk.msrb.mxu2 %vm280_vm0, %v690_v30 }
 0x16e   : > { %1509 = vmatpush.msk.msrb.mxu3 %vm280_vm0, %v719_v31 }
 0x16f   : > { %750 = vmatpush.msrb.mxu2 %v687_v28 }
 0x170   : > { %773 = vmatpush.msrb.mxu3 %v716_v29 }
 0x171   : > { %751 = vmatpush.msrb.mxu2 %v684_v26 }
 0x172   : > { %774 = vmatpush.msrb.mxu3 %v713_v27 }
 0x173   : > { %752 = vmatpush.msrb.mxu2 %v681_v24 }
 0x174   : > { %775 = vmatpush.msrb.mxu3 %v710_v25  ;;  %1507 = vmatmul.msk.f32.vlgmr.msrb.gmra.mxu2 %vm267_vm1, %v1504_v32  ;;  %v878_v33 = vpop.f32.mrf.mxu0 }
 0x175   : > { %1510 = vmatmul.msk.f32.vlgmr.msrb.gmra.mxu3 %vm267_vm1, %v1504_v32  ;;  %v907_v34 = vpop.f32.mrf.mxu1  ;;  %1514 = vmatpush.msk.msra.mxu2 %vm280_vm0, %v690_v30 }
 0x176   : > { %1517 = vmatpush.msk.msra.mxu3 %vm280_vm0, %v719_v31 }
 0x177   : > { %809 = vmatpush.msra.mxu2 %v687_v28 }
 0x178   : > { %832 = vmatpush.msra.mxu3 %v716_v29 }
 0x179   : > { %810 = vmatpush.msra.mxu2 %v684_v26 }
 0x17a   : > { %833 = vmatpush.msra.mxu3 %v713_v27 }
 0x17b   : > { %811 = vmatpush.msra.mxu2 %v681_v24 }
 0x17c   : > { %834 = vmatpush.msra.mxu3 %v710_v25  ;;  %1508 = vmatmul.msk.f32.gmra.mxu2 %vm267_vm1, %v1505_v35  ;;  %v881_v36 = vpop.f32.mrf.mxu0 }
 0x17d   : > { %1511 = vmatmul.msk.f32.gmra.mxu3 %vm267_vm1, %v1505_v35  ;;  %v910_v37 = vpop.f32.mrf.mxu1 }
 0x184   : > { %1515 = vmatmul.msk.f32.vlgmr.msra.gmra.mxu2 %vm267_vm1, %v1512_v38  ;;  %v884_v39 = vpop.f32.mrf.mxu0 }
 0x185   : > { %1518 = vmatmul.msk.f32.vlgmr.msra.gmra.mxu3 %vm267_vm1, %v1512_v38  ;;  %v913_v40 = vpop.f32.mrf.mxu1 }
 0x18c   : > { %1516 = vmatmul.msk.f32.gmra.mxu2 %vm267_vm1, %v1513_v41  ;;  %v887_v42 = vpop.f32.mrf.mxu0 }
 0x18d   : > { %1519 = vmatmul.msk.f32.gmra.mxu3 %vm267_vm1, %v1513_v41  ;;  %v916_v43 = vpop.f32.mrf.mxu1  ;;  %1532 = vmatpush.msk.msrb.mxu2 %vm280_vm0, %v887_v42 }
 0x18e   : > { %1535 = vmatpush.msk.msrb.mxu3 %vm280_vm0, %v916_v43 }
 0x18f   : > { %947 = vmatpush.msrb.mxu2 %v884_v39 }
 0x190   : > { %970 = vmatpush.msrb.mxu3 %v913_v40 }
 0x191   : > { %948 = vmatpush.msrb.mxu2 %v881_v36 }
 0x192   : > { %971 = vmatpush.msrb.mxu3 %v910_v37 }
 0x193   : > { %949 = vmatpush.msrb.mxu2 %v878_v33 }
 0x194   : > { %972 = vmatpush.msrb.mxu3 %v907_v34  ;;  %1533 = vmatmul.msk.f32.vlgmr.msrb.gmra.mxu2 %vm267_vm1, %v1530_v44  ;;  %v1075_v45 = vpop.f32.mrf.mxu0 }
 0x195   : > { %1536 = vmatmul.msk.f32.vlgmr.msrb.gmra.mxu3 %vm267_vm1, %v1530_v44  ;;  %v1104_v46 = vpop.f32.mrf.mxu1  ;;  %1540 = vmatpush.msk.msra.mxu2 %vm280_vm0, %v887_v42 }
 0x196   : > { %1543 = vmatpush.msk.msra.mxu3 %vm280_vm0, %v916_v43 }
 0x197   : > { %1006 = vmatpush.msra.mxu2 %v884_v39  ;;  %v624_v39 = vadd.f32 %v623_v60, %v1857_v18  ;;  %v1649_v60 = vmov 3  }
 0x198   : > { %1029 = vmatpush.msra.mxu3 %v913_v40  ;;  %v647_v40 = vadd.f32 %v646_v61, %v1859_v19 }
 0x199   : > { %1007 = vmatpush.msra.mxu2 %v881_v36 }
 0x19a   : > { %1030 = vmatpush.msra.mxu3 %v910_v37 }
 0x19b   : > { %1008 = vmatpush.msra.mxu2 %v878_v33 }
 0x19c   : > { %1031 = vmatpush.msra.mxu3 %v907_v34  ;;  %1534 = vmatmul.msk.f32.gmra.mxu2 %vm267_vm1, %v1531_v47  ;;  %v1078_v48 = vpop.f32.mrf.mxu0 }
 0x19d   : > { %1537 = vmatmul.msk.f32.gmra.mxu3 %vm267_vm1, %v1531_v47  ;;  %v1107_v49 = vpop.f32.mrf.mxu1 }
 0x1a4   : > { %1541 = vmatmul.msk.f32.vlgmr.msra.gmra.mxu2 %vm267_vm1, %v1538_v50  ;;  %v1081_v51 = vpop.f32.mrf.mxu0 }
 0x1a5   : > { %1544 = vmatmul.msk.f32.vlgmr.msra.gmra.mxu3 %vm267_vm1, %v1538_v50  ;;  %v1110_v52 = vpop.f32.mrf.mxu1 }
 0x1ac   : > { %1542 = vmatmul.msk.f32.gmra.mxu2 %vm267_vm1, %v1539_v53  ;;  %v1084_v54 = vpop.f32.mrf.mxu0 }
 0x1ad   : > { %1545 = vmatmul.msk.f32.gmra.mxu3 %vm267_vm1, %v1539_v53  ;;  %v1113_v55 = vpop.f32.mrf.mxu1  ;;  %1558 = vmatpush.msk.msrb.mxu2 %vm280_vm0, %v1084_v54 }
 0x1ae   : > { %1561 = vmatpush.msk.msrb.mxu3 %vm280_vm0, %v1113_v55 }
 0x1af   : > { %1144 = vmatpush.msrb.mxu2 %v1081_v51 }
 0x1b0   : > { %1167 = vmatpush.msrb.mxu3 %v1110_v52 }
 0x1b1   : > { %1145 = vmatpush.msrb.mxu2 %v1078_v48 }
 0x1b2   : > { %1168 = vmatpush.msrb.mxu3 %v1107_v49 }
 0x1b3   : > { %1146 = vmatpush.msrb.mxu2 %v1075_v45 }
 0x1b4   : > { %1169 = vmatpush.msrb.mxu3 %v1104_v46  ;;  %1559 = vmatmul.msk.f32.vlgmr.msrb.gmra.mxu2 %vm267_vm1, %v1556_v56 }
 0x1b5   : > { %1562 = vmatmul.msk.f32.vlgmr.msrb.gmra.mxu3 %vm267_vm1, %v1556_v56  ;;  %1566 = vmatpush.msk.msra.mxu2 %vm280_vm0, %v1084_v54  ;;  %v1601_v56 = vld [vmem:[%s2007_s3] ss:$0 sm:$0xff] }
 0x1b6   : > { %1569 = vmatpush.msk.msra.mxu3 %vm280_vm0, %v1113_v55 }
 0x1b7   : > { %1203 = vmatpush.msra.mxu2 %v1081_v51 }
 0x1b8   : > { %1226 = vmatpush.msra.mxu3 %v1110_v52 }
 0x1b9   : > { %1204 = vmatpush.msra.mxu2 %v1078_v48 }
 0x1ba   : > { %1227 = vmatpush.msra.mxu3 %v1107_v49 }
 0x1bb   : > { %1205 = vmatpush.msra.mxu2 %v1075_v45 }
 0x1bc   : > { %1228 = vmatpush.msra.mxu3 %v1104_v46  ;;  %1560 = vmatmul.msk.f32.gmra.mxu2 %vm267_vm1, %v1557_v57 }
 0x1bd   : > { %1563 = vmatmul.msk.f32.gmra.mxu3 %vm267_vm1, %v1557_v57 }
 0x1c4   : > { %1567 = vmatmul.msk.f32.vlgmr.msra.gmra.mxu2 %vm267_vm1, %v1564_v58 }
 0x1c5   : > { %1570 = vmatmul.msk.f32.vlgmr.msra.gmra.mxu3 %vm267_vm1, %v1564_v58 }
 0x1cc   : > { %1568 = vmatmul.msk.f32.gmra.mxu2 %vm267_vm1, %v1565_v59 }
 0x1cd   : > { %1571 = vmatmul.msk.f32.gmra.mxu3 %vm267_vm1, %v1565_v59 }
 0x1f7   : > { %v754_v62 = vpop.f32.mrf.mxu2 }
 0x1f8   : > { %v777_v63 = vpop.f32.mrf.mxu3 }
 0x1f9   : > { %v784_v0 = vadd.f32 %v777_v63, %v1851_v11  ;;  %v783_v11 = vadd.f32 %v754_v62, %v1849_v10 }
 0x1ff   : > { %v757_v1 = vpop.f32.mrf.mxu2 }
 0x200   : > { %v780_v2 = vpop.f32.mrf.mxu3 }
 0x201   : > { %v786_v3 = vadd.f32 %v780_v2, %v1855_v17 }
 0x207   : > { %v813_v4 = vpop.f32.mrf.mxu2 }
 0x208   : > { %v836_v5 = vpop.f32.mrf.mxu3  ;;  %v842_v10 = vadd.f32 %v813_v4, %v1861_v22 }
 0x209   : > { %v843_v6 = vadd.f32 %v836_v5, %v1863_v23  ;;  %v785_v23 = vadd.f32 %v757_v1, %v1853_v16 }
 0x20f   : > { %v816_v7 = vpop.f32.mrf.mxu2 }
 0x210   : > { %v839_v8 = vpop.f32.mrf.mxu3  ;;  %v844_v41 = vadd.f32 %v816_v7, %v624_v39 }
 0x211   : > { %v845_v42 = vadd.f32 %v839_v8, %v647_v40 }
 0x217   : > { %v951_v9 = vpop.f32.mrf.mxu2 }
 0x218   : > { %v974_v12 = vpop.f32.mrf.mxu3  ;;  %v980_v25 = vadd.f32 %v951_v9, %v783_v11 }
 0x219   : > { %v981_v28 = vadd.f32 %v974_v12, %v784_v0 }
 0x21f   : > { %v954_v13 = vpop.f32.mrf.mxu2 }
 0x220   : > { %v977_v14 = vpop.f32.mrf.mxu3  ;;  %v982_v29 = vadd.f32 %v954_v13, %v785_v23 }
 0x221   : > { %v983_v34 = vadd.f32 %v977_v14, %v786_v3 }
 0x227   : > { %v1010_v15 = vpop.f32.mrf.mxu2 }
 0x228   : > { %v1033_v20 = vpop.f32.mrf.mxu3  ;;  %v1039_v35 = vadd.f32 %v1010_v15, %v842_v10 }
 0x229   : > { %v1040_v43 = vadd.f32 %v1033_v20, %v843_v6 }
 0x22f   : > { %v1013_v21 = vpop.f32.mrf.mxu2 }
 0x230   : > { %v1036_v24 = vpop.f32.mrf.mxu3  ;;  %v1041_v22 = vadd.f32 %v1013_v21, %v844_v41 }
 0x231   : > { %v1042_v44 = vadd.f32 %v1036_v24, %v845_v42 }
 0x237   : > { %v1148_v26 = vpop.f32.mrf.mxu2 }
 0x238   : > { %v1171_v27 = vpop.f32.mrf.mxu3  ;;  %v1941_v17 = vadd.f32 %v1148_v26, %v980_v25 }
 0x239   : > { %v1946_v32 = vadd.f32 %v1171_v27, %v981_v28 }
 0x23a   : > { %1244 = vrot.lane.b32.xlu0 %v1941_v17, %s1647_s25 }
 0x23f   : > { %v1151_v30 = vpop.f32.mrf.mxu2 }
 0x240   : > { %v1174_v31 = vpop.f32.mrf.mxu3  ;;  %v1948_v33 = vadd.f32 %v1151_v30, %v982_v29 }
 0x241   : > { %v1955_v37 = vadd.f32 %v1174_v31, %v983_v34 }
 0x242   : > { %1246 = vrot.lane.b32.xlu0 %v1946_v32, %s1647_s25  ;;  %1248 = vrot.lane.b32.xlu1 %v1948_v33, %s1647_s25 }
 0x247   : > { %v1207_v36 = vpop.f32.mrf.mxu2 }
 0x248   : > { %v1230_v16 = vpop.f32.mrf.mxu3  ;;  %v1236_v38 = vadd.f32 %v1207_v36, %v1039_v35 }
 0x249   : > { %v1237_v47 = vadd.f32 %v1230_v16, %v1040_v43 }
 0x24a   : > { %1263 = vrot.lane.b32.xlu2 %v1236_v38, %s1647_s25  ;;  %1250 = vrot.lane.b32.xlu1 %v1955_v37, %s1647_s25 }
 0x24f   : > { %v1210_v45 = vpop.f32.mrf.mxu2 }
 0x250   : > { %v1233_v46 = vpop.f32.mrf.mxu3  ;;  %v1238_v48 = vadd.f32 %v1210_v45, %v1041_v22 }
 0x251   : > { %v1239_v49 = vadd.f32 %v1233_v46, %v1042_v44 }
 0x252   : > { %1265 = vrot.lane.b32.xlu2 %v1237_v47, %s1647_s25  ;;  %1267 = vrot.lane.b32.xlu0 %v1238_v48, %s1647_s25 }
 0x253   : > { %1269 = vrot.lane.b32.xlu1 %v1239_v49, %s1647_s25 }
 0x2a4   : > { %v1264_v18 = vpop.permute.xlu2 %1263 }
 0x2ac   : > { %v1245_v19 = vpop.permute.xlu0 %1244  ;;  %v1266_v50 = vpop.permute.xlu2 %1265 }
 0x2ad   : > { %v1271_v51 = vsel %vm1252_vm2, %v1264_v18, %v1266_v50 }
 0x2ae   : > { %v1275_v55 = vmax.f32 %v1236_v38, %v1271_v51 }
 0x2b4   : > { %v1247_v52 = vpop.permute.xlu0 %1246  ;;  %v1249_v53 = vpop.permute.xlu1 %1248 }
 0x2b5   : > { %v1253_v54 = vsel %vm1252_vm2, %v1245_v19, %v1247_v52 }
 0x2b6   : > { %v1257_v57 = vmax.f32 %v1941_v17, %v1253_v54 }
 0x2b8   : > { %v1277_v58 = vmax.f32 %v1257_v57, %v1275_v55 }
 0x2ba   : > { %v1321_v59 = vadd.f32 %v1601_v56, %v1277_v58  ;;  %1283 = vrot.lane.b32.xlu2 %v1277_v58, %s1648_s29  ;;  %vm1293_vm3 = vcmp.eq.f32.partialorder %v1236_v38, %v1277_v58  ;;  %vm1279_vm11 = vcmp.eq.f32.partialorder %v1941_v17, %v1277_v58 }
 0x2bb   : > { %v1295_v61 = vsel %vm1293_vm3, 2, %v1649_v60 }
 0x2bc   : > { %v1323_v62 = vmax.f32 %v1321_v59, 0.0  ;;  %1297 = vrot.lane.b32.xlu1 %v1295_v61, %s1648_s29  ;;  %v1251_v63 = vpop.permute.xlu1 %1250 }
 0x2bd   : > { %v1254_v0 = vsel %vm1252_vm2, %v1249_v53, %v1251_v63 }
 0x2be   : > { %1326 = vst.msk [vmem:[%s249_s7] sm:$0xff] %vm1325_vm4, %v1323_v62  ;;  %v1258_v4 = vmax.f32 %v1948_v33, %v1254_v0 }
 0x2c4   : > { %v1268_v1 = vpop.permute.xlu0 %1267 }
 0x2c5   : > { %v1270_v2 = vpop.permute.xlu1 %1269 }
 0x2c6   : > { %v1272_v3 = vsel %vm1252_vm2, %v1268_v1, %v1270_v2 }
 0x2c7   : > { %v1276_v5 = vmax.f32 %v1238_v48, %v1272_v3 }
 0x2c9   : > { %v1278_v6 = vmax.f32 %v1258_v4, %v1276_v5 }
 0x2cb   : > { %v1322_v7 = vadd.f32 %v1601_v56, %v1278_v6  ;;  %1285 = vrot.lane.b32.xlu0 %v1278_v6, %s1648_s29  ;;  %vm1294_vm5 = vcmp.eq.f32.partialorder %v1238_v48, %v1278_v6  ;;  %vm1280_vm12 = vcmp.eq.f32.partialorder %v1948_v33, %v1278_v6 }
 0x2cc   : > { %v1296_v8 = vsel %vm1294_vm5, 2, %v1649_v60 }
 0x2cd   : > { %v1324_v9 = vmax.f32 %v1322_v7, 0.0  ;;  %1299 = vrot.lane.b32.xlu2 %v1296_v8, %s1648_s29 }
 0x2cf   : > { %1328 = vst.msk [vmem:[%s249_s7 + $0x8] sm:$0xf] %vm1327_vm6, %v1324_v9 }
 0x314   : > { %v1284_v12 = vpop.permute.xlu2 %1283 }
 0x315   : > { %vm1289_vm7 = vcmp.eq.f32.partialorder %v1941_v17, %v1284_v12  ;;  %vm1290_vm8 = vcmp.eq.f32.partialorder %v1946_v32, %v1284_v12 }
 0x327   : > { %v1300_v21 = vpop.permute.xlu2 %1299 }
 0x32e   : > { %v1298_v13 = vpop.permute.xlu1 %1297 }
 0x32f   : > { %v1302_v14 = vsel %vm1290_vm8, 1, %v1298_v13  ;;  %v1301_v15 = vsel %vm1289_vm7, 1, %v1298_v13 }
 0x330   : > { %1307 = vrot.lane.b32.xlu1 %v1302_v14, %s1647_s25  ;;  %1305 = vrot.lane.b32.xlu0 %v1301_v15, %s1647_s25 }
 0x33d   : > { %v1286_v20 = vpop.permute.xlu0 %1285 }
 0x33e   : > { %vm1291_vm9 = vcmp.eq.f32.partialorder %v1948_v33, %v1286_v20  ;;  %vm1292_vm10 = vcmp.eq.f32.partialorder %v1955_v37, %v1286_v20 }
 0x33f   : > { %v1303_v24 = vsel %vm1291_vm9, 1, %v1300_v21  ;;  %v1304_v11 = vsel %vm1292_vm10, 1, %v1300_v21 }
 0x340   : > { %1309 = vrot.lane.b32.xlu2 %v1303_v24, %s1647_s25  ;;  %1311 = vrot.lane.b32.xlu0 %v1304_v11, %s1647_s25 }
 0x39a   : > { %v1310_v28 = vpop.permute.xlu2 %1309 }
 0x3a2   : > { %v1308_v25 = vpop.permute.xlu1 %1307  ;;  %v1306_v26 = vpop.permute.xlu0 %1305 }
 0x3a3   : > { %v1313_v27 = vsel %vm1252_vm2, %v1306_v26, %v1308_v25 }
 0x3a4   : > { %v1315_v23 = vsel %vm1279_vm11, 0, %v1313_v27 }
 0x3a5   : > { %1329 = vst.msk [vmem:[%s254_s10] sm:$0xff] %vm1325_vm4, %v1315_v23 }
 0x3b2   : > { %v1312_v29 = vpop.permute.xlu0 %1311 }
 0x3b3   : > { %v1314_v30 = vsel %vm1252_vm2, %v1310_v28, %v1312_v29 }
 0x3b4   : > { %v1316_v31 = vsel %vm1280_vm12, 0, %v1314_v30 }
 0x3b5   : > { %1330 = vst.msk [vmem:[%s254_s10 + $0x8] sm:$0xf] %vm1327_vm6, %v1316_v31 }
 0x3b6 PF: > { %s17_s18 = sadd.s32 1, %s1642_s18  }
 0x3b7   : > { %p14_p7 = scmp.ge.s32.totalorder %s17_s18, 4  }
 0x3b9   :  { %16 = sbr.rel (!%p14_p7) target bundleno = 1 (0x1), region = 96 }
 0x3be   :  { %1368 = vsyncpa [#allocation3], 1 }
 0x3bf   :  { %1370 = vsyncpa [#allocation3 + $0x1], 1 }

// kernel: forward.6
= control target key start
LH: loop header
LB: loop body
LE: loop exit
PB: predicated region body
PF: predicated region fallthrough
CT: control target
= control target key end

     0   :  { %s1506_s18 = smov 0   ;;  %s2130_s0 = inlined_call_operand.vmem [shape: f32[2,12,120], index: 0, kind: input, shape index: {}]   ;;  %s2131_s1 = inlined_call_operand.vmem [shape: f32[5,120,160], index: 1, kind: input, shape index: {}]   ;;  %s2132_s2 = inlined_call_operand.vmem [shape: f32[10,4,12], index: 2, kind: input, shape index: {}]   ;;  %s2133_s3 = inlined_call_operand.vmem [shape: f32[1,80], index: 3, kind: input, shape index: {}]   ;;  %s2134_s4 = inlined_call_operand.vmem [shape: f32[2,4,80], index: 4, kind: output, shape index: {0}]   ;;  %s2135_s5 = inlined_call_operand.vmem [shape: s32[2,4,80], index: 5, kind: output, shape index: {1}]  }
   0x1 LB: > { %s1252_s19 = sadd.s32 4294967295, %s1471_s18   ;;  %p1256_p0 = scmp.ge.s32.totalorder %s1471_s18, 1  ;;  %s1471_s18 = sphi %s1506_s18, %s16_s18  }
   0x2   : > { %p190_p1 = scmp.lt.s32.totalorder %s1471_s18, 3 }
   0x4   : > { %p191_p2 = pnand %p1256_p0, %p190_p1 }
   0x5   : > { %p1606_p3 = scmp.lt.s32.totalorder (!%p191_p2), %s1252_s19, 1  ;;  %s1473_s23 = smov (!%p191_p2), 48  }
   0x6   : > { %194 = sbr.rel (%p191_p2) target bundleno = 1048 (0x418), region = 36  ;;  %s1474_s27 = smov (!%p191_p2), 80  }
   0xb   : > { %v1294_v0 = vld [vmem:[%s2131_s1 + $0x1d0] sm:$0xff]  ;;  %v1295_v1 = vld [vmem:[%s2131_s1 + $0x1d8] sm:$0xff]  ;;  %v264_v2 = vld [vmem:[%s2131_s1 + $0xe0] sm:$0xff]  ;;  %s2138_s19 = smov (!%p1606_p3, %s1252_s19), 1  ;;  %vm266_vm0 = vcmask 982016   ;;  %vm405_vm1 = vcmask 1043456  }
   0xc   : > { %354 = vmatpush.msra.mxu2 %v1294_v0  ;;  %377 = vmatpush.msra.mxu3 %v1295_v1  ;;  %v1292_v3 = vld [vmem:[%s2131_s1 + $0x1c0] sm:$0xff]  ;;  %v1293_v4 = vld [vmem:[%s2131_s1 + $0x1c8] sm:$0xff]  ;;  %v262_v5 = vld [vmem:[%s2131_s1 + $0xd0] sm:$0xff]  ;;  %s1452_s21 = sshll.u32 %s2138_s19, 4  ;;  %vm401_vm2 = vcmask 97280   ;;  %vm1126_vm3 = vcmask 392192  }
   0xd   : > { %274 = vmatpush.msra.mxu0 %v264_v2  ;;  %v1290_v6 = vld [vmem:[%s2131_s1 + $0x1b0] sm:$0xff]  ;;  %v1291_v7 = vld [vmem:[%s2131_s1 + $0x1b8] sm:$0xff]  ;;  %v260_v8 = vld [vmem:[%s2131_s1 + $0xc0] sm:$0xff]  ;;  %s225_s11 = scalar_lea.vmem %s2130_s0, %s1452_s21  ;;  %s1259_s26 = sshll.u32 %s2138_s19, 2  ;;  %vm1165_vm4 = vcmask 650240  }
   0xe   : > { %355 = vmatpush.msra.mxu2 %v1292_v3  ;;  %378 = vmatpush.msra.mxu3 %v1293_v4  ;;  %v1288_v9 = vld [vmem:[%s2131_s1 + $0x1a0] sm:$0xff]  ;;  %v1289_v10 = vld [vmem:[%s2131_s1 + $0x1a8] sm:$0xff]  ;;  %v258_v11 = vld [vmem:[%s2131_s1 + $0xb0] sm:$0xff]  ;;  %s229_s30 = scalar_lea.vmem %s2134_s4, %s1259_s26  ;;  %s233_s7 = scalar_lea.vmem %s2135_s5, %s1259_s26 }
   0xf   : > { %275 = vmatpush.msra.mxu0 %v262_v5  ;;  %v265_v12 = vld [vmem:[%s2131_s1 + $0xe8] sm:$0xff]  ;;  %v1286_v13 = vld [vmem:[%s2131_s1 + $0x190] sm:$0xff]  ;;  %v1287_v14 = vld [vmem:[%s2131_s1 + $0x198] sm:$0xff] }
  0x10   : > { %356 = vmatpush.msra.mxu2 %v1290_v6  ;;  %379 = vmatpush.msra.mxu3 %v1291_v7  ;;  %v263_v15 = vld [vmem:[%s2131_s1 + $0xd8] sm:$0xff]  ;;  %v256_v16 = vld [vmem:[%s2131_s1 + $0xa0] sm:$0xff]  ;;  %v261_v17 = vld [vmem:[%s2131_s1 + $0xc8] sm:$0xff] }
  0x11   : > { %276 = vmatpush.msra.mxu0 %v260_v8  ;;  %297 = vmatpush.msra.mxu1 %v265_v12  ;;  %v1284_v18 = vld [vmem:[%s2131_s1 + $0x180] sm:$0xff]  ;;  %v1285_v19 = vld [vmem:[%s2131_s1 + $0x188] sm:$0xff]  ;;  %v254_v20 = vld [vmem:[%s2131_s1 + $0x90] sm:$0xff] }
  0x12   : > { %357 = vmatpush.msra.mxu2 %v1288_v9  ;;  %380 = vmatpush.msra.mxu3 %v1289_v10  ;;  %v259_v21 = vld [vmem:[%s2131_s1 + $0xb8] sm:$0xff]  ;;  %v1282_v22 = vld [vmem:[%s2131_s1 + $0x170] sm:$0xff]  ;;  %v252_v24 = vld [vmem:[%s2131_s1 + $0x80] sm:$0xff] }
  0x13   : > { %277 = vmatpush.msra.mxu0 %v258_v11  ;;  %298 = vmatpush.msra.mxu1 %v263_v15  ;;  %v1283_v23 = vld [vmem:[%s2131_s1 + $0x178] sm:$0xff]  ;;  %v257_v25 = vld [vmem:[%s2131_s1 + $0xa8] sm:$0xff]  ;;  %v1280_v26 = vld [vmem:[%s2131_s1 + $0x160] sm:$0xff] }
  0x14   : > { %358 = vmatpush.msra.mxu2 %v1286_v13  ;;  %381 = vmatpush.msra.mxu3 %v1287_v14  ;;  %v1281_v27 = vld [vmem:[%s2131_s1 + $0x168] sm:$0xff]  ;;  %v250_v28 = vld [vmem:[%s2131_s1 + $0x70] sm:$0xff]  ;;  %v255_v29 = vld [vmem:[%s2131_s1 + $0x98] sm:$0xff] }
  0x15   : > { %278 = vmatpush.msra.mxu0 %v256_v16  ;;  %299 = vmatpush.msra.mxu1 %v261_v17  ;;  %v1278_v30 = vld [vmem:[%s2131_s1 + $0x150] sm:$0xff]  ;;  %v1279_v31 = vld [vmem:[%s2131_s1 + $0x158] sm:$0xff]  ;;  %v248_v32 = vld [vmem:[%s2131_s1 + $0x60] sm:$0xff] }
  0x16   : > { %359 = vmatpush.msra.mxu2 %v1284_v18  ;;  %382 = vmatpush.msra.mxu3 %v1285_v19  ;;  %v253_v33 = vld [vmem:[%s2131_s1 + $0x88] sm:$0xff]  ;;  %v1276_v34 = vld [vmem:[%s2131_s1 + $0x140] sm:$0xff]  ;;  %v246_v36 = vld [vmem:[%s2131_s1 + $0x50] sm:$0xff] }
  0x17   : > { %279 = vmatpush.msra.mxu0 %v254_v20  ;;  %300 = vmatpush.msra.mxu1 %v259_v21  ;;  %v1277_v35 = vld [vmem:[%s2131_s1 + $0x148] sm:$0xff]  ;;  %v251_v37 = vld [vmem:[%s2131_s1 + $0x78] sm:$0xff]  ;;  %v1274_v38 = vld [vmem:[%s2131_s1 + $0x130] sm:$0xff] }
  0x18   : > { %360 = vmatpush.msra.mxu2 %v1282_v22  ;;  %383 = vmatpush.msra.mxu3 %v1283_v23  ;;  %v1275_v39 = vld [vmem:[%s2131_s1 + $0x138] sm:$0xff]  ;;  %v244_v40 = vld [vmem:[%s2131_s1 + $0x40] sm:$0xff]  ;;  %v249_v41 = vld [vmem:[%s2131_s1 + $0x68] sm:$0xff] }
  0x19   : > { %280 = vmatpush.msra.mxu0 %v252_v24  ;;  %301 = vmatpush.msra.mxu1 %v257_v25  ;;  %v1272_v42 = vld [vmem:[%s2131_s1 + $0x120] sm:$0xff]  ;;  %v1273_v43 = vld [vmem:[%s2131_s1 + $0x128] sm:$0xff]  ;;  %v242_v44 = vld [vmem:[%s2131_s1 + $0x30] sm:$0xff] }
  0x1a   : > { %361 = vmatpush.msra.mxu2 %v1280_v26  ;;  %384 = vmatpush.msra.mxu3 %v1281_v27  ;;  %v247_v45 = vld [vmem:[%s2131_s1 + $0x58] sm:$0xff]  ;;  %v1270_v46 = vld [vmem:[%s2131_s1 + $0x110] sm:$0xff]  ;;  %v240_v48 = vld [vmem:[%s2131_s1 + $0x20] sm:$0xff] }
  0x1b   : > { %281 = vmatpush.msra.mxu0 %v250_v28  ;;  %302 = vmatpush.msra.mxu1 %v255_v29  ;;  %v1271_v47 = vld [vmem:[%s2131_s1 + $0x118] sm:$0xff]  ;;  %v245_v49 = vld [vmem:[%s2131_s1 + $0x48] sm:$0xff]  ;;  %v1268_v50 = vld [vmem:[%s2131_s1 + $0x100] sm:$0xff] }
  0x1c   : > { %362 = vmatpush.msra.mxu2 %v1278_v30  ;;  %385 = vmatpush.msra.mxu3 %v1279_v31  ;;  %v1269_v51 = vld [vmem:[%s2131_s1 + $0x108] sm:$0xff]  ;;  %v238_v52 = vld [vmem:[%s2131_s1 + $0x10] sm:$0xff]  ;;  %v243_v53 = vld [vmem:[%s2131_s1 + $0x38] sm:$0xff] }
  0x1d   : > { %282 = vmatpush.msra.mxu0 %v248_v32  ;;  %303 = vmatpush.msra.mxu1 %v253_v33  ;;  %v1266_v54 = vld [vmem:[%s2131_s1 + $0xf0] sm:$0xff]  ;;  %v1267_v55 = vld [vmem:[%s2131_s1 + $0xf8] sm:$0xff]  ;;  %v236_v56 = vld [vmem:[%s2131_s1] sm:$0xff] }
  0x1e   : > { %363 = vmatpush.msra.mxu2 %v1276_v34  ;;  %386 = vmatpush.msra.mxu3 %v1277_v35  ;;  %v1701_v57 = vld [vmem:[%s225_s11] sm:$0xff]  ;;  %v241_v58 = vld [vmem:[%s2131_s1 + $0x28] sm:$0xff]  ;;  %v239_v59 = vld [vmem:[%s2131_s1 + $0x18] sm:$0xff] }
  0x1f   : > { %283 = vmatpush.msra.mxu0 %v246_v36  ;;  %304 = vmatpush.msra.mxu1 %v251_v37  ;;  %v237_v60 = vld [vmem:[%s2131_s1 + $0x8] sm:$0xff]  ;;  %v1265_v3 = vld [vmem:[%s2132_s2 + $0x14] sm:$0xf]  ;;  %v1300_v7 = vld [vmem:[%s2132_s2 + $0x4] sm:$0xf] }
  0x20   : > { %364 = vmatpush.msra.mxu2 %v1274_v38  ;;  %387 = vmatpush.msra.mxu3 %v1275_v39  ;;  %v1718_v61 = vld [vmem:[%s225_s11 + $0x8] sm:$0xf]  ;;  %v319_v8 = vld [vmem:[%s2132_s2] sm:$0xf]  ;;  %v1344_v11 = vld [vmem:[%s2131_s1 + $0x2b0] sm:$0xff] }
  0x21   : > { %284 = vmatpush.msra.mxu0 %v244_v40  ;;  %305 = vmatpush.msra.mxu1 %v249_v41  ;;  %v1346_v9 = vld [vmem:[%s2131_s1 + $0x2c0] sm:$0xff]  ;;  %v1347_v10 = vld [vmem:[%s2131_s1 + $0x2c8] sm:$0xff]  ;;  %v1345_v12 = vld [vmem:[%s2131_s1 + $0x2b8] sm:$0xff] }
  0x22   : > { %365 = vmatpush.msra.mxu2 %v1272_v42  ;;  %388 = vmatpush.msra.mxu3 %v1273_v43  ;;  %v1342_v13 = vld [vmem:[%s2131_s1 + $0x2a0] sm:$0xff]  ;;  %v1343_v14 = vld [vmem:[%s2131_s1 + $0x2a8] sm:$0xff]  ;;  %v1340_v15 = vld [vmem:[%s2131_s1 + $0x290] sm:$0xff] }
  0x23   : > { %285 = vmatpush.msra.mxu0 %v242_v44  ;;  %306 = vmatpush.msra.mxu1 %v247_v45  ;;  %v1341_v16 = vld [vmem:[%s2131_s1 + $0x298] sm:$0xff]  ;;  %v1338_v18 = vld [vmem:[%s2131_s1 + $0x280] sm:$0xff]  ;;  %v1339_v19 = vld [vmem:[%s2131_s1 + $0x288] sm:$0xff] }
  0x24   : > { %366 = vmatpush.msra.mxu2 %v1270_v46  ;;  %389 = vmatpush.msra.mxu3 %v1271_v47  ;;  %v1309_v17 = vld [vmem:[%s2132_s2 + $0x18] sm:$0xf]  ;;  %v1336_v20 = vld [vmem:[%s2131_s1 + $0x270] sm:$0xff]  ;;  %v1334_v22 = vld [vmem:[%s2131_s1 + $0x260] sm:$0xff] }
  0x25   : > { %286 = vmatpush.msra.mxu0 %v240_v48  ;;  %307 = vmatpush.msra.mxu1 %v245_v49  ;;  %v1337_v21 = vld [vmem:[%s2131_s1 + $0x278] sm:$0xff]  ;;  %v1335_v23 = vld [vmem:[%s2131_s1 + $0x268] sm:$0xff]  ;;  %v1332_v24 = vld [vmem:[%s2131_s1 + $0x250] sm:$0xff] }
  0x26   : > { %367 = vmatpush.msra.mxu2 %v1268_v50  ;;  %390 = vmatpush.msra.mxu3 %v1269_v51  ;;  %v1333_v25 = vld [vmem:[%s2131_s1 + $0x258] sm:$0xff]  ;;  %v1330_v26 = vld [vmem:[%s2131_s1 + $0x240] sm:$0xff]  ;;  %v1331_v27 = vld [vmem:[%s2131_s1 + $0x248] sm:$0xff] }
  0x27   : > { %287 = vmatpush.msra.mxu0 %v238_v52  ;;  %308 = vmatpush.msra.mxu1 %v243_v53  ;;  %v1328_v28 = vld [vmem:[%s2131_s1 + $0x230] sm:$0xff]  ;;  %v1329_v29 = vld [vmem:[%s2131_s1 + $0x238] sm:$0xff]  ;;  %v1326_v30 = vld [vmem:[%s2131_s1 + $0x220] sm:$0xff] }
  0x28   : > { %368 = vmatpush.msra.mxu2 %v1266_v54  ;;  %391 = vmatpush.msra.mxu3 %v1267_v55  ;;  %v1327_v31 = vld [vmem:[%s2131_s1 + $0x228] sm:$0xff]  ;;  %v1324_v32 = vld [vmem:[%s2131_s1 + $0x210] sm:$0xff]  ;;  %v1325_v33 = vld [vmem:[%s2131_s1 + $0x218] sm:$0xff] }
  0x29   : > { %288 = vmatpush.msra.mxu0 %v236_v56  ;;  %1296 = vmatmul.msk.f32.vlgmr.msra.gmra.mxu2 %vm266_vm0, %v1701_v57  ;;  %v1322_v34 = vld [vmem:[%s2131_s1 + $0x200] sm:$0xff]  ;;  %v1323_v35 = vld [vmem:[%s2131_s1 + $0x208] sm:$0xff]  ;;  %v1320_v36 = vld [vmem:[%s2131_s1 + $0x1f0] sm:$0xff] }
  0x2a   : > { %1298 = vmatmul.msk.f32.vlgmr.msra.gmra.mxu3 %vm266_vm0, %v1701_v57  ;;  %1261 = vmatmul.msk.f32.vlgmr.msra.gmra.mxu0 %vm266_vm0, %v1701_v57  ;;  %v1321_v37 = vld [vmem:[%s2131_s1 + $0x1f8] sm:$0xff]  ;;  %v1318_v38 = vld [vmem:[%s2131_s1 + $0x1e0] sm:$0xff]  ;;  %v1319_v39 = vld [vmem:[%s2131_s1 + $0x1e8] sm:$0xff] }
  0x2b   : > { %309 = vmatpush.msra.mxu1 %v241_v58  ;;  %v1352_v52 = vld [vmem:[%s2132_s2 + $0x8] sm:$0xf]  ;;  %v1390_v53 = vld [vmem:[%s2131_s1 + $0x3b0] sm:$0xff]  ;;  %v1391_v54 = vld [vmem:[%s2131_s1 + $0x3b8] sm:$0xff] }
  0x2c   : > { %v1388_v55 = vld [vmem:[%s2131_s1 + $0x3a0] sm:$0xff]  ;;  %v1389_v56 = vld [vmem:[%s2131_s1 + $0x3a8] sm:$0xff]  ;;  %v1386_v58 = vld [vmem:[%s2131_s1 + $0x390] sm:$0xff] }
  0x2d   : > { %310 = vmatpush.msra.mxu1 %v239_v59  ;;  %v1387_v59 = vld [vmem:[%s2131_s1 + $0x398] sm:$0xff] }
  0x2f   : > { %311 = vmatpush.msra.mxu1 %v237_v60  ;;  %v1357_v60 = vld [vmem:[%s2132_s2 + $0x1c] sm:$0xf] }
  0x30   : > { %1263 = vmatmul.msk.f32.vlgmr.msra.gmra.mxu1 %vm266_vm0, %v1701_v57 }
  0x31   : > { %1297 = vmatmul.msk.f32.gmra.mxu2 %vm266_vm0, %v1718_v61 }
  0x32   : > { %1299 = vmatmul.msk.f32.gmra.mxu3 %vm266_vm0, %v1718_v61  ;;  %1262 = vmatmul.msk.f32.gmra.mxu0 %vm266_vm0, %v1718_v61 }
  0x38   : > { %1264 = vmatmul.msk.f32.gmra.mxu1 %vm266_vm0, %v1718_v61 }
  0xa7   : > { %v290_v62 = vpop.f32.mrf.mxu0 }
  0xac   : > { %v370_v63 = vpop.f32.mrf.mxu2 }
  0xad   : > { %v393_v0 = vpop.f32.mrf.mxu3  ;;  %v313_v1 = vpop.f32.mrf.mxu1 }
  0xaf   : > { %v293_v2 = vpop.f32.mrf.mxu0 }
  0xb0   : > { %1314 = vmatpush.msk.msrb.mxu2 %vm405_vm1, %v293_v2 }
  0xb2   : > { %564 = vmatpush.msrb.mxu2 %v290_v62 }
  0xb3   : > { %1315 = vmatmul.msk.f32.vlgmr.msrb.gmra.mxu2 %vm401_vm2, %v1265_v3 }
  0xb4   : > { %v373_v4 = vpop.f32.mrf.mxu2 }
  0xb5   : > { %v396_v5 = vpop.f32.mrf.mxu3  ;;  %1301 = vmatpush.msk.msrb.mxu0 %vm405_vm1, %v373_v4  ;;  %v316_v6 = vpop.f32.mrf.mxu1 }
  0xb6   : > { %1303 = vmatpush.msk.msrb.mxu1 %vm405_vm1, %v396_v5  ;;  %1316 = vmatpush.msk.msrb.mxu3 %vm405_vm1, %v316_v6 }
  0xb7   : > { %427 = vmatpush.msrb.mxu0 %v370_v63 }
  0xb8   : > { %447 = vmatpush.msrb.mxu1 %v393_v0  ;;  %1302 = vmatmul.msk.f32.vlgmr.msrb.gmra.mxu0 %vm401_vm2, %v1300_v7 }
  0xb9   : > { %1304 = vmatmul.msk.f32.vlgmr.msrb.gmra.mxu1 %vm401_vm2, %v1300_v7  ;;  %1305 = vmatpush.msk.msra.mxu0 %vm405_vm1, %v293_v2  ;;  %v1380_v2 = vld [vmem:[%s2131_s1 + $0x360] sm:$0xff]  ;;  %v1377_v7 = vld [vmem:[%s2131_s1 + $0x348] sm:$0xff] }
  0xba   : > { %1307 = vmatpush.msk.msra.mxu1 %vm405_vm1, %v316_v6  ;;  %584 = vmatpush.msrb.mxu3 %v313_v1  ;;  %v1376_v6 = vld [vmem:[%s2131_s1 + $0x340] sm:$0xff] }
  0xbb   : > { %476 = vmatpush.msra.mxu0 %v290_v62  ;;  %1317 = vmatmul.msk.f32.vlgmr.msrb.gmra.mxu3 %vm401_vm2, %v1265_v3  ;;  %v1384_v62 = vld [vmem:[%s2131_s1 + $0x380] sm:$0xff]  ;;  %v1381_v3 = vld [vmem:[%s2131_s1 + $0x368] sm:$0xff] }
  0xbc   : > { %496 = vmatpush.msra.mxu1 %v313_v1  ;;  %v1383_v1 = vld [vmem:[%s2131_s1 + $0x378] sm:$0xff] }
  0xbd   : > { %1310 = vmatpush.msk.msrb.mxu0 %vm405_vm1, %v373_v4  ;;  %v1378_v4 = vld [vmem:[%s2131_s1 + $0x350] sm:$0xff] }
  0xbe   : > { %1312 = vmatpush.msk.msrb.mxu1 %vm405_vm1, %v396_v5  ;;  %v1379_v5 = vld [vmem:[%s2131_s1 + $0x358] sm:$0xff] }
  0xbf   : > { %521 = vmatpush.msrb.mxu0 %v370_v63  ;;  %v1385_v63 = vld [vmem:[%s2131_s1 + $0x388] sm:$0xff] }
  0xc0   : > { %541 = vmatpush.msrb.mxu1 %v393_v0  ;;  %1306 = vmatmul.msk.f32.vlgmr.msra.gmra.mxu0 %vm401_vm2, %v319_v8  ;;  %v1382_v0 = vld [vmem:[%s2131_s1 + $0x370] sm:$0xff] }
  0xc1   : > { %1308 = vmatmul.msk.f32.vlgmr.msra.gmra.mxu1 %vm401_vm2, %v319_v8  ;;  %621 = vmatpush.msra.mxu0 %v1346_v9  ;;  %v1374_v8 = vld [vmem:[%s2131_s1 + $0x330] sm:$0xff]  ;;  %v1375_v9 = vld [vmem:[%s2131_s1 + $0x338] sm:$0xff] }
  0xc2   : > { %644 = vmatpush.msra.mxu1 %v1347_v10  ;;  %v1372_v10 = vld [vmem:[%s2131_s1 + $0x320] sm:$0xff] }
  0xc3   : > { %622 = vmatpush.msra.mxu0 %v1344_v11  ;;  %v1373_v11 = vld [vmem:[%s2131_s1 + $0x328] sm:$0xff] }
  0xc4   : > { %645 = vmatpush.msra.mxu1 %v1345_v12  ;;  %v1370_v12 = vld [vmem:[%s2131_s1 + $0x310] sm:$0xff] }
  0xc5   : > { %623 = vmatpush.msra.mxu0 %v1342_v13  ;;  %v1371_v13 = vld [vmem:[%s2131_s1 + $0x318] sm:$0xff] }
  0xc6   : > { %646 = vmatpush.msra.mxu1 %v1343_v14  ;;  %v1368_v14 = vld [vmem:[%s2131_s1 + $0x300] sm:$0xff] }
  0xc7   : > { %624 = vmatpush.msra.mxu0 %v1340_v15  ;;  %v1369_v15 = vld [vmem:[%s2131_s1 + $0x308] sm:$0xff] }
  0xc8   : > { %647 = vmatpush.msra.mxu1 %v1341_v16  ;;  %1311 = vmatmul.msk.f32.vlgmr.msrb.gmra.mxu0 %vm401_vm2, %v1309_v17  ;;  %v1366_v16 = vld [vmem:[%s2131_s1 + $0x2f0] sm:$0xff] }
  0xc9   : > { %625 = vmatpush.msra.mxu0 %v1338_v18  ;;  %1313 = vmatmul.msk.f32.vlgmr.msrb.gmra.mxu1 %vm401_vm2, %v1309_v17  ;;  %v1367_v17 = vld [vmem:[%s2131_s1 + $0x2f8] sm:$0xff]  ;;  %v1364_v18 = vld [vmem:[%s2131_s1 + $0x2e0] sm:$0xff] }
  0xca   : > { %648 = vmatpush.msra.mxu1 %v1339_v19  ;;  %v1365_v19 = vld [vmem:[%s2131_s1 + $0x2e8] sm:$0xff] }
  0xcb   : > { %626 = vmatpush.msra.mxu0 %v1336_v20  ;;  %v1362_v20 = vld [vmem:[%s2131_s1 + $0x2d0] sm:$0xff] }
  0xcc   : > { %649 = vmatpush.msra.mxu1 %v1337_v21  ;;  %v1363_v21 = vld [vmem:[%s2131_s1 + $0x2d8] sm:$0xff] }
  0xcd   : > { %627 = vmatpush.msra.mxu0 %v1334_v22  ;;  %v1434_v22 = vld [vmem:[%s2131_s1 + $0x4a0] sm:$0xff] }
  0xce   : > { %650 = vmatpush.msra.mxu1 %v1335_v23  ;;  %v1435_v23 = vld [vmem:[%s2131_s1 + $0x4a8] sm:$0xff] }
  0xcf   : > { %628 = vmatpush.msra.mxu0 %v1332_v24  ;;  %v1432_v24 = vld [vmem:[%s2131_s1 + $0x490] sm:$0xff] }
  0xd0   : > { %651 = vmatpush.msra.mxu1 %v1333_v25  ;;  %v1433_v25 = vld [vmem:[%s2131_s1 + $0x498] sm:$0xff] }
  0xd1   : > { %629 = vmatpush.msra.mxu0 %v1330_v26  ;;  %v1430_v26 = vld [vmem:[%s2131_s1 + $0x480] sm:$0xff] }
  0xd2   : > { %652 = vmatpush.msra.mxu1 %v1331_v27  ;;  %v1431_v27 = vld [vmem:[%s2131_s1 + $0x488] sm:$0xff] }
  0xd3   : > { %630 = vmatpush.msra.mxu0 %v1328_v28  ;;  %v1428_v28 = vld [vmem:[%s2131_s1 + $0x470] sm:$0xff] }
  0xd4   : > { %653 = vmatpush.msra.mxu1 %v1329_v29  ;;  %v1429_v29 = vld [vmem:[%s2131_s1 + $0x478] sm:$0xff] }
  0xd5   : > { %631 = vmatpush.msra.mxu0 %v1326_v30  ;;  %v1426_v30 = vld [vmem:[%s2131_s1 + $0x460] sm:$0xff] }
  0xd6   : > { %654 = vmatpush.msra.mxu1 %v1327_v31  ;;  %v1427_v31 = vld [vmem:[%s2131_s1 + $0x468] sm:$0xff] }
  0xd7   : > { %632 = vmatpush.msra.mxu0 %v1324_v32  ;;  %v1424_v32 = vld [vmem:[%s2131_s1 + $0x450] sm:$0xff] }
  0xd8   : > { %655 = vmatpush.msra.mxu1 %v1325_v33  ;;  %v1425_v33 = vld [vmem:[%s2131_s1 + $0x458] sm:$0xff] }
  0xd9   : > { %633 = vmatpush.msra.mxu0 %v1322_v34  ;;  %v1422_v34 = vld [vmem:[%s2131_s1 + $0x440] sm:$0xff] }
  0xda   : > { %656 = vmatpush.msra.mxu1 %v1323_v35  ;;  %v1423_v35 = vld [vmem:[%s2131_s1 + $0x448] sm:$0xff] }
  0xdb   : > { %634 = vmatpush.msra.mxu0 %v1320_v36  ;;  %v1420_v36 = vld [vmem:[%s2131_s1 + $0x430] sm:$0xff] }
  0xdc   : > { %657 = vmatpush.msra.mxu1 %v1321_v37  ;;  %v1421_v37 = vld [vmem:[%s2131_s1 + $0x438] sm:$0xff] }
  0xdd   : > { %635 = vmatpush.msra.mxu0 %v1318_v38  ;;  %v1418_v38 = vld [vmem:[%s2131_s1 + $0x420] sm:$0xff] }
  0xde   : > { %658 = vmatpush.msra.mxu1 %v1319_v39  ;;  %1348 = vmatmul.msk.f32.vlgmr.msra.gmra.mxu0 %vm266_vm0, %v1701_v57  ;;  %v1419_v39 = vld [vmem:[%s2131_s1 + $0x428] sm:$0xff] }
  0xdf   : > { %1350 = vmatmul.msk.f32.vlgmr.msra.gmra.mxu1 %vm266_vm0, %v1701_v57 }
  0xe6   : > { %1349 = vmatmul.msk.f32.gmra.mxu0 %vm266_vm0, %v1718_v61 }
  0xe7   : > { %1351 = vmatmul.msk.f32.gmra.mxu1 %vm266_vm0, %v1718_v61 }
 0x135   : > { %v429_v40 = vpop.f32.mrf.mxu0 }
 0x136   : > { %v449_v41 = vpop.f32.mrf.mxu1 }
 0x13d   : > { %v478_v42 = vpop.f32.mrf.mxu0 }
 0x13e   : > { %v1856_v43 = vadd.f32 %v478_v42, %v429_v40  ;;  %v498_v44 = vpop.f32.mrf.mxu1  ;;  %v1416_v40 = vld [vmem:[%s2131_s1 + $0x410] sm:$0xff]  ;;  %v1414_v42 = vld [vmem:[%s2131_s1 + $0x400] sm:$0xff] }
 0x13f   : > { %v1858_v45 = vadd.f32 %v498_v44, %v449_v41  ;;  %v1417_v41 = vld [vmem:[%s2131_s1 + $0x418] sm:$0xff]  ;;  %v1415_v44 = vld [vmem:[%s2131_s1 + $0x408] sm:$0xff] }
 0x145   : > { %v1860_v46 = vpop.f32.mrf.mxu0 }
 0x146   : > { %v1862_v47 = vpop.f32.mrf.mxu1 }
 0x15b   : > { %v637_v48 = vpop.f32.mrf.mxu0 }
 0x15c   : > { %v660_v49 = vpop.f32.mrf.mxu1 }
 0x163   : > { %v640_v50 = vpop.f32.mrf.mxu0 }
 0x164   : > { %v663_v51 = vpop.f32.mrf.mxu1  ;;  %1353 = vmatpush.msk.msra.mxu2 %vm405_vm1, %v640_v50 }
 0x165   : > { %1355 = vmatpush.msk.msra.mxu3 %vm405_vm1, %v663_v51 }
 0x166   : > { %692 = vmatpush.msra.mxu2 %v637_v48 }
 0x167   : > { %712 = vmatpush.msra.mxu3 %v660_v49  ;;  %1354 = vmatmul.msk.f32.vlgmr.msra.gmra.mxu2 %vm401_vm2, %v1352_v52 }
 0x168   : > { %1356 = vmatmul.msk.f32.vlgmr.msra.gmra.mxu3 %vm401_vm2, %v1352_v52  ;;  %1358 = vmatpush.msk.msrb.mxu2 %vm405_vm1, %v640_v50  ;;  %v1410_v50 = vld [vmem:[%s2131_s1 + $0x3e0] sm:$0xff]  ;;  %v1408_v52 = vld [vmem:[%s2131_s1 + $0x3d0] sm:$0xff] }
 0x169   : > { %1360 = vmatpush.msk.msrb.mxu3 %vm405_vm1, %v663_v51  ;;  %v1411_v51 = vld [vmem:[%s2131_s1 + $0x3e8] sm:$0xff] }
 0x16a   : > { %739 = vmatpush.msrb.mxu2 %v637_v48  ;;  %v1412_v48 = vld [vmem:[%s2131_s1 + $0x3f0] sm:$0xff] }
 0x16b   : > { %759 = vmatpush.msrb.mxu3 %v660_v49  ;;  %v1413_v49 = vld [vmem:[%s2131_s1 + $0x3f8] sm:$0xff] }
 0x16c   : > { %798 = vmatpush.msra.mxu2 %v1390_v53  ;;  %v1409_v53 = vld [vmem:[%s2131_s1 + $0x3d8] sm:$0xff] }
 0x16d   : > { %821 = vmatpush.msra.mxu3 %v1391_v54  ;;  %v1406_v54 = vld [vmem:[%s2131_s1 + $0x3c0] sm:$0xff] }
 0x16e   : > { %799 = vmatpush.msra.mxu2 %v1388_v55  ;;  %v1407_v55 = vld [vmem:[%s2131_s1 + $0x3c8] sm:$0xff] }
 0x16f   : > { %822 = vmatpush.msra.mxu3 %v1389_v56  ;;  %1359 = vmatmul.msk.f32.vlgmr.msrb.gmra.mxu2 %vm401_vm2, %v1357_v60  ;;  %v566_v56 = vpop.f32.mrf.mxu2 }
 0x170   : > { %800 = vmatpush.msra.mxu2 %v1386_v58  ;;  %1361 = vmatmul.msk.f32.vlgmr.msrb.gmra.mxu3 %vm401_vm2, %v1357_v60  ;;  %v586_v58 = vpop.f32.mrf.mxu3 }
 0x171   : > { %823 = vmatpush.msra.mxu3 %v1387_v59 }
 0x172   : > { %801 = vmatpush.msra.mxu2 %v1384_v62 }
 0x173   : > { %824 = vmatpush.msra.mxu3 %v1385_v63 }
 0x174   : > { %802 = vmatpush.msra.mxu2 %v1382_v0  ;;  %v567_v0 = vadd.f32 %v566_v56, %v1860_v46 }
 0x175   : > { %825 = vmatpush.msra.mxu3 %v1383_v1  ;;  %v587_v1 = vadd.f32 %v586_v58, %v1862_v47 }
 0x176   : > { %803 = vmatpush.msra.mxu2 %v1380_v2 }
 0x177   : > { %826 = vmatpush.msra.mxu3 %v1381_v3 }
 0x178   : > { %804 = vmatpush.msra.mxu2 %v1378_v4 }
 0x179   : > { %827 = vmatpush.msra.mxu3 %v1379_v5 }
 0x17a   : > { %805 = vmatpush.msra.mxu2 %v1376_v6 }
 0x17b   : > { %828 = vmatpush.msra.mxu3 %v1377_v7 }
 0x17c   : > { %806 = vmatpush.msra.mxu2 %v1374_v8 }
 0x17d   : > { %829 = vmatpush.msra.mxu3 %v1375_v9 }
 0x17e   : > { %807 = vmatpush.msra.mxu2 %v1372_v10  ;;  %v1440_v10 = vld [vmem:[%s2132_s2 + $0x10] sm:$0xf] }
 0x17f   : > { %830 = vmatpush.msra.mxu3 %v1373_v11  ;;  %v1445_v11 = vld [vmem:[%s2132_s2 + $0x24] sm:$0xf] }
 0x180   : > { %808 = vmatpush.msra.mxu2 %v1370_v12 }
 0x181   : > { %831 = vmatpush.msra.mxu3 %v1371_v13 }
 0x182   : > { %809 = vmatpush.msra.mxu2 %v1368_v14 }
 0x183   : > { %832 = vmatpush.msra.mxu3 %v1369_v15 }
 0x184   : > { %810 = vmatpush.msra.mxu2 %v1366_v16 }
 0x185   : > { %833 = vmatpush.msra.mxu3 %v1367_v17 }
 0x186   : > { %811 = vmatpush.msra.mxu2 %v1364_v18 }
 0x187   : > { %834 = vmatpush.msra.mxu3 %v1365_v19 }
 0x188   : > { %812 = vmatpush.msra.mxu2 %v1362_v20 }
 0x189   : > { %835 = vmatpush.msra.mxu3 %v1363_v21  ;;  %1392 = vmatmul.msk.f32.vlgmr.msra.gmra.mxu2 %vm266_vm0, %v1701_v57 }
 0x18a   : > { %1394 = vmatmul.msk.f32.vlgmr.msra.gmra.mxu3 %vm266_vm0, %v1701_v57  ;;  %975 = vmatpush.msrb.mxu2 %v1434_v22 }
 0x18b   : > { %998 = vmatpush.msrb.mxu3 %v1435_v23 }
 0x18c   : > { %976 = vmatpush.msrb.mxu2 %v1432_v24 }
 0x18d   : > { %999 = vmatpush.msrb.mxu3 %v1433_v25 }
 0x18e   : > { %977 = vmatpush.msrb.mxu2 %v1430_v26 }
 0x18f   : > { %1000 = vmatpush.msrb.mxu3 %v1431_v27 }
 0x190   : > { %978 = vmatpush.msrb.mxu2 %v1428_v28 }
 0x191   : > { %1001 = vmatpush.msrb.mxu3 %v1429_v29  ;;  %1393 = vmatmul.msk.f32.gmra.mxu2 %vm266_vm0, %v1718_v61 }
 0x192   : > { %1395 = vmatmul.msk.f32.gmra.mxu3 %vm266_vm0, %v1718_v61  ;;  %979 = vmatpush.msrb.mxu2 %v1426_v30 }
 0x193   : > { %1002 = vmatpush.msrb.mxu3 %v1427_v31 }
 0x194   : > { %980 = vmatpush.msrb.mxu2 %v1424_v32 }
 0x195   : > { %1003 = vmatpush.msrb.mxu3 %v1425_v33 }
 0x196   : > { %981 = vmatpush.msrb.mxu2 %v1422_v34 }
 0x197   : > { %1004 = vmatpush.msrb.mxu3 %v1423_v35  ;;  %v1464_v35 = vld [vmem:[%s2133_s3] ss:$0 sm:$0xff] }
 0x198   : > { %982 = vmatpush.msrb.mxu2 %v1420_v36 }
 0x199   : > { %1005 = vmatpush.msrb.mxu3 %v1421_v37 }
 0x19a   : > { %983 = vmatpush.msrb.mxu2 %v1418_v38 }
 0x19b   : > { %1006 = vmatpush.msrb.mxu3 %v1419_v39 }
 0x19c   : > { %984 = vmatpush.msrb.mxu2 %v1416_v40  ;;  %v1475_v40 = vmov 3  }
 0x19d   : > { %1007 = vmatpush.msrb.mxu3 %v1417_v41 }
 0x19e   : > { %985 = vmatpush.msrb.mxu2 %v1414_v42 }
 0x19f   : > { %1008 = vmatpush.msrb.mxu3 %v1415_v44 }
 0x1a0   : > { %986 = vmatpush.msrb.mxu2 %v1412_v48 }
 0x1a1   : > { %1009 = vmatpush.msrb.mxu3 %v1413_v49 }
 0x1a2   : > { %987 = vmatpush.msrb.mxu2 %v1410_v50 }
 0x1a3   : > { %1010 = vmatpush.msrb.mxu3 %v1411_v51 }
 0x1a4   : > { %988 = vmatpush.msrb.mxu2 %v1408_v52 }
 0x1a5   : > { %1011 = vmatpush.msrb.mxu3 %v1409_v53 }
 0x1a6   : > { %989 = vmatpush.msrb.mxu2 %v1406_v54 }
 0x1a7   : > { %1012 = vmatpush.msrb.mxu3 %v1407_v55  ;;  %1436 = vmatmul.msk.f32.vlgmr.msrb.gmra.mxu2 %vm266_vm0, %v1701_v57 }
 0x1a8   : > { %1438 = vmatmul.msk.f32.vlgmr.msrb.gmra.mxu3 %vm266_vm0, %v1701_v57 }
 0x1af   : > { %1437 = vmatmul.msk.f32.gmra.mxu2 %vm266_vm0, %v1718_v61 }
 0x1b0   : > { %1439 = vmatmul.msk.f32.gmra.mxu3 %vm266_vm0, %v1718_v61 }
 0x1ea   : > { %v694_v59 = vpop.f32.mrf.mxu2 }
 0x1eb   : > { %v717_v60 = vadd.f32 %v694_v59, %v1856_v43  ;;  %v714_v62 = vpop.f32.mrf.mxu3  ;;  %v1396_v43 = vld [vmem:[%s2132_s2 + $0xc] sm:$0xf] }
 0x1ec   : > { %v718_v63 = vadd.f32 %v714_v62, %v1858_v45  ;;  %v1401_v45 = vld [vmem:[%s2132_s2 + $0x20] sm:$0xf] }
 0x1f2   : > { %v741_v2 = vpop.f32.mrf.mxu2 }
 0x1f3   : > { %v764_v57 = vadd.f32 %v741_v2, %v567_v0  ;;  %v761_v3 = vpop.f32.mrf.mxu3 }
 0x1f4   : > { %v765_v4 = vadd.f32 %v761_v3, %v587_v1 }
 0x20c   : > { %v814_v5 = vpop.f32.mrf.mxu2 }
 0x20d   : > { %v837_v6 = vpop.f32.mrf.mxu3 }
 0x214   : > { %v817_v7 = vpop.f32.mrf.mxu2 }
 0x215   : > { %v840_v61 = vpop.f32.mrf.mxu3  ;;  %1397 = vmatpush.msk.msrb.mxu0 %vm405_vm1, %v817_v7 }
 0x216   : > { %1399 = vmatpush.msk.msrb.mxu1 %vm405_vm1, %v840_v61 }
 0x217   : > { %869 = vmatpush.msrb.mxu0 %v814_v5 }
 0x218   : > { %889 = vmatpush.msrb.mxu1 %v837_v6  ;;  %1398 = vmatmul.msk.f32.vlgmr.msrb.gmra.mxu0 %vm401_vm2, %v1396_v43 }
 0x219   : > { %1400 = vmatmul.msk.f32.vlgmr.msrb.gmra.mxu1 %vm401_vm2, %v1396_v43  ;;  %1402 = vmatpush.msk.msra.mxu0 %vm405_vm1, %v817_v7 }
 0x21a   : > { %1404 = vmatpush.msk.msra.mxu1 %vm405_vm1, %v840_v61 }
 0x21b   : > { %916 = vmatpush.msra.mxu0 %v814_v5 }
 0x21c   : > { %936 = vmatpush.msra.mxu1 %v837_v6 }
 0x220   : > { %1403 = vmatmul.msk.f32.vlgmr.msra.gmra.mxu0 %vm401_vm2, %v1401_v45 }
 0x221   : > { %1405 = vmatmul.msk.f32.vlgmr.msra.gmra.mxu1 %vm401_vm2, %v1401_v45 }
 0x22a   : > { %v991_v46 = vpop.f32.mrf.mxu2 }
 0x22b   : > { %v1014_v47 = vpop.f32.mrf.mxu3 }
 0x232   : > { %v994_v8 = vpop.f32.mrf.mxu2 }
 0x233   : > { %v1017_v9 = vpop.f32.mrf.mxu3  ;;  %1441 = vmatpush.msk.msrb.mxu0 %vm405_vm1, %v994_v8 }
 0x234   : > { %1443 = vmatpush.msk.msrb.mxu1 %vm405_vm1, %v1017_v9 }
 0x235   : > { %1046 = vmatpush.msrb.mxu0 %v991_v46 }
 0x236   : > { %1066 = vmatpush.msrb.mxu1 %v1014_v47  ;;  %1442 = vmatmul.msk.f32.vlgmr.msrb.gmra.mxu0 %vm401_vm2, %v1440_v10 }
 0x237   : > { %1444 = vmatmul.msk.f32.vlgmr.msrb.gmra.mxu1 %vm401_vm2, %v1440_v10  ;;  %1446 = vmatpush.msk.msra.mxu0 %vm405_vm1, %v994_v8 }
 0x238   : > { %1448 = vmatpush.msk.msra.mxu1 %vm405_vm1, %v1017_v9 }
 0x239   : > { %1093 = vmatpush.msra.mxu0 %v991_v46 }
 0x23a   : > { %1113 = vmatpush.msra.mxu1 %v1014_v47 }
 0x23e   : > { %1447 = vmatmul.msk.f32.vlgmr.msra.gmra.mxu0 %vm401_vm2, %v1445_v11 }
 0x23f   : > { %1449 = vmatmul.msk.f32.vlgmr.msra.gmra.mxu1 %vm401_vm2, %v1445_v11 }
 0x295   : > { %v871_v12 = vpop.f32.mrf.mxu0 }
 0x296   : > { %v891_v13 = vpop.f32.mrf.mxu1  ;;  %v894_v16 = vadd.f32 %v871_v12, %v717_v60 }
 0x297   : > { %v895_v20 = vadd.f32 %v891_v13, %v718_v63 }
 0x29d   : > { %v918_v14 = vpop.f32.mrf.mxu0 }
 0x29e   : > { %v938_v15 = vpop.f32.mrf.mxu1  ;;  %v941_v21 = vadd.f32 %v918_v14, %v764_v57 }
 0x29f   : > { %v942_v26 = vadd.f32 %v938_v15, %v765_v4 }
 0x2b3   : > { %v1048_v17 = vpop.f32.mrf.mxu0 }
 0x2b4   : > { %v1071_v18 = vadd.f32 %v1048_v17, %v894_v16  ;;  %v1068_v19 = vpop.f32.mrf.mxu1 }
 0x2b5   : > { %v1072_v23 = vadd.f32 %v1068_v19, %v895_v20 }
 0x2b6   : > { %1122 = vrot.lane.b32.xlu0 %v1071_v18, %s1473_s23 }
 0x2bb   : > { %v1095_v22 = vpop.f32.mrf.mxu0 }
 0x2bc   : > { %v1118_v24 = vadd.f32 %v1095_v22, %v941_v21  ;;  %v1115_v25 = vpop.f32.mrf.mxu1 }
 0x2bd   : > { %v1119_v27 = vadd.f32 %v1115_v25, %v942_v26 }
 0x2be   : > { %1132 = vrot.lane.b32.xlu1 %v1118_v24, %s1473_s23  ;;  %1124 = vrot.lane.b32.xlu0 %v1072_v23, %s1473_s23 }
 0x2c6   : > { %1134 = vrot.lane.b32.xlu1 %v1119_v27, %s1473_s23 }
 0x328   : > { %v1123_v28 = vpop.permute.xlu0 %1122 }
 0x330   : > { %v1133_v29 = vpop.permute.xlu1 %1132  ;;  %v1125_v30 = vpop.permute.xlu0 %1124 }
 0x331   : > { %v1127_v31 = vsel %vm1126_vm3, %v1123_v28, %v1125_v30 }
 0x332   : > { %v1129_v34 = vmax.f32 %v1071_v18, %v1127_v31 }
 0x338   : > { %v1135_v32 = vpop.permute.xlu1 %1134 }
 0x339   : > { %v1136_v33 = vsel %vm1126_vm3, %v1133_v29, %v1135_v32 }
 0x33a   : > { %v1138_v36 = vmax.f32 %v1118_v24, %v1136_v33 }
 0x33c   : > { %v1139_v37 = vmax.f32 %v1129_v34, %v1138_v36 }
 0x33e   : > { %v1163_v38 = vadd.f32 %v1464_v35, %v1139_v37  ;;  %1142 = vrot.lane.b32.xlu2 %v1139_v37, %s1474_s27  ;;  %vm1147_vm5 = vcmp.eq.f32.partialorder %v1118_v24, %v1139_v37  ;;  %vm1140_vm8 = vcmp.eq.f32.partialorder %v1071_v18, %v1139_v37 }
 0x33f   : > { %v1148_v41 = vsel %vm1147_vm5, 2, %v1475_v40 }
 0x340   : > { %v1164_v39 = vmax.f32 %v1163_v38, 0.0 }
 0x342   : > { %1166 = vst.msk [vmem:[%s229_s30] sm:$0xf] %vm1165_vm4, %v1164_v39 }
 0x346   : > { %1149 = vrot.lane.b32.xlu2 %v1148_v41, %s1474_s27 }
 0x398   : > { %v1143_v42 = vpop.permute.xlu2 %1142 }
 0x399   : > { %vm1145_vm6 = vcmp.eq.f32.partialorder %v1071_v18, %v1143_v42  ;;  %vm1146_vm7 = vcmp.eq.f32.partialorder %v1072_v23, %v1143_v42 }
 0x3a0   : > { %v1150_v44 = vpop.permute.xlu2 %1149 }
 0x3a1   : > { %v1151_v48 = vsel %vm1145_vm6, 1, %v1150_v44  ;;  %v1152_v49 = vsel %vm1146_vm7, 1, %v1150_v44 }
 0x3a2   : > { %1155 = vrot.lane.b32.xlu1 %v1152_v49, %s1473_s23  ;;  %1153 = vrot.lane.b32.xlu0 %v1151_v48, %s1473_s23 }
 0x414   : > { %v1156_v50 = vpop.permute.xlu1 %1155  ;;  %v1154_v51 = vpop.permute.xlu0 %1153 }
 0x415   : > { %v1157_v52 = vsel %vm1126_vm3, %v1154_v51, %v1156_v50 }
 0x416   : > { %v1158_v53 = vsel %vm1140_vm8, 0, %v1157_v52 }
 0x417   : > { %1167 = vst.msk [vmem:[%s233_s7] sm:$0xf] %vm1165_vm4, %v1158_v53 }
 0x418 PF: > { %s16_s18 = sadd.s32 1, %s1471_s18  }
 0x419   : > { %p13_p4 = scmp.ge.s32.totalorder %s16_s18, 4  }
 0x41b   :  { %15 = sbr.rel (!%p13_p4) target bundleno = 1 (0x1), region = 91 }

// kernel: forward.8
= control target key start
LH: loop header
LB: loop body
LE: loop exit
PB: predicated region body
PF: predicated region fallthrough
CT: control target
= control target key end

     0   :  { %s2439_s21 = smov 0   ;;  %s3761_s0 = inlined_call_operand.vmem [shape: f32[2,4,80], index: 0, kind: input, shape index: {}]   ;;  %s3762_s1 = inlined_call_operand.vmem [shape: s32[2,4,80], index: 1, kind: input, shape index: {}]   ;;  %s3763_s2 = inlined_call_operand.vmem [shape: f32[2,80,320], index: 2, kind: input, shape index: {}]   ;;  %s3764_s3 = inlined_call_operand.vmem [shape: f32[10,12,4], index: 3, kind: input, shape index: {}]   ;;  %s3765_s4 = inlined_call_operand.vmem [shape: f32[5,320,120], index: 4, kind: input, shape index: {}]   ;;  %s3766_s5 = inlined_call_operand.vmem [shape: f32[1,120], index: 5, kind: input, shape index: {}]   ;;  %s3767_s6 = inlined_call_operand.vmem [shape: f32[2,12,120], index: 6, kind: output, shape index: {}]  }
   0x1 LB: > { %s2054_s22 = sadd.s32 4294967295, %s2402_s21   ;;  %p2058_p0 = scmp.ge.s32.totalorder %s2402_s21, 1  ;;  %s2402_s21 = sphi %s2439_s21, %s16_s21  }
   0x2   : > { %p220_p1 = scmp.lt.s32.totalorder %s2402_s21, 3 }
   0x4   : > { %p221_p2 = pnand %p2058_p0, %p220_p1 }
   0x5   : > { %p2599_p3 = scmp.lt.s32.totalorder (!%p221_p2), %s2054_s22, 1 }
   0x6   : > { %224 = sbr.rel (%p221_p2) target bundleno = 1004 (0x3ec), region = 44 }
   0xb   : > { %v2450_v0 = vld [vmem:[%s3763_s2 + $0x1c8] sm:$0xff]  ;;  %v2455_v1 = vld [vmem:[%s3763_s2 + $0x1d0] sm:$0xff]  ;;  %v2460_v2 = vld [vmem:[%s3763_s2 + $0x1d8] sm:$0xff]  ;;  %s3770_s22 = smov (!%p2599_p3, %s2054_s22), 1  ;;  %vm333_vm1 = vcmask 654336   ;;  %vm602_vm5 = vcmask 1043456  }
   0xc   : > { %343 = vmatpush.msra.mxu0 %v2450_v0  ;;  %363 = vmatpush.msra.mxu1 %v2455_v1  ;;  %v2467_v3 = vld [vmem:[%s3763_s2 + $0xd8] sm:$0xff]  ;;  %v2472_v4 = vld [vmem:[%s3763_s2 + $0x1b0] sm:$0xff]  ;;  %v2484_v6 = vld [vmem:[%s3763_s2 + $0x1c0] sm:$0xff]  ;;  %s2059_s18 = sshll.u32 %s3770_s22, 2  ;;  %vm595_vm6 = vcmask 31744   ;;  %vm1002_vm7 = vcmask 523264  }
   0xd   : > { %v2477_v5 = vld [vmem:[%s3763_s2 + $0x1b8] sm:$0xff]  ;;  %383 = vmatpush.msra.mxu2 %v2460_v2  ;;  %406 = vmatpush.msra.mxu3 %v2467_v3  ;;  %v2489_v7 = vld [vmem:[%s3763_s2 + $0xc0] sm:$0xff]  ;;  %v2506_v10 = vld [vmem:[%s3763_s2 + $0x1a8] sm:$0xff]  ;;  %s260_s27 = scalar_lea.vmem %s3762_s1, %s2059_s18  ;;  %s256_s14 = scalar_lea.vmem %s3761_s0, %s2059_s18  ;;  %vm1983_vm8 = vcmask 982016   ;;  %vm1985_vm9 = vcmask 977920  }
   0xe   : > { %v2494_v8 = vld [vmem:[%s3763_s2 + $0x198] sm:$0xff]  ;;  %344 = vmatpush.msra.mxu0 %v2472_v4  ;;  %364 = vmatpush.msra.mxu1 %v2477_v5  ;;  %v2501_v9 = vld [vmem:[%s3763_s2 + $0x1a0] sm:$0xff]  ;;  %v2511_v11 = vld [vmem:[%s3763_s2 + $0xa8] sm:$0xff]  ;;  %s2385_s18 = sshll.u32 %s3770_s22, 4 }
   0xf   : > { %384 = vmatpush.msra.mxu2 %v2484_v6  ;;  %407 = vmatpush.msra.mxu3 %v2489_v7  ;;  %v2518_v12 = vld [vmem:[%s3763_s2 + $0x180] sm:$0xff]  ;;  %v2523_v13 = vld [vmem:[%s3763_s2 + $0x188] sm:$0xff]  ;;  %v2530_v14 = vld [vmem:[%s3763_s2 + $0x190] sm:$0xff]  ;;  %s265_s24 = scalar_lea.vmem %s3767_s6, %s2385_s18 }
  0x10   : > { %345 = vmatpush.msra.mxu0 %v2494_v8  ;;  %365 = vmatpush.msra.mxu1 %v2501_v9  ;;  %v2535_v15 = vld [vmem:[%s3763_s2 + $0x90] sm:$0xff]  ;;  %v2542_v16 = vld [vmem:[%s3763_s2 + $0x168] sm:$0xff]  ;;  %v2554_v18 = vld [vmem:[%s3763_s2 + $0x178] sm:$0xff] }
  0x11   : > { %385 = vmatpush.msra.mxu2 %v2506_v10  ;;  %408 = vmatpush.msra.mxu3 %v2511_v11  ;;  %v2547_v17 = vld [vmem:[%s3763_s2 + $0x170] sm:$0xff]  ;;  %v2559_v19 = vld [vmem:[%s3763_s2 + $0x78] sm:$0xff]  ;;  %v2578_v22 = vld [vmem:[%s3763_s2 + $0x160] sm:$0xff] }
  0x12   : > { %346 = vmatpush.msra.mxu0 %v2518_v12  ;;  %366 = vmatpush.msra.mxu1 %v2523_v13  ;;  %v2566_v20 = vld [vmem:[%s3763_s2 + $0x150] sm:$0xff]  ;;  %v2571_v21 = vld [vmem:[%s3763_s2 + $0x158] sm:$0xff]  ;;  %v2583_v23 = vld [vmem:[%s3763_s2 + $0x60] sm:$0xff] }
  0x13   : > { %386 = vmatpush.msra.mxu2 %v2530_v14  ;;  %409 = vmatpush.msra.mxu3 %v2535_v15  ;;  %v2590_v24 = vld [vmem:[%s3763_s2 + $0x138] sm:$0xff]  ;;  %v2595_v25 = vld [vmem:[%s3763_s2 + $0x140] sm:$0xff]  ;;  %v2608_v26 = vld [vmem:[%s3763_s2 + $0x148] sm:$0xff] }
  0x14   : > { %347 = vmatpush.msra.mxu0 %v2542_v16  ;;  %367 = vmatpush.msra.mxu1 %v2547_v17  ;;  %v2613_v27 = vld [vmem:[%s3763_s2 + $0x48] sm:$0xff]  ;;  %v2620_v28 = vld [vmem:[%s3763_s2 + $0x120] sm:$0xff]  ;;  %v2632_v30 = vld [vmem:[%s3763_s2 + $0x130] sm:$0xff] }
  0x15   : > { %387 = vmatpush.msra.mxu2 %v2554_v18  ;;  %410 = vmatpush.msra.mxu3 %v2559_v19  ;;  %v2625_v29 = vld [vmem:[%s3763_s2 + $0x128] sm:$0xff]  ;;  %v2637_v31 = vld [vmem:[%s3763_s2 + $0x30] sm:$0xff]  ;;  %v2662_v34 = vld [vmem:[%s3763_s2 + $0x118] sm:$0xff] }
  0x16   : > { %348 = vmatpush.msra.mxu0 %v2566_v20  ;;  %368 = vmatpush.msra.mxu1 %v2571_v21  ;;  %v2644_v32 = vld [vmem:[%s3763_s2 + $0x108] sm:$0xff]  ;;  %v2649_v33 = vld [vmem:[%s3763_s2 + $0x110] sm:$0xff]  ;;  %v2667_v35 = vld [vmem:[%s3763_s2 + $0x18] sm:$0xff] }
  0x17   : > { %388 = vmatpush.msra.mxu2 %v2578_v22  ;;  %411 = vmatpush.msra.mxu3 %v2583_v23  ;;  %v2674_v36 = vld [vmem:[%s3763_s2 + $0xf0] sm:$0xff]  ;;  %v2679_v37 = vld [vmem:[%s3763_s2 + $0xf8] sm:$0xff]  ;;  %v2686_v38 = vld [vmem:[%s3763_s2 + $0x100] sm:$0xff] }
  0x18   : > { %349 = vmatpush.msra.mxu0 %v2590_v24  ;;  %369 = vmatpush.msra.mxu1 %v2595_v25  ;;  %v2691_v39 = vld [vmem:[%s3763_s2] sm:$0xff]  ;;  %v2703_v41 = vld [vmem:[%s3763_s2 + $0xe8] sm:$0xff]  ;;  %v2718_v43 = vld [vmem:[%s3763_s2 + $0xd0] sm:$0xff] }
  0x19   : > { %389 = vmatpush.msra.mxu2 %v2608_v26  ;;  %412 = vmatpush.msra.mxu3 %v2613_v27  ;;  %v2698_v40 = vld [vmem:[%s3763_s2 + $0xe0] sm:$0xff]  ;;  %v2713_v42 = vld [vmem:[%s3763_s2 + $0xc8] sm:$0xff]  ;;  %v2730_v44 = vld [vmem:[%s3763_s2 + $0xb0] sm:$0xff] }
  0x1a   : > { %350 = vmatpush.msra.mxu0 %v2620_v28  ;;  %370 = vmatpush.msra.mxu1 %v2625_v29  ;;  %v2735_v45 = vld [vmem:[%s3763_s2 + $0xb8] sm:$0xff]  ;;  %v2749_v47 = vld [vmem:[%s3763_s2 + $0xa0] sm:$0xff]  ;;  %v2768_v50 = vld [vmem:[%s3763_s2 + $0x88] sm:$0xff] }
  0x1b   : > { %390 = vmatpush.msra.mxu2 %v2632_v30  ;;  %413 = vmatpush.msra.mxu3 %v2637_v31  ;;  %v2744_v46 = vld [vmem:[%s3763_s2 + $0x98] sm:$0xff]  ;;  %v2754_v48 = vld [vmem:[%s260_s27] sm:$0xf]  ;;  %v2780_v52 = vld [vmem:[%s3763_s2 + $0x68] sm:$0xff] }
  0x1c   : > { %351 = vmatpush.msra.mxu0 %v2644_v32  ;;  %371 = vmatpush.msra.mxu1 %v2649_v33  ;;  %v2763_v49 = vld [vmem:[%s3763_s2 + $0x80] sm:$0xff]  ;;  %vm300_vm0 = vcmp.eq.s32.totalorder %v2754_v48, 1  ;;  %v2785_v53 = vld [vmem:[%s3763_s2 + $0x70] sm:$0xff]  ;;  %v2795_v55 = vld [vmem:[%s3763_s2 + $0x58] sm:$0xff]  ;;  %vm268_vm2 = vcmp.eq.s32.totalorder %v2754_v48, 0  ;;  %vm462_vm3 = vcmp.eq.s32.totalorder %v2754_v48, 3 }
  0x1d   : > { %391 = vmatpush.msra.mxu2 %v2662_v34  ;;  %414 = vmatpush.msra.mxu3 %v2667_v35  ;;  %v2772_v51 = vld [vmem:[%s256_s14] sm:$0xf]  ;;  %v280_v56 = vld [vmem:[%s3763_s2 + $0x50] sm:$0xff]  ;;  %v277_v58 = vld [vmem:[%s3763_s2 + $0x38] sm:$0xff]  ;;  %vm460_vm4 = vcmp.eq.s32.totalorder %v2754_v48, 2 }
  0x1e   : > { %352 = vmatpush.msra.mxu0 %v2674_v36  ;;  %372 = vmatpush.msra.mxu1 %v2679_v37  ;;  %v301_v54 = vsel %vm300_vm0, %v2772_v51, 0.0  ;;  %v2807_v57 = vld [vmem:[%s3763_s2 + $0x40] sm:$0xff]  ;;  %v275_v59 = vld [vmem:[%s3763_s2 + $0x28] sm:$0xff]  ;;  %v272_v61 = vld [vmem:[%s3763_s2 + $0x10] sm:$0xff]  ;;  %v269_v63 = vsel %vm268_vm2, %v2772_v51, 0.0 }
  0x1f   : > { %392 = vmatpush.msra.mxu2 %v2686_v38  ;;  %415 = vmatpush.msra.mxu3 %v2691_v39  ;;  %v274_v60 = vld [vmem:[%s3763_s2 + $0x20] sm:$0xff]  ;;  %v271_v62 = vld [vmem:[%s3763_s2 + $0x8] sm:$0xff]  ;;  %v767_v48 = vld [vmem:[%s3765_s4 + $0x10] sm:$0xff] }
  0x20   : > { %426 = vmatpush.msrb.mxu0 %v2698_v40  ;;  %446 = vmatpush.msrb.mxu1 %v2703_v41 }
  0x21   : > { %473 = vmatpush.msrb.mxu2 %v2450_v0  ;;  %493 = vmatpush.msrb.mxu3 %v2455_v1  ;;  %v463_v0 = vsel %vm462_vm3, %v2772_v51, 0.0  ;;  %v461_v1 = vsel %vm460_vm4, %v2772_v51, 0.0  ;;  %v766_v51 = vld [vmem:[%s3765_s4 + $0x8] sm:$0xff] }
  0x22   : > { %427 = vmatpush.msrb.mxu0 %v2713_v42  ;;  %447 = vmatpush.msrb.mxu1 %v2718_v43 }
  0x23   : > { %474 = vmatpush.msrb.mxu2 %v2472_v4  ;;  %494 = vmatpush.msrb.mxu3 %v2477_v5 }
  0x24   : > { %428 = vmatpush.msrb.mxu0 %v2730_v44  ;;  %448 = vmatpush.msrb.mxu1 %v2735_v45 }
  0x25   : > { %475 = vmatpush.msrb.mxu2 %v2494_v8  ;;  %495 = vmatpush.msrb.mxu3 %v2501_v9  ;;  %v2900_v9 = vld [vmem:[%s3764_s3 + $0x8] sm:$0xf] }
  0x26   : > { %429 = vmatpush.msrb.mxu0 %v2744_v46  ;;  %449 = vmatpush.msrb.mxu1 %v2749_v47 }
  0x27   : > { %476 = vmatpush.msrb.mxu2 %v2518_v12  ;;  %496 = vmatpush.msrb.mxu3 %v2523_v13 }
  0x28   : > { %430 = vmatpush.msrb.mxu0 %v2763_v49  ;;  %450 = vmatpush.msrb.mxu1 %v2768_v50 }
  0x29   : > { %477 = vmatpush.msrb.mxu2 %v2542_v16  ;;  %497 = vmatpush.msrb.mxu3 %v2547_v17  ;;  %v2106_v16 = vld [vmem:[%s3764_s3 + $0x58] sm:$0xf] }
  0x2a   : > { %431 = vmatpush.msrb.mxu0 %v2780_v52  ;;  %451 = vmatpush.msrb.mxu1 %v2785_v53 }
  0x2b   : > { %478 = vmatpush.msrb.mxu2 %v2566_v20  ;;  %498 = vmatpush.msrb.mxu3 %v2571_v21 }
  0x2c   : > { %2093 = vmatmul.msk.f32.vlgmr.msra.gmra.mxu0 %vm333_vm1, %v301_v54  ;;  %452 = vmatpush.msrb.mxu1 %v2795_v55 }
  0x2d   : > { %432 = vmatpush.msrb.mxu0 %v280_v56  ;;  %479 = vmatpush.msrb.mxu2 %v2590_v24  ;;  %v2127_v24 = vld [vmem:[%s3764_s3 + $0x60] sm:$0xff] }
  0x2e   : > { %499 = vmatpush.msrb.mxu3 %v2595_v25  ;;  %453 = vmatpush.msrb.mxu1 %v2807_v57  ;;  %v780_v25 = vld [vmem:[%s3765_s4 + $0x78] sm:$0xff] }
  0x2f   : > { %433 = vmatpush.msrb.mxu0 %v277_v58  ;;  %480 = vmatpush.msrb.mxu2 %v2620_v28  ;;  %v777_v28 = vld [vmem:[%s3765_s4 + $0x60] sm:$0xff] }
  0x30   : > { %500 = vmatpush.msrb.mxu3 %v2625_v29  ;;  %454 = vmatpush.msrb.mxu1 %v275_v59  ;;  %v2128_v29 = vld [vmem:[%s3764_s3 + $0x68] sm:$0xf] }
  0x31   : > { %434 = vmatpush.msrb.mxu0 %v274_v60  ;;  %481 = vmatpush.msrb.mxu2 %v2644_v32  ;;  %v774_v32 = vld [vmem:[%s3765_s4 + $0x48] sm:$0xff] }
  0x32   : > { %501 = vmatpush.msrb.mxu3 %v2649_v33  ;;  %455 = vmatpush.msrb.mxu1 %v272_v61  ;;  %v773_v33 = vld [vmem:[%s3765_s4 + $0x40] sm:$0xff] }
  0x33   : > { %435 = vmatpush.msrb.mxu0 %v271_v62  ;;  %482 = vmatpush.msrb.mxu2 %v2674_v36  ;;  %v2178_v36 = vld [vmem:[%s3765_s4 + $0x238] sm:$0xff] }
  0x34   : > { %502 = vmatpush.msrb.mxu3 %v2679_v37  ;;  %2094 = vmatmul.msk.f32.vlgmr.msra.gmra.mxu1 %vm333_vm1, %v301_v54  ;;  %v771_v37 = vld [vmem:[%s3765_s4 + $0x30] sm:$0xff] }
  0x35   : > { %2095 = vmatmul.msk.f32.vlgmr.msra.gmra.mxu2 %vm333_vm1, %v301_v54  ;;  %2096 = vmatmul.msk.f32.vlgmr.msra.gmra.mxu3 %vm333_vm1, %v269_v63  ;;  %v765_v54 = vld [vmem:[%s3765_s4] sm:$0xff] }
  0x36   : > { %2097 = vmatmul.msk.f32.vlgmr.msrb.gmra.mxu0 %vm333_vm1, %v269_v63  ;;  %536 = vmatpush.msra.mxu1 %v2467_v3 }
  0x37   : > { %556 = vmatpush.msra.mxu2 %v2698_v40  ;;  %576 = vmatpush.msra.mxu3 %v2703_v41  ;;  %v2186_v40 = vld [vmem:[%s3765_s4 + $0x278] sm:$0xff]  ;;  %v2185_v41 = vld [vmem:[%s3765_s4 + $0x270] sm:$0xff] }
  0x38   : > { %537 = vmatpush.msra.mxu1 %v2489_v7  ;;  %513 = vmatpush.msra.mxu0 %v2460_v2 }
  0x39   : > { %557 = vmatpush.msra.mxu2 %v2713_v42  ;;  %577 = vmatpush.msra.mxu3 %v2718_v43  ;;  %v2176_v42 = vld [vmem:[%s3765_s4 + $0x228] sm:$0xff]  ;;  %v769_v43 = vld [vmem:[%s3765_s4 + $0x20] sm:$0xff] }
  0x3a   : > { %538 = vmatpush.msra.mxu1 %v2511_v11  ;;  %514 = vmatpush.msra.mxu0 %v2484_v6  ;;  %v2891_v6 = vld [vmem:[%s3764_s3] sm:$0xff] }
  0x3b   : > { %558 = vmatpush.msra.mxu2 %v2730_v44  ;;  %578 = vmatpush.msra.mxu3 %v2735_v45  ;;  %v2126_v44 = vld [vmem:[%s3764_s3 + $0x18] sm:$0xf]  ;;  %v2175_v45 = vld [vmem:[%s3765_s4 + $0x220] sm:$0xff] }
  0x3c   : > { %539 = vmatpush.msra.mxu1 %v2535_v15  ;;  %515 = vmatpush.msra.mxu0 %v2506_v10  ;;  %v2105_v15 = vld [vmem:[%s3764_s3 + $0x50] sm:$0xff] }
  0x3d   : > { %559 = vmatpush.msra.mxu2 %v2744_v46  ;;  %579 = vmatpush.msra.mxu3 %v2749_v47  ;;  %v768_v46 = vld [vmem:[%s3765_s4 + $0x18] sm:$0xff] }
  0x3e   : > { %2098 = vmatmul.msk.f32.vlgmr.msrb.gmra.mxu1 %vm333_vm1, %v269_v63  ;;  %2099 = vmatmul.msk.f32.vlgmr.msrb.gmra.mxu2 %vm333_vm1, %v463_v0  ;;  %v2174_v47 = vld [vmem:[%s3765_s4 + $0x218] sm:$0xff]  ;;  %v2165_v63 = vld [vmem:[%s3765_s4 + $0x1d0] sm:$0xff] }
  0x3f   : > { %540 = vmatpush.msra.mxu1 %v2559_v19  ;;  %560 = vmatpush.msra.mxu2 %v2763_v49  ;;  %v2184_v49 = vld [vmem:[%s3765_s4 + $0x268] sm:$0xff] }
  0x40   : > { %580 = vmatpush.msra.mxu3 %v2768_v50  ;;  %516 = vmatpush.msra.mxu0 %v2530_v14  ;;  %v2173_v50 = vld [vmem:[%s3765_s4 + $0x210] sm:$0xff] }
  0x41   : > { %541 = vmatpush.msra.mxu1 %v2583_v23  ;;  %561 = vmatpush.msra.mxu2 %v2780_v52  ;;  %v2183_v52 = vld [vmem:[%s3765_s4 + $0x260] sm:$0xff] }
  0x42   : > { %581 = vmatpush.msra.mxu3 %v2785_v53  ;;  %517 = vmatpush.msra.mxu0 %v2554_v18  ;;  %v2172_v53 = vld [vmem:[%s3765_s4 + $0x208] sm:$0xff] }
  0x43   : > { %2100 = vmatmul.msk.f32.vlgmr.msrb.gmra.mxu3 %vm333_vm1, %v463_v0  ;;  %542 = vmatpush.msra.mxu1 %v2613_v27  ;;  %v778_v27 = vld [vmem:[%s3765_s4 + $0x68] sm:$0xff] }
  0x44   : > { %562 = vmatpush.msra.mxu2 %v280_v56  ;;  %582 = vmatpush.msra.mxu3 %v2795_v55  ;;  %v2171_v55 = vld [vmem:[%s3765_s4 + $0x200] sm:$0xff]  ;;  %v2182_v56 = vld [vmem:[%s3765_s4 + $0x258] sm:$0xff] }
  0x45   : > { %543 = vmatpush.msra.mxu1 %v2637_v31  ;;  %518 = vmatpush.msra.mxu0 %v2578_v22  ;;  %v775_v31 = vld [vmem:[%s3765_s4 + $0x50] sm:$0xff] }
  0x46   : > { %563 = vmatpush.msra.mxu2 %v277_v58  ;;  %583 = vmatpush.msra.mxu3 %v2807_v57  ;;  %v2170_v57 = vld [vmem:[%s3765_s4 + $0x1f8] sm:$0xff]  ;;  %v2181_v58 = vld [vmem:[%s3765_s4 + $0x250] sm:$0xff] }
  0x47   : > { %544 = vmatpush.msra.mxu1 %v2667_v35  ;;  %519 = vmatpush.msra.mxu0 %v2608_v26  ;;  %v779_v26 = vld [vmem:[%s3765_s4 + $0x70] sm:$0xff]  ;;  %v772_v35 = vld [vmem:[%s3765_s4 + $0x38] sm:$0xff] }
  0x48   : > { %564 = vmatpush.msra.mxu2 %v274_v60  ;;  %584 = vmatpush.msra.mxu3 %v275_v59  ;;  %v2169_v59 = vld [vmem:[%s3765_s4 + $0x1f0] sm:$0xff]  ;;  %v2168_v60 = vld [vmem:[%s3765_s4 + $0x1e8] sm:$0xff] }
  0x49   : > { %545 = vmatpush.msra.mxu1 %v2691_v39  ;;  %520 = vmatpush.msra.mxu0 %v2632_v30  ;;  %v776_v30 = vld [vmem:[%s3765_s4 + $0x58] sm:$0xff]  ;;  %v770_v39 = vld [vmem:[%s3765_s4 + $0x28] sm:$0xff] }
  0x4a   : > { %565 = vmatpush.msra.mxu2 %v271_v62  ;;  %585 = vmatpush.msra.mxu3 %v272_v61  ;;  %v2167_v61 = vld [vmem:[%s3765_s4 + $0x1e0] sm:$0xff]  ;;  %v2166_v62 = vld [vmem:[%s3765_s4 + $0x1d8] sm:$0xff] }
  0x4b   : > { %2102 = vmatmul.msk.f32.vlgmr.msra.gmra.mxu1 %vm333_vm1, %v461_v1  ;;  %2103 = vmatmul.msk.f32.vlgmr.msra.gmra.mxu2 %vm333_vm1, %v461_v1 }
  0x4c   : > { %2104 = vmatmul.msk.f32.vlgmr.msra.gmra.mxu3 %vm333_vm1, %v461_v1  ;;  %521 = vmatpush.msra.mxu0 %v2662_v34  ;;  %v2125_v34 = vld [vmem:[%s3764_s3 + $0x10] sm:$0xff]  ;;  %v2163_v1 = vld [vmem:[%s3765_s4 + $0x1c0] sm:$0xff] }
  0x4e   : > { %522 = vmatpush.msra.mxu0 %v2686_v38  ;;  %v2177_v38 = vld [vmem:[%s3765_s4 + $0x230] sm:$0xff] }
  0x4f   : > { %2101 = vmatmul.msk.f32.vlgmr.msra.gmra.mxu0 %vm333_vm1, %v463_v0  ;;  %v2164_v0 = vld [vmem:[%s3765_s4 + $0x1c8] sm:$0xff] }
  0xa9   : > { %v354_v3 = vpop.f32.mrf.mxu0 }
  0xb1   : > { %v374_v2 = vpop.f32.mrf.mxu1 }
  0xb3   : > { %v437_v11 = vpop.f32.mrf.mxu0 }
  0xb4   : > { %v2912_v17 = vadd.f32 %v437_v11, %v374_v2  ;;  %v2162_v2 = vld [vmem:[%s3765_s4 + $0x1b8] sm:$0xff]  ;;  %v794_v11 = vld [vmem:[%s3765_s4 + $0xe8] sm:$0xff] }
  0xb8   : > { %v417_v4 = vpop.f32.mrf.mxu3  ;;  %v394_v7 = vpop.f32.mrf.mxu2 }
  0xb9   : > { %v2886_v5 = vadd.f32 %v417_v4, %v354_v3  ;;  %v2180_v3 = vld [vmem:[%s3765_s4 + $0x248] sm:$0xff]  ;;  %v2161_v4 = vld [vmem:[%s3765_s4 + $0x1b0] sm:$0xff] }
  0xbb   : > { %2116 = vmatpush.msk.msrb.mxu3 %vm602_vm5, %v2886_v5  ;;  %v457_v8 = vpop.f32.mrf.mxu1 }
  0xbc   : > { %2117 = vmatmul.msk.f32.vlgmr.msrb.gmra.mxu3 %vm595_vm6, %v2891_v6  ;;  %v2924_v22 = vadd.f32 %v457_v8, %v394_v7  ;;  %v796_v7 = vld [vmem:[%s3765_s4 + $0xf8] sm:$0xff]  ;;  %v2160_v8 = vld [vmem:[%s3765_s4 + $0x1a8] sm:$0xff] }
  0xc1   : > { %v484_v10 = vpop.f32.mrf.mxu2 }
  0xc4   : > { %2118 = vmatmul.msk.f32.gmra.mxu3 %vm595_vm6, %v2900_v9 }
  0xc6   : > { %v504_v12 = vpop.f32.mrf.mxu3 }
  0xc8   : > { %v547_v13 = vpop.f32.mrf.mxu1 }
  0xc9   : > { %v2904_v14 = vadd.f32 %v547_v13, %v484_v10  ;;  %v2159_v10 = vld [vmem:[%s3765_s4 + $0x1a0] sm:$0xff] }
  0xca   : > { %v793_v13 = vld [vmem:[%s3765_s4 + $0xe0] sm:$0xff] }
  0xcb   : > { %2107 = vmatpush.msk.msrb.mxu0 %vm602_vm5, %v2904_v14  ;;  %2386 = vmatpush.msk.msrb.mxu1 %vm602_vm5, %v2904_v14 }
  0xcc   : > { %2108 = vmatmul.msk.f32.vlgmr.msrb.gmra.mxu0 %vm595_vm6, %v2105_v15  ;;  %2109 = vmatmul.msk.f32.vlgmr.msrb.gmra.mxu1 %vm595_vm6, %v2106_v16  ;;  %v524_v18 = vpop.f32.mrf.mxu0 }
  0xcd   : > { %2119 = vmatpush.msk.msra.mxu0 %vm602_vm5, %v2912_v17 }
  0xce   : > { %v567_v19 = vpop.f32.mrf.mxu2 }
  0xcf   : > { %v2922_v20 = vadd.f32 %v567_v19, %v504_v12  ;;  %v587_v21 = vpop.f32.mrf.mxu3  ;;  %v2158_v12 = vld [vmem:[%s3765_s4 + $0x198] sm:$0xff]  ;;  %v791_v19 = vld [vmem:[%s3765_s4 + $0xd0] sm:$0xff] }
  0xd0   : > { %v2926_v23 = vadd.f32 %v587_v21, %v524_v18  ;;  %v2156_v18 = vld [vmem:[%s3765_s4 + $0x188] sm:$0xff]  ;;  %v2155_v21 = vld [vmem:[%s3765_s4 + $0x180] sm:$0xff] }
  0xd1   : > { %2110 = vmatpush.msk.msra.mxu1 %vm602_vm5, %v2922_v20  ;;  %2132 = vmatpush.msk.msra.mxu3 %vm602_vm5, %v2922_v20 }
  0xd2   : > { %2113 = vmatpush.msk.msrb.mxu2 %vm602_vm5, %v2926_v23  ;;  %2133 = vmatmul.msk.f32.vlgmr.msra.gmra.mxu3 %vm595_vm6, %v2127_v24 }
  0xd3   : > { %2122 = vmatpush.msk.msrb.mxu1 %vm602_vm5, %v2924_v22  ;;  %2114 = vmatmul.msk.f32.vlgmr.msrb.gmra.mxu2 %vm595_vm6, %v2105_v15 }
  0xd4   : > { %2129 = vmatpush.msk.msra.mxu2 %vm602_vm5, %v2904_v14  ;;  %2144 = vmatpush.msk.msrb.mxu3 %vm602_vm5, %v2924_v22 }
  0xd5   : > { %2111 = vmatmul.msk.f32.vlgmr.msra.gmra.mxu1 %vm595_vm6, %v2105_v15  ;;  %2120 = vmatmul.msk.f32.vlgmr.msra.gmra.mxu0 %vm595_vm6, %v2891_v6  ;;  %v2157_v15 = vld [vmem:[%s3765_s4 + $0x190] sm:$0xff] }
  0xd6   : > { %2141 = vmatpush.msk.msrb.mxu2 %vm602_vm5, %v2912_v17  ;;  %1084 = vmatpush.msra.mxu3 %v780_v25  ;;  %v2154_v25 = vld [vmem:[%s3765_s4 + $0x178] sm:$0xff] }
  0xd7   : > { %2138 = vmatpush.msk.msra.mxu1 %vm602_vm5, %v2886_v5  ;;  %2135 = vmatpush.msk.msrb.mxu0 %vm602_vm5, %v2926_v23 }
  0xd8   : > { %1085 = vmatpush.msra.mxu3 %v779_v26  ;;  %v789_v26 = vld [vmem:[%s3765_s4 + $0xc0] sm:$0xff] }
  0xd9   : > { %1009 = vmatpush.msra.mxu0 %v2162_v2 }
  0xda   : > { %1086 = vmatpush.msra.mxu3 %v778_v27  ;;  %v2153_v27 = vld [vmem:[%s3765_s4 + $0x170] sm:$0xff] }
  0xdb   : > { %2115 = vmatmul.msk.f32.gmra.mxu2 %vm595_vm6, %v2106_v16  ;;  %2134 = vmatmul.msk.f32.gmra.mxu3 %vm595_vm6, %v2128_v29 }
  0xdc   : > { %1087 = vmatpush.msra.mxu3 %v777_v28  ;;  %1010 = vmatpush.msra.mxu0 %v2161_v4  ;;  %v788_v28 = vld [vmem:[%s3765_s4 + $0xb8] sm:$0xff] }
  0xdd   : > { %2112 = vmatmul.msk.f32.gmra.mxu1 %vm595_vm6, %v2106_v16  ;;  %2121 = vmatmul.msk.f32.gmra.mxu0 %vm595_vm6, %v2900_v9  ;;  %v792_v16 = vld [vmem:[%s3765_s4 + $0xd8] sm:$0xff] }
  0xde   : > { %1088 = vmatpush.msra.mxu3 %v776_v30  ;;  %1011 = vmatpush.msra.mxu0 %v2160_v8  ;;  %v787_v30 = vld [vmem:[%s3765_s4 + $0xb0] sm:$0xff]  ;;  %v3251_v8 = vld [vmem:[%s3764_s3 + $0x20] sm:$0xff] }
  0xe0   : > { %1089 = vmatpush.msra.mxu3 %v775_v31  ;;  %1012 = vmatpush.msra.mxu0 %v2159_v10  ;;  %v2151_v31 = vld [vmem:[%s3765_s4 + $0x160] sm:$0xff] }
  0xe2   : > { %1090 = vmatpush.msra.mxu3 %v774_v32  ;;  %1013 = vmatpush.msra.mxu0 %v2158_v12  ;;  %v786_v32 = vld [vmem:[%s3765_s4 + $0xa8] sm:$0xff] }
  0xe3   : > { %2130 = vmatmul.msk.f32.vlgmr.msra.gmra.mxu2 %vm595_vm6, %v2127_v24  ;;  %2145 = vmatmul.msk.f32.vlgmr.msrb.gmra.mxu3 %vm595_vm6, %v2125_v34 }
  0xe4   : > { %1091 = vmatpush.msra.mxu3 %v773_v33  ;;  %1063 = vmatpush.msra.mxu2 %v2186_v40  ;;  %v2150_v33 = vld [vmem:[%s3765_s4 + $0x158] sm:$0xff]  ;;  %v2147_v40 = vld [vmem:[%s3765_s4 + $0x140] sm:$0xff] }
  0xe5   : > { %2123 = vmatmul.msk.f32.vlgmr.msrb.gmra.mxu1 %vm595_vm6, %v2891_v6  ;;  %2136 = vmatmul.msk.f32.vlgmr.msrb.gmra.mxu0 %vm595_vm6, %v2127_v24  ;;  %v2179_v6 = vld [vmem:[%s3765_s4 + $0x240] sm:$0xff]  ;;  %v790_v24 = vld [vmem:[%s3765_s4 + $0xc8] sm:$0xff] }
  0xe6   : > { %1092 = vmatpush.msra.mxu3 %v772_v35  ;;  %1032 = vmatpush.msrb.mxu1 %v2178_v36  ;;  %v2149_v35 = vld [vmem:[%s3765_s4 + $0x150] sm:$0xff]  ;;  %v784_v36 = vld [vmem:[%s3765_s4 + $0x98] sm:$0xff] }
  0xe7   : > { %1064 = vmatpush.msra.mxu2 %v2185_v41  ;;  %1014 = vmatpush.msra.mxu0 %v2157_v15  ;;  %v782_v41 = vld [vmem:[%s3765_s4 + $0x88] sm:$0xff] }
  0xe8   : > { %1093 = vmatpush.msra.mxu3 %v771_v37  ;;  %1033 = vmatpush.msrb.mxu1 %v2177_v38  ;;  %v2148_v38 = vld [vmem:[%s3765_s4 + $0x148] sm:$0xff] }
  0xe9   : > { %1065 = vmatpush.msra.mxu2 %v2184_v49  ;;  %1015 = vmatpush.msra.mxu0 %v2156_v18  ;;  %v801_v49 = vld [vmem:[%s3765_s4 + $0x120] sm:$0xff]  ;;  %v3265_v15 = vld [vmem:[%s3764_s3 + $0x28] sm:$0xf] }
  0xea   : > { %1094 = vmatpush.msra.mxu3 %v770_v39  ;;  %1034 = vmatpush.msrb.mxu1 %v2176_v42  ;;  %v783_v39 = vld [vmem:[%s3765_s4 + $0x90] sm:$0xff]  ;;  %v804_v42 = vld [vmem:[%s3765_s4 + $0x138] sm:$0xff] }
  0xeb   : > { %2131 = vmatmul.msk.f32.gmra.mxu2 %vm595_vm6, %v2128_v29  ;;  %2146 = vmatmul.msk.f32.gmra.mxu3 %vm595_vm6, %v2126_v44 }
  0xec   : > { %1095 = vmatpush.msra.mxu3 %v769_v43  ;;  %1035 = vmatpush.msrb.mxu1 %v2175_v45  ;;  %v781_v43 = vld [vmem:[%s3765_s4 + $0x80] sm:$0xff] }
  0xed   : > { %2124 = vmatmul.msk.f32.gmra.mxu1 %vm595_vm6, %v2900_v9  ;;  %2137 = vmatmul.msk.f32.gmra.mxu0 %vm595_vm6, %v2128_v29  ;;  %v795_v9 = vld [vmem:[%s3765_s4 + $0xf0] sm:$0xff]  ;;  %v2152_v29 = vld [vmem:[%s3765_s4 + $0x168] sm:$0xff] }
  0xee   : > { %1096 = vmatpush.msra.mxu3 %v768_v46  ;;  %1036 = vmatpush.msrb.mxu1 %v2174_v47 }
  0xef   : > { %1066 = vmatpush.msra.mxu2 %v2183_v52  ;;  %1016 = vmatpush.msra.mxu0 %v2155_v21  ;;  %v799_v52 = vld [vmem:[%s3765_s4 + $0x110] sm:$0xff] }
  0xf0   : > { %1097 = vmatpush.msra.mxu3 %v767_v48  ;;  %1037 = vmatpush.msrb.mxu1 %v2173_v50  ;;  %v802_v48 = vld [vmem:[%s3765_s4 + $0x128] sm:$0xff] }
  0xf1   : > { %1067 = vmatpush.msra.mxu2 %v2182_v56  ;;  %1017 = vmatpush.msra.mxu0 %v2154_v25  ;;  %v798_v56 = vld [vmem:[%s3765_s4 + $0x108] sm:$0xff]  ;;  %v2252_v25 = vld [vmem:[%s3765_s4 + $0x3b8] sm:$0xff] }
  0xf2   : > { %1098 = vmatpush.msra.mxu3 %v766_v51  ;;  %1038 = vmatpush.msrb.mxu1 %v2172_v53  ;;  %v800_v51 = vld [vmem:[%s3765_s4 + $0x118] sm:$0xff] }
  0xf3   : > { %2142 = vmatmul.msk.f32.vlgmr.msrb.gmra.mxu2 %vm595_vm6, %v2125_v34  ;;  %1018 = vmatpush.msra.mxu0 %v2153_v27  ;;  %v2251_v27 = vld [vmem:[%s3765_s4 + $0x3b0] sm:$0xff] }
  0xf4   : > { %1099 = vmatpush.msra.mxu3 %v765_v54  ;;  %1039 = vmatpush.msrb.mxu1 %v2171_v55 }
  0xf5   : > { %2139 = vmatmul.msk.f32.vlgmr.msra.gmra.mxu1 %vm595_vm6, %v2125_v34  ;;  %1068 = vmatpush.msra.mxu2 %v2181_v58  ;;  %v785_v34 = vld [vmem:[%s3765_s4 + $0xa0] sm:$0xff] }
  0xf6   : > { %2198 = vmatpush.msk.msrb.mxu3 %vm602_vm5, %v2922_v20  ;;  %1040 = vmatpush.msrb.mxu1 %v2170_v57  ;;  %v797_v57 = vld [vmem:[%s3765_s4 + $0x100] sm:$0xff] }
  0xf7   : > { %1069 = vmatpush.msra.mxu2 %v2180_v3  ;;  %1019 = vmatpush.msra.mxu0 %v2152_v29 }
  0xf8   : > { %1041 = vmatpush.msrb.mxu1 %v2169_v59 }
  0xf9   : > { %1070 = vmatpush.msra.mxu2 %v2179_v6  ;;  %1020 = vmatpush.msra.mxu0 %v2151_v31  ;;  %v2250_v31 = vld [vmem:[%s3765_s4 + $0x3a8] sm:$0xff] }
  0xfa   : > { %1042 = vmatpush.msrb.mxu1 %v2168_v60  ;;  %v3233_v60 = vld [vmem:[%s3764_s3 + $0x70] sm:$0xff] }
  0xfb   : > { %2143 = vmatmul.msk.f32.gmra.mxu2 %vm595_vm6, %v2126_v44  ;;  %1021 = vmatpush.msra.mxu0 %v2150_v33  ;;  %v2249_v33 = vld [vmem:[%s3765_s4 + $0x3a0] sm:$0xff] }
  0xfc   : > { %1043 = vmatpush.msrb.mxu1 %v2167_v61  ;;  %1107 = vmatpush.msrb.mxu2 %v796_v7 }
  0xfd   : > { %2140 = vmatmul.msk.f32.gmra.mxu1 %vm595_vm6, %v2126_v44  ;;  %1022 = vmatpush.msra.mxu0 %v2149_v35  ;;  %v803_v44 = vld [vmem:[%s3765_s4 + $0x130] sm:$0xff] }
  0xfe   : > { %1044 = vmatpush.msrb.mxu1 %v2166_v62  ;;  %1108 = vmatpush.msrb.mxu2 %v795_v9 }
  0xff   : > { %1023 = vmatpush.msra.mxu0 %v2148_v38  ;;  %v2248_v38 = vld [vmem:[%s3765_s4 + $0x398] sm:$0xff] }
 0x100   : > { %1045 = vmatpush.msrb.mxu1 %v2165_v63  ;;  %1109 = vmatpush.msrb.mxu2 %v794_v11 }
 0x101   : > { %1024 = vmatpush.msra.mxu0 %v2147_v40  ;;  %v3311_v40 = vld [vmem:[%s3764_s3 + $0x88] sm:$0xf] }
 0x102   : > { %1046 = vmatpush.msrb.mxu1 %v2164_v0  ;;  %1110 = vmatpush.msrb.mxu2 %v793_v13 }
 0x103   : > { %1138 = vmatpush.msrb.mxu0 %v804_v42  ;;  %v2288_v42 = vld [vmem:[%s3765_s4 + $0x418] sm:$0xff] }
 0x104   : > { %1047 = vmatpush.msrb.mxu1 %v2163_v1  ;;  %1111 = vmatpush.msrb.mxu2 %v792_v16  ;;  %v3244_v1 = vld [vmem:[%s3764_s3 + $0x78] sm:$0xf] }
 0x105   : > { %1139 = vmatpush.msrb.mxu0 %v803_v44  ;;  %v2228_v44 = vld [vmem:[%s3765_s4 + $0x2f8] sm:$0xff] }
 0x106   : > { %2195 = vmatpush.msk.msra.mxu1 %vm602_vm5, %v2904_v14  ;;  %1112 = vmatpush.msrb.mxu2 %v791_v19 }
 0x107   : > { %1140 = vmatpush.msrb.mxu0 %v802_v48  ;;  %v2245_v48 = vld [vmem:[%s3765_s4 + $0x380] sm:$0xff] }
 0x108   : > { %1113 = vmatpush.msrb.mxu2 %v790_v24 }
 0x109   : > { %1141 = vmatpush.msrb.mxu0 %v801_v49  ;;  %v2226_v49 = vld [vmem:[%s3765_s4 + $0x2e8] sm:$0xff] }
 0x10a   : > { %1114 = vmatpush.msrb.mxu2 %v789_v26  ;;  %v3278_v26 = vld [vmem:[%s3764_s3 + $0x80] sm:$0xff] }
 0x10b   : > { %1142 = vmatpush.msrb.mxu0 %v800_v51  ;;  %v2286_v51 = vld [vmem:[%s3765_s4 + $0x408] sm:$0xff] }
 0x10c   : > { %1115 = vmatpush.msrb.mxu2 %v788_v28  ;;  %v2292_v28 = vld [vmem:[%s3765_s4 + $0x438] sm:$0xff] }
 0x10d   : > { %1143 = vmatpush.msrb.mxu0 %v799_v52  ;;  %v2225_v52 = vld [vmem:[%s3765_s4 + $0x2e0] sm:$0xff] }
 0x10e   : > { %1116 = vmatpush.msrb.mxu2 %v787_v30 }
 0x10f   : > { %1144 = vmatpush.msrb.mxu0 %v798_v56  ;;  %v2224_v56 = vld [vmem:[%s3765_s4 + $0x2d8] sm:$0xff] }
 0x110   : > { %1117 = vmatpush.msrb.mxu2 %v786_v32  ;;  %v2291_v32 = vld [vmem:[%s3765_s4 + $0x430] sm:$0xff] }
 0x111   : > { %1145 = vmatpush.msrb.mxu0 %v797_v57  ;;  %v2242_v57 = vld [vmem:[%s3765_s4 + $0x368] sm:$0xff] }
 0x112   : > { %1118 = vmatpush.msrb.mxu2 %v785_v34  ;;  %v2290_v34 = vld [vmem:[%s3765_s4 + $0x428] sm:$0xff] }
 0x114   : > { %1119 = vmatpush.msrb.mxu2 %v784_v36 }
 0x116   : > { %1120 = vmatpush.msrb.mxu2 %v783_v39  ;;  %v2289_v39 = vld [vmem:[%s3765_s4 + $0x420] sm:$0xff] }
 0x118   : > { %1121 = vmatpush.msrb.mxu2 %v782_v41  ;;  %v2247_v41 = vld [vmem:[%s3765_s4 + $0x390] sm:$0xff] }
 0x11a   : > { %1122 = vmatpush.msrb.mxu2 %v781_v43 }
 0x13f   : > { %v713_v37 = vpop.f32.mrf.mxu3 }
 0x147   : > { %v716_v50 = vpop.f32.mrf.mxu3 }
 0x149   : > { %v629_v45 = vpop.f32.mrf.mxu0  ;;  %v632_v46 = vpop.f32.mrf.mxu1 }
 0x14a   : > { %v714_v47 = vadd.f32 %v713_v37, %v629_v45  ;;  %v717_v53 = vadd.f32 %v716_v50, %v632_v46  ;;  %v2246_v45 = vld [vmem:[%s3765_s4 + $0x388] sm:$0xff]  ;;  %v2287_v46 = vld [vmem:[%s3765_s4 + $0x410] sm:$0xff]  ;;  %v2244_v50 = vld [vmem:[%s3765_s4 + $0x378] sm:$0xff] }
 0x14c   : > { %1100 = vmatmul.f32.vlgmr.msra.gmra.mxu3 %v714_v47  ;;  %v2227_v47 = vld [vmem:[%s3765_s4 + $0x2f0] sm:$0xff] }
 0x14d   : > { %2210 = vmatpush.msk.msra.mxu3 %vm602_vm5, %v2924_v22 }
 0x152   : > { %v652_v54 = vpop.f32.mrf.mxu1  ;;  %v736_v55 = vpop.f32.mrf.mxu0 }
 0x153   : > { %v737_v21 = vadd.f32 %v736_v55, %v652_v54  ;;  %v2285_v54 = vld [vmem:[%s3765_s4 + $0x400] sm:$0xff] }
 0x154   : > { %1103 = vmatmul.f32.gmra.mxu3 %v717_v53  ;;  %v2243_v53 = vld [vmem:[%s3765_s4 + $0x370] sm:$0xff] }
 0x155   : > { %v857_v59 = vpop.f32.mrf.mxu3 }
 0x156   : > { %v3228_v58 = vpop.f32.mrf.mxu2 }
 0x15a   : > { %v655_v61 = vpop.f32.mrf.mxu1  ;;  %v739_v62 = vpop.f32.mrf.mxu0 }
 0x15b   : > { %v740_v36 = vadd.f32 %v739_v62, %v655_v61  ;;  %v2241_v61 = vld [vmem:[%s3765_s4 + $0x360] sm:$0xff]  ;;  %v2283_v62 = vld [vmem:[%s3765_s4 + $0x3f0] sm:$0xff] }
 0x15c   : > { %2199 = vmatmul.msk.f32.vlgmr.msrb.gmra.mxu3 %vm595_vm6, %v3233_v60 }
 0x15d   : > { %2259 = vmatpush.msk.msrb.mxu3 %vm602_vm5, %v2904_v14 }
 0x15e   : > { %v3239_v63 = vpop.f32.mrf.mxu2  ;;  %v860_v0 = vpop.f32.mrf.mxu3 }
 0x162   : > { %v759_v2 = vpop.f32.mrf.mxu1  ;;  %v880_v3 = vpop.f32.mrf.mxu0 }
 0x163   : > { %v760_v43 = vadd.f32 %v759_v2, %v3228_v58  ;;  %v2284_v58 = vld [vmem:[%s3765_s4 + $0x3f8] sm:$0xff]  ;;  %v2282_v2 = vld [vmem:[%s3765_s4 + $0x3e8] sm:$0xff] }
 0x164   : > { %2200 = vmatmul.msk.f32.gmra.mxu3 %vm595_vm6, %v3244_v1 }
 0x166   : > { %v834_v4 = vpop.f32.mrf.mxu2  ;;  %v955_v6 = vpop.f32.mrf.mxu3 }
 0x167   : > { %v956_v7 = vadd.f32 %v955_v6, %v880_v3  ;;  %v2221_v3 = vld [vmem:[%s3765_s4 + $0x2c0] sm:$0xff] }
 0x168   : > { %v2281_v6 = vld [vmem:[%s3765_s4 + $0x3e0] sm:$0xff] }
 0x169   : > { %2187 = vmatmul.msk.f32.vlgmr.msra.gmra.mxu2 %vm1002_vm7, %v956_v7  ;;  %v2220_v7 = vld [vmem:[%s3765_s4 + $0x2b8] sm:$0xff] }
 0x16a   : > { %2207 = vmatpush.msk.msra.mxu2 %vm602_vm5, %v2912_v17  ;;  %v3256_v9 = vpop.f32.mrf.mxu1  ;;  %v883_v10 = vpop.f32.mrf.mxu0 }
 0x16b   : > { %v763_v55 = vadd.f32 %v3256_v9, %v3239_v63  ;;  %v2222_v63 = vld [vmem:[%s3765_s4 + $0x2c8] sm:$0xff] }
 0x16c   : > { %2211 = vmatmul.msk.f32.vlgmr.msra.gmra.mxu3 %vm595_vm6, %v3251_v8  ;;  %v2238_v9 = vld [vmem:[%s3765_s4 + $0x348] sm:$0xff] }
 0x16d   : > { %2265 = vmatpush.msk.msra.mxu3 %vm602_vm5, %v2926_v23 }
 0x16e   : > { %v837_v11 = vpop.f32.mrf.mxu2  ;;  %v958_v12 = vpop.f32.mrf.mxu3 }
 0x16f   : > { %v959_v13 = vadd.f32 %v958_v12, %v883_v10  ;;  %v2280_v10 = vld [vmem:[%s3765_s4 + $0x3d8] sm:$0xff]  ;;  %v2237_v12 = vld [vmem:[%s3765_s4 + $0x340] sm:$0xff] }
 0x171   : > { %2188 = vmatmul.msk.f32.gmra.mxu2 %vm1002_vm7, %v959_v13  ;;  %v2279_v13 = vld [vmem:[%s3765_s4 + $0x3d0] sm:$0xff] }
 0x172   : > { %v909_v16 = vpop.f32.mrf.mxu1 }
 0x173   : > { %v910_v18 = vadd.f32 %v909_v16, %v834_v4  ;;  %v2239_v4 = vld [vmem:[%s3765_s4 + $0x350] sm:$0xff]  ;;  %v2218_v16 = vld [vmem:[%s3765_s4 + $0x2a8] sm:$0xff] }
 0x174   : > { %2212 = vmatmul.msk.f32.gmra.mxu3 %vm595_vm6, %v3265_v15 }
 0x175   : > { %1025 = vmatmul.f32.vlgmr.msra.gmra.mxu0 %v910_v18  ;;  %v2278_v18 = vld [vmem:[%s3765_s4 + $0x3c8] sm:$0xff] }
 0x176   : > { %2201 = vmatpush.msk.msra.mxu0 %vm602_vm5, %v2926_v23  ;;  %v932_v19 = vpop.f32.mrf.mxu2 }
 0x177   : > { %v933_v24 = vadd.f32 %v932_v19, %v857_v59  ;;  %v2223_v59 = vld [vmem:[%s3765_s4 + $0x2d0] sm:$0xff]  ;;  %v2217_v19 = vld [vmem:[%s3765_s4 + $0x2a0] sm:$0xff] }
 0x179   : > { %1048 = vmatmul.f32.vlgmr.msrb.gmra.mxu1 %v933_v24  ;;  %1123 = vmatmul.f32.vlgmr.msrb.gmra.mxu2 %v737_v21  ;;  %v2235_v21 = vld [vmem:[%s3765_s4 + $0x330] sm:$0xff]  ;;  %v2277_v24 = vld [vmem:[%s3765_s4 + $0x3c0] sm:$0xff] }
 0x17a   : > { %2204 = vmatpush.msk.msrb.mxu1 %vm602_vm5, %v2886_v5  ;;  %v912_v29 = vpop.f32.mrf.mxu1  ;;  %1410 = vmatpush.msrb.mxu2 %v2252_v25  ;;  %v2216_v25 = vld [vmem:[%s3765_s4 + $0x298] sm:$0xff] }
 0x17b   : > { %v913_v30 = vadd.f32 %v912_v29, %v837_v11  ;;  %v2219_v11 = vld [vmem:[%s3765_s4 + $0x2b0] sm:$0xff]  ;;  %v2214_v29 = vld [vmem:[%s3765_s4 + $0x288] sm:$0xff] }
 0x17c   : > { %2260 = vmatmul.msk.f32.vlgmr.msrb.gmra.mxu3 %vm595_vm6, %v3278_v26  ;;  %1411 = vmatpush.msrb.mxu2 %v2251_v27  ;;  %v2215_v27 = vld [vmem:[%s3765_s4 + $0x290] sm:$0xff] }
 0x17d   : > { %1630 = vmatpush.msrb.mxu3 %v2292_v28  ;;  %1028 = vmatmul.f32.gmra.mxu0 %v913_v30  ;;  %v2233_v28 = vld [vmem:[%s3765_s4 + $0x320] sm:$0xff] }
 0x17e   : > { %v935_v35 = vpop.f32.mrf.mxu2  ;;  %1412 = vmatpush.msrb.mxu2 %v2250_v31  ;;  %v2213_v30 = vld [vmem:[%s3765_s4 + $0x280] sm:$0xff]  ;;  %v2231_v31 = vld [vmem:[%s3765_s4 + $0x310] sm:$0xff] }
 0x17f   : > { %1631 = vmatpush.msrb.mxu3 %v2291_v32  ;;  %v936_v37 = vadd.f32 %v935_v35, %v860_v0  ;;  %v2240_v0 = vld [vmem:[%s3765_s4 + $0x358] sm:$0xff]  ;;  %v2230_v32 = vld [vmem:[%s3765_s4 + $0x308] sm:$0xff] }
 0x180   : > { %1413 = vmatpush.msrb.mxu2 %v2249_v33  ;;  %v2229_v33 = vld [vmem:[%s3765_s4 + $0x300] sm:$0xff] }
 0x181   : > { %1632 = vmatpush.msrb.mxu3 %v2290_v34  ;;  %1051 = vmatmul.f32.gmra.mxu1 %v936_v37 }
 0x182   : > { %1126 = vmatmul.f32.gmra.mxu2 %v740_v36 }
 0x183   : > { %1414 = vmatpush.msrb.mxu2 %v2248_v38  ;;  %1633 = vmatpush.msrb.mxu3 %v2289_v39 }
 0x184   : > { %2261 = vmatmul.msk.f32.gmra.mxu3 %vm595_vm6, %v3311_v40 }
 0x185   : > { %1415 = vmatpush.msrb.mxu2 %v2247_v41  ;;  %1634 = vmatpush.msrb.mxu3 %v2288_v42 }
 0x186   : > { %2189 = vmatmul.msk.f32.vlgmr.msrb.gmra.mxu0 %vm1002_vm7, %v760_v43 }
 0x187   : > { %1356 = vmatpush.msrb.mxu0 %v2228_v44  ;;  %1416 = vmatpush.msrb.mxu2 %v2246_v45 }
 0x188   : > { %1635 = vmatpush.msrb.mxu3 %v2287_v46 }
 0x189   : > { %1357 = vmatpush.msrb.mxu0 %v2227_v47  ;;  %1417 = vmatpush.msrb.mxu2 %v2245_v48 }
 0x18a   : > { %2196 = vmatmul.msk.f32.vlgmr.msra.gmra.mxu1 %vm595_vm6, %v3233_v60  ;;  %2208 = vmatmul.msk.f32.vlgmr.msra.gmra.mxu2 %vm595_vm6, %v3251_v8 }
 0x18b   : > { %1358 = vmatpush.msrb.mxu0 %v2226_v49  ;;  %1379 = vmatpush.msra.mxu1 %v2244_v50 }
 0x18c   : > { %2262 = vmatpush.msk.msra.mxu2 %vm602_vm5, %v2922_v20  ;;  %1636 = vmatpush.msrb.mxu3 %v2286_v51 }
 0x18d   : > { %1359 = vmatpush.msrb.mxu0 %v2225_v52  ;;  %1380 = vmatpush.msra.mxu1 %v2243_v53 }
 0x18e   : > { %1637 = vmatpush.msrb.mxu3 %v2285_v54  ;;  %2190 = vmatmul.msk.f32.gmra.mxu0 %vm1002_vm7, %v763_v55 }
 0x18f   : > { %1360 = vmatpush.msrb.mxu0 %v2224_v56  ;;  %1381 = vmatpush.msra.mxu1 %v2242_v57 }
 0x190   : > { %1638 = vmatpush.msrb.mxu3 %v2284_v58 }
 0x191   : > { %1361 = vmatpush.msrb.mxu0 %v2223_v59  ;;  %1382 = vmatpush.msra.mxu1 %v2241_v61  ;;  %v2316_v61 = vld [vmem:[%s3765_s4 + $0x4f8] sm:$0xff] }
 0x192   : > { %1639 = vmatpush.msrb.mxu3 %v2283_v62  ;;  %2197 = vmatmul.msk.f32.gmra.mxu1 %vm595_vm6, %v3244_v1 }
 0x193   : > { %2209 = vmatmul.msk.f32.gmra.mxu2 %vm595_vm6, %v3265_v15  ;;  %1362 = vmatpush.msrb.mxu0 %v2222_v63 }
 0x194   : > { %1383 = vmatpush.msra.mxu1 %v2240_v0  ;;  %1640 = vmatpush.msrb.mxu3 %v2282_v2  ;;  %v2315_v0 = vld [vmem:[%s3765_s4 + $0x4f0] sm:$0xff]  ;;  %v2314_v2 = vld [vmem:[%s3765_s4 + $0x4e8] sm:$0xff] }
 0x195   : > { %1363 = vmatpush.msrb.mxu0 %v2221_v3  ;;  %2266 = vmatmul.msk.f32.vlgmr.msra.gmra.mxu3 %vm595_vm6, %v3278_v26 }
 0x196   : > { %1384 = vmatpush.msra.mxu1 %v2239_v4  ;;  %1641 = vmatpush.msrb.mxu3 %v2281_v6  ;;  %v2313_v4 = vld [vmem:[%s3765_s4 + $0x4e0] sm:$0xff] }
 0x197   : > { %2202 = vmatmul.msk.f32.vlgmr.msra.gmra.mxu0 %vm595_vm6, %v3233_v60  ;;  %v2236_v60 = vld [vmem:[%s3765_s4 + $0x338] sm:$0xff] }
 0x198   : > { %1364 = vmatpush.msrb.mxu0 %v2220_v7  ;;  %1385 = vmatpush.msra.mxu1 %v2238_v9 }
 0x199   : > { %1642 = vmatpush.msrb.mxu3 %v2280_v10  ;;  %v2312_v10 = vld [vmem:[%s3765_s4 + $0x4d8] sm:$0xff] }
 0x19a   : > { %1365 = vmatpush.msrb.mxu0 %v2219_v11  ;;  %1386 = vmatpush.msra.mxu1 %v2237_v12 }
 0x19b   : > { %1643 = vmatpush.msrb.mxu3 %v2279_v13  ;;  %2205 = vmatmul.msk.f32.vlgmr.msrb.gmra.mxu1 %vm595_vm6, %v3251_v8  ;;  %v2234_v8 = vld [vmem:[%s3765_s4 + $0x328] sm:$0xff]  ;;  %v2308_v13 = vld [vmem:[%s3765_s4 + $0x4b8] sm:$0xff] }
 0x19c   : > { %1366 = vmatpush.msrb.mxu0 %v2218_v16  ;;  %1387 = vmatpush.msra.mxu1 %v2236_v60  ;;  %v2311_v16 = vld [vmem:[%s3765_s4 + $0x4d0] sm:$0xff] }
 0x19d   : > { %1644 = vmatpush.msrb.mxu3 %v2278_v18  ;;  %v2307_v18 = vld [vmem:[%s3765_s4 + $0x4b0] sm:$0xff] }
 0x19e   : > { %1367 = vmatpush.msrb.mxu0 %v2217_v19  ;;  %1388 = vmatpush.msra.mxu1 %v2235_v21  ;;  %v2310_v19 = vld [vmem:[%s3765_s4 + $0x4c8] sm:$0xff] }
 0x19f   : > { %1645 = vmatpush.msrb.mxu3 %v2277_v24  ;;  %2203 = vmatmul.msk.f32.gmra.mxu0 %vm595_vm6, %v3244_v1  ;;  %v2232_v1 = vld [vmem:[%s3765_s4 + $0x318] sm:$0xff] }
 0x1a0   : > { %1368 = vmatpush.msrb.mxu0 %v2216_v25  ;;  %1389 = vmatpush.msra.mxu1 %v2234_v8  ;;  %v2306_v25 = vld [vmem:[%s3765_s4 + $0x4a8] sm:$0xff]  ;;  %v2309_v8 = vld [vmem:[%s3765_s4 + $0x4c0] sm:$0xff] }
 0x1a1   : > { %2332 = vmatpush.msk.msra.mxu3 %vm602_vm5, %v2886_v5 }
 0x1a2   : > { %2267 = vmatmul.msk.f32.gmra.mxu3 %vm595_vm6, %v3311_v40  ;;  %1369 = vmatpush.msrb.mxu0 %v2215_v27  ;;  %v2255_v27 = vld [vmem:[%s3764_s3 + $0x30] sm:$0xff] }
 0x1a3   : > { %1390 = vmatpush.msra.mxu1 %v2233_v28  ;;  %v2305_v28 = vld [vmem:[%s3765_s4 + $0x4a0] sm:$0xff] }
 0x1a4   : > { %2206 = vmatmul.msk.f32.gmra.mxu1 %vm595_vm6, %v3265_v15  ;;  %1370 = vmatpush.msrb.mxu0 %v2214_v29 }
 0x1a5   : > { %1391 = vmatpush.msra.mxu1 %v2232_v1 }
 0x1a6   : > { %1371 = vmatpush.msrb.mxu0 %v2213_v30  ;;  %v2304_v30 = vld [vmem:[%s3765_s4 + $0x498] sm:$0xff] }
 0x1a7   : > { %1392 = vmatpush.msra.mxu1 %v2231_v31  ;;  %v2303_v31 = vld [vmem:[%s3765_s4 + $0x490] sm:$0xff] }
 0x1a8   : > { %2268 = vmatpush.msk.msra.mxu0 %vm602_vm5, %v2886_v5 }
 0x1a9   : > { %1393 = vmatpush.msra.mxu1 %v2230_v32  ;;  %v2302_v32 = vld [vmem:[%s3765_s4 + $0x488] sm:$0xff] }
 0x1ab   : > { %1394 = vmatpush.msra.mxu1 %v2229_v33  ;;  %v2256_v33 = vld [vmem:[%s3764_s3 + $0x38] sm:$0xf] }
 0x1ad   : > { %2271 = vmatpush.msk.msrb.mxu1 %vm602_vm5, %v2912_v17 }
 0x1cf   : > { %v1101_v15 = vpop.f32.mrf.mxu3 }
 0x1d7   : > { %v1104_v36 = vpop.f32.mrf.mxu3 }
 0x1df   : > { %v1205_v5 = vpop.f32.mrf.mxu3 }
 0x1e7   : > { %v1208_v54 = vpop.f32.mrf.mxu3 }
 0x1ec   : > { %v1072_v34 = vpop.f32.mrf.mxu2 }
 0x1ef   : > { %v1303_v63 = vpop.f32.mrf.mxu3 }
 0x1f2   : > { %v1026_v35 = vpop.f32.mrf.mxu0 }
 0x1f4   : > { %v1075_v37 = vpop.f32.mrf.mxu2 }
 0x1f6   : > { %v1049_v38 = vpop.f32.mrf.mxu1 }
 0x1f7   : > { %v1050_v39 = vadd.f32 %v1049_v38, %v1026_v35  ;;  %v1306_v60 = vpop.f32.mrf.mxu3  ;;  %v2296_v35 = vld [vmem:[%s3765_s4 + $0x458] sm:$0xff] }
 0x1f9   : > { %v1073_v41 = vadd.f32 %v1072_v34, %v1050_v39  ;;  %v2297_v34 = vld [vmem:[%s3765_s4 + $0x460] sm:$0xff] }
 0x1fa   : > { %v1029_v42 = vpop.f32.mrf.mxu0 }
 0x1fb   : > { %v1102_v43 = vadd.f32 %v1101_v15, %v1073_v41  ;;  %v2300_v15 = vld [vmem:[%s3765_s4 + $0x478] sm:$0xff] }
 0x1fc   : > { %v1124_v44 = vpop.f32.mrf.mxu2 }
 0x1fd   : > { %v1125_v45 = vadd.f32 %v1124_v44, %v1102_v43 }
 0x1fe   : > { %v1052_v46 = vpop.f32.mrf.mxu1 }
 0x1ff   : > { %v1053_v47 = vadd.f32 %v1052_v46, %v1029_v42 }
 0x201   : > { %v1076_v48 = vadd.f32 %v1075_v37, %v1053_v47  ;;  %v2293_v37 = vld [vmem:[%s3765_s4 + $0x440] sm:$0xff] }
 0x203   : > { %v1147_v49 = vpop.f32.mrf.mxu0  ;;  %v1105_v51 = vadd.f32 %v1104_v36, %v1076_v48  ;;  %v2295_v36 = vld [vmem:[%s3765_s4 + $0x450] sm:$0xff]  ;;  %v1456_v48 = vpop.f32.mrf.mxu3 }
 0x204   : > { %v3489_v50 = vadd.f32 %v1147_v49, %v1125_v45 }
 0x205   : > { %v1127_v52 = vpop.f32.mrf.mxu2 }
 0x206   : > { %v1128_v53 = vadd.f32 %v1127_v52, %v1105_v51 }
 0x207   : > { %v1182_v55 = vpop.f32.mrf.mxu1 }
 0x20b   : > { %v1150_v56 = vpop.f32.mrf.mxu0 }
 0x20c   : > { %v3491_v57 = vadd.f32 %v1150_v56, %v1128_v53  ;;  %v1459_v56 = vpop.f32.mrf.mxu3 }
 0x20d   : > { %v1280_v58 = vpop.f32.mrf.mxu2 }
 0x20e   : > { %v1281_v59 = vadd.f32 %v1280_v58, %v1205_v5 }
 0x20f   : > { %v1185_v62 = vpop.f32.mrf.mxu1 }
 0x210   : > { %1395 = vmatmul.f32.vlgmr.msra.gmra.mxu1 %v1281_v59 }
 0x211   : > { %1684 = vmatpush.msra.mxu1 %v2316_v61 }
 0x213   : > { %1685 = vmatpush.msra.mxu1 %v2315_v0  ;;  %v2319_v0 = vld [vmem:[%s3764_s3 + $0x40] sm:$0xff] }
 0x214   : > { %v1228_v3 = vpop.f32.mrf.mxu0 }
 0x215   : > { %v1304_v6 = vadd.f32 %v1303_v63, %v1228_v3  ;;  %1686 = vmatpush.msra.mxu1 %v2314_v2 }
 0x216   : > { %v1283_v7 = vpop.f32.mrf.mxu2 }
 0x217   : > { %v1284_v9 = vadd.f32 %v1283_v7, %v1208_v54  ;;  %2253 = vmatmul.msk.f32.vlgmr.msrb.gmra.mxu2 %vm1002_vm7, %v1304_v6  ;;  %1687 = vmatpush.msra.mxu1 %v2313_v4  ;;  %v2320_v6 = vld [vmem:[%s3764_s3 + $0x48] sm:$0xf] }
 0x218   : > { %2274 = vmatpush.msk.msrb.mxu2 %vm602_vm5, %v2924_v22  ;;  %v1257_v11 = vpop.f32.mrf.mxu1  ;;  %v1502_v63 = vpop.f32.mrf.mxu3 }
 0x219   : > { %v1258_v12 = vadd.f32 %v1257_v11, %v1182_v55  ;;  %1398 = vmatmul.f32.gmra.mxu1 %v1284_v9  ;;  %v2322_v55 = vld [vmem:[%s3764_s3 + $0x98] sm:$0xf]  ;;  %v2355_v11 = vld [vmem:[%s3765_s4 + $0x570] sm:$0xff] }
 0x21a   : > { %1688 = vmatpush.msra.mxu1 %v2312_v10  ;;  %v2372_v10 = vld [vmem:[%s3765_s4 + $0x5f8] sm:$0xff] }
 0x21b   : > { %1372 = vmatmul.f32.vlgmr.msrb.gmra.mxu0 %v1258_v12  ;;  %v2371_v12 = vld [vmem:[%s3765_s4 + $0x5f0] sm:$0xff] }
 0x21c   : > { %1653 = vmatpush.msrb.mxu0 %v2308_v13  ;;  %v1231_v21 = vpop.f32.mrf.mxu0  ;;  %1689 = vmatpush.msra.mxu1 %v2311_v16  ;;  %v2354_v13 = vld [vmem:[%s3765_s4 + $0x568] sm:$0xff] }
 0x21d   : > { %v1307_v24 = vadd.f32 %v1306_v60, %v1231_v21  ;;  %v2370_v16 = vld [vmem:[%s3765_s4 + $0x5e8] sm:$0xff]  ;;  %v2353_v60 = vld [vmem:[%s3765_s4 + $0x560] sm:$0xff]  ;;  %v2368_v21 = vld [vmem:[%s3765_s4 + $0x5d8] sm:$0xff] }
 0x21e   : > { %1654 = vmatpush.msrb.mxu0 %v2307_v18  ;;  %1690 = vmatpush.msra.mxu1 %v2310_v19  ;;  %v2369_v18 = vld [vmem:[%s3765_s4 + $0x5e0] sm:$0xff]  ;;  %v2352_v19 = vld [vmem:[%s3765_s4 + $0x558] sm:$0xff] }
 0x21f   : > { %2254 = vmatmul.msk.f32.gmra.mxu2 %vm1002_vm7, %v1307_v24  ;;  %v2351_v24 = vld [vmem:[%s3765_s4 + $0x550] sm:$0xff] }
 0x220   : > { %1655 = vmatpush.msrb.mxu0 %v2306_v25  ;;  %1691 = vmatpush.msra.mxu1 %v2309_v8  ;;  %v2367_v25 = vld [vmem:[%s3765_s4 + $0x5d0] sm:$0xff]  ;;  %v2350_v8 = vld [vmem:[%s3765_s4 + $0x548] sm:$0xff] }
 0x221   : > { %v1260_v29 = vpop.f32.mrf.mxu1  ;;  %2272 = vmatmul.msk.f32.vlgmr.msrb.gmra.mxu1 %vm595_vm6, %v2255_v27 }
 0x222   : > { %v1261_v1 = vadd.f32 %v1260_v29, %v1185_v62  ;;  %1656 = vmatpush.msrb.mxu0 %v2305_v28  ;;  %2326 = vmatpush.msk.msrb.mxu1 %vm602_vm5, %v2922_v20  ;;  %v2301_v20 = vld [vmem:[%s3765_s4 + $0x480] sm:$0xff] }
 0x223   : > { %v2349_v28 = vld [vmem:[%s3765_s4 + $0x540] sm:$0xff] }
 0x224   : > { %1375 = vmatmul.f32.gmra.mxu0 %v1261_v1  ;;  %v2365_v29 = vld [vmem:[%s3765_s4 + $0x5c0] sm:$0xff]  ;;  %v2348_v1 = vld [vmem:[%s3765_s4 + $0x538] sm:$0xff] }
 0x225   : > { %1657 = vmatpush.msrb.mxu0 %v2304_v30  ;;  %v1505_v4 = vpop.f32.mrf.mxu3  ;;  %v2364_v30 = vld [vmem:[%s3765_s4 + $0x5b8] sm:$0xff] }
 0x227   : > { %1658 = vmatpush.msrb.mxu0 %v2303_v31  ;;  %2263 = vmatmul.msk.f32.vlgmr.msra.gmra.mxu2 %vm595_vm6, %v3278_v26  ;;  %v2298_v26 = vld [vmem:[%s3765_s4 + $0x468] sm:$0xff]  ;;  %v2347_v31 = vld [vmem:[%s3765_s4 + $0x530] sm:$0xff] }
 0x228   : > { %2323 = vmatpush.msk.msra.mxu2 %vm602_vm5, %v2904_v14  ;;  %v2299_v14 = vld [vmem:[%s3765_s4 + $0x470] sm:$0xff] }
 0x229   : > { %1659 = vmatpush.msrb.mxu0 %v2302_v32  ;;  %2273 = vmatmul.msk.f32.gmra.mxu1 %vm595_vm6, %v2256_v33  ;;  %v2363_v32 = vld [vmem:[%s3765_s4 + $0x5b0] sm:$0xff] }
 0x22b   : > { %1660 = vmatpush.msrb.mxu0 %v2301_v20  ;;  %v2346_v20 = vld [vmem:[%s3765_s4 + $0x528] sm:$0xff] }
 0x22c   : > { %2269 = vmatmul.msk.f32.vlgmr.msra.gmra.mxu0 %vm595_vm6, %v2255_v27 }
 0x22d   : > { %1661 = vmatpush.msrb.mxu0 %v2300_v15  ;;  %v2345_v15 = vld [vmem:[%s3765_s4 + $0x520] sm:$0xff] }
 0x22f   : > { %1662 = vmatpush.msrb.mxu0 %v2299_v14  ;;  %2264 = vmatmul.msk.f32.gmra.mxu2 %vm595_vm6, %v3311_v40  ;;  %v2294_v40 = vld [vmem:[%s3765_s4 + $0x448] sm:$0xff]  ;;  %v2361_v14 = vld [vmem:[%s3765_s4 + $0x5a0] sm:$0xff] }
 0x231   : > { %1663 = vmatpush.msrb.mxu0 %v2298_v26  ;;  %v2344_v26 = vld [vmem:[%s3765_s4 + $0x518] sm:$0xff] }
 0x233   : > { %1664 = vmatpush.msrb.mxu0 %v2297_v34  ;;  %v2360_v34 = vld [vmem:[%s3765_s4 + $0x598] sm:$0xff] }
 0x234   : > { %2270 = vmatmul.msk.f32.gmra.mxu0 %vm595_vm6, %v2256_v33 }
 0x235   : > { %1665 = vmatpush.msrb.mxu0 %v2296_v35  ;;  %v2343_v35 = vld [vmem:[%s3765_s4 + $0x510] sm:$0xff] }
 0x237   : > { %1666 = vmatpush.msrb.mxu0 %v2295_v36  ;;  %2275 = vmatmul.msk.f32.vlgmr.msrb.gmra.mxu2 %vm595_vm6, %v2255_v27  ;;  %v2366_v27 = vld [vmem:[%s3765_s4 + $0x5c8] sm:$0xff]  ;;  %v2359_v36 = vld [vmem:[%s3765_s4 + $0x590] sm:$0xff] }
 0x238   : > { %2329 = vmatpush.msk.msrb.mxu2 %vm602_vm5, %v2926_v23 }
 0x239   : > { %1667 = vmatpush.msrb.mxu0 %v2294_v40  ;;  %v2380_v40 = vld [vmem:[%s3765_s4 + $0x638] sm:$0xff] }
 0x23b   : > { %1668 = vmatpush.msrb.mxu0 %v2293_v37  ;;  %v2379_v37 = vld [vmem:[%s3765_s4 + $0x630] sm:$0xff] }
 0x23d   : > { %2335 = vmatpush.msk.msra.mxu0 %vm602_vm5, %v2912_v17  ;;  %v2321_v17 = vld [vmem:[%s3764_s3 + $0x90] sm:$0xff] }
 0x23f   : > { %2276 = vmatmul.msk.f32.gmra.mxu2 %vm595_vm6, %v2256_v33  ;;  %v2362_v33 = vld [vmem:[%s3765_s4 + $0x5a8] sm:$0xff] }
 0x247   : > { %2324 = vmatmul.msk.f32.vlgmr.msra.gmra.mxu2 %vm595_vm6, %v2321_v17 }
 0x24f   : > { %2325 = vmatmul.msk.f32.gmra.mxu2 %vm595_vm6, %v2322_v55 }
 0x257   : > { %2330 = vmatmul.msk.f32.vlgmr.msrb.gmra.mxu2 %vm595_vm6, %v2321_v17 }
 0x25f   : > { %2331 = vmatmul.msk.f32.gmra.mxu2 %vm595_vm6, %v2322_v55 }
 0x28d   : > { %v1396_v38 = vpop.f32.mrf.mxu1 }
 0x296   : > { %v1399_v23 = vpop.f32.mrf.mxu1 }
 0x298   : > { %v1373_v39 = vpop.f32.mrf.mxu0 }
 0x299   : > { %v1397_v41 = vadd.f32 %v1396_v38, %v1373_v39  ;;  %v2342_v38 = vld [vmem:[%s3765_s4 + $0x508] sm:$0xff] }
 0x29a   : > { %v1419_v42 = vpop.f32.mrf.mxu2  ;;  %v2358_v39 = vld [vmem:[%s3765_s4 + $0x588] sm:$0xff] }
 0x29b   : > { %v1420_v43 = vadd.f32 %v1419_v42, %v1397_v41  ;;  %v2341_v42 = vld [vmem:[%s3765_s4 + $0x500] sm:$0xff] }
 0x29d   : > { %v3594_v5 = vadd.f32 %v1420_v43, %v3489_v50  ;;  %v2357_v43 = vld [vmem:[%s3765_s4 + $0x580] sm:$0xff] }
 0x29e   : > { %v1554_v51 = vpop.f32.mrf.mxu1 }
 0x2a1   : > { %v1376_v44 = vpop.f32.mrf.mxu0 }
 0x2a2   : > { %v1400_v45 = vadd.f32 %v1399_v23, %v1376_v44  ;;  %v1422_v46 = vpop.f32.mrf.mxu2 }
 0x2a4   : > { %v1423_v47 = vadd.f32 %v1422_v46, %v1400_v45  ;;  %v2378_v45 = vld [vmem:[%s3765_s4 + $0x628] sm:$0xff]  ;;  %v2377_v46 = vld [vmem:[%s3765_s4 + $0x620] sm:$0xff] }
 0x2a6   : > { %v3600_v49 = vadd.f32 %v1423_v47, %v3491_v57  ;;  %v1557_v58 = vpop.f32.mrf.mxu1  ;;  %v2376_v47 = vld [vmem:[%s3765_s4 + $0x618] sm:$0xff] }
 0x2a9   : > { %v1531_v52 = vpop.f32.mrf.mxu0 }
 0x2aa   : > { %v1479_v53 = vpop.f32.mrf.mxu2  ;;  %v1532_v50 = vadd.f32 %v1531_v52, %v1456_v48  ;;  %v2375_v48 = vld [vmem:[%s3765_s4 + $0x610] sm:$0xff] }
 0x2ab   : > { %v1555_v54 = vadd.f32 %v1554_v51, %v1479_v53 }
 0x2ac   : > { %1646 = vmatmul.f32.vlgmr.msrb.gmra.mxu3 %v1532_v50 }
 0x2ad   : > { %1669 = vmatmul.f32.vlgmr.msrb.gmra.mxu0 %v1555_v54  ;;  %1927 = vmatpush.msrb.mxu3 %v2372_v10 }
 0x2ae   : > { %1958 = vmatpush.msrb.mxu0 %v2380_v40 }
 0x2af   : > { %1928 = vmatpush.msrb.mxu3 %v2371_v12 }
 0x2b0   : > { %1959 = vmatpush.msrb.mxu0 %v2379_v37 }
 0x2b1   : > { %v1534_v59 = vpop.f32.mrf.mxu0  ;;  %1929 = vmatpush.msrb.mxu3 %v2370_v16 }
 0x2b2   : > { %v1482_v57 = vpop.f32.mrf.mxu2  ;;  %v1535_v61 = vadd.f32 %v1534_v59, %v1459_v56  ;;  %1960 = vmatpush.msrb.mxu0 %v2378_v45  ;;  %v2373_v56 = vld [vmem:[%s3765_s4 + $0x600] sm:$0xff] }
 0x2b3   : > { %v1558_v62 = vadd.f32 %v1557_v58, %v1482_v57  ;;  %1930 = vmatpush.msrb.mxu3 %v2369_v18 }
 0x2b4   : > { %1649 = vmatmul.f32.gmra.mxu3 %v1535_v61  ;;  %1961 = vmatpush.msrb.mxu0 %v2377_v46 }
 0x2b5   : > { %1672 = vmatmul.f32.gmra.mxu0 %v1558_v62  ;;  %1931 = vmatpush.msrb.mxu3 %v2368_v21 }
 0x2b6   : > { %1962 = vmatpush.msrb.mxu0 %v2376_v47 }
 0x2b7   : > { %1932 = vmatpush.msrb.mxu3 %v2367_v25  ;;  %v2395_v25 = vld [vmem:[%s3766_s5] ss:$0 sm:$0xff] }
 0x2b8   : > { %1963 = vmatpush.msrb.mxu0 %v2375_v48 }
 0x2b9   : > { %1933 = vmatpush.msrb.mxu3 %v2366_v27 }
 0x2ba   : > { %v1577_v2 = vpop.f32.mrf.mxu2 }
 0x2bb   : > { %v1578_v3 = vadd.f32 %v1577_v2, %v1502_v63  ;;  %1934 = vmatpush.msrb.mxu3 %v2365_v29 }
 0x2bc   : > { %2333 = vmatmul.msk.f32.vlgmr.msra.gmra.mxu3 %vm595_vm6, %v2319_v0 }
 0x2bd   : > { %2317 = vmatmul.msk.f32.vlgmr.msra.gmra.mxu1 %vm1002_vm7, %v1578_v3  ;;  %2336 = vmatmul.msk.f32.vlgmr.msra.gmra.mxu0 %vm595_vm6, %v2319_v0 }
 0x2be   : > { %2338 = vmatpush.msk.msra.mxu1 %vm602_vm5, %v2924_v22  ;;  %v2356_v22 = vld [vmem:[%s3765_s4 + $0x578] sm:$0xff]  ;;  %1935 = vmatpush.msrb.mxu3 %v2364_v30 }
 0x2bf   : > { %1904 = vmatpush.msra.mxu2 %v2356_v22 }
 0x2c0   : > { %1936 = vmatpush.msrb.mxu3 %v2363_v32 }
 0x2c1   : > { %1905 = vmatpush.msra.mxu2 %v2355_v11 }
 0x2c2   : > { %v1580_v7 = vpop.f32.mrf.mxu2  ;;  %1937 = vmatpush.msrb.mxu3 %v2362_v33 }
 0x2c3   : > { %v1581_v9 = vadd.f32 %v1580_v7, %v1505_v4  ;;  %1906 = vmatpush.msra.mxu2 %v2354_v13 }
 0x2c4   : > { %2334 = vmatmul.msk.f32.gmra.mxu3 %vm595_vm6, %v2320_v6 }
 0x2c5   : > { %2318 = vmatmul.msk.f32.gmra.mxu1 %vm1002_vm7, %v1581_v9  ;;  %2337 = vmatmul.msk.f32.gmra.mxu0 %vm595_vm6, %v2320_v6 }
 0x2c6   : > { %1907 = vmatpush.msra.mxu2 %v2353_v60  ;;  %1938 = vmatpush.msrb.mxu3 %v2361_v14 }
 0x2c8   : > { %1908 = vmatpush.msra.mxu2 %v2352_v19  ;;  %1939 = vmatpush.msrb.mxu3 %v2360_v34 }
 0x2ca   : > { %1909 = vmatpush.msra.mxu2 %v2351_v24  ;;  %1940 = vmatpush.msrb.mxu3 %v2359_v36  ;;  %v1730_v54 = vpop.f32.mrf.mxu2 }
 0x2cc   : > { %1910 = vmatpush.msra.mxu2 %v2350_v8  ;;  %1941 = vmatpush.msrb.mxu3 %v2358_v39 }
 0x2cd   : > { %2327 = vmatmul.msk.f32.vlgmr.msrb.gmra.mxu1 %vm595_vm6, %v2321_v17 }
 0x2ce   : > { %1911 = vmatpush.msra.mxu2 %v2349_v28  ;;  %1942 = vmatpush.msrb.mxu3 %v2357_v43 }
 0x2d0   : > { %1912 = vmatpush.msra.mxu2 %v2348_v1 }
 0x2d2   : > { %1913 = vmatpush.msra.mxu2 %v2347_v31 }
 0x2d4   : > { %1914 = vmatpush.msra.mxu2 %v2346_v20 }
 0x2d5   : > { %2328 = vmatmul.msk.f32.gmra.mxu1 %vm595_vm6, %v2322_v55  ;;  %v2374_v55 = vld [vmem:[%s3765_s4 + $0x608] sm:$0xff] }
 0x2d6   : > { %1915 = vmatpush.msra.mxu2 %v2345_v15  ;;  %1964 = vmatpush.msrb.mxu0 %v2374_v55 }
 0x2d8   : > { %1916 = vmatpush.msra.mxu2 %v2344_v26  ;;  %1965 = vmatpush.msrb.mxu0 %v2373_v56 }
 0x2da   : > { %1917 = vmatpush.msra.mxu2 %v2343_v35 }
 0x2dc   : > { %1918 = vmatpush.msra.mxu2 %v2342_v38 }
 0x2dd   : > { %2339 = vmatmul.msk.f32.vlgmr.msra.gmra.mxu1 %vm595_vm6, %v2319_v0  ;;  %v1733_v0 = vpop.f32.mrf.mxu2 }
 0x2de   : > { %1919 = vmatpush.msra.mxu2 %v2341_v42 }
 0x2e5   : > { %2340 = vmatmul.msk.f32.gmra.mxu1 %vm595_vm6, %v2320_v6 }
 0x32a   : > { %v1670_v41 = vpop.f32.mrf.mxu0 }
 0x32f   : > { %v1647_v23 = vpop.f32.mrf.mxu3 }
 0x330   : > { %v1671_v44 = vadd.f32 %v1670_v41, %v1647_v23 }
 0x332   : > { %v1673_v51 = vpop.f32.mrf.mxu0 }
 0x337   : > { %v1650_v17 = vpop.f32.mrf.mxu3 }
 0x338   : > { %v1674_v52 = vadd.f32 %v1673_v51, %v1650_v17 }
 0x33a   : > { %v1693_v53 = vpop.f32.mrf.mxu1  ;;  %v1828_v2 = vpop.f32.mrf.mxu0 }
 0x33b   : > { %v1694_v50 = vadd.f32 %v1693_v53, %v1671_v44 }
 0x33d   : > { %v1699_v58 = vadd.f32 %v1694_v50, %v3594_v5  ;;  %v1776_v5 = vpop.f32.mrf.mxu2 }
 0x33f   : > { %v1805_v59 = vpop.f32.mrf.mxu3 }
 0x340   : > { %v1806_v57 = vadd.f32 %v1805_v59, %v1730_v54 }
 0x342   : > { %v1696_v61 = vpop.f32.mrf.mxu1  ;;  %1920 = vmatmul.f32.vlgmr.msra.gmra.mxu2 %v1806_v57  ;;  %v1831_v9 = vpop.f32.mrf.mxu0 }
 0x343   : > { %v1697_v62 = vadd.f32 %v1696_v61, %v1674_v52 }
 0x345   : > { %v1700_v63 = vadd.f32 %v1697_v62, %v3600_v49  ;;  %v1779_v13 = vpop.f32.mrf.mxu2 }
 0x347   : > { %v1808_v3 = vpop.f32.mrf.mxu3 }
 0x348   : > { %v1809_v4 = vadd.f32 %v1808_v3, %v1733_v0 }
 0x34a   : > { %v1753_v6 = vpop.f32.mrf.mxu1  ;;  %1923 = vmatmul.f32.gmra.mxu2 %v1809_v4 }
 0x34b   : > { %v1829_v7 = vadd.f32 %v1828_v2, %v1753_v6 }
 0x34d   : > { %1943 = vmatmul.f32.vlgmr.msrb.gmra.mxu3 %v1829_v7 }
 0x352   : > { %v1756_v22 = vpop.f32.mrf.mxu1 }
 0x353   : > { %v1832_v10 = vadd.f32 %v1831_v9, %v1756_v22 }
 0x355   : > { %1946 = vmatmul.f32.gmra.mxu3 %v1832_v10 }
 0x35a   : > { %v1851_v11 = vpop.f32.mrf.mxu1 }
 0x35b   : > { %v1852_v12 = vadd.f32 %v1851_v11, %v1776_v5 }
 0x35d   : > { %2381 = vmatmul.msk.f32.vlgmr.msrb.gmra.mxu0 %vm1002_vm7, %v1852_v12 }
 0x362   : > { %v1854_v49 = vpop.f32.mrf.mxu1 }
 0x363   : > { %v1855_v16 = vadd.f32 %v1854_v49, %v1779_v13 }
 0x365   : > { %2382 = vmatmul.msk.f32.gmra.mxu0 %vm1002_vm7, %v1855_v16 }
 0x3c5   : > { %v1921_v60 = vpop.f32.mrf.mxu2 }
 0x3cd   : > { %v1924_v27 = vpop.f32.mrf.mxu2 }
 0x3d0   : > { %v1944_v18 = vpop.f32.mrf.mxu3 }
 0x3d1   : > { %v1945_v19 = vadd.f32 %v1944_v18, %v1921_v60 }
 0x3d8   : > { %v1947_v28 = vpop.f32.mrf.mxu3 }
 0x3d9   : > { %v1948_v30 = vadd.f32 %v1947_v28, %v1924_v27 }
 0x3da   : > { %v1967_v21 = vpop.f32.mrf.mxu0 }
 0x3db   : > { %v1968_v24 = vadd.f32 %v1967_v21, %v1945_v19 }
 0x3dd   : > { %v1973_v8 = vadd.f32 %v1968_v24, %v1699_v58 }
 0x3df   : > { %v1979_v29 = vadd.f32 %v2395_v25, %v1973_v8 }
 0x3e1   : > { %v1981_v1 = vmax.f32 %v1979_v29, 0.0 }
 0x3e2   : > { %v1970_v31 = vpop.f32.mrf.mxu0 }
 0x3e3   : > { %1984 = vst.msk [vmem:[%s265_s24] sm:$0xff] %vm1983_vm8, %v1981_v1  ;;  %v1971_v32 = vadd.f32 %v1970_v31, %v1948_v30 }
 0x3e5   : > { %v1974_v20 = vadd.f32 %v1971_v32, %v1700_v63 }
 0x3e7   : > { %v1980_v33 = vadd.f32 %v2395_v25, %v1974_v20 }
 0x3e9   : > { %v1982_v15 = vmax.f32 %v1980_v33, 0.0 }
 0x3eb   : > { %1986 = vst.msk [vmem:[%s265_s24 + $0x8] sm:$0xf] %vm1985_vm9, %v1982_v15 }
 0x3ec PF: > { %s16_s21 = sadd.s32 1, %s2402_s21  }
 0x3ed   : > { %p13_p4 = scmp.ge.s32.totalorder %s16_s21, 4  }
 0x3ef   :  { %15 = sbr.rel (!%p13_p4) target bundleno = 1 (0x1), region = 91 }

// kernel: forward.9
= control target key start
LH: loop header
LB: loop body
LE: loop exit
PB: predicated region body
PF: predicated region fallthrough
CT: control target
= control target key end

     0   :  { %s3049_s21 = smov 0   ;;  %s5038_s0 = inlined_call_operand.vmem [shape: f32[2,12,120], index: 0, kind: input, shape index: {}]   ;;  %s5039_s1 = inlined_call_operand.vmem [shape: s32[2,12,120], index: 1, kind: input, shape index: {}]   ;;  %s5040_s2 = inlined_call_operand.vmem [shape: f32[2,120,320], index: 2, kind: input, shape index: {}]   ;;  %s5041_s3 = inlined_call_operand.vmem [shape: f32[10,28,12], index: 3, kind: input, shape index: {}]   ;;  %s5042_s4 = inlined_call_operand.vmem [shape: f32[5,320,28], index: 4, kind: input, shape index: {}]   ;;  %s5043_s5 = inlined_call_operand.vmem [shape: f32[1,28], index: 5, kind: input, shape index: {}]   ;;  %s5044_s6 = inlined_call_operand.vmem [shape: f32[2,28,28], index: 6, kind: output, shape index: {}]  }
   0x1 LB: > { %s2540_s22 = sadd.s32 4294967295, %s3012_s21   ;;  %p2544_p0 = scmp.ge.s32.totalorder %s3012_s21, 1  ;;  %s3012_s21 = sphi %s3049_s21, %s16_s21  }
   0x2   : > { %p222_p1 = scmp.lt.s32.totalorder %s3012_s21, 3 }
   0x4   : > { %p223_p2 = pnand %p2544_p0, %p222_p1 }
   0x6   : > { %226 = sbr.rel (%p223_p2) target bundleno = 1173 (0x495), region = 44 }
   0xb   : > { %v3060_v0 = vld [vmem:[%s5040_s2 + $0x2b8] sm:$0xff]  ;;  %v3065_v1 = vld [vmem:[%s5040_s2 + $0x2c0] sm:$0xff]  ;;  %v3070_v2 = vld [vmem:[%s5040_s2 + $0x2c8] sm:$0xff]  ;;  %p3353_p3 = scmp.lt.s32.totalorder %s2540_s22, 1  ;;  %vm375_vm1 = vcmask 982016   ;;  %vm706_vm9 = vcmask 1043456  }
   0xc   : > { %383 = vmatpush.msra.mxu0 %v3060_v0  ;;  %406 = vmatpush.msra.mxu1 %v3065_v1  ;;  %v3077_v3 = vld [vmem:[%s5040_s2 + $0x150] sm:$0xff]  ;;  %v3082_v4 = vld [vmem:[%s5040_s2 + $0x2a0] sm:$0xff]  ;;  %v3087_v5 = vld [vmem:[%s5040_s2 + $0x2a8] sm:$0xff]  ;;  %vm693_vm10 = vcmask 97280   ;;  %vm1200_vm11 = vcmask 523264   ;;  %vm2467_vm12 = vcmask 228352  }
   0xd   : > { %429 = vmatpush.msra.mxu2 %v3070_v2  ;;  %458 = vmatpush.msra.mxu3 %v3077_v3  ;;  %v3094_v6 = vld [vmem:[%s5040_s2 + $0x2b0] sm:$0xff]  ;;  %v3099_v7 = vld [vmem:[%s5040_s2 + $0x138] sm:$0xff]  ;;  %v3104_v8 = vld [vmem:[%s5040_s2 + $0x288] sm:$0xff]  ;;  %s5071_s22 = smov (!%p3353_p3, %s2540_s22), 1  ;;  %vm2471_vm13 = vcmask 224256  }
   0xe   : > { %384 = vmatpush.msra.mxu0 %v3082_v4  ;;  %407 = vmatpush.msra.mxu1 %v3087_v5  ;;  %v3111_v9 = vld [vmem:[%s5040_s2 + $0x290] sm:$0xff]  ;;  %v3116_v10 = vld [vmem:[%s5040_s2 + $0x298] sm:$0xff]  ;;  %v3121_v11 = vld [vmem:[%s5040_s2 + $0x120] sm:$0xff]  ;;  %s2988_s18 = sshll.u32 %s5071_s22, 4  ;;  %s2990_s10 = sshll.u32 %s5071_s22, 5 }
   0xf   : > { %430 = vmatpush.msra.mxu2 %v3094_v6  ;;  %459 = vmatpush.msra.mxu3 %v3099_v7  ;;  %v3128_v12 = vld [vmem:[%s5040_s2 + $0x270] sm:$0xff]  ;;  %v3133_v13 = vld [vmem:[%s5040_s2 + $0x278] sm:$0xff]  ;;  %v3140_v14 = vld [vmem:[%s5040_s2 + $0x280] sm:$0xff]  ;;  %s3469_s27 = scalar_lea.vmem %s5039_s1, %s2988_s18  ;;  %s3500_s14 = scalar_lea.vmem %s5038_s0, %s2988_s18 }
  0x10   : > { %385 = vmatpush.msra.mxu0 %v3104_v8  ;;  %408 = vmatpush.msra.mxu1 %v3111_v9  ;;  %v3145_v15 = vld [vmem:[%s5040_s2 + $0x108] sm:$0xff]  ;;  %v3152_v16 = vld [vmem:[%s5040_s2 + $0x258] sm:$0xff]  ;;  %v3157_v17 = vld [vmem:[%s5040_s2 + $0x260] sm:$0xff]  ;;  %s271_s12 = scalar_lea.vmem %s5044_s6, %s2990_s10 }
  0x11   : > { %431 = vmatpush.msra.mxu2 %v3116_v10  ;;  %460 = vmatpush.msra.mxu3 %v3121_v11  ;;  %v3164_v18 = vld [vmem:[%s5040_s2 + $0x268] sm:$0xff]  ;;  %v3169_v19 = vld [vmem:[%s5040_s2 + $0xf0] sm:$0xff]  ;;  %v3176_v20 = vld [vmem:[%s5040_s2 + $0x240] sm:$0xff] }
  0x12   : > { %386 = vmatpush.msra.mxu0 %v3128_v12  ;;  %409 = vmatpush.msra.mxu1 %v3133_v13  ;;  %v3181_v21 = vld [vmem:[%s5040_s2 + $0x248] sm:$0xff]  ;;  %v3188_v22 = vld [vmem:[%s5040_s2 + $0x250] sm:$0xff]  ;;  %v3193_v23 = vld [vmem:[%s5040_s2 + $0xd8] sm:$0xff] }
  0x13   : > { %432 = vmatpush.msra.mxu2 %v3140_v14  ;;  %461 = vmatpush.msra.mxu3 %v3145_v15  ;;  %v3200_v24 = vld [vmem:[%s5040_s2 + $0x228] sm:$0xff]  ;;  %v3205_v25 = vld [vmem:[%s5040_s2 + $0x230] sm:$0xff]  ;;  %v3212_v26 = vld [vmem:[%s5040_s2 + $0x238] sm:$0xff] }
  0x14   : > { %387 = vmatpush.msra.mxu0 %v3152_v16  ;;  %410 = vmatpush.msra.mxu1 %v3157_v17  ;;  %v3217_v27 = vld [vmem:[%s5040_s2 + $0xc0] sm:$0xff]  ;;  %v3224_v28 = vld [vmem:[%s5040_s2 + $0x210] sm:$0xff]  ;;  %v3229_v29 = vld [vmem:[%s5040_s2 + $0x218] sm:$0xff] }
  0x15   : > { %433 = vmatpush.msra.mxu2 %v3164_v18  ;;  %462 = vmatpush.msra.mxu3 %v3169_v19  ;;  %v3236_v30 = vld [vmem:[%s5040_s2 + $0x220] sm:$0xff]  ;;  %v3241_v31 = vld [vmem:[%s5040_s2 + $0xa8] sm:$0xff]  ;;  %v3248_v32 = vld [vmem:[%s5040_s2 + $0x1f8] sm:$0xff] }
  0x16   : > { %388 = vmatpush.msra.mxu0 %v3176_v20  ;;  %411 = vmatpush.msra.mxu1 %v3181_v21  ;;  %v3253_v33 = vld [vmem:[%s5040_s2 + $0x200] sm:$0xff]  ;;  %v3260_v34 = vld [vmem:[%s5040_s2 + $0x208] sm:$0xff]  ;;  %v3265_v35 = vld [vmem:[%s5040_s2 + $0x90] sm:$0xff] }
  0x17   : > { %434 = vmatpush.msra.mxu2 %v3188_v22  ;;  %463 = vmatpush.msra.mxu3 %v3193_v23  ;;  %v3272_v36 = vld [vmem:[%s5040_s2 + $0x1e0] sm:$0xff]  ;;  %v3277_v37 = vld [vmem:[%s5040_s2 + $0x1e8] sm:$0xff]  ;;  %v3284_v38 = vld [vmem:[%s5040_s2 + $0x1f0] sm:$0xff] }
  0x18   : > { %389 = vmatpush.msra.mxu0 %v3200_v24  ;;  %412 = vmatpush.msra.mxu1 %v3205_v25  ;;  %v3289_v39 = vld [vmem:[%s5040_s2 + $0x78] sm:$0xff]  ;;  %v3296_v40 = vld [vmem:[%s5040_s2 + $0x1c8] sm:$0xff]  ;;  %v3301_v41 = vld [vmem:[%s5040_s2 + $0x1d0] sm:$0xff] }
  0x19   : > { %435 = vmatpush.msra.mxu2 %v3212_v26  ;;  %464 = vmatpush.msra.mxu3 %v3217_v27  ;;  %v3308_v42 = vld [vmem:[%s5040_s2 + $0x1d8] sm:$0xff]  ;;  %v3313_v43 = vld [vmem:[%s5040_s2 + $0x60] sm:$0xff]  ;;  %v3320_v44 = vld [vmem:[%s5040_s2 + $0x1b0] sm:$0xff] }
  0x1a   : > { %390 = vmatpush.msra.mxu0 %v3224_v28  ;;  %413 = vmatpush.msra.mxu1 %v3229_v29  ;;  %5053 = vst [vmem:[#allocation2_spill] sm:$0xff] %v3308_v42  ;;  %v3325_v45 = vld [vmem:[%s5040_s2 + $0x1b8] sm:$0xff]  ;;  %v3332_v46 = vld [vmem:[%s5040_s2 + $0x1c0] sm:$0xff]  ;;  %v3337_v47 = vld [vmem:[%s5040_s2 + $0x48] sm:$0xff] }
  0x1b   : > { %436 = vmatpush.msra.mxu2 %v3236_v30  ;;  %465 = vmatpush.msra.mxu3 %v3241_v31  ;;  %5054 = vst [vmem:[#allocation3_spill] sm:$0xff] %v3332_v46  ;;  %v3344_v48 = vld [vmem:[%s5040_s2 + $0x198] sm:$0xff]  ;;  %v3349_v49 = vld [vmem:[%s5040_s2 + $0x1a0] sm:$0xff]  ;;  %v3362_v50 = vld [vmem:[%s5040_s2 + $0x1a8] sm:$0xff] }
  0x1c   : > { %391 = vmatpush.msra.mxu0 %v3248_v32  ;;  %414 = vmatpush.msra.mxu1 %v3253_v33  ;;  %5056 = vst [vmem:[#allocation4_spill] sm:$0xff] %v3362_v50  ;;  %v3367_v51 = vld [vmem:[%s5040_s2 + $0x30] sm:$0xff]  ;;  %v3374_v52 = vld [vmem:[%s5040_s2 + $0x180] sm:$0xff]  ;;  %v3379_v53 = vld [vmem:[%s5040_s2 + $0x188] sm:$0xff] }
  0x1d   : > { %437 = vmatpush.msra.mxu2 %v3260_v34  ;;  %466 = vmatpush.msra.mxu3 %v3265_v35  ;;  %5057 = vst [vmem:[#allocation5_spill] sm:$0xff] %v3367_v51  ;;  %v3386_v54 = vld [vmem:[%s5040_s2 + $0x190] sm:$0xff]  ;;  %v3391_v55 = vld [vmem:[%s5040_s2 + $0x18] sm:$0xff]  ;;  %v3398_v56 = vld [vmem:[%s5040_s2 + $0x168] sm:$0xff] }
  0x1e   : > { %392 = vmatpush.msra.mxu0 %v3272_v36  ;;  %415 = vmatpush.msra.mxu1 %v3277_v37  ;;  %5058 = vst [vmem:[#allocation6_spill] sm:$0xff] %v3386_v54  ;;  %v3403_v57 = vld [vmem:[%s5040_s2 + $0x170] sm:$0xff]  ;;  %v3416_v58 = vld [vmem:[%s5040_s2 + $0x178] sm:$0xff]  ;;  %v3421_v59 = vld [vmem:[%s5040_s2] sm:$0xff] }
  0x1f   : > { %438 = vmatpush.msra.mxu2 %v3284_v38  ;;  %467 = vmatpush.msra.mxu3 %v3289_v39  ;;  %5059 = vst [vmem:[#allocation7_spill] sm:$0xff] %v3391_v55  ;;  %v3428_v60 = vld [vmem:[%s5040_s2 + $0x158] sm:$0xff]  ;;  %v3433_v61 = vld [vmem:[%s5040_s2 + $0x160] sm:$0xff]  ;;  %v3447_v63 = vld [vmem:[%s5040_s2 + $0x148] sm:$0xff] }
  0x20   : > { %393 = vmatpush.msra.mxu0 %v3296_v40  ;;  %416 = vmatpush.msra.mxu1 %v3301_v41  ;;  %5060 = vst [vmem:[#allocation8_spill] sm:$0xff] %v3416_v58  ;;  %v3442_v62 = vld [vmem:[%s5040_s2 + $0x140] sm:$0xff] }
  0x21   : > { %439 = vmatpush.msra.mxu2 %v3308_v42  ;;  %468 = vmatpush.msra.mxu3 %v3313_v43  ;;  %5061 = vst [vmem:[#allocation9_spill] sm:$0xff] %v3421_v59  ;;  %v3586_v42 = vld [vmem:[%s3500_s14 + $0x8] sm:$0xf] }
  0x22   : > { %394 = vmatpush.msra.mxu0 %v3320_v44  ;;  %417 = vmatpush.msra.mxu1 %v3325_v45 }
  0x23   : > { %440 = vmatpush.msra.mxu2 %v3332_v46  ;;  %469 = vmatpush.msra.mxu3 %v3337_v47  ;;  %v3552_v46 = vld [vmem:[%s5040_s2 + $0xb0] sm:$0xff] }
  0x24   : > { %395 = vmatpush.msra.mxu0 %v3344_v48  ;;  %418 = vmatpush.msra.mxu1 %v3349_v49 }
  0x25   : > { %441 = vmatpush.msra.mxu2 %v3362_v50  ;;  %470 = vmatpush.msra.mxu3 %v3367_v51  ;;  %v3503_v50 = vld [vmem:[%s3469_s27] sm:$0xff]  ;;  %v3616_v51 = vld [vmem:[%s5040_s2 + $0x58] sm:$0xff] }
  0x26   : > { %396 = vmatpush.msra.mxu0 %v3374_v52  ;;  %419 = vmatpush.msra.mxu1 %v3379_v53  ;;  %vm325_vm0 = vcmp.eq.s32.totalorder %v3503_v50, 1  ;;  %vm276_vm3 = vcmp.eq.s32.totalorder %v3503_v50, 0  ;;  %vm530_vm5 = vcmp.eq.s32.totalorder %v3503_v50, 3  ;;  %vm526_vm7 = vcmp.eq.s32.totalorder %v3503_v50, 2 }
  0x27   : > { %442 = vmatpush.msra.mxu2 %v3386_v54  ;;  %471 = vmatpush.msra.mxu3 %v3391_v55  ;;  %v3462_v54 = vld [vmem:[%s5040_s2 + $0x130] sm:$0xff]  ;;  %v3569_v55 = vld [vmem:[%s5040_s2 + $0x98] sm:$0xff] }
  0x28   : > { %397 = vmatpush.msra.mxu0 %v3398_v56  ;;  %420 = vmatpush.msra.mxu1 %v3403_v57 }
  0x29   : > { %443 = vmatpush.msra.mxu2 %v3416_v58  ;;  %472 = vmatpush.msra.mxu3 %v3421_v59  ;;  %v3457_v58 = vld [vmem:[%s5040_s2 + $0x128] sm:$0xff]  ;;  %v3522_v59 = vld [vmem:[%s3500_s14] sm:$0xff] }
  0x2a   : > { %481 = vmatpush.msrb.mxu0 %v3428_v60  ;;  %504 = vmatpush.msrb.mxu1 %v3433_v61 }
  0x2b   : > { %541 = vmatpush.msrb.mxu2 %v3060_v0  ;;  %564 = vmatpush.msrb.mxu3 %v3065_v1  ;;  %v3476_v0 = vld [vmem:[%s5040_s2 + $0x110] sm:$0xff]  ;;  %v3481_v1 = vld [vmem:[%s5040_s2 + $0x118] sm:$0xff] }
  0x2c   : > { %482 = vmatpush.msrb.mxu0 %v3442_v62  ;;  %505 = vmatpush.msrb.mxu1 %v3447_v63 }
  0x2d   : > { %542 = vmatpush.msrb.mxu2 %v3082_v4  ;;  %565 = vmatpush.msrb.mxu3 %v3087_v5  ;;  %v3490_v4 = vld [vmem:[%s5040_s2 + $0xf8] sm:$0xff]  ;;  %v3495_v5 = vld [vmem:[%s5040_s2 + $0x100] sm:$0xff] }
  0x2e   : > { %483 = vmatpush.msrb.mxu0 %v3457_v58  ;;  %506 = vmatpush.msrb.mxu1 %v3462_v54 }
  0x2f   : > { %543 = vmatpush.msrb.mxu2 %v3104_v8  ;;  %566 = vmatpush.msrb.mxu3 %v3111_v9  ;;  %v3512_v8 = vld [vmem:[%s5040_s2 + $0xe0] sm:$0xff]  ;;  %v3517_v9 = vld [vmem:[%s5040_s2 + $0xe8] sm:$0xff] }
  0x30   : > { %484 = vmatpush.msrb.mxu0 %v3476_v0  ;;  %507 = vmatpush.msrb.mxu1 %v3481_v1 }
  0x31   : > { %544 = vmatpush.msrb.mxu2 %v3128_v12  ;;  %567 = vmatpush.msrb.mxu3 %v3133_v13  ;;  %v3530_v12 = vld [vmem:[%s5040_s2 + $0xc8] sm:$0xff]  ;;  %v3535_v13 = vld [vmem:[%s5040_s2 + $0xd0] sm:$0xff] }
  0x32   : > { %485 = vmatpush.msrb.mxu0 %v3490_v4  ;;  %508 = vmatpush.msrb.mxu1 %v3495_v5 }
  0x33   : > { %545 = vmatpush.msrb.mxu2 %v3152_v16  ;;  %568 = vmatpush.msrb.mxu3 %v3157_v17  ;;  %v327_v16 = vsel %vm325_vm0, %v3522_v59, 0.0  ;;  %v3545_v17 = vld [vmem:[%s5040_s2 + $0xb8] sm:$0xff] }
  0x34   : > { %486 = vmatpush.msrb.mxu0 %v3512_v8  ;;  %509 = vmatpush.msrb.mxu1 %v3517_v9 }
  0x35   : > { %546 = vmatpush.msrb.mxu2 %v3176_v20  ;;  %569 = vmatpush.msrb.mxu3 %v3181_v21  ;;  %v3559_v20 = vld [vmem:[%s5040_s2 + $0xa0] sm:$0xff]  ;;  %v3562_v21 = vld [vmem:[%s3469_s27 + $0x8] sm:$0xf] }
  0x36   : > { %487 = vmatpush.msrb.mxu0 %v3530_v12  ;;  %510 = vmatpush.msrb.mxu1 %v3535_v13  ;;  %vm326_vm2 = vcmp.eq.s32.totalorder %v3562_v21, 1  ;;  %vm277_vm4 = vcmp.eq.s32.totalorder %v3562_v21, 0  ;;  %vm531_vm6 = vcmp.eq.s32.totalorder %v3562_v21, 3  ;;  %vm527_vm8 = vcmp.eq.s32.totalorder %v3562_v21, 2 }
  0x37   : > { %547 = vmatpush.msrb.mxu2 %v3200_v24  ;;  %570 = vmatpush.msrb.mxu3 %v3205_v25  ;;  %v3576_v24 = vld [vmem:[%s5040_s2 + $0x88] sm:$0xff]  ;;  %v3583_v25 = vld [vmem:[%s5040_s2 + $0x80] sm:$0xff] }
  0x38   : > { %2596 = vmatmul.msk.f32.vlgmr.msra.gmra.mxu0 %vm375_vm1, %v327_v16  ;;  %511 = vmatpush.msrb.mxu1 %v3545_v17 }
  0x39   : > { %488 = vmatpush.msrb.mxu0 %v3552_v46  ;;  %548 = vmatpush.msrb.mxu2 %v3224_v28  ;;  %v3594_v28 = vld [vmem:[%s5040_s2 + $0x70] sm:$0xff] }
  0x3a   : > { %571 = vmatpush.msrb.mxu3 %v3229_v29  ;;  %512 = vmatpush.msrb.mxu1 %v3559_v20  ;;  %v3601_v29 = vld [vmem:[%s5040_s2 + $0x68] sm:$0xff] }
  0x3b   : > { %489 = vmatpush.msrb.mxu0 %v3569_v55  ;;  %549 = vmatpush.msrb.mxu2 %v3248_v32  ;;  %v328_v32 = vsel %vm326_vm2, %v3586_v42, 0.0 }
  0x3c   : > { %572 = vmatpush.msrb.mxu3 %v3253_v33  ;;  %513 = vmatpush.msrb.mxu1 %v3576_v24  ;;  %v3611_v33 = vld [vmem:[%s5040_s2 + $0x50] sm:$0xff] }
  0x3d   : > { %490 = vmatpush.msrb.mxu0 %v3583_v25  ;;  %550 = vmatpush.msrb.mxu2 %v3272_v36  ;;  %v3625_v36 = vld [vmem:[%s5040_s2 + $0x38] sm:$0xff] }
  0x3e   : > { %573 = vmatpush.msrb.mxu3 %v3277_v37  ;;  %514 = vmatpush.msrb.mxu1 %v3594_v28  ;;  %v3633_v37 = vld [vmem:[%s5040_s2 + $0x40] sm:$0xff] }
  0x3f   : > { %491 = vmatpush.msrb.mxu0 %v3601_v29  ;;  %551 = vmatpush.msrb.mxu2 %v3296_v40  ;;  %v278_v40 = vsel %vm276_vm3, %v3522_v59, 0.0 }
  0x40   : > { %574 = vmatpush.msrb.mxu3 %v3301_v41  ;;  %2597 = vmatmul.msk.f32.gmra.mxu0 %vm375_vm1, %v328_v32  ;;  %v3643_v41 = vld [vmem:[%s5040_s2 + $0x20] sm:$0xff] }
  0x41   : > { %492 = vmatpush.msrb.mxu0 %v3611_v33  ;;  %515 = vmatpush.msrb.mxu1 %v3616_v51 }
  0x42   : > { %552 = vmatpush.msrb.mxu2 %v3320_v44  ;;  %575 = vmatpush.msrb.mxu3 %v3325_v45  ;;  %v3650_v44 = vld [vmem:[%s5040_s2 + $0x28] sm:$0xff] }
  0x43   : > { %2598 = vmatmul.msk.f32.vlgmr.msra.gmra.mxu1 %vm375_vm1, %v327_v16  ;;  %493 = vmatpush.msrb.mxu0 %v3625_v36  ;;  %v3657_v45 = vld [vmem:[%s5040_s2 + $0x8] sm:$0xff] }
  0x44   : > { %516 = vmatpush.msrb.mxu1 %v3633_v37  ;;  %553 = vmatpush.msrb.mxu2 %v3344_v48  ;;  %v3664_v48 = vld [vmem:[%s5040_s2 + $0x10] sm:$0xff] }
  0x45   : > { %576 = vmatpush.msrb.mxu3 %v3349_v49  ;;  %2600 = vmatmul.msk.f32.vlgmr.msra.gmra.mxu2 %vm375_vm1, %v327_v16  ;;  %v279_v49 = vsel %vm277_vm4, %v3586_v42, 0.0 }
  0x46   : > { %2602 = vmatmul.msk.f32.vlgmr.msra.gmra.mxu3 %vm375_vm1, %v278_v40  ;;  %494 = vmatpush.msrb.mxu0 %v3643_v41 }
  0x47   : > { %517 = vmatpush.msrb.mxu1 %v3650_v44  ;;  %554 = vmatpush.msrb.mxu2 %v3374_v52 }
  0x48   : > { %577 = vmatpush.msrb.mxu3 %v3379_v53  ;;  %495 = vmatpush.msrb.mxu0 %v3657_v45 }
  0x49   : > { %518 = vmatpush.msrb.mxu1 %v3664_v48  ;;  %555 = vmatpush.msrb.mxu2 %v3398_v56 }
  0x4a   : > { %578 = vmatpush.msrb.mxu3 %v3403_v57  ;;  %2604 = vmatmul.msk.f32.vlgmr.msrb.gmra.mxu0 %vm375_vm1, %v278_v40 }
  0x4b   : > { %616 = vmatpush.msra.mxu1 %v3077_v3  ;;  %639 = vmatpush.msra.mxu2 %v3428_v60  ;;  %v533_v3 = vsel %vm531_vm6, %v3586_v42, 0.0 }
  0x4c   : > { %662 = vmatpush.msra.mxu3 %v3433_v61  ;;  %2599 = vmatmul.msk.f32.gmra.mxu1 %vm375_vm1, %v328_v32  ;;  %v2620_v61 = vld [vmem:[%s5041_s3 + $0xa0] sm:$0xff] }
  0x4d   : > { %617 = vmatpush.msra.mxu1 %v3099_v7  ;;  %640 = vmatpush.msra.mxu2 %v3442_v62  ;;  %v5063_v7 = vld [vmem:[#allocation2_spill] sm:$0xff]  ;;  %v2623_v62 = vld [vmem:[%s5041_s3 + $0xb8] sm:$0xf] }
  0x4e   : > { %663 = vmatpush.msra.mxu3 %v3447_v63  ;;  %2601 = vmatmul.msk.f32.gmra.mxu2 %vm375_vm1, %v328_v32  ;;  %v686_v32 = vld [vmem:[%s5041_s3 + $0x10] sm:$0xff] }
  0x4f   : > { %618 = vmatpush.msra.mxu1 %v3121_v11  ;;  %641 = vmatpush.msra.mxu2 %v3457_v58  ;;  %v528_v11 = vsel %vm526_vm7, %v3522_v59, 0.0 }
  0x50   : > { %664 = vmatpush.msra.mxu3 %v3462_v54  ;;  %587 = vmatpush.msra.mxu0 %v3070_v2  ;;  %v532_v2 = vsel %vm530_vm5, %v3522_v59, 0.0 }
  0x51   : > { %2603 = vmatmul.msk.f32.gmra.mxu3 %vm375_vm1, %v279_v49  ;;  %619 = vmatpush.msra.mxu1 %v3145_v15  ;;  %v5066_v15 = vld [vmem:[#allocation9_spill] sm:$0xff] }
  0x52   : > { %642 = vmatpush.msra.mxu2 %v3476_v0  ;;  %665 = vmatpush.msra.mxu3 %v3481_v1 }
  0x53   : > { %2605 = vmatmul.msk.f32.gmra.mxu0 %vm375_vm1, %v279_v49  ;;  %620 = vmatpush.msra.mxu1 %v3169_v19  ;;  %v5068_v19 = vld [vmem:[#allocation6_spill] sm:$0xff] }
  0x54   : > { %588 = vmatpush.msra.mxu0 %v3094_v6  ;;  %643 = vmatpush.msra.mxu2 %v3490_v4  ;;  %v5062_v6 = vld [vmem:[#allocation5_spill] sm:$0xff] }
  0x55   : > { %666 = vmatpush.msra.mxu3 %v3495_v5  ;;  %621 = vmatpush.msra.mxu1 %v3193_v23  ;;  %v5069_v23 = vld [vmem:[#allocation8_spill] sm:$0xff] }
  0x56   : > { %589 = vmatpush.msra.mxu0 %v3116_v10  ;;  %644 = vmatpush.msra.mxu2 %v3512_v8  ;;  %v5064_v10 = vld [vmem:[#allocation7_spill] sm:$0xff] }
  0x57   : > { %667 = vmatpush.msra.mxu3 %v3517_v9  ;;  %2606 = vmatmul.msk.f32.vlgmr.msrb.gmra.mxu1 %vm375_vm1, %v278_v40  ;;  %v2730_v40 = vld [vmem:[%s5042_s4 + $0x270] sm:$0xff] }
  0x58   : > { %590 = vmatpush.msra.mxu0 %v3140_v14  ;;  %622 = vmatpush.msra.mxu1 %v3217_v27  ;;  %v5065_v14 = vld [vmem:[#allocation3_spill] sm:$0xff] }
  0x59   : > { %645 = vmatpush.msra.mxu2 %v3530_v12  ;;  %668 = vmatpush.msra.mxu3 %v3535_v13 }
  0x5a   : > { %2608 = vmatmul.msk.f32.vlgmr.msrb.gmra.mxu2 %vm375_vm1, %v532_v2  ;;  %2610 = vmatmul.msk.f32.vlgmr.msrb.gmra.mxu3 %vm375_vm1, %v532_v2 }
  0x5b   : > { %591 = vmatpush.msra.mxu0 %v3164_v18  ;;  %623 = vmatpush.msra.mxu1 %v3241_v31  ;;  %v5067_v18 = vld [vmem:[#allocation4_spill] sm:$0xff] }
  0x5c   : > { %646 = vmatpush.msra.mxu2 %v3552_v46  ;;  %669 = vmatpush.msra.mxu3 %v3545_v17 }
  0x5d   : > { %592 = vmatpush.msra.mxu0 %v3188_v22  ;;  %624 = vmatpush.msra.mxu1 %v3265_v35  ;;  %v529_v22 = vsel %vm527_vm8, %v3586_v42, 0.0 }
  0x5e   : > { %647 = vmatpush.msra.mxu2 %v3569_v55  ;;  %670 = vmatpush.msra.mxu3 %v3559_v20  ;;  %v2621_v20 = vld [vmem:[%s5041_s3 + $0xa8] sm:$0xff] }
  0x5f   : > { %593 = vmatpush.msra.mxu0 %v3212_v26  ;;  %625 = vmatpush.msra.mxu1 %v3289_v39 }
  0x60   : > { %648 = vmatpush.msra.mxu2 %v3583_v25  ;;  %671 = vmatpush.msra.mxu3 %v3576_v24  ;;  %v684_v25 = vld [vmem:[%s5041_s3] sm:$0xff] }
  0x61   : > { %2607 = vmatmul.msk.f32.gmra.mxu1 %vm375_vm1, %v279_v49  ;;  %594 = vmatpush.msra.mxu0 %v3236_v30  ;;  %v2728_v49 = vld [vmem:[%s5042_s4 + $0x260] sm:$0xff] }
  0x62   : > { %626 = vmatpush.msra.mxu1 %v3313_v43  ;;  %649 = vmatpush.msra.mxu2 %v3601_v29  ;;  %v685_v29 = vld [vmem:[%s5041_s3 + $0x8] sm:$0xff] }
  0x63   : > { %672 = vmatpush.msra.mxu3 %v3594_v28  ;;  %2609 = vmatmul.msk.f32.gmra.mxu2 %vm375_vm1, %v533_v3  ;;  %v2622_v28 = vld [vmem:[%s5041_s3 + $0xb0] sm:$0xff] }
  0x64   : > { %2611 = vmatmul.msk.f32.gmra.mxu3 %vm375_vm1, %v533_v3  ;;  %595 = vmatpush.msra.mxu0 %v3260_v34 }
  0x65   : > { %627 = vmatpush.msra.mxu1 %v3337_v47  ;;  %650 = vmatpush.msra.mxu2 %v3611_v33  ;;  %v687_v33 = vld [vmem:[%s5041_s3 + $0x18] sm:$0xf] }
  0x66   : > { %673 = vmatpush.msra.mxu3 %v3616_v51  ;;  %596 = vmatpush.msra.mxu0 %v3284_v38 }
  0x67   : > { %628 = vmatpush.msra.mxu1 %v5062_v6  ;;  %651 = vmatpush.msra.mxu2 %v3625_v36  ;;  %v2658_v36 = vld [vmem:[%s5041_s3 + $0xc0] sm:$0xff] }
  0x68   : > { %674 = vmatpush.msra.mxu3 %v3633_v37  ;;  %597 = vmatpush.msra.mxu0 %v5063_v7  ;;  %v2731_v37 = vld [vmem:[%s5042_s4 + $0x278] sm:$0xff]  ;;  %v923_v6 = vld [vmem:[%s5042_s4 + $0x60] sm:$0xff]  ;;  %v2726_v7 = vld [vmem:[%s5042_s4 + $0x250] sm:$0xff] }
  0x69   : > { %629 = vmatpush.msra.mxu1 %v5064_v10  ;;  %652 = vmatpush.msra.mxu2 %v3643_v41  ;;  %v2729_v41 = vld [vmem:[%s5042_s4 + $0x268] sm:$0xff]  ;;  %v922_v10 = vld [vmem:[%s5042_s4 + $0x58] sm:$0xff] }
  0x6a   : > { %675 = vmatpush.msra.mxu3 %v3650_v44  ;;  %598 = vmatpush.msra.mxu0 %v5065_v14  ;;  %v926_v44 = vld [vmem:[%s5042_s4 + $0x78] sm:$0xff]  ;;  %v921_v14 = vld [vmem:[%s5042_s4 + $0x50] sm:$0xff] }
  0x6b   : > { %630 = vmatpush.msra.mxu1 %v5066_v15  ;;  %653 = vmatpush.msra.mxu2 %v3657_v45  ;;  %v2659_v45 = vld [vmem:[%s5041_s3 + $0xc8] sm:$0xff] }
  0x6c   : > { %676 = vmatpush.msra.mxu3 %v3664_v48  ;;  %2614 = vmatmul.msk.f32.vlgmr.msra.gmra.mxu1 %vm375_vm1, %v528_v11  ;;  %v925_v48 = vld [vmem:[%s5042_s4 + $0x70] sm:$0xff]  ;;  %v2725_v15 = vld [vmem:[%s5042_s4 + $0x248] sm:$0xff] }
  0x6d   : > { %2616 = vmatmul.msk.f32.vlgmr.msra.gmra.mxu2 %vm375_vm1, %v528_v11  ;;  %2618 = vmatmul.msk.f32.vlgmr.msra.gmra.mxu3 %vm375_vm1, %v528_v11  ;;  %v2660_v11 = vld [vmem:[%s5041_s3 + $0xd0] sm:$0xff] }
  0x6e   : > { %599 = vmatpush.msra.mxu0 %v5067_v18  ;;  %v920_v18 = vld [vmem:[%s5042_s4 + $0x48] sm:$0xff] }
  0x70   : > { %600 = vmatpush.msra.mxu0 %v5068_v19  ;;  %v2724_v19 = vld [vmem:[%s5042_s4 + $0x240] sm:$0xff] }
  0x72   : > { %601 = vmatpush.msra.mxu0 %v5069_v23  ;;  %v2654_v23 = vld [vmem:[%s5041_s3 + $0x20] sm:$0xff] }
  0x73   : > { %2612 = vmatmul.msk.f32.vlgmr.msra.gmra.mxu0 %vm375_vm1, %v532_v2  ;;  %v924_v2 = vld [vmem:[%s5042_s4 + $0x68] sm:$0xff] }
  0x74   : > { %2615 = vmatmul.msk.f32.gmra.mxu1 %vm375_vm1, %v529_v22 }
  0x75   : > { %2617 = vmatmul.msk.f32.gmra.mxu2 %vm375_vm1, %v529_v22  ;;  %2619 = vmatmul.msk.f32.gmra.mxu3 %vm375_vm1, %v529_v22  ;;  %v919_v22 = vld [vmem:[%s5042_s4 + $0x40] sm:$0xff] }
  0x7b   : > { %2613 = vmatmul.msk.f32.gmra.mxu0 %vm375_vm1, %v533_v3  ;;  %v2727_v3 = vld [vmem:[%s5042_s4 + $0x258] sm:$0xff] }
  0xb5   : > { %v399_v30 = vpop.f32.mrf.mxu0 }
  0xbd   : > { %v402_v38 = vpop.f32.mrf.mxu0 }
  0xc0   : > { %v422_v26 = vpop.f32.mrf.mxu1 }
  0xc7   : > { %v497_v47 = vpop.f32.mrf.mxu0 }
  0xc8   : > { %v445_v27 = vpop.f32.mrf.mxu2  ;;  %v3782_v0 = vadd.f32 %v497_v47, %v422_v26  ;;  %v918_v26 = vld [vmem:[%s5042_s4 + $0x38] sm:$0xff] }
  0xc9   : > { %v474_v31 = vpop.f32.mrf.mxu3  ;;  %v425_v34 = vpop.f32.mrf.mxu1  ;;  %v2657_v47 = vld [vmem:[%s5041_s3 + $0x38] sm:$0xf] }
  0xca   : > { %v3816_v21 = vadd.f32 %v474_v31, %v399_v30  ;;  %v917_v30 = vld [vmem:[%s5042_s4 + $0x30] sm:$0xff]  ;;  %v916_v31 = vld [vmem:[%s5042_s4 + $0x28] sm:$0xff] }
  0xd0   : > { %v500_v53 = vpop.f32.mrf.mxu0 }
  0xd1   : > { %v448_v35 = vpop.f32.mrf.mxu2  ;;  %v3776_v63 = vadd.f32 %v500_v53, %v425_v34  ;;  %v915_v34 = vld [vmem:[%s5042_s4 + $0x20] sm:$0xff] }
  0xd2   : > { %v2704_v53 = vld [vmem:[%s5042_s4 + $0x1a0] sm:$0xff] }
  0xd4   : > { %v477_v39 = vpop.f32.mrf.mxu3  ;;  %v520_v42 = vpop.f32.mrf.mxu1 }
  0xd5   : > { %v3805_v16 = vadd.f32 %v477_v39, %v402_v38  ;;  %v3822_v24 = vadd.f32 %v520_v42, %v445_v27  ;;  %v2661_v27 = vld [vmem:[%s5041_s3 + $0xd8] sm:$0xf]  ;;  %v913_v39 = vld [vmem:[%s5042_s4 + $0x10] sm:$0xff]  ;;  %v912_v42 = vld [vmem:[%s5042_s4 + $0x8] sm:$0xff] }
  0xd6   : > { %v914_v38 = vld [vmem:[%s5042_s4 + $0x18] sm:$0xff] }
  0xdd   : > { %v557_v43 = vpop.f32.mrf.mxu2  ;;  %v580_v46 = vpop.f32.mrf.mxu3 }
  0xde   : > { %v523_v50 = vpop.f32.mrf.mxu1 }
  0xdf   : > { %v3807_v17 = vadd.f32 %v523_v50, %v448_v35  ;;  %v2655_v35 = vld [vmem:[%s5041_s3 + $0x28] sm:$0xff]  ;;  %v2707_v50 = vld [vmem:[%s5042_s4 + $0x1b8] sm:$0xff] }
  0xe6   : > { %v560_v51 = vpop.f32.mrf.mxu2 }
  0xe7   : > { %v583_v52 = vpop.f32.mrf.mxu3 }
  0xe9   : > { %v632_v54 = vpop.f32.mrf.mxu1 }
  0xea   : > { %v3764_v60 = vadd.f32 %v632_v54, %v557_v43  ;;  %v911_v43 = vld [vmem:[%s5042_s4] sm:$0xff]  ;;  %v2703_v54 = vld [vmem:[%s5042_s4 + $0x198] sm:$0xff] }
  0xf0   : > { %v603_v55 = vpop.f32.mrf.mxu0  ;;  %v655_v56 = vpop.f32.mrf.mxu2 }
  0xf1   : > { %v678_v57 = vpop.f32.mrf.mxu3  ;;  %v635_v58 = vpop.f32.mrf.mxu1  ;;  %v3791_v12 = vadd.f32 %v655_v56, %v580_v46  ;;  %v2656_v46 = vld [vmem:[%s5041_s3 + $0x30] sm:$0xff]  ;;  %v2701_v56 = vld [vmem:[%s5042_s4 + $0x188] sm:$0xff] }
  0xf2   : > { %v3762_v59 = vadd.f32 %v635_v58, %v560_v51  ;;  %v3797_v13 = vadd.f32 %v678_v57, %v603_v55  ;;  %v2706_v51 = vld [vmem:[%s5042_s4 + $0x1b0] sm:$0xff]  ;;  %v2700_v57 = vld [vmem:[%s5042_s4 + $0x180] sm:$0xff]  ;;  %v2699_v58 = vld [vmem:[%s5042_s4 + $0x178] sm:$0xff] }
  0xf3   : > { %v2702_v55 = vld [vmem:[%s5042_s4 + $0x190] sm:$0xff] }
  0xf4   : > { %2624 = vmatpush.msk.msrb.mxu0 %vm706_vm9, %v3762_v59  ;;  %2991 = vmatpush.msk.msrb.mxu2 %vm706_vm9, %v3762_v59 }
  0xf6   : > { %731 = vmatpush.msrb.mxu0 %v3764_v60  ;;  %2992 = vmatpush.msrb.mxu2 %v3764_v60 }
  0xf7   : > { %2625 = vmatmul.msk.f32.vlgmr.msrb.gmra.mxu0 %vm693_vm10, %v2620_v61  ;;  %2628 = vmatmul.msk.f32.vlgmr.msrb.gmra.mxu2 %vm693_vm10, %v2623_v62 }
  0xf8   : > { %v606_v1 = vpop.f32.mrf.mxu0  ;;  %v658_v4 = vpop.f32.mrf.mxu2  ;;  %2644 = vmatpush.msk.msra.mxu0 %vm706_vm9, %v3776_v63 }
  0xf9   : > { %v3786_v5 = vadd.f32 %v658_v4, %v583_v52  ;;  %v681_v8 = vpop.f32.mrf.mxu3  ;;  %v2705_v52 = vld [vmem:[%s5042_s4 + $0x1a8] sm:$0xff]  ;;  %v2695_v4 = vld [vmem:[%s5042_s4 + $0x158] sm:$0xff] }
  0xfa   : > { %v3788_v9 = vadd.f32 %v681_v8, %v606_v1  ;;  %868 = vmatpush.msra.mxu0 %v3782_v0  ;;  %v2696_v1 = vld [vmem:[%s5042_s4 + $0x160] sm:$0xff]  ;;  %v2694_v8 = vld [vmem:[%s5042_s4 + $0x150] sm:$0xff] }
  0xfb   : > { %2629 = vmatpush.msk.msrb.mxu1 %vm706_vm9, %v3786_v5  ;;  %2993 = vmatpush.msk.msrb.mxu3 %vm706_vm9, %v3786_v5 }
  0xfc   : > { %2634 = vmatpush.msk.msra.mxu2 %vm706_vm9, %v3788_v9  ;;  %2672 = vmatpush.msk.msrb.mxu0 %vm706_vm9, %v3788_v9 }
  0xfd   : > { %760 = vmatpush.msrb.mxu1 %v3791_v12  ;;  %2994 = vmatpush.msrb.mxu3 %v3791_v12 }
  0xfe   : > { %789 = vmatpush.msra.mxu2 %v3797_v13  ;;  %1046 = vmatpush.msrb.mxu0 %v3797_v13 }
  0xff   : > { %2630 = vmatmul.msk.f32.vlgmr.msrb.gmra.mxu1 %vm693_vm10, %v2620_v61  ;;  %2633 = vmatmul.msk.f32.vlgmr.msrb.gmra.mxu3 %vm693_vm10, %v2623_v62 }
 0x100   : > { %2639 = vmatpush.msk.msra.mxu3 %vm706_vm9, %v3805_v16  ;;  %2649 = vmatpush.msk.msra.mxu1 %vm706_vm9, %v3807_v17 }
 0x101   : > { %2662 = vmatpush.msk.msrb.mxu2 %vm706_vm9, %v3762_v59  ;;  %2626 = vmatmul.msk.f32.gmra.mxu0 %vm693_vm10, %v2621_v20 }
 0x102   : > { %2635 = vmatmul.msk.f32.vlgmr.msra.gmra.mxu2 %vm693_vm10, %v2620_v61  ;;  %839 = vmatpush.msra.mxu3 %v3816_v21  ;;  %v2698_v61 = vld [vmem:[%s5042_s4 + $0x170] sm:$0xff] }
 0x103   : > { %897 = vmatpush.msra.mxu1 %v3822_v24  ;;  %988 = vmatpush.msrb.mxu2 %v3764_v60 }
 0x104   : > { %2667 = vmatpush.msk.msrb.mxu3 %vm706_vm9, %v3786_v5 }
 0x105   : > { %2677 = vmatpush.msk.msrb.mxu1 %vm706_vm9, %v3805_v16  ;;  %2682 = vmatpush.msk.msra.mxu2 %vm706_vm9, %v3776_v63 }
 0x106   : > { %1017 = vmatpush.msrb.mxu3 %v3791_v12 }
 0x107   : > { %1087 = vmatpush.msrb.mxu1 %v3816_v21  ;;  %1116 = vmatpush.msra.mxu2 %v3782_v0 }
 0x108   : > { %2631 = vmatmul.msk.f32.gmra.mxu1 %vm693_vm10, %v2621_v20  ;;  %2640 = vmatmul.msk.f32.vlgmr.msra.gmra.mxu3 %vm693_vm10, %v684_v25 }
 0x109   : > { %2687 = vmatpush.msk.msra.mxu3 %vm706_vm9, %v3807_v17  ;;  %2627 = vmatmul.msk.f32.gmra.mxu0 %vm693_vm10, %v2622_v28 }
 0x10a   : > { %2636 = vmatmul.msk.f32.gmra.mxu2 %vm693_vm10, %v2621_v20  ;;  %v2693_v20 = vld [vmem:[%s5042_s4 + $0x148] sm:$0xff] }
 0x10b   : > { %1145 = vmatpush.msra.mxu3 %v3822_v24 }
 0x110   : > { %2632 = vmatmul.msk.f32.gmra.mxu1 %vm693_vm10, %v2622_v28  ;;  %2641 = vmatmul.msk.f32.gmra.mxu3 %vm693_vm10, %v685_v29 }
 0x111   : > { %2645 = vmatmul.msk.f32.vlgmr.msra.gmra.mxu0 %vm693_vm10, %v684_v25 }
 0x112   : > { %2637 = vmatmul.msk.f32.gmra.mxu2 %vm693_vm10, %v2622_v28  ;;  %1213 = vmatpush.msra.mxu0 %v2707_v50  ;;  %v2723_v28 = vld [vmem:[%s5042_s4 + $0x238] sm:$0xff] }
 0x113   : > { %v2711_v50 = vld [vmem:[%s5042_s4 + $0x1d8] sm:$0xff] }
 0x114   : > { %1214 = vmatpush.msra.mxu0 %v2706_v51 }
 0x116   : > { %1215 = vmatpush.msra.mxu0 %v2705_v52 }
 0x118   : > { %2650 = vmatmul.msk.f32.vlgmr.msra.gmra.mxu1 %vm693_vm10, %v684_v25  ;;  %2642 = vmatmul.msk.f32.gmra.mxu3 %vm693_vm10, %v686_v32  ;;  %v2692_v25 = vld [vmem:[%s5042_s4 + $0x140] sm:$0xff] }
 0x119   : > { %2646 = vmatmul.msk.f32.gmra.mxu0 %vm693_vm10, %v685_v29  ;;  %1242 = vmatpush.msra.mxu1 %v2723_v28 }
 0x11a   : > { %2638 = vmatmul.msk.f32.gmra.mxu2 %vm693_vm10, %v2623_v62  ;;  %1216 = vmatpush.msra.mxu0 %v2704_v53  ;;  %v2697_v62 = vld [vmem:[%s5042_s4 + $0x168] sm:$0xff]  ;;  %v929_v53 = vld [vmem:[%s5042_s4 + $0x90] sm:$0xff] }
 0x11c   : > { %1217 = vmatpush.msra.mxu0 %v2703_v54  ;;  %v2710_v54 = vld [vmem:[%s5042_s4 + $0x1d0] sm:$0xff] }
 0x11e   : > { %1218 = vmatpush.msra.mxu0 %v2702_v55 }
 0x120   : > { %2651 = vmatmul.msk.f32.gmra.mxu1 %vm693_vm10, %v685_v29  ;;  %2643 = vmatmul.msk.f32.gmra.mxu3 %vm693_vm10, %v687_v33  ;;  %v942_v29 = vld [vmem:[%s5042_s4 + $0xf8] sm:$0xff] }
 0x121   : > { %2647 = vmatmul.msk.f32.gmra.mxu0 %vm693_vm10, %v686_v32 }
 0x122   : > { %2663 = vmatmul.msk.f32.vlgmr.msrb.gmra.mxu2 %vm693_vm10, %v2658_v36  ;;  %1219 = vmatpush.msra.mxu0 %v2701_v56 }
 0x123   : > { %1279 = vmatpush.msrb.mxu2 %v2731_v37 }
 0x124   : > { %1220 = vmatpush.msra.mxu0 %v2700_v57 }
 0x125   : > { %1280 = vmatpush.msrb.mxu2 %v2730_v40  ;;  %v940_v40 = vld [vmem:[%s5042_s4 + $0xe8] sm:$0xff] }
 0x126   : > { %1221 = vmatpush.msra.mxu0 %v2699_v58  ;;  %v928_v58 = vld [vmem:[%s5042_s4 + $0x88] sm:$0xff] }
 0x127   : > { %1281 = vmatpush.msrb.mxu2 %v2729_v41  ;;  %v2721_v41 = vld [vmem:[%s5042_s4 + $0x228] sm:$0xff] }
 0x128   : > { %2652 = vmatmul.msk.f32.gmra.mxu1 %vm693_vm10, %v686_v32  ;;  %2668 = vmatmul.msk.f32.vlgmr.msrb.gmra.mxu3 %vm693_vm10, %v2658_v36 }
 0x129   : > { %1312 = vmatpush.msrb.mxu3 %v926_v44  ;;  %2648 = vmatmul.msk.f32.gmra.mxu0 %vm693_vm10, %v687_v33  ;;  %v939_v44 = vld [vmem:[%s5042_s4 + $0xe0] sm:$0xff] }
 0x12a   : > { %2664 = vmatmul.msk.f32.gmra.mxu2 %vm693_vm10, %v2659_v45  ;;  %1222 = vmatpush.msra.mxu0 %v2698_v61  ;;  %v2709_v61 = vld [vmem:[%s5042_s4 + $0x1c8] sm:$0xff] }
 0x12b   : > { %1313 = vmatpush.msrb.mxu3 %v925_v48  ;;  %1282 = vmatpush.msrb.mxu2 %v2728_v49  ;;  %v938_v49 = vld [vmem:[%s5042_s4 + $0xd8] sm:$0xff] }
 0x12c   : > { %1223 = vmatpush.msra.mxu0 %v2697_v62  ;;  %v927_v62 = vld [vmem:[%s5042_s4 + $0x80] sm:$0xff] }
 0x12d   : > { %1314 = vmatpush.msrb.mxu3 %v924_v2  ;;  %1283 = vmatpush.msrb.mxu2 %v2727_v3  ;;  %v2719_v2 = vld [vmem:[%s5042_s4 + $0x218] sm:$0xff] }
 0x12e   : > { %1224 = vmatpush.msra.mxu0 %v2696_v1  ;;  %v2708_v1 = vld [vmem:[%s5042_s4 + $0x1c0] sm:$0xff] }
 0x12f   : > { %1315 = vmatpush.msrb.mxu3 %v923_v6  ;;  %1284 = vmatpush.msrb.mxu2 %v2726_v7  ;;  %v937_v6 = vld [vmem:[%s5042_s4 + $0xd0] sm:$0xff] }
 0x130   : > { %2653 = vmatmul.msk.f32.gmra.mxu1 %vm693_vm10, %v687_v33  ;;  %2669 = vmatmul.msk.f32.gmra.mxu3 %vm693_vm10, %v2659_v45  ;;  %v941_v33 = vld [vmem:[%s5042_s4 + $0xf0] sm:$0xff] }
 0x131   : > { %1316 = vmatpush.msrb.mxu3 %v922_v10  ;;  %2673 = vmatmul.msk.f32.vlgmr.msrb.gmra.mxu0 %vm693_vm10, %v2658_v36  ;;  %v2722_v36 = vld [vmem:[%s5042_s4 + $0x230] sm:$0xff] }
 0x132   : > { %2665 = vmatmul.msk.f32.gmra.mxu2 %vm693_vm10, %v2660_v11  ;;  %1225 = vmatpush.msra.mxu0 %v2695_v4  ;;  %v2718_v7 = vld [vmem:[%s5042_s4 + $0x210] sm:$0xff]  ;;  %v950_v4 = vld [vmem:[%s5042_s4 + $0x138] sm:$0xff] }
 0x133   : > { %1317 = vmatpush.msrb.mxu3 %v921_v14  ;;  %1285 = vmatpush.msrb.mxu2 %v2725_v15  ;;  %v936_v14 = vld [vmem:[%s5042_s4 + $0xc8] sm:$0xff] }
 0x134   : > { %1226 = vmatpush.msra.mxu0 %v2694_v8  ;;  %1243 = vmatpush.msra.mxu1 %v2722_v36  ;;  %v2717_v15 = vld [vmem:[%s5042_s4 + $0x208] sm:$0xff] }
 0x135   : > { %1318 = vmatpush.msrb.mxu3 %v920_v18  ;;  %1286 = vmatpush.msrb.mxu2 %v2724_v19  ;;  %v935_v18 = vld [vmem:[%s5042_s4 + $0xc0] sm:$0xff]  ;;  %v948_v36 = vld [vmem:[%s5042_s4 + $0x128] sm:$0xff] }
 0x136   : > { %1227 = vmatpush.msra.mxu0 %v2693_v20  ;;  %1244 = vmatpush.msra.mxu1 %v2721_v41  ;;  %v2716_v19 = vld [vmem:[%s5042_s4 + $0x200] sm:$0xff]  ;;  %v949_v20 = vld [vmem:[%s5042_s4 + $0x130] sm:$0xff]  ;;  %v946_v41 = vld [vmem:[%s5042_s4 + $0x118] sm:$0xff] }
 0x137   : > { %1319 = vmatpush.msrb.mxu3 %v919_v22  ;;  %v934_v22 = vld [vmem:[%s5042_s4 + $0xb8] sm:$0xff] }
 0x138   : > { %2678 = vmatmul.msk.f32.vlgmr.msrb.gmra.mxu1 %vm693_vm10, %v2654_v23  ;;  %2670 = vmatmul.msk.f32.gmra.mxu3 %vm693_vm10, %v2660_v11 }
 0x139   : > { %1320 = vmatpush.msrb.mxu3 %v918_v26  ;;  %2674 = vmatmul.msk.f32.gmra.mxu0 %vm693_vm10, %v2659_v45  ;;  %v2720_v45 = vld [vmem:[%s5042_s4 + $0x220] sm:$0xff] }
 0x13a   : > { %2666 = vmatmul.msk.f32.gmra.mxu2 %vm693_vm10, %v2661_v27  ;;  %1228 = vmatpush.msra.mxu0 %v2692_v25 }
 0x13b   : > { %1321 = vmatpush.msrb.mxu3 %v917_v30  ;;  %1245 = vmatpush.msra.mxu1 %v2720_v45  ;;  %v933_v30 = vld [vmem:[%s5042_s4 + $0xb0] sm:$0xff] }
 0x13c   : > { %1341 = vmatpush.msrb.mxu0 %v942_v29  ;;  %v945_v45 = vld [vmem:[%s5042_s4 + $0x110] sm:$0xff] }
 0x13d   : > { %1322 = vmatpush.msrb.mxu3 %v916_v31  ;;  %1246 = vmatpush.msra.mxu1 %v2719_v2  ;;  %v2714_v31 = vld [vmem:[%s5042_s4 + $0x1f0] sm:$0xff] }
 0x13e   : > { %1342 = vmatpush.msrb.mxu0 %v941_v33 }
 0x13f   : > { %1323 = vmatpush.msrb.mxu3 %v915_v34  ;;  %1247 = vmatpush.msra.mxu1 %v2718_v7  ;;  %v943_v7 = vld [vmem:[%s5042_s4 + $0x100] sm:$0xff] }
 0x140   : > { %2679 = vmatmul.msk.f32.gmra.mxu1 %vm693_vm10, %v2655_v35  ;;  %2671 = vmatmul.msk.f32.gmra.mxu3 %vm693_vm10, %v2661_v27 }
 0x141   : > { %1324 = vmatpush.msrb.mxu3 %v914_v38  ;;  %2675 = vmatmul.msk.f32.gmra.mxu0 %vm693_vm10, %v2660_v11 }
 0x142   : > { %2683 = vmatmul.msk.f32.vlgmr.msra.gmra.mxu2 %vm693_vm10, %v2654_v23  ;;  %1343 = vmatpush.msrb.mxu0 %v940_v40  ;;  %v947_v40 = vld [vmem:[%s5042_s4 + $0x120] sm:$0xff] }
 0x143   : > { %2748 = vmatpush.msk.msra.mxu2 %vm706_vm9, %v3762_v59  ;;  %1325 = vmatpush.msrb.mxu3 %v913_v39  ;;  %v932_v39 = vld [vmem:[%s5042_s4 + $0xa8] sm:$0xff] }
 0x144   : > { %1344 = vmatpush.msrb.mxu0 %v939_v44  ;;  %1248 = vmatpush.msra.mxu1 %v2717_v15 }
 0x145   : > { %1436 = vmatpush.msra.mxu2 %v3764_v60  ;;  %1326 = vmatpush.msrb.mxu3 %v912_v42  ;;  %v2713_v42 = vld [vmem:[%s5042_s4 + $0x1e8] sm:$0xff] }
 0x146   : > { %1345 = vmatpush.msrb.mxu0 %v938_v49  ;;  %1249 = vmatpush.msra.mxu1 %v2716_v19 }
 0x147   : > { %1327 = vmatpush.msrb.mxu3 %v911_v43  ;;  %v931_v43 = vld [vmem:[%s5042_s4 + $0xa0] sm:$0xff] }
 0x148   : > { %2680 = vmatmul.msk.f32.gmra.mxu1 %vm693_vm10, %v2656_v46  ;;  %2688 = vmatmul.msk.f32.vlgmr.msra.gmra.mxu3 %vm693_vm10, %v2654_v23  ;;  %v2715_v23 = vld [vmem:[%s5042_s4 + $0x1f8] sm:$0xff] }
 0x149   : > { %2753 = vmatpush.msk.msra.mxu3 %vm706_vm9, %v3786_v5  ;;  %2676 = vmatmul.msk.f32.gmra.mxu0 %vm693_vm10, %v2661_v27 }
 0x14a   : > { %2684 = vmatmul.msk.f32.gmra.mxu2 %vm693_vm10, %v2655_v35  ;;  %1346 = vmatpush.msrb.mxu0 %v937_v6  ;;  %v944_v6 = vld [vmem:[%s5042_s4 + $0x108] sm:$0xff] }
 0x14b   : > { %1465 = vmatpush.msra.mxu3 %v3791_v12  ;;  %1250 = vmatpush.msra.mxu1 %v2715_v23 }
 0x14c   : > { %1347 = vmatpush.msrb.mxu0 %v936_v14 }
 0x14d   : > { %1251 = vmatpush.msra.mxu1 %v2714_v31 }
 0x14e   : > { %1348 = vmatpush.msrb.mxu0 %v935_v18 }
 0x14f   : > { %1252 = vmatpush.msra.mxu1 %v2713_v42  ;;  %v4231_v42 = vld [vmem:[%s5041_s3 + $0xf0] sm:$0xff] }
 0x150   : > { %2681 = vmatmul.msk.f32.gmra.mxu1 %vm693_vm10, %v2657_v47  ;;  %2689 = vmatmul.msk.f32.gmra.mxu3 %vm693_vm10, %v2655_v35 }
 0x151   : > { %1349 = vmatpush.msrb.mxu0 %v934_v22 }
 0x152   : > { %2685 = vmatmul.msk.f32.gmra.mxu2 %vm693_vm10, %v2656_v46 }
 0x153   : > { %1350 = vmatpush.msrb.mxu0 %v933_v30 }
 0x155   : > { %1351 = vmatpush.msrb.mxu0 %v932_v39 }
 0x157   : > { %1352 = vmatpush.msrb.mxu0 %v931_v43 }
 0x158   : > { %2690 = vmatmul.msk.f32.gmra.mxu3 %vm693_vm10, %v2656_v46  ;;  %v2712_v46 = vld [vmem:[%s5042_s4 + $0x1e0] sm:$0xff] }
 0x159   : > { %1253 = vmatpush.msra.mxu1 %v2712_v46 }
 0x15a   : > { %2686 = vmatmul.msk.f32.gmra.mxu2 %vm693_vm10, %v2657_v47 }
 0x15b   : > { %1254 = vmatpush.msra.mxu1 %v2711_v50 }
 0x15d   : > { %1255 = vmatpush.msra.mxu1 %v2710_v54 }
 0x15f   : > { %1256 = vmatpush.msra.mxu1 %v2709_v61 }
 0x160   : > { %2691 = vmatmul.msk.f32.gmra.mxu3 %vm693_vm10, %v2657_v47  ;;  %v930_v47 = vld [vmem:[%s5042_s4 + $0x98] sm:$0xff] }
 0x161   : > { %1353 = vmatpush.msrb.mxu0 %v930_v47  ;;  %1257 = vmatpush.msra.mxu1 %v2708_v1 }
 0x163   : > { %1354 = vmatpush.msrb.mxu0 %v929_v53  ;;  %1378 = vmatpush.msrb.mxu1 %v950_v4 }
 0x165   : > { %1355 = vmatpush.msrb.mxu0 %v928_v58  ;;  %1379 = vmatpush.msrb.mxu1 %v949_v20 }
 0x167   : > { %1356 = vmatpush.msrb.mxu0 %v927_v62  ;;  %1380 = vmatpush.msrb.mxu1 %v948_v36  ;;  %v4248_v62 = vld [vmem:[%s5041_s3 + $0x40] sm:$0xff] }
 0x169   : > { %1381 = vmatpush.msrb.mxu1 %v947_v40 }
 0x16b   : > { %1382 = vmatpush.msrb.mxu1 %v946_v41  ;;  %v4262_v41 = vld [vmem:[%s5041_s3 + $0x48] sm:$0xff] }
 0x16d   : > { %1383 = vmatpush.msrb.mxu1 %v945_v45 }
 0x16f   : > { %1384 = vmatpush.msrb.mxu1 %v944_v6  ;;  %v2793_v6 = vld [vmem:[%s5042_s4 + $0x2f8] sm:$0xff] }
 0x171   : > { %1385 = vmatpush.msrb.mxu1 %v943_v7 }
 0x174   : > { %v733_v48 = vpop.f32.mrf.mxu0 }
 0x17a   : > { %v4056_v32 = vpop.f32.mrf.mxu2 }
 0x17c   : > { %v4064_v37 = vpop.f32.mrf.mxu1 }
 0x17e   : > { %v736_v26 = vpop.f32.mrf.mxu0 }
 0x182   : > { %v4084_v3 = vpop.f32.mrf.mxu3 }
 0x185   : > { %v4092_v10 = vpop.f32.mrf.mxu1  ;;  %v4094_v11 = vpop.f32.mrf.mxu2 }
 0x186   : > { %v739_v51 = vpop.f32.mrf.mxu0 }
 0x18b   : > { %v841_v27 = vpop.f32.mrf.mxu3 }
 0x18c   : > { %v842_v34 = vadd.f32 %v841_v27, %v733_v48 }
 0x18d   : > { %v4120_v35 = vpop.f32.mrf.mxu1  ;;  %v4122_v38 = vpop.f32.mrf.mxu2 }
 0x18e   : > { %1328 = vmatmul.f32.vlgmr.msrb.gmra.mxu3 %v842_v34  ;;  %v4175_v29 = vpop.f32.mrf.mxu0 }
 0x18f   : > { %2773 = vmatpush.msk.msrb.mxu3 %vm706_vm9, %v3807_v17 }
 0x191   : > { %1593 = vmatpush.msrb.mxu3 %v3822_v24 }
 0x193   : > { %v844_v52 = vpop.f32.mrf.mxu3 }
 0x194   : > { %v845_v56 = vadd.f32 %v844_v52, %v736_v26  ;;  %v4219_v26 = vld [vmem:[%s5041_s3 + $0xe8] sm:$0xff] }
 0x195   : > { %v4151_v55 = vpop.f32.mrf.mxu1  ;;  %v4153_v57 = vpop.f32.mrf.mxu2 }
 0x196   : > { %1331 = vmatmul.f32.gmra.mxu3 %v845_v56  ;;  %v4200_v14 = vpop.f32.mrf.mxu0 }
 0x19b   : > { %v847_v8 = vpop.f32.mrf.mxu3 }
 0x19c   : > { %v848_v28 = vadd.f32 %v847_v8, %v739_v51  ;;  %v4238_v51 = vld [vmem:[%s5041_s3 + $0xf8] sm:$0xf] }
 0x19d   : > { %v4173_v25 = vpop.f32.mrf.mxu1  ;;  %v4177_v33 = vpop.f32.mrf.mxu2 }
 0x19e   : > { %1334 = vmatmul.f32.gmra.mxu3 %v848_v28  ;;  %v4213_v22 = vpop.f32.mrf.mxu0 }
 0x1a3   : > { %v850_v44 = vpop.f32.mrf.mxu3 }
 0x1a4   : > { %v851_v49 = vadd.f32 %v850_v44, %v4056_v32  ;;  %v4205_v32 = vld [vmem:[%s5041_s3 + $0xe0] sm:$0xff] }
 0x1a5   : > { %v4191_v48 = vpop.f32.mrf.mxu1  ;;  %v990_v2 = vpop.f32.mrf.mxu2 }
 0x1a6   : > { %1337 = vmatmul.f32.gmra.mxu3 %v851_v49  ;;  %v4226_v34 = vpop.f32.mrf.mxu0  ;;  %v871_v49 = vadd.f32 %v4175_v29, %v4064_v37  ;;  %v2791_v37 = vld [vmem:[%s5042_s4 + $0x2e8] sm:$0xff] }
 0x1ab   : > { %v1019_v15 = vpop.f32.mrf.mxu3 }
 0x1ad   : > { %v4207_v18 = vpop.f32.mrf.mxu1  ;;  %v993_v19 = vpop.f32.mrf.mxu2 }
 0x1ae   : > { %2754 = vmatmul.msk.f32.vlgmr.msra.gmra.mxu3 %vm693_vm10, %v4205_v32  ;;  %v1048_v52 = vpop.f32.mrf.mxu0 }
 0x1af   : > { %2830 = vmatpush.msk.msra.mxu3 %vm706_vm9, %v3762_v59 }
 0x1b1   : > { %1788 = vmatpush.msra.mxu3 %v3764_v60 }
 0x1b3   : > { %v1022_v23 = vpop.f32.mrf.mxu3 }
 0x1b5   : > { %v1089_v27 = vpop.f32.mrf.mxu1  ;;  %v996_v30 = vpop.f32.mrf.mxu2 }
 0x1b6   : > { %v1090_v31 = vadd.f32 %v1089_v27, %v990_v2  ;;  %2755 = vmatmul.msk.f32.gmra.mxu3 %vm693_vm10, %v4219_v26  ;;  %v1051_v28 = vpop.f32.mrf.mxu0  ;;  %v2790_v27 = vld [vmem:[%s5042_s4 + $0x2e0] sm:$0xff] }
 0x1b8   : > { %1229 = vmatmul.f32.vlgmr.msra.gmra.mxu0 %v1090_v31 }
 0x1b9   : > { %2758 = vmatpush.msk.msra.mxu0 %vm706_vm9, %v3788_v9 }
 0x1bb   : > { %1494 = vmatpush.msra.mxu0 %v3797_v13  ;;  %v1025_v39 = vpop.f32.mrf.mxu3 }
 0x1bd   : > { %v1092_v43 = vpop.f32.mrf.mxu1  ;;  %v999_v46 = vpop.f32.mrf.mxu2 }
 0x1be   : > { %v1093_v47 = vadd.f32 %v1092_v43, %v993_v19  ;;  %2756 = vmatmul.msk.f32.gmra.mxu3 %vm693_vm10, %v4231_v42  ;;  %v1054_v7 = vpop.f32.mrf.mxu0  ;;  %v4281_v19 = vld [vmem:[%s5041_s3 + $0x50] sm:$0xff]  ;;  %v2789_v43 = vld [vmem:[%s5042_s4 + $0x2d8] sm:$0xff] }
 0x1c0   : > { %1232 = vmatmul.f32.gmra.mxu0 %v1093_v47 }
 0x1c3   : > { %v1028_v50 = vpop.f32.mrf.mxu3 }
 0x1c5   : > { %v1095_v53 = vpop.f32.mrf.mxu1  ;;  %v1118_v54 = vpop.f32.mrf.mxu2 }
 0x1c6   : > { %v1096_v56 = vadd.f32 %v1095_v53, %v996_v30  ;;  %v1119_v58 = vadd.f32 %v1118_v54, %v1019_v15  ;;  %2757 = vmatmul.msk.f32.gmra.mxu3 %vm693_vm10, %v4238_v51  ;;  %v2792_v15 = vld [vmem:[%s5042_s4 + $0x2f0] sm:$0xff]  ;;  %v1057_v47 = vpop.f32.mrf.mxu0  ;;  %v2786_v53 = vld [vmem:[%s5042_s4 + $0x2c0] sm:$0xff]  ;;  %v900_v54 = vadd.f32 %v4151_v55, %v4094_v11  ;;  %v2783_v55 = vld [vmem:[%s5042_s4 + $0x2a8] sm:$0xff] }
 0x1c7   : > { %v2784_v11 = vld [vmem:[%s5042_s4 + $0x2b0] sm:$0xff] }
 0x1c8   : > { %1235 = vmatmul.f32.gmra.mxu0 %v1096_v56  ;;  %1258 = vmatmul.f32.vlgmr.msra.gmra.mxu1 %v1119_v58  ;;  %v877_v56 = vadd.f32 %v4213_v22, %v4120_v35  ;;  %v2785_v58 = vld [vmem:[%s5042_s4 + $0x2b8] sm:$0xff]  ;;  %v2808_v35 = vld [vmem:[%s5042_s4 + $0x370] sm:$0xff]  ;;  %v2807_v22 = vld [vmem:[%s5042_s4 + $0x368] sm:$0xff] }
 0x1c9   : > { %2763 = vmatpush.msk.msra.mxu1 %vm706_vm9, %v3805_v16 }
 0x1cb   : > { %1535 = vmatpush.msra.mxu1 %v3816_v21  ;;  %v1147_v61 = vpop.f32.mrf.mxu3 }
 0x1cc   : > { %v1148_v1 = vadd.f32 %v1147_v61, %v1048_v52  ;;  %v2809_v61 = vld [vmem:[%s5042_s4 + $0x378] sm:$0xff] }
 0x1cd   : > { %v1098_v4 = vpop.f32.mrf.mxu1  ;;  %v1121_v8 = vpop.f32.mrf.mxu2 }
 0x1ce   : > { %v1099_v20 = vadd.f32 %v1098_v4, %v999_v46  ;;  %2732 = vmatmul.msk.f32.vlgmr.msrb.gmra.mxu2 %vm1200_vm11, %v1148_v1  ;;  %2774 = vmatmul.msk.f32.vlgmr.msrb.gmra.mxu3 %vm693_vm10, %v4248_v62  ;;  %v1122_v36 = vadd.f32 %v1121_v8, %v1022_v23  ;;  %v2788_v46 = vld [vmem:[%s5042_s4 + $0x2d0] sm:$0xff]  ;;  %v4337_v1 = vld [vmem:[%s5041_s3 + $0x100] sm:$0xff] }
 0x1cf   : > { %2768 = vmatpush.msk.msrb.mxu2 %vm706_vm9, %v3776_v63  ;;  %2850 = vmatpush.msk.msrb.mxu3 %vm706_vm9, %v3776_v63  ;;  %v2782_v4 = vld [vmem:[%s5042_s4 + $0x2a0] sm:$0xff] }
 0x1d0   : > { %1238 = vmatmul.f32.gmra.mxu0 %v1099_v20  ;;  %1261 = vmatmul.f32.gmra.mxu1 %v1122_v36  ;;  %v2806_v8 = vld [vmem:[%s5042_s4 + $0x360] sm:$0xff]  ;;  %v903_v20 = vadd.f32 %v4173_v25, %v4122_v38  ;;  %v2781_v36 = vld [vmem:[%s5042_s4 + $0x298] sm:$0xff]  ;;  %v2780_v25 = vld [vmem:[%s5042_s4 + $0x290] sm:$0xff] }
 0x1d1   : > { %1564 = vmatpush.msrb.mxu2 %v3782_v0  ;;  %1916 = vmatpush.msrb.mxu3 %v3782_v0  ;;  %v2899_v38 = vld [vmem:[%s5042_s4 + $0x4f8] sm:$0xff] }
 0x1d3   : > { %v1150_v40 = vpop.f32.mrf.mxu3 }
 0x1d4   : > { %v1151_v44 = vadd.f32 %v1150_v40, %v1051_v28  ;;  %v880_v28 = vadd.f32 %v4226_v34, %v4084_v3  ;;  %v2805_v40 = vld [vmem:[%s5042_s4 + $0x358] sm:$0xff]  ;;  %v2804_v34 = vld [vmem:[%s5042_s4 + $0x350] sm:$0xff] }
 0x1d5   : > { %v1124_v45 = vpop.f32.mrf.mxu2  ;;  %v2817_v3 = vld [vmem:[%s5042_s4 + $0x3b8] sm:$0xff] }
 0x1d6   : > { %2733 = vmatmul.msk.f32.gmra.mxu2 %vm1200_vm11, %v1151_v44  ;;  %2775 = vmatmul.msk.f32.gmra.mxu3 %vm693_vm10, %v4262_v41  ;;  %v1125_v2 = vadd.f32 %v1124_v45, %v1025_v39  ;;  %v874_v39 = vadd.f32 %v4200_v14, %v4092_v10  ;;  %v4303_v10 = vld [vmem:[%s5041_s3 + $0x58] sm:$0xf]  ;;  %v2816_v44 = vld [vmem:[%s5042_s4 + $0x3b0] sm:$0xff] }
 0x1d7   : > { %v2898_v45 = vld [vmem:[%s5042_s4 + $0x4f0] sm:$0xff] }
 0x1d8   : > { %1264 = vmatmul.f32.gmra.mxu1 %v1125_v2  ;;  %1357 = vmatmul.f32.vlgmr.msrb.gmra.mxu0 %v871_v49  ;;  %v2779_v49 = vld [vmem:[%s5042_s4 + $0x288] sm:$0xff] }
 0x1d9   : > { %1660 = vmatpush.msrb.mxu0 %v2793_v6  ;;  %v2803_v2 = vld [vmem:[%s5042_s4 + $0x348] sm:$0xff] }
 0x1da   : > { %v4387_v6 = vld [vmem:[%s5041_s3 + $0x108] sm:$0xff] }
 0x1db   : > { %v1153_v29 = vpop.f32.mrf.mxu3  ;;  %1661 = vmatpush.msrb.mxu0 %v2792_v15  ;;  %v2802_v15 = vld [vmem:[%s5042_s4 + $0x340] sm:$0xff] }
 0x1dc   : > { %v1154_v23 = vadd.f32 %v1153_v29, %v1054_v7  ;;  %v2778_v7 = vld [vmem:[%s5042_s4 + $0x280] sm:$0xff]  ;;  %v2801_v29 = vld [vmem:[%s5042_s4 + $0x338] sm:$0xff] }
 0x1dd   : > { %v1127_v30 = vpop.f32.mrf.mxu2  ;;  %1662 = vmatpush.msrb.mxu0 %v2791_v37  ;;  %v906_v37 = vadd.f32 %v4191_v48, %v4153_v57  ;;  %v2897_v57 = vld [vmem:[%s5042_s4 + $0x4e8] sm:$0xff]  ;;  %v2800_v48 = vld [vmem:[%s5042_s4 + $0x330] sm:$0xff] }
 0x1de   : > { %2734 = vmatmul.msk.f32.gmra.mxu2 %vm1200_vm11, %v1154_v23  ;;  %2776 = vmatmul.msk.f32.gmra.mxu3 %vm693_vm10, %v4281_v19  ;;  %v1128_v31 = vadd.f32 %v1127_v30, %v1028_v50  ;;  %v2787_v50 = vld [vmem:[%s5042_s4 + $0x2c8] sm:$0xff]  ;;  %v2896_v30 = vld [vmem:[%s5042_s4 + $0x4e0] sm:$0xff] }
 0x1df   : > { %1663 = vmatpush.msrb.mxu0 %v2790_v27  ;;  %v2815_v23 = vld [vmem:[%s5042_s4 + $0x3a8] sm:$0xff]  ;;  %v2814_v27 = vld [vmem:[%s5042_s4 + $0x3a0] sm:$0xff] }
 0x1e0   : > { %1267 = vmatmul.f32.gmra.mxu1 %v1128_v31  ;;  %1360 = vmatmul.f32.gmra.mxu0 %v874_v39  ;;  %v4431_v31 = vld [vmem:[%s5041_s3 + $0x110] sm:$0xff]  ;;  %v2798_v39 = vld [vmem:[%s5042_s4 + $0x320] sm:$0xff] }
 0x1e1   : > { %1664 = vmatpush.msrb.mxu0 %v2789_v43  ;;  %v2813_v43 = vld [vmem:[%s5042_s4 + $0x398] sm:$0xff] }
 0x1e3   : > { %v1156_v52 = vpop.f32.mrf.mxu3  ;;  %1665 = vmatpush.msrb.mxu0 %v2788_v46  ;;  %v909_v46 = vadd.f32 %v4207_v18, %v4177_v33  ;;  %v2812_v33 = vld [vmem:[%s5042_s4 + $0x390] sm:$0xff] }
 0x1e4   : > { %v1157_v14 = vadd.f32 %v1156_v52, %v1057_v47  ;;  %v2797_v47 = vld [vmem:[%s5042_s4 + $0x318] sm:$0xff]  ;;  %v2796_v18 = vld [vmem:[%s5042_s4 + $0x310] sm:$0xff] }
 0x1e5   : > { %1666 = vmatpush.msrb.mxu0 %v2787_v50  ;;  %v2895_v50 = vld [vmem:[%s5042_s4 + $0x4d8] sm:$0xff]  ;;  %v2894_v52 = vld [vmem:[%s5042_s4 + $0x4d0] sm:$0xff] }
 0x1e6   : > { %2735 = vmatmul.msk.f32.gmra.mxu2 %vm1200_vm11, %v1157_v14  ;;  %2777 = vmatmul.msk.f32.gmra.mxu3 %vm693_vm10, %v4303_v10  ;;  %v2811_v14 = vld [vmem:[%s5042_s4 + $0x388] sm:$0xff] }
 0x1e7   : > { %1667 = vmatpush.msrb.mxu0 %v2786_v53  ;;  %v2795_v53 = vld [vmem:[%s5042_s4 + $0x308] sm:$0xff] }
 0x1e8   : > { %1363 = vmatmul.f32.gmra.mxu0 %v877_v56  ;;  %2736 = vmatmul.msk.f32.vlgmr.msrb.gmra.mxu1 %vm1200_vm11, %v900_v54  ;;  %v4475_v54 = vld [vmem:[%s5041_s3 + $0x118] sm:$0xf]  ;;  %v2794_v56 = vld [vmem:[%s5042_s4 + $0x300] sm:$0xff] }
 0x1e9   : > { %1668 = vmatpush.msrb.mxu0 %v2785_v58  ;;  %1689 = vmatpush.msrb.mxu1 %v2809_v61  ;;  %v2810_v58 = vld [vmem:[%s5042_s4 + $0x380] sm:$0xff] }
 0x1ea   : > { %v2892_v61 = vld [vmem:[%s5042_s4 + $0x4c0] sm:$0xff] }
 0x1eb   : > { %1669 = vmatpush.msrb.mxu0 %v2784_v11  ;;  %1690 = vmatpush.msrb.mxu1 %v2808_v35  ;;  %v4500_v11 = vld [vmem:[%s5041_s3 + $0x60] sm:$0xff] }
 0x1ed   : > { %1670 = vmatpush.msrb.mxu0 %v2783_v55  ;;  %1691 = vmatpush.msrb.mxu1 %v2807_v22 }
 0x1ee   : > { %2749 = vmatmul.msk.f32.vlgmr.msra.gmra.mxu2 %vm693_vm10, %v4205_v32  ;;  %2831 = vmatmul.msk.f32.vlgmr.msra.gmra.mxu3 %vm693_vm10, %v4337_v1 }
 0x1ef   : > { %1671 = vmatpush.msrb.mxu0 %v2782_v4  ;;  %1692 = vmatpush.msrb.mxu1 %v2806_v8 }
 0x1f0   : > { %1366 = vmatmul.f32.gmra.mxu0 %v880_v28  ;;  %2737 = vmatmul.msk.f32.gmra.mxu1 %vm1200_vm11, %v903_v20 }
 0x1f1   : > { %1672 = vmatpush.msrb.mxu0 %v2781_v36  ;;  %1693 = vmatpush.msrb.mxu1 %v2805_v40 }
 0x1f2   : > { %1726 = vmatpush.msra.mxu2 %v2817_v3  ;;  %2078 = vmatpush.msra.mxu3 %v2899_v38 }
 0x1f3   : > { %1673 = vmatpush.msrb.mxu0 %v2780_v25  ;;  %1694 = vmatpush.msrb.mxu1 %v2804_v34 }
 0x1f4   : > { %1727 = vmatpush.msra.mxu2 %v2816_v44  ;;  %2079 = vmatpush.msra.mxu3 %v2898_v45 }
 0x1f5   : > { %1674 = vmatpush.msrb.mxu0 %v2779_v49  ;;  %1695 = vmatpush.msrb.mxu1 %v2803_v2 }
 0x1f6   : > { %2750 = vmatmul.msk.f32.gmra.mxu2 %vm693_vm10, %v4219_v26  ;;  %2832 = vmatmul.msk.f32.gmra.mxu3 %vm693_vm10, %v4387_v6 }
 0x1f7   : > { %1675 = vmatpush.msrb.mxu0 %v2778_v7  ;;  %1696 = vmatpush.msrb.mxu1 %v2802_v15 }
 0x1f8   : > { %2738 = vmatmul.msk.f32.gmra.mxu1 %vm1200_vm11, %v906_v37  ;;  %2759 = vmatmul.msk.f32.vlgmr.msra.gmra.mxu0 %vm693_vm10, %v4205_v32  ;;  %v2799_v32 = vld [vmem:[%s5042_s4 + $0x328] sm:$0xff] }
 0x1f9   : > { %2835 = vmatpush.msk.msra.mxu0 %vm706_vm9, %v3786_v5  ;;  %1697 = vmatpush.msrb.mxu1 %v2801_v29 }
 0x1fa   : > { %1728 = vmatpush.msra.mxu2 %v2815_v23  ;;  %2080 = vmatpush.msra.mxu3 %v2897_v57 }
 0x1fb   : > { %1817 = vmatpush.msra.mxu0 %v3791_v12  ;;  %1698 = vmatpush.msrb.mxu1 %v2800_v48  ;;  %v2891_v48 = vld [vmem:[%s5042_s4 + $0x4b8] sm:$0xff] }
 0x1fc   : > { %1729 = vmatpush.msra.mxu2 %v2814_v27  ;;  %2081 = vmatpush.msra.mxu3 %v2896_v30  ;;  %v2890_v30 = vld [vmem:[%s5042_s4 + $0x4b0] sm:$0xff] }
 0x1fd   : > { %1699 = vmatpush.msrb.mxu1 %v2799_v32 }
 0x1fe   : > { %2751 = vmatmul.msk.f32.gmra.mxu2 %vm693_vm10, %v4231_v42  ;;  %2833 = vmatmul.msk.f32.gmra.mxu3 %vm693_vm10, %v4431_v31 }
 0x1ff   : > { %1700 = vmatpush.msrb.mxu1 %v2798_v39  ;;  %1730 = vmatpush.msra.mxu2 %v2813_v43  ;;  %v2889_v39 = vld [vmem:[%s5042_s4 + $0x4a8] sm:$0xff]  ;;  %v2888_v43 = vld [vmem:[%s5042_s4 + $0x4a0] sm:$0xff] }
 0x200   : > { %2739 = vmatmul.msk.f32.gmra.mxu1 %vm1200_vm11, %v909_v46  ;;  %2760 = vmatmul.msk.f32.gmra.mxu0 %vm693_vm10, %v4219_v26  ;;  %v2893_v26 = vld [vmem:[%s5042_s4 + $0x4c8] sm:$0xff] }
 0x201   : > { %1701 = vmatpush.msrb.mxu1 %v2797_v47  ;;  %2082 = vmatpush.msra.mxu3 %v2895_v50 }
 0x202   : > { %1731 = vmatpush.msra.mxu2 %v2812_v33  ;;  %v2887_v33 = vld [vmem:[%s5042_s4 + $0x498] sm:$0xff] }
 0x203   : > { %1702 = vmatpush.msrb.mxu1 %v2796_v18  ;;  %2083 = vmatpush.msra.mxu3 %v2894_v52  ;;  %v2886_v18 = vld [vmem:[%s5042_s4 + $0x490] sm:$0xff]  ;;  %v4605_v52 = vld [vmem:[%s5041_s3 + $0x68] sm:$0xff] }
 0x204   : > { %1732 = vmatpush.msra.mxu2 %v2811_v14 }
 0x205   : > { %1703 = vmatpush.msrb.mxu1 %v2795_v53  ;;  %2084 = vmatpush.msra.mxu3 %v2893_v26  ;;  %v2885_v26 = vld [vmem:[%s5042_s4 + $0x488] sm:$0xff] }
 0x206   : > { %2752 = vmatmul.msk.f32.gmra.mxu2 %vm693_vm10, %v4238_v51  ;;  %2834 = vmatmul.msk.f32.gmra.mxu3 %vm693_vm10, %v4475_v54 }
 0x207   : > { %1704 = vmatpush.msrb.mxu1 %v2794_v56  ;;  %1733 = vmatpush.msra.mxu2 %v2810_v58  ;;  %v2884_v56 = vld [vmem:[%s5042_s4 + $0x480] sm:$0xff] }
 0x208   : > { %2761 = vmatmul.msk.f32.gmra.mxu0 %vm693_vm10, %v4231_v42  ;;  %2764 = vmatmul.msk.f32.vlgmr.msra.gmra.mxu1 %vm693_vm10, %v4248_v62 }
 0x209   : > { %2840 = vmatpush.msk.msra.mxu1 %vm706_vm9, %v3788_v9  ;;  %2085 = vmatpush.msra.mxu3 %v2892_v61 }
 0x20b   : > { %1846 = vmatpush.msra.mxu1 %v3797_v13 }
 0x20e   : > { %2769 = vmatmul.msk.f32.vlgmr.msrb.gmra.mxu2 %vm693_vm10, %v4248_v62  ;;  %2851 = vmatmul.msk.f32.vlgmr.msrb.gmra.mxu3 %vm693_vm10, %v4500_v11 }
 0x20f   : > { %2845 = vmatpush.msk.msrb.mxu2 %vm706_vm9, %v3805_v16  ;;  %2927 = vmatpush.msk.msrb.mxu3 %vm706_vm9, %v3805_v16 }
 0x210   : > { %2762 = vmatmul.msk.f32.gmra.mxu0 %vm693_vm10, %v4238_v51  ;;  %2765 = vmatmul.msk.f32.gmra.mxu1 %vm693_vm10, %v4262_v41 }
 0x211   : > { %1887 = vmatpush.msrb.mxu2 %v3816_v21  ;;  %2239 = vmatpush.msrb.mxu3 %v3816_v21  ;;  %v4520_v42 = vpop.f32.mrf.mxu3 }
 0x216   : > { %2770 = vmatmul.msk.f32.gmra.mxu2 %vm693_vm10, %v4262_v41  ;;  %2852 = vmatmul.msk.f32.gmra.mxu3 %vm693_vm10, %v4605_v52 }
 0x218   : > { %2766 = vmatmul.msk.f32.gmra.mxu1 %vm693_vm10, %v4281_v19 }
 0x219   : > { %v4528_v16 = vpop.f32.mrf.mxu3 }
 0x21e   : > { %2771 = vmatmul.msk.f32.gmra.mxu2 %vm693_vm10, %v4281_v19 }
 0x220   : > { %2767 = vmatmul.msk.f32.gmra.mxu1 %vm693_vm10, %v4303_v10 }
 0x221   : > { %v4530_v21 = vpop.f32.mrf.mxu3 }
 0x226   : > { %2772 = vmatmul.msk.f32.gmra.mxu2 %vm693_vm10, %v4303_v10 }
 0x229   : > { %v4534_v62 = vpop.f32.mrf.mxu3 }
 0x231   : > { %v4540_v55 = vpop.f32.mrf.mxu3 }
 0x235   : > { %v4532_v51 = vpop.f32.mrf.mxu0 }
 0x239   : > { %v4548_v10 = vpop.f32.mrf.mxu3 }
 0x23d   : > { %v4536_v41 = vpop.f32.mrf.mxu0 }
 0x241   : > { %v4556_v36 = vpop.f32.mrf.mxu3 }
 0x245   : > { %v4538_v35 = vpop.f32.mrf.mxu0  ;;  %v4542_v19 = vpop.f32.mrf.mxu1 }
 0x249   : > { %v4566_v34 = vpop.f32.mrf.mxu3 }
 0x24d   : > { %v4544_v22 = vpop.f32.mrf.mxu0  ;;  %v4546_v4 = vpop.f32.mrf.mxu1 }
 0x251   : > { %v4550_v8 = vpop.f32.mrf.mxu2  ;;  %v1595_v2 = vpop.f32.mrf.mxu3 }
 0x255   : > { %v4552_v20 = vpop.f32.mrf.mxu1  ;;  %v4554_v28 = vpop.f32.mrf.mxu0 }
 0x259   : > { %v4558_v40 = vpop.f32.mrf.mxu2  ;;  %v1598_v27 = vpop.f32.mrf.mxu3 }
 0x25d   : > { %v4560_v3 = vpop.f32.mrf.mxu1  ;;  %v4562_v38 = vpop.f32.mrf.mxu0 }
 0x261   : > { %v4564_v25 = vpop.f32.mrf.mxu2  ;;  %v1601_v53 = vpop.f32.mrf.mxu3 }
 0x265   : > { %v4568_v44 = vpop.f32.mrf.mxu0  ;;  %v4570_v45 = vpop.f32.mrf.mxu1 }
 0x269   : > { %v4572_v49 = vpop.f32.mrf.mxu2 }
 0x26d   : > { %v4574_v7 = vpop.f32.mrf.mxu0  ;;  %v4576_v15 = vpop.f32.mrf.mxu1 }
 0x271   : > { %v1438_v37 = vpop.f32.mrf.mxu2 }
 0x275   : > { %v4578_v29 = vpop.f32.mrf.mxu1  ;;  %v1496_v23 = vpop.f32.mrf.mxu0 }
 0x276   : > { %v1596_v57 = vadd.f32 %v1595_v2, %v1496_v23 }
 0x278   : > { %2818 = vmatmul.msk.f32.vlgmr.msra.gmra.mxu2 %vm1200_vm11, %v1596_v57  ;;  %v2883_v57 = vld [vmem:[%s5042_s4 + $0x478] sm:$0xff] }
 0x279   : > { %v1441_v32 = vpop.f32.mrf.mxu2  ;;  %2041 = vmatpush.msra.mxu2 %v2891_v48  ;;  %v2882_v48 = vld [vmem:[%s5042_s4 + $0x470] sm:$0xff] }
 0x27b   : > { %2042 = vmatpush.msra.mxu2 %v2890_v30  ;;  %v2881_v30 = vld [vmem:[%s5042_s4 + $0x468] sm:$0xff] }
 0x27d   : > { %v4593_v46 = vpop.f32.mrf.mxu1  ;;  %v1499_v47 = vpop.f32.mrf.mxu0  ;;  %2043 = vmatpush.msra.mxu2 %v2889_v39 }
 0x27e   : > { %v1599_v50 = vadd.f32 %v1598_v27, %v1499_v47  ;;  %v1604_v39 = vpop.f32.mrf.mxu3 }
 0x27f   : > { %2044 = vmatpush.msra.mxu2 %v2888_v43  ;;  %v2880_v43 = vld [vmem:[%s5042_s4 + $0x460] sm:$0xff] }
 0x280   : > { %2819 = vmatmul.msk.f32.gmra.mxu2 %vm1200_vm11, %v1599_v50 }
 0x281   : > { %v1444_v14 = vpop.f32.mrf.mxu2  ;;  %2045 = vmatpush.msra.mxu2 %v2887_v33 }
 0x283   : > { %2046 = vmatpush.msra.mxu2 %v2886_v18 }
 0x285   : > { %v1502_v58 = vpop.f32.mrf.mxu0  ;;  %v1537_v61 = vpop.f32.mrf.mxu1  ;;  %2047 = vmatpush.msra.mxu2 %v2885_v26  ;;  %v2878_v26 = vld [vmem:[%s5042_s4 + $0x450] sm:$0xff] }
 0x286   : > { %v1538_v2 = vadd.f32 %v1537_v61, %v1438_v37  ;;  %v1602_v23 = vadd.f32 %v1601_v53, %v1502_v58  ;;  %v4627_v37 = vld [vmem:[%s5041_s3 + $0x70] sm:$0xff]  ;;  %v2879_v53 = vld [vmem:[%s5042_s4 + $0x458] sm:$0xff] }
 0x287   : > { %2048 = vmatpush.msra.mxu2 %v2884_v56  ;;  %2853 = vmatmul.msk.f32.gmra.mxu3 %vm693_vm10, %v4627_v37  ;;  %v4648_v58 = vld [vmem:[%s5041_s3 + $0x78] sm:$0xf] }
 0x288   : > { %1676 = vmatmul.f32.vlgmr.msrb.gmra.mxu0 %v1538_v2  ;;  %2820 = vmatmul.msk.f32.gmra.mxu2 %vm1200_vm11, %v1602_v23  ;;  %v2875_v61 = vld [vmem:[%s5042_s4 + $0x438] sm:$0xff]  ;;  %v2877_v2 = vld [vmem:[%s5042_s4 + $0x448] sm:$0xff]  ;;  %v2874_v23 = vld [vmem:[%s5042_s4 + $0x430] sm:$0xff] }
 0x289   : > { %2855 = vmatpush.msk.msrb.mxu0 %vm706_vm9, %v3807_v17  ;;  %v1447_v27 = vpop.f32.mrf.mxu2  ;;  %2049 = vmatpush.msra.mxu2 %v2883_v57 }
 0x28b   : > { %1945 = vmatpush.msrb.mxu0 %v3822_v24  ;;  %2050 = vmatpush.msra.mxu2 %v2882_v48 }
 0x28d   : > { %v1505_v47 = vpop.f32.mrf.mxu0  ;;  %v1540_v50 = vpop.f32.mrf.mxu1  ;;  %2051 = vmatpush.msra.mxu2 %v2881_v30  ;;  %v2873_v30 = vld [vmem:[%s5042_s4 + $0x428] sm:$0xff] }
 0x28e   : > { %v1541_v33 = vadd.f32 %v1540_v50, %v1441_v32  ;;  %v1605_v18 = vadd.f32 %v1604_v39, %v1505_v47  ;;  %v2872_v39 = vld [vmem:[%s5042_s4 + $0x420] sm:$0xff]  ;;  %v2871_v47 = vld [vmem:[%s5042_s4 + $0x418] sm:$0xff]  ;;  %v2870_v50 = vld [vmem:[%s5042_s4 + $0x410] sm:$0xff] }
 0x28f   : > { %2052 = vmatpush.msra.mxu2 %v2880_v43  ;;  %2854 = vmatmul.msk.f32.gmra.mxu3 %vm693_vm10, %v4648_v58 }
 0x290   : > { %1679 = vmatmul.f32.gmra.mxu0 %v1541_v33  ;;  %2821 = vmatmul.msk.f32.gmra.mxu2 %vm1200_vm11, %v1605_v18 }
 0x291   : > { %v1566_v56 = vpop.f32.mrf.mxu2  ;;  %2053 = vmatpush.msra.mxu2 %v2879_v53 }
 0x292   : > { %v1567_v32 = vadd.f32 %v1566_v56, %v4540_v55  ;;  %v2876_v55 = vld [vmem:[%s5042_s4 + $0x440] sm:$0xff]  ;;  %v2865_v56 = vld [vmem:[%s5042_s4 + $0x3e8] sm:$0xff] }
 0x293   : > { %2054 = vmatpush.msra.mxu2 %v2878_v26  ;;  %v2866_v26 = vld [vmem:[%s5042_s4 + $0x3f0] sm:$0xff] }
 0x294   : > { %1705 = vmatmul.f32.vlgmr.msrb.gmra.mxu1 %v1567_v32 }
 0x295   : > { %v1543_v57 = vpop.f32.mrf.mxu1  ;;  %2012 = vmatpush.msrb.mxu1 %v2875_v61  ;;  %2055 = vmatpush.msra.mxu2 %v2877_v2  ;;  %v2863_v2 = vld [vmem:[%s5042_s4 + $0x3d8] sm:$0xff] }
 0x296   : > { %v1544_v48 = vadd.f32 %v1543_v57, %v1444_v14 }
 0x297   : > { %2013 = vmatpush.msrb.mxu1 %v2874_v23  ;;  %2056 = vmatpush.msra.mxu2 %v2876_v55  ;;  %v2862_v23 = vld [vmem:[%s5042_s4 + $0x3d0] sm:$0xff] }
 0x298   : > { %1682 = vmatmul.f32.gmra.mxu0 %v1544_v48  ;;  %2846 = vmatmul.msk.f32.vlgmr.msrb.gmra.mxu2 %vm693_vm10, %v4500_v11 }
 0x299   : > { %2922 = vmatpush.msk.msrb.mxu2 %vm706_vm9, %v3788_v9  ;;  %v1569_v43 = vpop.f32.mrf.mxu2  ;;  %2014 = vmatpush.msrb.mxu1 %v2873_v30  ;;  %v2869_v9 = vld [vmem:[%s5042_s4 + $0x408] sm:$0xff] }
 0x29a   : > { %v1570_v14 = vadd.f32 %v1569_v43, %v4548_v10  ;;  %v4773_v43 = vld [vmem:[%s5041_s3 + $0x130] sm:$0xff] }
 0x29b   : > { %2198 = vmatpush.msrb.mxu2 %v3797_v13  ;;  %2015 = vmatpush.msrb.mxu1 %v2872_v39  ;;  %v2868_v13 = vld [vmem:[%s5042_s4 + $0x400] sm:$0xff] }
 0x29c   : > { %1708 = vmatmul.f32.gmra.mxu1 %v1570_v14 }
 0x29d   : > { %v1546_v33 = vpop.f32.mrf.mxu1  ;;  %2016 = vmatpush.msrb.mxu1 %v2871_v47 }
 0x29e   : > { %v1547_v18 = vadd.f32 %v1546_v33, %v1447_v27  ;;  %v2867_v27 = vld [vmem:[%s5042_s4 + $0x3f8] sm:$0xff] }
 0x29f   : > { %2017 = vmatpush.msrb.mxu1 %v2870_v50 }
 0x2a0   : > { %1685 = vmatmul.f32.gmra.mxu0 %v1547_v18  ;;  %2847 = vmatmul.msk.f32.gmra.mxu2 %vm693_vm10, %v4605_v52 }
 0x2a1   : > { %v1572_v10 = vpop.f32.mrf.mxu2  ;;  %2018 = vmatpush.msrb.mxu1 %v2869_v9 }
 0x2a2   : > { %v1573_v53 = vadd.f32 %v1572_v10, %v4556_v36  ;;  %v2864_v36 = vld [vmem:[%s5042_s4 + $0x3e0] sm:$0xff]  ;;  %v4784_v10 = vld [vmem:[%s5041_s3 + $0x138] sm:$0xf] }
 0x2a3   : > { %2019 = vmatpush.msrb.mxu1 %v2868_v13 }
 0x2a4   : > { %1711 = vmatmul.f32.gmra.mxu1 %v1573_v53 }
 0x2a5   : > { %2020 = vmatpush.msrb.mxu1 %v2867_v27 }
 0x2a7   : > { %2021 = vmatpush.msrb.mxu1 %v2866_v26 }
 0x2a8   : > { %2836 = vmatmul.msk.f32.vlgmr.msra.gmra.mxu0 %vm693_vm10, %v4337_v1  ;;  %2848 = vmatmul.msk.f32.gmra.mxu2 %vm693_vm10, %v4627_v37 }
 0x2a9   : > { %2912 = vmatpush.msk.msra.mxu0 %vm706_vm9, %v3762_v59  ;;  %v1575_v32 = vpop.f32.mrf.mxu2  ;;  %2022 = vmatpush.msrb.mxu1 %v2865_v56  ;;  %v2861_v59 = vld [vmem:[%s5042_s4 + $0x3c8] sm:$0xff] }
 0x2aa   : > { %v1576_v61 = vadd.f32 %v1575_v32, %v4566_v34 }
 0x2ab   : > { %2140 = vmatpush.msra.mxu0 %v3764_v60  ;;  %2023 = vmatpush.msrb.mxu1 %v2864_v36  ;;  %v2860_v60 = vld [vmem:[%s5042_s4 + $0x3c0] sm:$0xff] }
 0x2ac   : > { %1714 = vmatmul.f32.gmra.mxu1 %v1576_v61 }
 0x2ad   : > { %2024 = vmatpush.msrb.mxu1 %v2863_v2  ;;  %v2904_v2 = vld [vmem:[%s5041_s3 + $0x80] sm:$0xff] }
 0x2af   : > { %2025 = vmatpush.msrb.mxu1 %v2862_v23 }
 0x2b0   : > { %2837 = vmatmul.msk.f32.gmra.mxu0 %vm693_vm10, %v4387_v6  ;;  %2849 = vmatmul.msk.f32.gmra.mxu2 %vm693_vm10, %v4648_v58 }
 0x2b1   : > { %2026 = vmatpush.msrb.mxu1 %v2861_v59 }
 0x2b3   : > { %2027 = vmatpush.msrb.mxu1 %v2860_v60 }
 0x2b4   : > { %2841 = vmatmul.msk.f32.vlgmr.msra.gmra.mxu1 %vm693_vm10, %v4337_v1 }
 0x2b5   : > { %2917 = vmatpush.msk.msra.mxu1 %vm706_vm9, %v3786_v5  ;;  %v1790_v5 = vpop.f32.mrf.mxu3 }
 0x2b7   : > { %2169 = vmatpush.msra.mxu1 %v3791_v12 }
 0x2b8   : > { %2838 = vmatmul.msk.f32.gmra.mxu0 %vm693_vm10, %v4431_v31 }
 0x2bc   : > { %2842 = vmatmul.msk.f32.gmra.mxu1 %vm693_vm10, %v4387_v6 }
 0x2bd   : > { %v1793_v1 = vpop.f32.mrf.mxu3 }
 0x2c0   : > { %2839 = vmatmul.msk.f32.gmra.mxu0 %vm693_vm10, %v4475_v54 }
 0x2c4   : > { %2843 = vmatmul.msk.f32.gmra.mxu1 %vm693_vm10, %v4431_v31 }
 0x2c8   : > { %2856 = vmatmul.msk.f32.vlgmr.msrb.gmra.mxu0 %vm693_vm10, %v4500_v11  ;;  %v4757_v11 = vld [vmem:[%s5041_s3 + $0x120] sm:$0xff] }
 0x2c9   : > { %2932 = vmatpush.msk.msrb.mxu0 %vm706_vm9, %v3776_v63 }
 0x2cb   : > { %2268 = vmatpush.msrb.mxu0 %v3782_v0 }
 0x2cc   : > { %2844 = vmatmul.msk.f32.gmra.mxu1 %vm693_vm10, %v4475_v54  ;;  %v1796_v54 = vpop.f32.mrf.mxu3 }
 0x2d0   : > { %2857 = vmatmul.msk.f32.gmra.mxu0 %vm693_vm10, %v4605_v52 }
 0x2d4   : > { %v1799_v48 = vpop.f32.mrf.mxu3 }
 0x2d8   : > { %2858 = vmatmul.msk.f32.gmra.mxu0 %vm693_vm10, %v4627_v37  ;;  %v4764_v37 = vld [vmem:[%s5041_s3 + $0x128] sm:$0xff] }
 0x2dc   : > { %v1918_v13 = vpop.f32.mrf.mxu3 }
 0x2e0   : > { %2859 = vmatmul.msk.f32.gmra.mxu0 %vm693_vm10, %v4648_v58 }
 0x2e8   : > { %2913 = vmatmul.msk.f32.vlgmr.msra.gmra.mxu0 %vm693_vm10, %v4757_v11 }
 0x2f0   : > { %2914 = vmatmul.msk.f32.gmra.mxu0 %vm693_vm10, %v4764_v37 }
 0x2f8   : > { %2915 = vmatmul.msk.f32.gmra.mxu0 %vm693_vm10, %v4773_v43 }
 0x2fb   : > { %v1735_v12 = vpop.f32.mrf.mxu2 }
 0x300   : > { %2916 = vmatmul.msk.f32.gmra.mxu0 %vm693_vm10, %v4784_v10 }
 0x303   : > { %v1738_v6 = vpop.f32.mrf.mxu2 }
 0x305   : > { %v1677_v31 = vpop.f32.mrf.mxu0 }
 0x308   : > { %2933 = vmatmul.msk.f32.vlgmr.msrb.gmra.mxu0 %vm693_vm10, %v2904_v2 }
 0x30b   : > { %v1741_v34 = vpop.f32.mrf.mxu2 }
 0x30d   : > { %v1680_v52 = vpop.f32.mrf.mxu0 }
 0x311   : > { %v1706_v58 = vpop.f32.mrf.mxu1 }
 0x312   : > { %v1707_v55 = vadd.f32 %v1706_v58, %v1677_v31 }
 0x313   : > { %v1744_v57 = vpop.f32.mrf.mxu2 }
 0x314   : > { %v4768_v30 = vadd.f32 %v1735_v12, %v1707_v55 }
 0x315   : > { %v1683_v39 = vpop.f32.mrf.mxu0 }
 0x319   : > { %v1709_v14 = vpop.f32.mrf.mxu1 }
 0x31a   : > { %v1710_v47 = vadd.f32 %v1709_v14, %v1680_v52 }
 0x31b   : > { %v1889_v50 = vpop.f32.mrf.mxu2 }
 0x31c   : > { %v4777_v33 = vadd.f32 %v1738_v6, %v1710_v47  ;;  %v1890_v18 = vadd.f32 %v1889_v50, %v1790_v5  ;;  %v2905_v6 = vld [vmem:[%s5041_s3 + $0x88] sm:$0xff] }
 0x31d   : > { %v1686_v9 = vpop.f32.mrf.mxu0  ;;  %2934 = vmatmul.msk.f32.gmra.mxu0 %vm693_vm10, %v2905_v6 }
 0x31e   : > { %2028 = vmatmul.f32.vlgmr.msrb.gmra.mxu1 %v1890_v18 }
 0x31f   : > { %2995 = vmatpush.msk.msrb.mxu1 %vm706_vm9, %v3776_v63  ;;  %v1921_v63 = vpop.f32.mrf.mxu3 }
 0x321   : > { %2996 = vmatpush.msrb.mxu1 %v3782_v0  ;;  %v1712_v53 = vpop.f32.mrf.mxu1 }
 0x322   : > { %v1713_v27 = vadd.f32 %v1712_v53, %v1683_v39  ;;  %v2906_v53 = vld [vmem:[%s5041_s3 + $0x90] sm:$0xff] }
 0x323   : > { %v1892_v26 = vpop.f32.mrf.mxu2 }
 0x324   : > { %v4789_v56 = vadd.f32 %v1741_v34, %v1713_v27  ;;  %v1893_v36 = vadd.f32 %v1892_v26, %v1793_v1 }
 0x325   : > { %v1819_v32 = vpop.f32.mrf.mxu0 }
 0x326   : > { %2031 = vmatmul.f32.gmra.mxu1 %v1893_v36  ;;  %v1919_v61 = vadd.f32 %v1918_v13, %v1819_v32  ;;  %v2971_v36 = vld [vmem:[%s5042_s4 + $0x5e8] sm:$0xff]  ;;  %v2970_v32 = vld [vmem:[%s5042_s4 + $0x5e0] sm:$0xff] }
 0x327   : > { %v1924_v31 = vpop.f32.mrf.mxu3 }
 0x328   : > { %2057 = vmatmul.f32.vlgmr.msra.gmra.mxu2 %v1919_v61 }
 0x329   : > { %v1715_v23 = vpop.f32.mrf.mxu1 }
 0x32a   : > { %v1716_v59 = vadd.f32 %v1715_v23, %v1686_v9  ;;  %v2967_v23 = vld [vmem:[%s5042_s4 + $0x5c8] sm:$0xff] }
 0x32b   : > { %v1895_v0 = vpop.f32.mrf.mxu2 }
 0x32c   : > { %v4795_v60 = vadd.f32 %v1744_v57, %v1716_v59  ;;  %v1896_v5 = vadd.f32 %v1895_v0, %v1796_v54  ;;  %v2966_v59 = vld [vmem:[%s5042_s4 + $0x5c0] sm:$0xff]  ;;  %v2965_v0 = vld [vmem:[%s5042_s4 + $0x5b8] sm:$0xff] }
 0x32d   : > { %v1822_v12 = vpop.f32.mrf.mxu0 }
 0x32e   : > { %2034 = vmatmul.f32.gmra.mxu1 %v1896_v5  ;;  %v1922_v1 = vadd.f32 %v1921_v63, %v1822_v12  ;;  %v2969_v63 = vld [vmem:[%s5042_s4 + $0x5d8] sm:$0xff]  ;;  %v2964_v12 = vld [vmem:[%s5042_s4 + $0x5b0] sm:$0xff] }
 0x32f   : > { %v1927_v57 = vpop.f32.mrf.mxu3 }
 0x330   : > { %2060 = vmatmul.f32.gmra.mxu2 %v1922_v1 }
 0x331   : > { %v1848_v54 = vpop.f32.mrf.mxu1 }
 0x333   : > { %v1898_v34 = vpop.f32.mrf.mxu2 }
 0x334   : > { %v1899_v52 = vadd.f32 %v1898_v34, %v1799_v48  ;;  %v2961_v34 = vld [vmem:[%s5042_s4 + $0x598] sm:$0xff] }
 0x335   : > { %v1825_v58 = vpop.f32.mrf.mxu0 }
 0x336   : > { %2037 = vmatmul.f32.gmra.mxu1 %v1899_v52  ;;  %v1925_v55 = vadd.f32 %v1924_v31, %v1825_v58  ;;  %v2962_v31 = vld [vmem:[%s5042_s4 + $0x5a0] sm:$0xff]  ;;  %v2960_v52 = vld [vmem:[%s5042_s4 + $0x590] sm:$0xff] }
 0x338   : > { %2063 = vmatmul.f32.gmra.mxu2 %v1925_v55 }
 0x339   : > { %v1851_v48 = vpop.f32.mrf.mxu1 }
 0x33d   : > { %v1828_v39 = vpop.f32.mrf.mxu0 }
 0x33e   : > { %2918 = vmatmul.msk.f32.vlgmr.msra.gmra.mxu1 %vm693_vm10, %v4757_v11  ;;  %v1928_v14 = vadd.f32 %v1927_v57, %v1828_v39  ;;  %v2959_v57 = vld [vmem:[%s5042_s4 + $0x588] sm:$0xff]  ;;  %v2958_v39 = vld [vmem:[%s5042_s4 + $0x580] sm:$0xff] }
 0x33f   : > { %2937 = vmatpush.msk.msra.mxu1 %vm706_vm9, %v3807_v17 }
 0x340   : > { %2066 = vmatmul.f32.gmra.mxu2 %v1928_v14 }
 0x341   : > { %2297 = vmatpush.msra.mxu1 %v3822_v24  ;;  %v1854_v17 = vpop.f32.mrf.mxu1 }
 0x345   : > { %v1947_v47 = vpop.f32.mrf.mxu0 }
 0x346   : > { %v1948_v50 = vadd.f32 %v1947_v47, %v1848_v54  ;;  %2919 = vmatmul.msk.f32.gmra.mxu1 %vm693_vm10, %v4764_v37 }
 0x348   : > { %2900 = vmatmul.msk.f32.vlgmr.msra.gmra.mxu3 %vm1200_vm11, %v1948_v50  ;;  %2923 = vmatmul.msk.f32.vlgmr.msrb.gmra.mxu2 %vm693_vm10, %v4757_v11 }
 0x349   : > { %v1857_v11 = vpop.f32.mrf.mxu1 }
 0x34d   : > { %v1950_v18 = vpop.f32.mrf.mxu0 }
 0x34e   : > { %v1951_v9 = vadd.f32 %v1950_v18, %v1851_v48  ;;  %2920 = vmatmul.msk.f32.gmra.mxu1 %vm693_vm10, %v4773_v43  ;;  %v2957_v48 = vld [vmem:[%s5042_s4 + $0x578] sm:$0xff]  ;;  %v2956_v18 = vld [vmem:[%s5042_s4 + $0x570] sm:$0xff] }
 0x34f   : > { %2364 = vmatpush.msra.mxu2 %v2957_v48 }
 0x350   : > { %2901 = vmatmul.msk.f32.gmra.mxu3 %vm1200_vm11, %v1951_v9  ;;  %2924 = vmatmul.msk.f32.gmra.mxu2 %vm693_vm10, %v4764_v37  ;;  %v2907_v37 = vld [vmem:[%s5041_s3 + $0x98] sm:$0xf] }
 0x351   : > { %2365 = vmatpush.msra.mxu2 %v2956_v18 }
 0x355   : > { %v1953_v24 = vpop.f32.mrf.mxu0 }
 0x356   : > { %v1954_v13 = vadd.f32 %v1953_v24, %v1854_v17  ;;  %2921 = vmatmul.msk.f32.gmra.mxu1 %vm693_vm10, %v4784_v10 }
 0x358   : > { %2902 = vmatmul.msk.f32.gmra.mxu3 %vm1200_vm11, %v1954_v13  ;;  %2925 = vmatmul.msk.f32.gmra.mxu2 %vm693_vm10, %v4773_v43  ;;  %v2973_v43 = vld [vmem:[%s5042_s4 + $0x5f8] sm:$0xff]  ;;  %v2955_v13 = vld [vmem:[%s5042_s4 + $0x568] sm:$0xff] }
 0x359   : > { %2393 = vmatpush.msra.mxu3 %v2973_v43  ;;  %2366 = vmatpush.msra.mxu2 %v2955_v13  ;;  %v2977_v13 = vld [vmem:[%s5042_s4 + $0x618] sm:$0xff] }
 0x35d   : > { %v1956_v27 = vpop.f32.mrf.mxu0 }
 0x35e   : > { %v1957_v26 = vadd.f32 %v1956_v27, %v1857_v11  ;;  %2935 = vmatmul.msk.f32.vlgmr.msrb.gmra.mxu1 %vm693_vm10, %v2906_v53  ;;  %v2954_v11 = vld [vmem:[%s5042_s4 + $0x560] sm:$0xff] }
 0x35f   : > { %2367 = vmatpush.msra.mxu2 %v2954_v11 }
 0x360   : > { %2903 = vmatmul.msk.f32.gmra.mxu3 %vm1200_vm11, %v1957_v26  ;;  %2926 = vmatmul.msk.f32.gmra.mxu2 %vm693_vm10, %v4784_v10  ;;  %v2972_v10 = vld [vmem:[%s5042_s4 + $0x5f0] sm:$0xff] }
 0x361   : > { %2394 = vmatpush.msra.mxu3 %v2972_v10  ;;  %v2952_v26 = vld [vmem:[%s5042_s4 + $0x550] sm:$0xff] }
 0x363   : > { %2395 = vmatpush.msra.mxu3 %v2971_v36 }
 0x365   : > { %v4852_v61 = vpop.f32.mrf.mxu0  ;;  %2396 = vmatpush.msra.mxu3 %v2970_v32  ;;  %v2951_v32 = vld [vmem:[%s5042_s4 + $0x548] sm:$0xff] }
 0x366   : > { %2936 = vmatmul.msk.f32.gmra.mxu1 %vm693_vm10, %v2907_v37 }
 0x367   : > { %2397 = vmatpush.msra.mxu3 %v2969_v63  ;;  %v1260_v63 = vadd.f32 %v4542_v19, %v4532_v51 }
 0x368   : > { %2928 = vmatmul.msk.f32.vlgmr.msrb.gmra.mxu3 %vm693_vm10, %v2904_v2 }
 0x36d   : > { %v4869_v5 = vpop.f32.mrf.mxu0 }
 0x36e   : > { %2938 = vmatmul.msk.f32.vlgmr.msra.gmra.mxu1 %vm693_vm10, %v2904_v2  ;;  %v2968_v2 = vld [vmem:[%s5042_s4 + $0x5d0] sm:$0xff] }
 0x36f   : > { %2398 = vmatpush.msra.mxu3 %v2968_v2  ;;  %v2950_v2 = vld [vmem:[%s5042_s4 + $0x540] sm:$0xff] }
 0x370   : > { %2929 = vmatmul.msk.f32.gmra.mxu3 %vm693_vm10, %v2905_v6 }
 0x371   : > { %2399 = vmatpush.msra.mxu3 %v2967_v23  ;;  %v2949_v23 = vld [vmem:[%s5042_s4 + $0x538] sm:$0xff] }
 0x373   : > { %2400 = vmatpush.msra.mxu3 %v2966_v59  ;;  %v1289_v59 = vadd.f32 %v4550_v8, %v1260_v63  ;;  %v1263_v8 = vadd.f32 %v4546_v4, %v4536_v41 }
 0x375   : > { %2401 = vmatpush.msra.mxu3 %v2965_v0  ;;  %v4886_v55 = vpop.f32.mrf.mxu0  ;;  %v2948_v0 = vld [vmem:[%s5042_s4 + $0x530] sm:$0xff]  ;;  %v1330_v19 = vadd.f32 %v4520_v42, %v1289_v59  ;;  %v2945_v42 = vld [vmem:[%s5042_s4 + $0x518] sm:$0xff]  ;;  %v1292_v4 = vadd.f32 %v4558_v40, %v1263_v8  ;;  %v2979_v40 = vld [vmem:[%s5042_s4 + $0x628] sm:$0xff] }
 0x376   : > { %2939 = vmatmul.msk.f32.gmra.mxu1 %vm693_vm10, %v2905_v6  ;;  %v2963_v6 = vld [vmem:[%s5042_s4 + $0x5a8] sm:$0xff] }
 0x377   : > { %2402 = vmatpush.msra.mxu3 %v2964_v12  ;;  %v1359_v41 = vadd.f32 %v4554_v28, %v1330_v19  ;;  %v1333_v18 = vadd.f32 %v4528_v16, %v1292_v4  ;;  %v2943_v28 = vld [vmem:[%s5042_s4 + $0x508] sm:$0xff]  ;;  %v2978_v16 = vld [vmem:[%s5042_s4 + $0x620] sm:$0xff] }
 0x378   : > { %2930 = vmatmul.msk.f32.gmra.mxu3 %vm693_vm10, %v2906_v53 }
 0x379   : > { %2403 = vmatpush.msra.mxu3 %v2963_v6  ;;  %v1362_v11 = vadd.f32 %v4562_v38, %v1333_v18  ;;  %v2975_v38 = vld [vmem:[%s5042_s4 + $0x608] sm:$0xff] }
 0x37b   : > { %2404 = vmatpush.msra.mxu3 %v2962_v31 }
 0x37d   : > { %2405 = vmatpush.msra.mxu3 %v2961_v34  ;;  %v4894_v50 = vpop.f32.mrf.mxu0  ;;  %v2947_v34 = vld [vmem:[%s5042_s4 + $0x528] sm:$0xff] }
 0x37e   : > { %2940 = vmatmul.msk.f32.gmra.mxu1 %vm693_vm10, %v2906_v53  ;;  %v2953_v53 = vld [vmem:[%s5042_s4 + $0x558] sm:$0xff] }
 0x37f   : > { %2406 = vmatpush.msra.mxu3 %v2960_v52  ;;  %2368 = vmatpush.msra.mxu2 %v2953_v53  ;;  %v2946_v52 = vld [vmem:[%s5042_s4 + $0x520] sm:$0xff] }
 0x380   : > { %2931 = vmatmul.msk.f32.gmra.mxu3 %vm693_vm10, %v2907_v37 }
 0x381   : > { %2407 = vmatpush.msra.mxu3 %v2959_v57  ;;  %2369 = vmatpush.msra.mxu2 %v2952_v26  ;;  %v2980_v57 = vld [vmem:[%s5042_s4 + $0x630] sm:$0xff]  ;;  %v1391_v26 = vadd.f32 %v4576_v15, %v1362_v11  ;;  %v1269_v15 = vadd.f32 %v4560_v3, %v4544_v22 }
 0x383   : > { %2408 = vmatpush.msra.mxu3 %v2958_v39  ;;  %2370 = vmatpush.msra.mxu2 %v2951_v32  ;;  %v2944_v39 = vld [vmem:[%s5042_s4 + $0x510] sm:$0xff] }
 0x385   : > { %v2270_v27 = vpop.f32.mrf.mxu0  ;;  %2371 = vmatpush.msra.mxu2 %v2950_v2 }
 0x386   : > { %2941 = vmatmul.msk.f32.gmra.mxu1 %vm693_vm10, %v2907_v37 }
 0x387   : > { %2372 = vmatpush.msra.mxu2 %v2949_v23 }
 0x389   : > { %2373 = vmatpush.msra.mxu2 %v2948_v0 }
 0x38b   : > { %2374 = vmatpush.msra.mxu2 %v2947_v34 }
 0x38d   : > { %2375 = vmatpush.msra.mxu2 %v2946_v52 }
 0x38f   : > { %2376 = vmatpush.msra.mxu2 %v2945_v42 }
 0x391   : > { %2377 = vmatpush.msra.mxu2 %v2944_v39 }
 0x393   : > { %2378 = vmatpush.msra.mxu2 %v2943_v28 }
 0x39a   : > { %v2273_v12 = vpop.f32.mrf.mxu0 }
 0x39b   : > { %v2029_v1 = vpop.f32.mrf.mxu1 }
 0x3a3   : > { %v2032_v58 = vpop.f32.mrf.mxu1 }
 0x3ab   : > { %v2035_v54 = vpop.f32.mrf.mxu1  ;;  %v2058_v14 = vpop.f32.mrf.mxu2 }
 0x3ac   : > { %v2059_v47 = vadd.f32 %v2058_v14, %v2029_v1 }
 0x3b3   : > { %v2038_v9 = vpop.f32.mrf.mxu1  ;;  %v2061_v17 = vpop.f32.mrf.mxu2 }
 0x3b4   : > { %v4902_v24 = vadd.f32 %v2061_v17, %v2032_v58  ;;  %v2981_v58 = vld [vmem:[%s5042_s4 + $0x638] sm:$0xff] }
 0x3b5   : > { %2430 = vmatpush.msra.mxu0 %v2981_v58 }
 0x3b7   : > { %2431 = vmatpush.msra.mxu0 %v2980_v57 }
 0x3b9   : > { %2432 = vmatpush.msra.mxu0 %v2979_v40 }
 0x3bb   : > { %v2064_v37 = vpop.f32.mrf.mxu2  ;;  %v2171_v43 = vpop.f32.mrf.mxu1  ;;  %2433 = vmatpush.msra.mxu0 %v2978_v16 }
 0x3bc   : > { %v4916_v10 = vadd.f32 %v2064_v37, %v2035_v54  ;;  %v2271_v36 = vadd.f32 %v2270_v27, %v2171_v43  ;;  %v1388_v54 = vadd.f32 %v4570_v45, %v1359_v41  ;;  %v2942_v45 = vld [vmem:[%s5042_s4 + $0x500] sm:$0xff]  ;;  %v2976_v27 = vld [vmem:[%s5042_s4 + $0x610] sm:$0xff]  ;;  %v1748_v43 = vadd.f32 %v4777_v33, %v1391_v26 }
 0x3bd   : > { %2379 = vmatpush.msra.mxu2 %v2942_v45  ;;  %2434 = vmatpush.msra.mxu0 %v2977_v13  ;;  %v1298_v33 = vadd.f32 %v4572_v49, %v1269_v15 }
 0x3be   : > { %2409 = vmatmul.f32.vlgmr.msra.gmra.mxu3 %v2271_v36 }
 0x3bf   : > { %2435 = vmatpush.msra.mxu0 %v2976_v27  ;;  %v1339_v23 = vadd.f32 %v4534_v62, %v1298_v33 }
 0x3c1   : > { %2436 = vmatpush.msra.mxu0 %v2975_v38  ;;  %v1368_v22 = vadd.f32 %v4574_v7, %v1339_v23 }
 0x3c3   : > { %v2067_v1 = vpop.f32.mrf.mxu2  ;;  %v2174_v51 = vpop.f32.mrf.mxu1  ;;  %v1397_v3 = vadd.f32 %v4593_v46, %v1368_v22 }
 0x3c4   : > { %v4934_v6 = vadd.f32 %v2067_v1, %v2038_v9  ;;  %v2274_v31 = vadd.f32 %v2273_v12, %v2174_v51  ;;  %v1747_v9 = vadd.f32 %v4768_v30, %v1388_v54  ;;  %v1266_v30 = vadd.f32 %v4552_v20, %v4538_v35 }
 0x3c6   : > { %2412 = vmatmul.f32.gmra.mxu3 %v2274_v31  ;;  %v1295_v53 = vadd.f32 %v4564_v25, %v1266_v30  ;;  %v2974_v25 = vld [vmem:[%s5042_s4 + $0x600] sm:$0xff] }
 0x3c7   : > { %2437 = vmatpush.msra.mxu0 %v2974_v25 }
 0x3c8   : > { %v1336_v37 = vadd.f32 %v4530_v21, %v1295_v53 }
 0x3ca   : > { %v1365_v21 = vadd.f32 %v4568_v44, %v1336_v37 }
 0x3cb   : > { %v2087_v14 = vpop.f32.mrf.mxu3  ;;  %v2177_v48 = vpop.f32.mrf.mxu1 }
 0x3cc   : > { %v2088_v17 = vadd.f32 %v2087_v14, %v2059_v47  ;;  %v2200_v44 = vpop.f32.mrf.mxu2 }
 0x3ce   : > { %v4975_v47 = vadd.f32 %v2088_v17, %v1747_v9 }
 0x3d3   : > { %v2090_v35 = vpop.f32.mrf.mxu3  ;;  %v2180_v20 = vpop.f32.mrf.mxu1 }
 0x3d4   : > { %v2091_v36 = vadd.f32 %v2090_v35, %v4902_v24  ;;  %v1394_v24 = vadd.f32 %v4578_v29, %v1365_v21  ;;  %v1750_v29 = vadd.f32 %v4795_v60, %v1397_v3  ;;  %v2203_v52 = vpop.f32.mrf.mxu2 }
 0x3d6   : > { %v4997_v32 = vadd.f32 %v2091_v36, %v1748_v43  ;;  %v1749_v59 = vadd.f32 %v4789_v56, %v1394_v24 }
 0x3db   : > { %v2093_v63 = vpop.f32.mrf.mxu3  ;;  %v2276_v2 = vpop.f32.mrf.mxu1 }
 0x3dc   : > { %v2094_v0 = vadd.f32 %v2093_v63, %v4916_v10  ;;  %v2277_v12 = vadd.f32 %v2276_v2, %v2177_v48 }
 0x3de   : > { %v5005_v1 = vadd.f32 %v2094_v0, %v1749_v59  ;;  %2415 = vmatmul.f32.gmra.mxu3 %v2277_v12 }
 0x3e3   : > { %v2096_v49 = vpop.f32.mrf.mxu3  ;;  %v2279_v51 = vpop.f32.mrf.mxu1 }
 0x3e4   : > { %v2097_v19 = vadd.f32 %v2096_v49, %v4934_v6  ;;  %v2280_v62 = vadd.f32 %v2279_v51, %v2180_v20  ;;  %v2206_v6 = vpop.f32.mrf.mxu2 }
 0x3e6   : > { %v5011_v31 = vadd.f32 %v2097_v19, %v1750_v29  ;;  %2418 = vmatmul.f32.gmra.mxu3 %v2280_v62 }
 0x3eb   : > { %v2241_v56 = vpop.f32.mrf.mxu3  ;;  %v2299_v10 = vpop.f32.mrf.mxu1 }
 0x3ec   : > { %v2242_v34 = vadd.f32 %v2241_v56, %v4852_v61  ;;  %v2300_v8 = vadd.f32 %v2299_v10, %v2200_v44  ;;  %v2209_v61 = vpop.f32.mrf.mxu2 }
 0x3ee   : > { %2380 = vmatmul.f32.vlgmr.msra.gmra.mxu2 %v2242_v34  ;;  %2982 = vmatmul.msk.f32.vlgmr.msra.gmra.mxu0 %vm1200_vm11, %v2300_v8 }
 0x3f3   : > { %v2244_v7 = vpop.f32.mrf.mxu3  ;;  %v2302_v46 = vpop.f32.mrf.mxu1 }
 0x3f4   : > { %v2245_v42 = vadd.f32 %v2244_v7, %v4869_v5  ;;  %v2303_v60 = vadd.f32 %v2302_v46, %v2203_v52 }
 0x3f6   : > { %2383 = vmatmul.f32.gmra.mxu2 %v2245_v42  ;;  %2983 = vmatmul.msk.f32.gmra.mxu0 %vm1200_vm11, %v2303_v60 }
 0x3fb   : > { %v2247_v58 = vpop.f32.mrf.mxu3  ;;  %v2305_v57 = vpop.f32.mrf.mxu1 }
 0x3fc   : > { %v2248_v41 = vadd.f32 %v2247_v58, %v4886_v55  ;;  %v2306_v4 = vadd.f32 %v2305_v57, %v2206_v6  ;;  %v3005_v55 = vld [vmem:[%s5043_s5] ss:$0 sm:$0xff] }
 0x3fe   : > { %2386 = vmatmul.f32.gmra.mxu2 %v2248_v41  ;;  %2984 = vmatmul.msk.f32.gmra.mxu0 %vm1200_vm11, %v2306_v4 }
 0x403   : > { %v2250_v39 = vpop.f32.mrf.mxu3  ;;  %v2308_v54 = vpop.f32.mrf.mxu1 }
 0x404   : > { %v2251_v14 = vadd.f32 %v2250_v39, %v4894_v50  ;;  %v2309_v5 = vadd.f32 %v2308_v54, %v2209_v61 }
 0x406   : > { %2389 = vmatmul.f32.gmra.mxu2 %v2251_v14  ;;  %2985 = vmatmul.msk.f32.gmra.mxu0 %vm1200_vm11, %v2309_v5 }
 0x441   : > { %v2410_v18 = vpop.f32.mrf.mxu3 }
 0x449   : > { %v2413_v45 = vpop.f32.mrf.mxu3 }
 0x461   : > { %v2416_v27 = vpop.f32.mrf.mxu3 }
 0x469   : > { %v2419_v25 = vpop.f32.mrf.mxu3 }
 0x46b   : > { %v2439_v48 = vpop.f32.mrf.mxu0 }
 0x471   : > { %v2381_v9 = vpop.f32.mrf.mxu2 }
 0x472   : > { %v2411_v17 = vadd.f32 %v2410_v18, %v2381_v9 }
 0x473   : > { %v2442_v40 = vpop.f32.mrf.mxu0 }
 0x474   : > { %v2440_v28 = vadd.f32 %v2439_v48, %v2411_v17 }
 0x476   : > { %v2451_v16 = vadd.f32 %v2440_v28, %v4975_v47 }
 0x478   : > { %v2459_v30 = vadd.f32 %v3005_v55, %v2451_v16 }
 0x479   : > { %v2384_v50 = vpop.f32.mrf.mxu2 }
 0x47a   : > { %v2463_v13 = vmax.f32 %v2459_v30, 0.0  ;;  %v2414_v11 = vadd.f32 %v2413_v45, %v2384_v50 }
 0x47b   : > { %v2445_v35 = vpop.f32.mrf.mxu0 }
 0x47c   : > { %2468 = vst.msk [vmem:[%s271_s12] sm:$0xff] %vm2467_vm12, %v2463_v13  ;;  %v2443_v53 = vadd.f32 %v2442_v40, %v2414_v11 }
 0x47e   : > { %v2452_v26 = vadd.f32 %v2443_v53, %v4997_v32 }
 0x480   : > { %v2460_v20 = vadd.f32 %v3005_v55, %v2452_v26 }
 0x481   : > { %v2387_v37 = vpop.f32.mrf.mxu2 }
 0x482   : > { %v2464_v43 = vmax.f32 %v2460_v20, 0.0  ;;  %v2417_v47 = vadd.f32 %v2416_v27, %v2387_v37 }
 0x483   : > { %v2448_v33 = vpop.f32.mrf.mxu0 }
 0x484   : > { %2469 = vst.msk [vmem:[%s271_s12 + $0x8] sm:$0xff] %vm2467_vm12, %v2464_v43  ;;  %v2446_v36 = vadd.f32 %v2445_v35, %v2417_v47 }
 0x486   : > { %v2453_v38 = vadd.f32 %v2446_v36, %v5005_v1 }
 0x488   : > { %v2461_v15 = vadd.f32 %v3005_v55, %v2453_v38 }
 0x489   : > { %v2390_v21 = vpop.f32.mrf.mxu2 }
 0x48a   : > { %v2465_v24 = vmax.f32 %v2461_v15, 0.0  ;;  %v2420_v63 = vadd.f32 %v2419_v25, %v2390_v21 }
 0x48c   : > { %2470 = vst.msk [vmem:[%s271_s12 + $0x10] sm:$0xff] %vm2467_vm12, %v2465_v24  ;;  %v2449_v2 = vadd.f32 %v2448_v33, %v2420_v63 }
 0x48e   : > { %v2454_v32 = vadd.f32 %v2449_v2, %v5011_v31 }
 0x490   : > { %v2462_v23 = vadd.f32 %v3005_v55, %v2454_v32 }
 0x492   : > { %v2466_v59 = vmax.f32 %v2462_v23, 0.0 }
 0x494   : > { %2472 = vst.msk [vmem:[%s271_s12 + $0x18] sm:$0xf] %vm2471_vm13, %v2466_v59 }
 0x495 PF: > { %s16_s21 = sadd.s32 1, %s3012_s21  }
 0x496   : > { %p13_p4 = scmp.ge.s32.totalorder %s16_s21, 4  }
 0x498   :  { %15 = sbr.rel (!%p13_p4) target bundleno = 1 (0x1), region = 91 }

</bundles_post_ra>
